<compile_context>
chip_gen: v7x
topology: tpu7x:2x2x1
jax: 0.10.0
libtpu: 0.0.40
codegen_flags: <defaults>
</compile_context>

<pallas_src>
import functools
import math

import jax
import jax.numpy as jnp
from jax.experimental import pallas as pl
from jax.experimental.pallas import tpu as pltpu


def _round_up(a, b):
    return -(-a // b) * b


# ----------------------------------------------------------------------------
# Pallas kernels
# ----------------------------------------------------------------------------

def _conv_mm_kernel(*refs, has_res, apply_relu):
    """Tiled (M, K) x (K, Cout) matmul with fused BN / residual / ReLU.

    grid = (M_tiles, Cout_tiles, K_tiles); reduction axis K is last.
    Accumulates partial products in an f32 VMEM scratch; on the last K step
    applies BN scale/shift, optional residual add, ReLU, and stores bf16.
    """
    if has_res:
        p_ref, w_ref, scale_ref, shift_ref, res_ref, o_ref, acc_ref = refs
    else:
        p_ref, w_ref, scale_ref, shift_ref, o_ref, acc_ref = refs
        res_ref = None

    k = pl.program_id(2)
    nk = pl.num_programs(2)

    part = jnp.dot(p_ref[...], w_ref[...], preferred_element_type=jnp.float32)

    @pl.when(k == 0)
    def _init():
        acc_ref[...] = part

    @pl.when(k > 0)
    def _accum():
        acc_ref[...] += part

    @pl.when(k == nk - 1)
    def _finalize():
        y = acc_ref[...] * scale_ref[...] + shift_ref[...]
        if has_res:
            y = y + res_ref[...].astype(jnp.float32)
        if apply_relu:
            y = jnp.maximum(y, 0.0)
        o_ref[...] = y.astype(o_ref.dtype)


def _head_kernel(x_ref, scale_ref, shift_ref, w_ref, b_ref, o_ref):
    """end BN + ReLU + global average pool + Linear (tiny; single block)."""
    y = x_ref[...].astype(jnp.float32) * scale_ref[...] + shift_ref[...]
    y = jnp.maximum(y, 0.0)                                  # (N, HW, C)
    hw = y.shape[1]
    pooled = jnp.sum(y, axis=1) * (1.0 / hw)                 # (N, C)
    out = jnp.dot(pooled, w_ref[...], preferred_element_type=jnp.float32)
    o_ref[...] = (out + b_ref[...]).astype(o_ref.dtype)


# ----------------------------------------------------------------------------
# Glue: im2col, wrappers
# ----------------------------------------------------------------------------

def _im2col_3x3(x, stride):
    """x: (N, H, W, C) NHWC -> (N*Ho*Wo, 9*C) bf16 patches (single array)."""
    x = x.astype(jnp.bfloat16)
    N, H, W, C = x.shape
    xp = jnp.pad(x, ((0, 0), (1, 1), (1, 1), (0, 0)))
    Ho = (H + 2 - 3) // stride + 1
    Wo = (W + 2 - 3) // stride + 1
    span_h = (Ho - 1) * stride + 1
    span_w = (Wo - 1) * stride + 1
    cols = []
    for ky in range(3):
        for kx in range(3):
            t = xp[:, ky:ky + span_h:stride, kx:kx + span_w:stride, :]
            cols.append(t.reshape(N * Ho * Wo, C))
    # TODO(synk): patches still replicate activation bytes ~9x in HBM; a fully
    # im2col-free kernel (padded NHWC tile resident in VMEM + shifted views)
    # would cut conv-input HBM traffic further.
    return jnp.concatenate(cols, axis=1), (N, Ho, Wo)


_TM_MAX = 512   # M tile (big blocks; ~0.35us/step overhead amortized)
_TN_MAX = 256   # Cout tile (lane-dense, multiple of 128 where possible)
_TK_MAX = 2048  # max K tile (contraction depth per step)


def conv3x3_bn_act(x, w_hwio, bn_scale, bn_shift, *, stride=1,
                   residual=None, apply_relu=True):
    """Fused 3x3 conv (pad=1, no bias) + BN (eval) + optional residual + ReLU.

    Returns bf16 NHWC activations.
    """
    N, H, W, Cin = x.shape
    Cout = w_hwio.shape[-1]

    patches, (N, Ho, Wo) = _im2col_3x3(x, stride)      # (M, 9*Cin) bf16
    M, K = patches.shape

    # ---- tile selection (taps folded into K => big contraction, few steps) ----
    tm = min(_TM_MAX, _round_up(M, 16))
    Mp = _round_up(M, tm)

    tn = Cout if Cout <= _TN_MAX else _TN_MAX
    assert Cout % tn == 0, (Cout, tn)

    Kp0 = _round_up(K, 128)
    if Kp0 <= _TK_MAX + _TK_MAX // 2:
        tk, Kp = Kp0, Kp0
    else:
        nk = -(-Kp0 // _TK_MAX)
        tk = _round_up(-(-Kp0 // nk), 128)
        Kp = tk * nk

    # ---- pad operands to tile multiples (zero pad is matmul-neutral) ----
    if (Mp, Kp) != (M, K):
        patches = jnp.pad(patches, ((0, Mp - M), (0, Kp - K)))
    w2 = w_hwio.reshape(9 * Cin, Cout).astype(jnp.bfloat16)
    if Kp != K:
        w2 = jnp.pad(w2, ((0, Kp - K), (0, 0)))

    scale2 = bn_scale.reshape(1, Cout).astype(jnp.float32)
    shift2 = bn_shift.reshape(1, Cout).astype(jnp.float32)

    has_res = residual is not None
    inputs = [patches, w2, scale2, shift2]
    in_specs = [
        pl.BlockSpec((tm, tk), lambda i, j, kk: (i, kk)),
        pl.BlockSpec((tk, tn), lambda i, j, kk: (kk, j)),
        pl.BlockSpec((1, tn), lambda i, j, kk: (0, j)),
        pl.BlockSpec((1, tn), lambda i, j, kk: (0, j)),
    ]
    if has_res:
        res2 = residual.reshape(M, Cout).astype(jnp.bfloat16)
        if Mp != M:
            res2 = jnp.pad(res2, ((0, Mp - M), (0, 0)))
        inputs.append(res2)
        in_specs.append(pl.BlockSpec((tm, tn), lambda i, j, kk: (i, j)))

    grid = (Mp // tm, Cout // tn, Kp // tk)
    kern = functools.partial(_conv_mm_kernel, has_res=has_res,
                             apply_relu=apply_relu)
    out = pl.pallas_call(
        kern,
        grid=grid,
        in_specs=in_specs,
        out_specs=pl.BlockSpec((tm, tn), lambda i, j, kk: (i, j)),
        out_shape=jax.ShapeDtypeStruct((Mp, Cout), jnp.bfloat16),
        scratch_shapes=[pltpu.VMEM((tm, tn), jnp.float32)],
        compiler_params=pltpu.CompilerParams(
            dimension_semantics=("parallel", "parallel", "arbitrary"),
            vmem_limit_bytes=32 * 1024 * 1024),
    )(*inputs)

    out = out[:M]
    return out.reshape(N, Ho, Wo, Cout)


def head(x, bn_scale, bn_shift, fc_w, fc_b):
    """end_bn_relu + AdaptiveAvgPool2d(1) + flatten + Linear."""
    N, H, W, C = x.shape
    ncls = fc_w.shape[1]
    xr = x.reshape(N, H * W, C)
    vmem = lambda: pl.BlockSpec(memory_space=pltpu.MemorySpace.VMEM)
    return pl.pallas_call(
        _head_kernel,
        in_specs=[vmem() for _ in range(5)],
        out_specs=vmem(),
        out_shape=jax.ShapeDtypeStruct((N, ncls), jnp.float32),
    )(xr,
      bn_scale.reshape(1, 1, C).astype(jnp.float32),
      bn_shift.reshape(1, 1, C).astype(jnp.float32),
      fc_w.astype(jnp.float32),
      fc_b.reshape(1, ncls).astype(jnp.float32))


# ----------------------------------------------------------------------------
# Model: parameter init (mirrors ResNet._init_weights) and forward
# ----------------------------------------------------------------------------

def _bn_fold(c, eps=1e-5):
    gamma = jnp.ones((c,), jnp.float32)
    beta = jnp.zeros((c,), jnp.float32)
    running_mean = jnp.zeros((c,), jnp.float32)
    running_var = jnp.ones((c,), jnp.float32)
    s = gamma / jnp.sqrt(running_var + eps)
    return s, beta - running_mean * s


def init_resnet_params(key, nblocks=(1, 1, 1), num_classes=10):
    width = [64, 128, 256]
    keys = list(jax.random.split(key, 64))
    kit = iter(keys)

    def conv3x3(cin, cout):
        std = math.sqrt(2.0 / (3 * 3 * cout))
        return jax.random.normal(next(kit), (3, 3, cin, cout), jnp.float32) * std

    params = {
        "pre_w": conv3x3(3, width[0]),
        "pre_bn": _bn_fold(width[0]),
    }

    blocks = []
    in_planes = width[0]
    for planes, nb, stride in zip(width, nblocks, (1, 2, 2)):
        for bi in range(nb):
            s = stride if bi == 0 else 1
            shortcut = 1 if (s != 1 or in_planes != planes) else 0
            blocks.append(dict(
                w1=conv3x3(in_planes, planes), bn1=_bn_fold(planes),
                w2=conv3x3(planes, planes), bn2=_bn_fold(planes),
                stride=s, shortcut=shortcut,
            ))
            in_planes = planes
    params["blocks"] = blocks
    params["end_bn"] = _bn_fold(width[2])

    bound = 1.0 / math.sqrt(width[2])
    params["fc_w"] = jax.random.uniform(next(kit), (width[2], num_classes),
                                        jnp.float32, -bound, bound)
    params["fc_b"] = jax.random.uniform(next(kit), (num_classes,),
                                        jnp.float32, -bound, bound)
    return params


def basic_block(x, blk):
    s1, b1 = blk["bn1"]
    s2, b2 = blk["bn2"]
    y = conv3x3_bn_act(x, blk["w1"], s1, b1, stride=blk["stride"],
                       apply_relu=True)
    if blk["shortcut"]:
        N, H, W, C = x.shape
        pooled = x.astype(jnp.float32).reshape(
            N, H // 2, 2, W // 2, 2, C).mean(axis=(2, 4))      # AvgPool2d(2)
        residual = jnp.concatenate([pooled, jnp.zeros_like(pooled)], axis=-1)
    else:
        residual = x
    y = conv3x3_bn_act(y, blk["w2"], s2, b2, stride=1,
                       residual=residual, apply_relu=True)
    return y


def resnet_forward(params, x_nchw):
    # normal_obj is None -> normalize() treated as identity.
    x = jnp.transpose(x_nchw, (0, 2, 3, 1)).astype(jnp.float32)  # NCHW -> NHWC
    s, b = params["pre_bn"]
    x = conv3x3_bn_act(x, params["pre_w"], s, b, stride=1, apply_relu=True)
    for blk in params["blocks"]:
        x = basic_block(x, blk)
    s, b = params["end_bn"]
    return head(x, s, b, params["fc_w"], params["fc_b"])


# ----------------------------------------------------------------------------
# Main
# ----------------------------------------------------------------------------

if __name__ == "__main__":
    key = jax.random.PRNGKey(0)
    pkey, xkey = jax.random.split(key)

    num_classes = 10
    params = init_resnet_params(pkey, nblocks=(1, 1, 1),
                                num_classes=num_classes)

    # PyTorch-style NCHW input: batch=2, 3 channels, 16x16 spatial.
    x = jax.random.normal(xkey, (2, 3, 16, 16), jnp.float32)

    fwd = jax.jit(functools.partial(resnet_forward, params))
    out = fwd(x)
    jax.block_until_ready(out)

    assert out.shape == (2, num_classes), out.shape
    assert bool(jnp.all(jnp.isfinite(out)))
    print("KERNEL_OK")
</pallas_src>

<mosaic_0001>
module attributes {stable_mosaic.version = 11 : i64} {
  func.func @_conv_mm_kernel(%arg0: i32, %arg1: i32, %arg2: i32, %arg3: memref<512x128xbf16, #tpu.memory_space<vmem>>, %arg4: memref<128x64xbf16, #tpu.memory_space<vmem>>, %arg5: memref<1x64xf32, #tpu.memory_space<vmem>>, %arg6: memref<1x64xf32, #tpu.memory_space<vmem>>, %arg7: memref<512x64xbf16, #tpu.memory_space<vmem>>, %arg8: memref<512x64xf32, #tpu.memory_space<vmem>>) attributes {dimension_semantics = [#tpu.dimension_semantics<parallel>, #tpu.dimension_semantics<parallel>, #tpu.dimension_semantics<arbitrary>], iteration_bounds = array<i64: 1, 1, 1>, scalar_prefetch = 0 : i64, scratch_operands = 1 : i64, tpu.core_type = #tpu.core_type<tc>, window_params = [{transform_indices = @transform_0, window_bounds = array<i64: 512, 128>}, {transform_indices = @transform_1, window_bounds = array<i64: 128, 64>}, {transform_indices = @transform_2, window_bounds = array<i64: 1, 64>}, {transform_indices = @transform_3, window_bounds = array<i64: 1, 64>}, {transform_indices = @transform_4, window_bounds = array<i64: 512, 64>}]} {
    %c0 = arith.constant 0 : index
    %c0_0 = arith.constant 0 : index
    %0 = vector.load %arg3[%c0, %c0_0] : memref<512x128xbf16, #tpu.memory_space<vmem>>, vector<512x128xbf16>
    %c0_1 = arith.constant 0 : index
    %c0_2 = arith.constant 0 : index
    %1 = vector.load %arg4[%c0_1, %c0_2] : memref<128x64xbf16, #tpu.memory_space<vmem>>, vector<128x64xbf16>
    %cst = arith.constant dense<0.000000e+00> : vector<512x64xf32>
    %2 = tpu.matmul %0, %1, %cst {dimension_numbers = #tpu.dot_dimension_numbers<[1], [0], [0], [1], [0, 0, 1, 1], [], []>} : vector<512x128xbf16>, vector<128x64xbf16>, vector<512x64xf32> -> vector<512x64xf32>
    %c0_i32 = arith.constant 0 : i32
    %3 = arith.cmpi eq, %arg2, %c0_i32 : i32
    %4 = arith.extui %3 : i1 to i32
    %c0_i32_3 = arith.constant 0 : i32
    %5 = arith.cmpi ne, %4, %c0_i32_3 : i32
    scf.if %5 {
      %c0_8 = arith.constant 0 : index
      %c0_9 = arith.constant 0 : index
      %12 = vector.load %arg8[%c0_8, %c0_9] : memref<512x64xf32, #tpu.memory_space<vmem>>, vector<512x64xf32>
      tpu.vector_store %arg8[%c0_8, %c0_9], %2 {strides = array<i32>} : memref<512x64xf32, #tpu.memory_space<vmem>>, vector<512x64xf32>,
    } else {
    }
    %c0_i32_4 = arith.constant 0 : i32
    %6 = arith.cmpi sgt, %arg2, %c0_i32_4 : i32
    %7 = arith.extui %6 : i1 to i32
    %c0_i32_5 = arith.constant 0 : i32
    %8 = arith.cmpi ne, %7, %c0_i32_5 : i32
    scf.if %8 {
      %c0_8 = arith.constant 0 : index
      %c0_9 = arith.constant 0 : index
      %12 = vector.load %arg8[%c0_8, %c0_9] : memref<512x64xf32, #tpu.memory_space<vmem>>, vector<512x64xf32>
      %13 = arith.addf %12, %2 : vector<512x64xf32>
      %c0_10 = arith.constant 0 : index
      %c0_11 = arith.constant 0 : index
      %14 = vector.load %arg8[%c0_10, %c0_11] : memref<512x64xf32, #tpu.memory_space<vmem>>, vector<512x64xf32>
      tpu.vector_store %arg8[%c0_10, %c0_11], %13 {strides = array<i32>} : memref<512x64xf32, #tpu.memory_space<vmem>>, vector<512x64xf32>,
    } else {
    }
    %c0_i32_6 = arith.constant 0 : i32
    %9 = arith.cmpi eq, %arg2, %c0_i32_6 : i32
    %10 = arith.extui %9 : i1 to i32
    %c0_i32_7 = arith.constant 0 : i32
    %11 = arith.cmpi ne, %10, %c0_i32_7 : i32
    scf.if %11 {
      %c0_8 = arith.constant 0 : index
      %c0_9 = arith.constant 0 : index
      %12 = vector.load %arg8[%c0_8, %c0_9] : memref<512x64xf32, #tpu.memory_space<vmem>>, vector<512x64xf32>
      %c0_10 = arith.constant 0 : index
      %c0_11 = arith.constant 0 : index
      %13 = vector.load %arg5[%c0_10, %c0_11] : memref<1x64xf32, #tpu.memory_space<vmem>>, vector<1x64xf32>
      %14 = vector.broadcast %13 : vector<1x64xf32> to vector<512x64xf32>
      %15 = arith.mulf %12, %14 : vector<512x64xf32>
      %c0_12 = arith.constant 0 : index
      %c0_13 = arith.constant 0 : index
      %16 = vector.load %arg6[%c0_12, %c0_13] : memref<1x64xf32, #tpu.memory_space<vmem>>, vector<1x64xf32>
      %17 = vector.broadcast %16 : vector<1x64xf32> to vector<512x64xf32>
      %18 = arith.addf %15, %17 : vector<512x64xf32>
      %cst_14 = arith.constant 0.000000e+00 : f32
      %19 = vector.broadcast %cst_14 : f32 to vector<512x64xf32>
      %20 = arith.maximumf %18, %19 : vector<512x64xf32>
      %21 = arith.truncf %20 : vector<512x64xf32> to vector<512x64xbf16>
      %c0_15 = arith.constant 0 : index
      %c0_16 = arith.constant 0 : index
      %22 = vector.load %arg7[%c0_15, %c0_16] : memref<512x64xbf16, #tpu.memory_space<vmem>>, vector<512x64xbf16>
      tpu.vector_store %arg7[%c0_15, %c0_16], %21 {strides = array<i32>} : memref<512x64xbf16, #tpu.memory_space<vmem>>, vector<512x64xbf16>,
    } else {
    }
    return
  }
  func.func @transform_0(%arg0: i32, %arg1: i32, %arg2: i32) -> (i32, i32) {
    %c0_i32 = arith.constant 0 : i32
    return %arg0, %arg2 : i32, i32
  }
  func.func @transform_1(%arg0: i32, %arg1: i32, %arg2: i32) -> (i32, i32) {
    %c0_i32 = arith.constant 0 : i32
    return %arg2, %arg1 : i32, i32
  }
  func.func @transform_2(%arg0: i32, %arg1: i32, %arg2: i32) -> (i32, i32) {
    %c0_i32 = arith.constant 0 : i32
    %c0_i32_0 = arith.constant 0 : i32
    return %c0_i32, %arg1 : i32, i32
  }
  func.func @transform_3(%arg0: i32, %arg1: i32, %arg2: i32) -> (i32, i32) {
    %c0_i32 = arith.constant 0 : i32
    %c0_i32_0 = arith.constant 0 : i32
    return %c0_i32, %arg1 : i32, i32
  }
  func.func @transform_4(%arg0: i32, %arg1: i32, %arg2: i32) -> (i32, i32) {
    %c0_i32 = arith.constant 0 : i32
    return %arg0, %arg1 : i32, i32
  }
}

module attributes {stable_mosaic.version = 11 : i64} {
  func.func @_conv_mm_kernel(%arg0: i32, %arg1: i32, %arg2: i32, %arg3: memref<512x640xbf16, #tpu.memory_space<vmem>>, %arg4: memref<640x64xbf16, #tpu.memory_space<vmem>>, %arg5: memref<1x64xf32, #tpu.memory_space<vmem>>, %arg6: memref<1x64xf32, #tpu.memory_space<vmem>>, %arg7: memref<512x64xbf16, #tpu.memory_space<vmem>>, %arg8: memref<512x64xf32, #tpu.memory_space<vmem>>) attributes {dimension_semantics = [#tpu.dimension_semantics<parallel>, #tpu.dimension_semantics<parallel>, #tpu.dimension_semantics<arbitrary>], iteration_bounds = array<i64: 1, 1, 1>, scalar_prefetch = 0 : i64, scratch_operands = 1 : i64, tpu.core_type = #tpu.core_type<tc>, window_params = [{transform_indices = @transform_0, window_bounds = array<i64: 512, 640>}, {transform_indices = @transform_1, window_bounds = array<i64: 640, 64>}, {transform_indices = @transform_2, window_bounds = array<i64: 1, 64>}, {transform_indices = @transform_3, window_bounds = array<i64: 1, 64>}, {transform_indices = @transform_4, window_bounds = array<i64: 512, 64>}]} {
    %c0 = arith.constant 0 : index
    %c0_0 = arith.constant 0 : index
    %0 = vector.load %arg3[%c0, %c0_0] : memref<512x640xbf16, #tpu.memory_space<vmem>>, vector<512x640xbf16>
    %c0_1 = arith.constant 0 : index
    %c0_2 = arith.constant 0 : index
    %1 = vector.load %arg4[%c0_1, %c0_2] : memref<640x64xbf16, #tpu.memory_space<vmem>>, vector<640x64xbf16>
    %cst = arith.constant dense<0.000000e+00> : vector<512x64xf32>
    %2 = tpu.matmul %0, %1, %cst {dimension_numbers = #tpu.dot_dimension_numbers<[1], [0], [0], [1], [0, 0, 1, 1], [], []>} : vector<512x640xbf16>, vector<640x64xbf16>, vector<512x64xf32> -> vector<512x64xf32>
    %c0_i32 = arith.constant 0 : i32
    %3 = arith.cmpi eq, %arg2, %c0_i32 : i32
    %4 = arith.extui %3 : i1 to i32
    %c0_i32_3 = arith.constant 0 : i32
    %5 = arith.cmpi ne, %4, %c0_i32_3 : i32
    scf.if %5 {
      %c0_8 = arith.constant 0 : index
      %c0_9 = arith.constant 0 : index
      %12 = vector.load %arg8[%c0_8, %c0_9] : memref<512x64xf32, #tpu.memory_space<vmem>>, vector<512x64xf32>
      tpu.vector_store %arg8[%c0_8, %c0_9], %2 {strides = array<i32>} : memref<512x64xf32, #tpu.memory_space<vmem>>, vector<512x64xf32>,
    } else {
    }
    %c0_i32_4 = arith.constant 0 : i32
    %6 = arith.cmpi sgt, %arg2, %c0_i32_4 : i32
    %7 = arith.extui %6 : i1 to i32
    %c0_i32_5 = arith.constant 0 : i32
    %8 = arith.cmpi ne, %7, %c0_i32_5 : i32
    scf.if %8 {
      %c0_8 = arith.constant 0 : index
      %c0_9 = arith.constant 0 : index
      %12 = vector.load %arg8[%c0_8, %c0_9] : memref<512x64xf32, #tpu.memory_space<vmem>>, vector<512x64xf32>
      %13 = arith.addf %12, %2 : vector<512x64xf32>
      %c0_10 = arith.constant 0 : index
      %c0_11 = arith.constant 0 : index
      %14 = vector.load %arg8[%c0_10, %c0_11] : memref<512x64xf32, #tpu.memory_space<vmem>>, vector<512x64xf32>
      tpu.vector_store %arg8[%c0_10, %c0_11], %13 {strides = array<i32>} : memref<512x64xf32, #tpu.memory_space<vmem>>, vector<512x64xf32>,
    } else {
    }
    %c0_i32_6 = arith.constant 0 : i32
    %9 = arith.cmpi eq, %arg2, %c0_i32_6 : i32
    %10 = arith.extui %9 : i1 to i32
    %c0_i32_7 = arith.constant 0 : i32
    %11 = arith.cmpi ne, %10, %c0_i32_7 : i32
    scf.if %11 {
      %c0_8 = arith.constant 0 : index
      %c0_9 = arith.constant 0 : index
      %12 = vector.load %arg8[%c0_8, %c0_9] : memref<512x64xf32, #tpu.memory_space<vmem>>, vector<512x64xf32>
      %c0_10 = arith.constant 0 : index
      %c0_11 = arith.constant 0 : index
      %13 = vector.load %arg5[%c0_10, %c0_11] : memref<1x64xf32, #tpu.memory_space<vmem>>, vector<1x64xf32>
      %14 = vector.broadcast %13 : vector<1x64xf32> to vector<512x64xf32>
      %15 = arith.mulf %12, %14 : vector<512x64xf32>
      %c0_12 = arith.constant 0 : index
      %c0_13 = arith.constant 0 : index
      %16 = vector.load %arg6[%c0_12, %c0_13] : memref<1x64xf32, #tpu.memory_space<vmem>>, vector<1x64xf32>
      %17 = vector.broadcast %16 : vector<1x64xf32> to vector<512x64xf32>
      %18 = arith.addf %15, %17 : vector<512x64xf32>
      %cst_14 = arith.constant 0.000000e+00 : f32
      %19 = vector.broadcast %cst_14 : f32 to vector<512x64xf32>
      %20 = arith.maximumf %18, %19 : vector<512x64xf32>
      %21 = arith.truncf %20 : vector<512x64xf32> to vector<512x64xbf16>
      %c0_15 = arith.constant 0 : index
      %c0_16 = arith.constant 0 : index
      %22 = vector.load %arg7[%c0_15, %c0_16] : memref<512x64xbf16, #tpu.memory_space<vmem>>, vector<512x64xbf16>
      tpu.vector_store %arg7[%c0_15, %c0_16], %21 {strides = array<i32>} : memref<512x64xbf16, #tpu.memory_space<vmem>>, vector<512x64xbf16>,
    } else {
    }
    return
  }
  func.func @transform_0(%arg0: i32, %arg1: i32, %arg2: i32) -> (i32, i32) {
    %c0_i32 = arith.constant 0 : i32
    return %arg0, %arg2 : i32, i32
  }
  func.func @transform_1(%arg0: i32, %arg1: i32, %arg2: i32) -> (i32, i32) {
    %c0_i32 = arith.constant 0 : i32
    return %arg2, %arg1 : i32, i32
  }
  func.func @transform_2(%arg0: i32, %arg1: i32, %arg2: i32) -> (i32, i32) {
    %c0_i32 = arith.constant 0 : i32
    %c0_i32_0 = arith.constant 0 : i32
    return %c0_i32, %arg1 : i32, i32
  }
  func.func @transform_3(%arg0: i32, %arg1: i32, %arg2: i32) -> (i32, i32) {
    %c0_i32 = arith.constant 0 : i32
    %c0_i32_0 = arith.constant 0 : i32
    return %c0_i32, %arg1 : i32, i32
  }
  func.func @transform_4(%arg0: i32, %arg1: i32, %arg2: i32) -> (i32, i32) {
    %c0_i32 = arith.constant 0 : i32
    return %arg0, %arg1 : i32, i32
  }
}

module attributes {stable_mosaic.version = 11 : i64} {
  func.func @_conv_mm_kernel(%arg0: i32, %arg1: i32, %arg2: i32, %arg3: memref<512x640xbf16, #tpu.memory_space<vmem>>, %arg4: memref<640x64xbf16, #tpu.memory_space<vmem>>, %arg5: memref<1x64xf32, #tpu.memory_space<vmem>>, %arg6: memref<1x64xf32, #tpu.memory_space<vmem>>, %arg7: memref<512x64xbf16, #tpu.memory_space<vmem>>, %arg8: memref<512x64xbf16, #tpu.memory_space<vmem>>, %arg9: memref<512x64xf32, #tpu.memory_space<vmem>>) attributes {dimension_semantics = [#tpu.dimension_semantics<parallel>, #tpu.dimension_semantics<parallel>, #tpu.dimension_semantics<arbitrary>], iteration_bounds = array<i64: 1, 1, 1>, scalar_prefetch = 0 : i64, scratch_operands = 1 : i64, tpu.core_type = #tpu.core_type<tc>, window_params = [{transform_indices = @transform_0, window_bounds = array<i64: 512, 640>}, {transform_indices = @transform_1, window_bounds = array<i64: 640, 64>}, {transform_indices = @transform_2, window_bounds = array<i64: 1, 64>}, {transform_indices = @transform_3, window_bounds = array<i64: 1, 64>}, {transform_indices = @transform_4, window_bounds = array<i64: 512, 64>}, {transform_indices = @transform_5, window_bounds = array<i64: 512, 64>}]} {
    %c0 = arith.constant 0 : index
    %c0_0 = arith.constant 0 : index
    %0 = vector.load %arg3[%c0, %c0_0] : memref<512x640xbf16, #tpu.memory_space<vmem>>, vector<512x640xbf16>
    %c0_1 = arith.constant 0 : index
    %c0_2 = arith.constant 0 : index
    %1 = vector.load %arg4[%c0_1, %c0_2] : memref<640x64xbf16, #tpu.memory_space<vmem>>, vector<640x64xbf16>
    %cst = arith.constant dense<0.000000e+00> : vector<512x64xf32>
    %2 = tpu.matmul %0, %1, %cst {dimension_numbers = #tpu.dot_dimension_numbers<[1], [0], [0], [1], [0, 0, 1, 1], [], []>} : vector<512x640xbf16>, vector<640x64xbf16>, vector<512x64xf32> -> vector<512x64xf32>
    %c0_i32 = arith.constant 0 : i32
    %3 = arith.cmpi eq, %arg2, %c0_i32 : i32
    %4 = arith.extui %3 : i1 to i32
    %c0_i32_3 = arith.constant 0 : i32
    %5 = arith.cmpi ne, %4, %c0_i32_3 : i32
    scf.if %5 {
      %c0_8 = arith.constant 0 : index
      %c0_9 = arith.constant 0 : index
      %12 = vector.load %arg9[%c0_8, %c0_9] : memref<512x64xf32, #tpu.memory_space<vmem>>, vector<512x64xf32>
      tpu.vector_store %arg9[%c0_8, %c0_9], %2 {strides = array<i32>} : memref<512x64xf32, #tpu.memory_space<vmem>>, vector<512x64xf32>,
    } else {
    }
    %c0_i32_4 = arith.constant 0 : i32
    %6 = arith.cmpi sgt, %arg2, %c0_i32_4 : i32
    %7 = arith.extui %6 : i1 to i32
    %c0_i32_5 = arith.constant 0 : i32
    %8 = arith.cmpi ne, %7, %c0_i32_5 : i32
    scf.if %8 {
      %c0_8 = arith.constant 0 : index
      %c0_9 = arith.constant 0 : index
      %12 = vector.load %arg9[%c0_8, %c0_9] : memref<512x64xf32, #tpu.memory_space<vmem>>, vector<512x64xf32>
      %13 = arith.addf %12, %2 : vector<512x64xf32>
      %c0_10 = arith.constant 0 : index
      %c0_11 = arith.constant 0 : index
      %14 = vector.load %arg9[%c0_10, %c0_11] : memref<512x64xf32, #tpu.memory_space<vmem>>, vector<512x64xf32>
      tpu.vector_store %arg9[%c0_10, %c0_11], %13 {strides = array<i32>} : memref<512x64xf32, #tpu.memory_space<vmem>>, vector<512x64xf32>,
    } else {
    }
    %c0_i32_6 = arith.constant 0 : i32
    %9 = arith.cmpi eq, %arg2, %c0_i32_6 : i32
    %10 = arith.extui %9 : i1 to i32
    %c0_i32_7 = arith.constant 0 : i32
    %11 = arith.cmpi ne, %10, %c0_i32_7 : i32
    scf.if %11 {
      %c0_8 = arith.constant 0 : index
      %c0_9 = arith.constant 0 : index
      %12 = vector.load %arg9[%c0_8, %c0_9] : memref<512x64xf32, #tpu.memory_space<vmem>>, vector<512x64xf32>
      %c0_10 = arith.constant 0 : index
      %c0_11 = arith.constant 0 : index
      %13 = vector.load %arg5[%c0_10, %c0_11] : memref<1x64xf32, #tpu.memory_space<vmem>>, vector<1x64xf32>
      %14 = vector.broadcast %13 : vector<1x64xf32> to vector<512x64xf32>
      %15 = arith.mulf %12, %14 : vector<512x64xf32>
      %c0_12 = arith.constant 0 : index
      %c0_13 = arith.constant 0 : index
      %16 = vector.load %arg6[%c0_12, %c0_13] : memref<1x64xf32, #tpu.memory_space<vmem>>, vector<1x64xf32>
      %17 = vector.broadcast %16 : vector<1x64xf32> to vector<512x64xf32>
      %18 = arith.addf %15, %17 : vector<512x64xf32>
      %c0_14 = arith.constant 0 : index
      %c0_15 = arith.constant 0 : index
      %19 = vector.load %arg7[%c0_14, %c0_15] : memref<512x64xbf16, #tpu.memory_space<vmem>>, vector<512x64xbf16>
      %20 = arith.extf %19 : vector<512x64xbf16> to vector<512x64xf32>
      %21 = arith.addf %18, %20 : vector<512x64xf32>
      %cst_16 = arith.constant 0.000000e+00 : f32
      %22 = vector.broadcast %cst_16 : f32 to vector<512x64xf32>
      %23 = arith.maximumf %21, %22 : vector<512x64xf32>
      %24 = arith.truncf %23 : vector<512x64xf32> to vector<512x64xbf16>
      %c0_17 = arith.constant 0 : index
      %c0_18 = arith.constant 0 : index
      %25 = vector.load %arg8[%c0_17, %c0_18] : memref<512x64xbf16, #tpu.memory_space<vmem>>, vector<512x64xbf16>
      tpu.vector_store %arg8[%c0_17, %c0_18], %24 {strides = array<i32>} : memref<512x64xbf16, #tpu.memory_space<vmem>>, vector<512x64xbf16>,
    } else {
    }
    return
  }
  func.func @transform_0(%arg0: i32, %arg1: i32, %arg2: i32) -> (i32, i32) {
    %c0_i32 = arith.constant 0 : i32
    return %arg0, %arg2 : i32, i32
  }
  func.func @transform_1(%arg0: i32, %arg1: i32, %arg2: i32) -> (i32, i32) {
    %c0_i32 = arith.constant 0 : i32
    return %arg2, %arg1 : i32, i32
  }
  func.func @transform_2(%arg0: i32, %arg1: i32, %arg2: i32) -> (i32, i32) {
    %c0_i32 = arith.constant 0 : i32
    %c0_i32_0 = arith.constant 0 : i32
    return %c0_i32, %arg1 : i32, i32
  }
  func.func @transform_3(%arg0: i32, %arg1: i32, %arg2: i32) -> (i32, i32) {
    %c0_i32 = arith.constant 0 : i32
    %c0_i32_0 = arith.constant 0 : i32
    return %c0_i32, %arg1 : i32, i32
  }
  func.func @transform_4(%arg0: i32, %arg1: i32, %arg2: i32) -> (i32, i32) {
    %c0_i32 = arith.constant 0 : i32
    return %arg0, %arg1 : i32, i32
  }
  func.func @transform_5(%arg0: i32, %arg1: i32, %arg2: i32) -> (i32, i32) {
    %c0_i32 = arith.constant 0 : i32
    return %arg0, %arg1 : i32, i32
  }
}

module attributes {stable_mosaic.version = 11 : i64} {
  func.func @_conv_mm_kernel(%arg0: i32, %arg1: i32, %arg2: i32, %arg3: memref<128x640xbf16, #tpu.memory_space<vmem>>, %arg4: memref<640x128xbf16, #tpu.memory_space<vmem>>, %arg5: memref<1x128xf32, #tpu.memory_space<vmem>>, %arg6: memref<1x128xf32, #tpu.memory_space<vmem>>, %arg7: memref<128x128xbf16, #tpu.memory_space<vmem>>, %arg8: memref<128x128xf32, #tpu.memory_space<vmem>>) attributes {dimension_semantics = [#tpu.dimension_semantics<parallel>, #tpu.dimension_semantics<parallel>, #tpu.dimension_semantics<arbitrary>], iteration_bounds = array<i64: 1, 1, 1>, scalar_prefetch = 0 : i64, scratch_operands = 1 : i64, tpu.core_type = #tpu.core_type<tc>, window_params = [{transform_indices = @transform_0, window_bounds = array<i64: 128, 640>}, {transform_indices = @transform_1, window_bounds = array<i64: 640, 128>}, {transform_indices = @transform_2, window_bounds = array<i64: 1, 128>}, {transform_indices = @transform_3, window_bounds = array<i64: 1, 128>}, {transform_indices = @transform_4, window_bounds = array<i64: 128, 128>}]} {
    %c0 = arith.constant 0 : index
    %c0_0 = arith.constant 0 : index
    %0 = vector.load %arg3[%c0, %c0_0] : memref<128x640xbf16, #tpu.memory_space<vmem>>, vector<128x640xbf16>
    %c0_1 = arith.constant 0 : index
    %c0_2 = arith.constant 0 : index
    %1 = vector.load %arg4[%c0_1, %c0_2] : memref<640x128xbf16, #tpu.memory_space<vmem>>, vector<640x128xbf16>
    %cst = arith.constant dense<0.000000e+00> : vector<128x128xf32>
    %2 = tpu.matmul %0, %1, %cst {dimension_numbers = #tpu.dot_dimension_numbers<[1], [0], [0], [1], [0, 0, 1, 1], [], []>} : vector<128x640xbf16>, vector<640x128xbf16>, vector<128x128xf32> -> vector<128x128xf32>
    %c0_i32 = arith.constant 0 : i32
    %3 = arith.cmpi eq, %arg2, %c0_i32 : i32
    %4 = arith.extui %3 : i1 to i32
    %c0_i32_3 = arith.constant 0 : i32
    %5 = arith.cmpi ne, %4, %c0_i32_3 : i32
    scf.if %5 {
      %c0_8 = arith.constant 0 : index
      %c0_9 = arith.constant 0 : index
      %12 = vector.load %arg8[%c0_8, %c0_9] : memref<128x128xf32, #tpu.memory_space<vmem>>, vector<128x128xf32>
      tpu.vector_store %arg8[%c0_8, %c0_9], %2 {strides = array<i32>} : memref<128x128xf32, #tpu.memory_space<vmem>>, vector<128x128xf32>,
    } else {
    }
    %c0_i32_4 = arith.constant 0 : i32
    %6 = arith.cmpi sgt, %arg2, %c0_i32_4 : i32
    %7 = arith.extui %6 : i1 to i32
    %c0_i32_5 = arith.constant 0 : i32
    %8 = arith.cmpi ne, %7, %c0_i32_5 : i32
    scf.if %8 {
      %c0_8 = arith.constant 0 : index
      %c0_9 = arith.constant 0 : index
      %12 = vector.load %arg8[%c0_8, %c0_9] : memref<128x128xf32, #tpu.memory_space<vmem>>, vector<128x128xf32>
      %13 = arith.addf %12, %2 : vector<128x128xf32>
      %c0_10 = arith.constant 0 : index
      %c0_11 = arith.constant 0 : index
      %14 = vector.load %arg8[%c0_10, %c0_11] : memref<128x128xf32, #tpu.memory_space<vmem>>, vector<128x128xf32>
      tpu.vector_store %arg8[%c0_10, %c0_11], %13 {strides = array<i32>} : memref<128x128xf32, #tpu.memory_space<vmem>>, vector<128x128xf32>,
    } else {
    }
    %c0_i32_6 = arith.constant 0 : i32
    %9 = arith.cmpi eq, %arg2, %c0_i32_6 : i32
    %10 = arith.extui %9 : i1 to i32
    %c0_i32_7 = arith.constant 0 : i32
    %11 = arith.cmpi ne, %10, %c0_i32_7 : i32
    scf.if %11 {
      %c0_8 = arith.constant 0 : index
      %c0_9 = arith.constant 0 : index
      %12 = vector.load %arg8[%c0_8, %c0_9] : memref<128x128xf32, #tpu.memory_space<vmem>>, vector<128x128xf32>
      %c0_10 = arith.constant 0 : index
      %c0_11 = arith.constant 0 : index
      %13 = vector.load %arg5[%c0_10, %c0_11] : memref<1x128xf32, #tpu.memory_space<vmem>>, vector<1x128xf32>
      %14 = vector.broadcast %13 : vector<1x128xf32> to vector<128x128xf32>
      %15 = arith.mulf %12, %14 : vector<128x128xf32>
      %c0_12 = arith.constant 0 : index
      %c0_13 = arith.constant 0 : index
      %16 = vector.load %arg6[%c0_12, %c0_13] : memref<1x128xf32, #tpu.memory_space<vmem>>, vector<1x128xf32>
      %17 = vector.broadcast %16 : vector<1x128xf32> to vector<128x128xf32>
      %18 = arith.addf %15, %17 : vector<128x128xf32>
      %cst_14 = arith.constant 0.000000e+00 : f32
      %19 = vector.broadcast %cst_14 : f32 to vector<128x128xf32>
      %20 = arith.maximumf %18, %19 : vector<128x128xf32>
      %21 = arith.truncf %20 : vector<128x128xf32> to vector<128x128xbf16>
      %c0_15 = arith.constant 0 : index
      %c0_16 = arith.constant 0 : index
      %22 = vector.load %arg7[%c0_15, %c0_16] : memref<128x128xbf16, #tpu.memory_space<vmem>>, vector<128x128xbf16>
      tpu.vector_store %arg7[%c0_15, %c0_16], %21 {strides = array<i32>} : memref<128x128xbf16, #tpu.memory_space<vmem>>, vector<128x128xbf16>,
    } else {
    }
    return
  }
  func.func @transform_0(%arg0: i32, %arg1: i32, %arg2: i32) -> (i32, i32) {
    %c0_i32 = arith.constant 0 : i32
    return %arg0, %arg2 : i32, i32
  }
  func.func @transform_1(%arg0: i32, %arg1: i32, %arg2: i32) -> (i32, i32) {
    %c0_i32 = arith.constant 0 : i32
    return %arg2, %arg1 : i32, i32
  }
  func.func @transform_2(%arg0: i32, %arg1: i32, %arg2: i32) -> (i32, i32) {
    %c0_i32 = arith.constant 0 : i32
    %c0_i32_0 = arith.constant 0 : i32
    return %c0_i32, %arg1 : i32, i32
  }
  func.func @transform_3(%arg0: i32, %arg1: i32, %arg2: i32) -> (i32, i32) {
    %c0_i32 = arith.constant 0 : i32
    %c0_i32_0 = arith.constant 0 : i32
    return %c0_i32, %arg1 : i32, i32
  }
  func.func @transform_4(%arg0: i32, %arg1: i32, %arg2: i32) -> (i32, i32) {
    %c0_i32 = arith.constant 0 : i32
    return %arg0, %arg1 : i32, i32
  }
}

module attributes {stable_mosaic.version = 11 : i64} {
  func.func @_conv_mm_kernel(%arg0: i32, %arg1: i32, %arg2: i32, %arg3: memref<128x1152xbf16, #tpu.memory_space<vmem>>, %arg4: memref<1152x128xbf16, #tpu.memory_space<vmem>>, %arg5: memref<1x128xf32, #tpu.memory_space<vmem>>, %arg6: memref<1x128xf32, #tpu.memory_space<vmem>>, %arg7: memref<128x128xbf16, #tpu.memory_space<vmem>>, %arg8: memref<128x128xbf16, #tpu.memory_space<vmem>>, %arg9: memref<128x128xf32, #tpu.memory_space<vmem>>) attributes {dimension_semantics = [#tpu.dimension_semantics<parallel>, #tpu.dimension_semantics<parallel>, #tpu.dimension_semantics<arbitrary>], iteration_bounds = array<i64: 1, 1, 1>, scalar_prefetch = 0 : i64, scratch_operands = 1 : i64, tpu.core_type = #tpu.core_type<tc>, window_params = [{transform_indices = @transform_0, window_bounds = array<i64: 128, 1152>}, {transform_indices = @transform_1, window_bounds = array<i64: 1152, 128>}, {transform_indices = @transform_2, window_bounds = array<i64: 1, 128>}, {transform_indices = @transform_3, window_bounds = array<i64: 1, 128>}, {transform_indices = @transform_4, window_bounds = array<i64: 128, 128>}, {transform_indices = @transform_5, window_bounds = array<i64: 128, 128>}]} {
    %c0 = arith.constant 0 : index
    %c0_0 = arith.constant 0 : index
    %0 = vector.load %arg3[%c0, %c0_0] : memref<128x1152xbf16, #tpu.memory_space<vmem>>, vector<128x1152xbf16>
    %c0_1 = arith.constant 0 : index
    %c0_2 = arith.constant 0 : index
    %1 = vector.load %arg4[%c0_1, %c0_2] : memref<1152x128xbf16, #tpu.memory_space<vmem>>, vector<1152x128xbf16>
    %cst = arith.constant dense<0.000000e+00> : vector<128x128xf32>
    %2 = tpu.matmul %0, %1, %cst {dimension_numbers = #tpu.dot_dimension_numbers<[1], [0], [0], [1], [0, 0, 1, 1], [], []>} : vector<128x1152xbf16>, vector<1152x128xbf16>, vector<128x128xf32> -> vector<128x128xf32>
    %c0_i32 = arith.constant 0 : i32
    %3 = arith.cmpi eq, %arg2, %c0_i32 : i32
    %4 = arith.extui %3 : i1 to i32
    %c0_i32_3 = arith.constant 0 : i32
    %5 = arith.cmpi ne, %4, %c0_i32_3 : i32
    scf.if %5 {
      %c0_8 = arith.constant 0 : index
      %c0_9 = arith.constant 0 : index
      %12 = vector.load %arg9[%c0_8, %c0_9] : memref<128x128xf32, #tpu.memory_space<vmem>>, vector<128x128xf32>
      tpu.vector_store %arg9[%c0_8, %c0_9], %2 {strides = array<i32>} : memref<128x128xf32, #tpu.memory_space<vmem>>, vector<128x128xf32>,
    } else {
    }
    %c0_i32_4 = arith.constant 0 : i32
    %6 = arith.cmpi sgt, %arg2, %c0_i32_4 : i32
    %7 = arith.extui %6 : i1 to i32
    %c0_i32_5 = arith.constant 0 : i32
    %8 = arith.cmpi ne, %7, %c0_i32_5 : i32
    scf.if %8 {
      %c0_8 = arith.constant 0 : index
      %c0_9 = arith.constant 0 : index
      %12 = vector.load %arg9[%c0_8, %c0_9] : memref<128x128xf32, #tpu.memory_space<vmem>>, vector<128x128xf32>
      %13 = arith.addf %12, %2 : vector<128x128xf32>
      %c0_10 = arith.constant 0 : index
      %c0_11 = arith.constant 0 : index
      %14 = vector.load %arg9[%c0_10, %c0_11] : memref<128x128xf32, #tpu.memory_space<vmem>>, vector<128x128xf32>
      tpu.vector_store %arg9[%c0_10, %c0_11], %13 {strides = array<i32>} : memref<128x128xf32, #tpu.memory_space<vmem>>, vector<128x128xf32>,
    } else {
    }
    %c0_i32_6 = arith.constant 0 : i32
    %9 = arith.cmpi eq, %arg2, %c0_i32_6 : i32
    %10 = arith.extui %9 : i1 to i32
    %c0_i32_7 = arith.constant 0 : i32
    %11 = arith.cmpi ne, %10, %c0_i32_7 : i32
    scf.if %11 {
      %c0_8 = arith.constant 0 : index
      %c0_9 = arith.constant 0 : index
      %12 = vector.load %arg9[%c0_8, %c0_9] : memref<128x128xf32, #tpu.memory_space<vmem>>, vector<128x128xf32>
      %c0_10 = arith.constant 0 : index
      %c0_11 = arith.constant 0 : index
      %13 = vector.load %arg5[%c0_10, %c0_11] : memref<1x128xf32, #tpu.memory_space<vmem>>, vector<1x128xf32>
      %14 = vector.broadcast %13 : vector<1x128xf32> to vector<128x128xf32>
      %15 = arith.mulf %12, %14 : vector<128x128xf32>
      %c0_12 = arith.constant 0 : index
      %c0_13 = arith.constant 0 : index
      %16 = vector.load %arg6[%c0_12, %c0_13] : memref<1x128xf32, #tpu.memory_space<vmem>>, vector<1x128xf32>
      %17 = vector.broadcast %16 : vector<1x128xf32> to vector<128x128xf32>
      %18 = arith.addf %15, %17 : vector<128x128xf32>
      %c0_14 = arith.constant 0 : index
      %c0_15 = arith.constant 0 : index
      %19 = vector.load %arg7[%c0_14, %c0_15] : memref<128x128xbf16, #tpu.memory_space<vmem>>, vector<128x128xbf16>
      %20 = arith.extf %19 : vector<128x128xbf16> to vector<128x128xf32>
      %21 = arith.addf %18, %20 : vector<128x128xf32>
      %cst_16 = arith.constant 0.000000e+00 : f32
      %22 = vector.broadcast %cst_16 : f32 to vector<128x128xf32>
      %23 = arith.maximumf %21, %22 : vector<128x128xf32>
      %24 = arith.truncf %23 : vector<128x128xf32> to vector<128x128xbf16>
      %c0_17 = arith.constant 0 : index
      %c0_18 = arith.constant 0 : index
      %25 = vector.load %arg8[%c0_17, %c0_18] : memref<128x128xbf16, #tpu.memory_space<vmem>>, vector<128x128xbf16>
      tpu.vector_store %arg8[%c0_17, %c0_18], %24 {strides = array<i32>} : memref<128x128xbf16, #tpu.memory_space<vmem>>, vector<128x128xbf16>,
    } else {
    }
    return
  }
  func.func @transform_0(%arg0: i32, %arg1: i32, %arg2: i32) -> (i32, i32) {
    %c0_i32 = arith.constant 0 : i32
    return %arg0, %arg2 : i32, i32
  }
  func.func @transform_1(%arg0: i32, %arg1: i32, %arg2: i32) -> (i32, i32) {
    %c0_i32 = arith.constant 0 : i32
    return %arg2, %arg1 : i32, i32
  }
  func.func @transform_2(%arg0: i32, %arg1: i32, %arg2: i32) -> (i32, i32) {
    %c0_i32 = arith.constant 0 : i32
    %c0_i32_0 = arith.constant 0 : i32
    return %c0_i32, %arg1 : i32, i32
  }
  func.func @transform_3(%arg0: i32, %arg1: i32, %arg2: i32) -> (i32, i32) {
    %c0_i32 = arith.constant 0 : i32
    %c0_i32_0 = arith.constant 0 : i32
    return %c0_i32, %arg1 : i32, i32
  }
  func.func @transform_4(%arg0: i32, %arg1: i32, %arg2: i32) -> (i32, i32) {
    %c0_i32 = arith.constant 0 : i32
    return %arg0, %arg1 : i32, i32
  }
  func.func @transform_5(%arg0: i32, %arg1: i32, %arg2: i32) -> (i32, i32) {
    %c0_i32 = arith.constant 0 : i32
    return %arg0, %arg1 : i32, i32
  }
}

module attributes {stable_mosaic.version = 11 : i64} {
  func.func @_conv_mm_kernel(%arg0: i32, %arg1: i32, %arg2: i32, %arg3: memref<32x1152xbf16, #tpu.memory_space<vmem>>, %arg4: memref<1152x256xbf16, #tpu.memory_space<vmem>>, %arg5: memref<1x256xf32, #tpu.memory_space<vmem>>, %arg6: memref<1x256xf32, #tpu.memory_space<vmem>>, %arg7: memref<32x256xbf16, #tpu.memory_space<vmem>>, %arg8: memref<32x256xf32, #tpu.memory_space<vmem>>) attributes {dimension_semantics = [#tpu.dimension_semantics<parallel>, #tpu.dimension_semantics<parallel>, #tpu.dimension_semantics<arbitrary>], iteration_bounds = array<i64: 1, 1, 1>, scalar_prefetch = 0 : i64, scratch_operands = 1 : i64, tpu.core_type = #tpu.core_type<tc>, window_params = [{transform_indices = @transform_0, window_bounds = array<i64: 32, 1152>}, {transform_indices = @transform_1, window_bounds = array<i64: 1152, 256>}, {transform_indices = @transform_2, window_bounds = array<i64: 1, 256>}, {transform_indices = @transform_3, window_bounds = array<i64: 1, 256>}, {transform_indices = @transform_4, window_bounds = array<i64: 32, 256>}]} {
    %c0 = arith.constant 0 : index
    %c0_0 = arith.constant 0 : index
    %0 = vector.load %arg3[%c0, %c0_0] : memref<32x1152xbf16, #tpu.memory_space<vmem>>, vector<32x1152xbf16>
    %c0_1 = arith.constant 0 : index
    %c0_2 = arith.constant 0 : index
    %1 = vector.load %arg4[%c0_1, %c0_2] : memref<1152x256xbf16, #tpu.memory_space<vmem>>, vector<1152x256xbf16>
    %cst = arith.constant dense<0.000000e+00> : vector<32x256xf32>
    %2 = tpu.matmul %0, %1, %cst {dimension_numbers = #tpu.dot_dimension_numbers<[1], [0], [0], [1], [0, 0, 1, 1], [], []>} : vector<32x1152xbf16>, vector<1152x256xbf16>, vector<32x256xf32> -> vector<32x256xf32>
    %c0_i32 = arith.constant 0 : i32
    %3 = arith.cmpi eq, %arg2, %c0_i32 : i32
    %4 = arith.extui %3 : i1 to i32
    %c0_i32_3 = arith.constant 0 : i32
    %5 = arith.cmpi ne, %4, %c0_i32_3 : i32
    scf.if %5 {
      %c0_8 = arith.constant 0 : index
      %c0_9 = arith.constant 0 : index
      %12 = vector.load %arg8[%c0_8, %c0_9] : memref<32x256xf32, #tpu.memory_space<vmem>>, vector<32x256xf32>
      tpu.vector_store %arg8[%c0_8, %c0_9], %2 {strides = array<i32>} : memref<32x256xf32, #tpu.memory_space<vmem>>, vector<32x256xf32>,
    } else {
    }
    %c0_i32_4 = arith.constant 0 : i32
    %6 = arith.cmpi sgt, %arg2, %c0_i32_4 : i32
    %7 = arith.extui %6 : i1 to i32
    %c0_i32_5 = arith.constant 0 : i32
    %8 = arith.cmpi ne, %7, %c0_i32_5 : i32
    scf.if %8 {
      %c0_8 = arith.constant 0 : index
      %c0_9 = arith.constant 0 : index
      %12 = vector.load %arg8[%c0_8, %c0_9] : memref<32x256xf32, #tpu.memory_space<vmem>>, vector<32x256xf32>
      %13 = arith.addf %12, %2 : vector<32x256xf32>
      %c0_10 = arith.constant 0 : index
      %c0_11 = arith.constant 0 : index
      %14 = vector.load %arg8[%c0_10, %c0_11] : memref<32x256xf32, #tpu.memory_space<vmem>>, vector<32x256xf32>
      tpu.vector_store %arg8[%c0_10, %c0_11], %13 {strides = array<i32>} : memref<32x256xf32, #tpu.memory_space<vmem>>, vector<32x256xf32>,
    } else {
    }
    %c0_i32_6 = arith.constant 0 : i32
    %9 = arith.cmpi eq, %arg2, %c0_i32_6 : i32
    %10 = arith.extui %9 : i1 to i32
    %c0_i32_7 = arith.constant 0 : i32
    %11 = arith.cmpi ne, %10, %c0_i32_7 : i32
    scf.if %11 {
      %c0_8 = arith.constant 0 : index
      %c0_9 = arith.constant 0 : index
      %12 = vector.load %arg8[%c0_8, %c0_9] : memref<32x256xf32, #tpu.memory_space<vmem>>, vector<32x256xf32>
      %c0_10 = arith.constant 0 : index
      %c0_11 = arith.constant 0 : index
      %13 = vector.load %arg5[%c0_10, %c0_11] : memref<1x256xf32, #tpu.memory_space<vmem>>, vector<1x256xf32>
      %14 = vector.broadcast %13 : vector<1x256xf32> to vector<32x256xf32>
      %15 = arith.mulf %12, %14 : vector<32x256xf32>
      %c0_12 = arith.constant 0 : index
      %c0_13 = arith.constant 0 : index
      %16 = vector.load %arg6[%c0_12, %c0_13] : memref<1x256xf32, #tpu.memory_space<vmem>>, vector<1x256xf32>
      %17 = vector.broadcast %16 : vector<1x256xf32> to vector<32x256xf32>
      %18 = arith.addf %15, %17 : vector<32x256xf32>
      %cst_14 = arith.constant 0.000000e+00 : f32
      %19 = vector.broadcast %cst_14 : f32 to vector<32x256xf32>
      %20 = arith.maximumf %18, %19 : vector<32x256xf32>
      %21 = arith.truncf %20 : vector<32x256xf32> to vector<32x256xbf16>
      %c0_15 = arith.constant 0 : index
      %c0_16 = arith.constant 0 : index
      %22 = vector.load %arg7[%c0_15, %c0_16] : memref<32x256xbf16, #tpu.memory_space<vmem>>, vector<32x256xbf16>
      tpu.vector_store %arg7[%c0_15, %c0_16], %21 {strides = array<i32>} : memref<32x256xbf16, #tpu.memory_space<vmem>>, vector<32x256xbf16>,
    } else {
    }
    return
  }
  func.func @transform_0(%arg0: i32, %arg1: i32, %arg2: i32) -> (i32, i32) {
    %c0_i32 = arith.constant 0 : i32
    return %arg0, %arg2 : i32, i32
  }
  func.func @transform_1(%arg0: i32, %arg1: i32, %arg2: i32) -> (i32, i32) {
    %c0_i32 = arith.constant 0 : i32
    return %arg2, %arg1 : i32, i32
  }
  func.func @transform_2(%arg0: i32, %arg1: i32, %arg2: i32) -> (i32, i32) {
    %c0_i32 = arith.constant 0 : i32
    %c0_i32_0 = arith.constant 0 : i32
    return %c0_i32, %arg1 : i32, i32
  }
  func.func @transform_3(%arg0: i32, %arg1: i32, %arg2: i32) -> (i32, i32) {
    %c0_i32 = arith.constant 0 : i32
    %c0_i32_0 = arith.constant 0 : i32
    return %c0_i32, %arg1 : i32, i32
  }
  func.func @transform_4(%arg0: i32, %arg1: i32, %arg2: i32) -> (i32, i32) {
    %c0_i32 = arith.constant 0 : i32
    return %arg0, %arg1 : i32, i32
  }
}

module attributes {stable_mosaic.version = 11 : i64} {
  func.func @_conv_mm_kernel(%arg0: i32, %arg1: i32, %arg2: i32, %arg3: memref<32x2304xbf16, #tpu.memory_space<vmem>>, %arg4: memref<2304x256xbf16, #tpu.memory_space<vmem>>, %arg5: memref<1x256xf32, #tpu.memory_space<vmem>>, %arg6: memref<1x256xf32, #tpu.memory_space<vmem>>, %arg7: memref<32x256xbf16, #tpu.memory_space<vmem>>, %arg8: memref<32x256xbf16, #tpu.memory_space<vmem>>, %arg9: memref<32x256xf32, #tpu.memory_space<vmem>>) attributes {dimension_semantics = [#tpu.dimension_semantics<parallel>, #tpu.dimension_semantics<parallel>, #tpu.dimension_semantics<arbitrary>], iteration_bounds = array<i64: 1, 1, 1>, scalar_prefetch = 0 : i64, scratch_operands = 1 : i64, tpu.core_type = #tpu.core_type<tc>, window_params = [{transform_indices = @transform_0, window_bounds = array<i64: 32, 2304>}, {transform_indices = @transform_1, window_bounds = array<i64: 2304, 256>}, {transform_indices = @transform_2, window_bounds = array<i64: 1, 256>}, {transform_indices = @transform_3, window_bounds = array<i64: 1, 256>}, {transform_indices = @transform_4, window_bounds = array<i64: 32, 256>}, {transform_indices = @transform_5, window_bounds = array<i64: 32, 256>}]} {
    %c0 = arith.constant 0 : index
    %c0_0 = arith.constant 0 : index
    %0 = vector.load %arg3[%c0, %c0_0] : memref<32x2304xbf16, #tpu.memory_space<vmem>>, vector<32x2304xbf16>
    %c0_1 = arith.constant 0 : index
    %c0_2 = arith.constant 0 : index
    %1 = vector.load %arg4[%c0_1, %c0_2] : memref<2304x256xbf16, #tpu.memory_space<vmem>>, vector<2304x256xbf16>
    %cst = arith.constant dense<0.000000e+00> : vector<32x256xf32>
    %2 = tpu.matmul %0, %1, %cst {dimension_numbers = #tpu.dot_dimension_numbers<[1], [0], [0], [1], [0, 0, 1, 1], [], []>} : vector<32x2304xbf16>, vector<2304x256xbf16>, vector<32x256xf32> -> vector<32x256xf32>
    %c0_i32 = arith.constant 0 : i32
    %3 = arith.cmpi eq, %arg2, %c0_i32 : i32
    %4 = arith.extui %3 : i1 to i32
    %c0_i32_3 = arith.constant 0 : i32
    %5 = arith.cmpi ne, %4, %c0_i32_3 : i32
    scf.if %5 {
      %c0_8 = arith.constant 0 : index
      %c0_9 = arith.constant 0 : index
      %12 = vector.load %arg9[%c0_8, %c0_9] : memref<32x256xf32, #tpu.memory_space<vmem>>, vector<32x256xf32>
      tpu.vector_store %arg9[%c0_8, %c0_9], %2 {strides = array<i32>} : memref<32x256xf32, #tpu.memory_space<vmem>>, vector<32x256xf32>,
    } else {
    }
    %c0_i32_4 = arith.constant 0 : i32
    %6 = arith.cmpi sgt, %arg2, %c0_i32_4 : i32
    %7 = arith.extui %6 : i1 to i32
    %c0_i32_5 = arith.constant 0 : i32
    %8 = arith.cmpi ne, %7, %c0_i32_5 : i32
    scf.if %8 {
      %c0_8 = arith.constant 0 : index
      %c0_9 = arith.constant 0 : index
      %12 = vector.load %arg9[%c0_8, %c0_9] : memref<32x256xf32, #tpu.memory_space<vmem>>, vector<32x256xf32>
      %13 = arith.addf %12, %2 : vector<32x256xf32>
      %c0_10 = arith.constant 0 : index
      %c0_11 = arith.constant 0 : index
      %14 = vector.load %arg9[%c0_10, %c0_11] : memref<32x256xf32, #tpu.memory_space<vmem>>, vector<32x256xf32>
      tpu.vector_store %arg9[%c0_10, %c0_11], %13 {strides = array<i32>} : memref<32x256xf32, #tpu.memory_space<vmem>>, vector<32x256xf32>,
    } else {
    }
    %c0_i32_6 = arith.constant 0 : i32
    %9 = arith.cmpi eq, %arg2, %c0_i32_6 : i32
    %10 = arith.extui %9 : i1 to i32
    %c0_i32_7 = arith.constant 0 : i32
    %11 = arith.cmpi ne, %10, %c0_i32_7 : i32
    scf.if %11 {
      %c0_8 = arith.constant 0 : index
      %c0_9 = arith.constant 0 : index
      %12 = vector.load %arg9[%c0_8, %c0_9] : memref<32x256xf32, #tpu.memory_space<vmem>>, vector<32x256xf32>
      %c0_10 = arith.constant 0 : index
      %c0_11 = arith.constant 0 : index
      %13 = vector.load %arg5[%c0_10, %c0_11] : memref<1x256xf32, #tpu.memory_space<vmem>>, vector<1x256xf32>
      %14 = vector.broadcast %13 : vector<1x256xf32> to vector<32x256xf32>
      %15 = arith.mulf %12, %14 : vector<32x256xf32>
      %c0_12 = arith.constant 0 : index
      %c0_13 = arith.constant 0 : index
      %16 = vector.load %arg6[%c0_12, %c0_13] : memref<1x256xf32, #tpu.memory_space<vmem>>, vector<1x256xf32>
      %17 = vector.broadcast %16 : vector<1x256xf32> to vector<32x256xf32>
      %18 = arith.addf %15, %17 : vector<32x256xf32>
      %c0_14 = arith.constant 0 : index
      %c0_15 = arith.constant 0 : index
      %19 = vector.load %arg7[%c0_14, %c0_15] : memref<32x256xbf16, #tpu.memory_space<vmem>>, vector<32x256xbf16>
      %20 = arith.extf %19 : vector<32x256xbf16> to vector<32x256xf32>
      %21 = arith.addf %18, %20 : vector<32x256xf32>
      %cst_16 = arith.constant 0.000000e+00 : f32
      %22 = vector.broadcast %cst_16 : f32 to vector<32x256xf32>
      %23 = arith.maximumf %21, %22 : vector<32x256xf32>
      %24 = arith.truncf %23 : vector<32x256xf32> to vector<32x256xbf16>
      %c0_17 = arith.constant 0 : index
      %c0_18 = arith.constant 0 : index
      %25 = vector.load %arg8[%c0_17, %c0_18] : memref<32x256xbf16, #tpu.memory_space<vmem>>, vector<32x256xbf16>
      tpu.vector_store %arg8[%c0_17, %c0_18], %24 {strides = array<i32>} : memref<32x256xbf16, #tpu.memory_space<vmem>>, vector<32x256xbf16>,
    } else {
    }
    return
  }
  func.func @transform_0(%arg0: i32, %arg1: i32, %arg2: i32) -> (i32, i32) {
    %c0_i32 = arith.constant 0 : i32
    return %arg0, %arg2 : i32, i32
  }
  func.func @transform_1(%arg0: i32, %arg1: i32, %arg2: i32) -> (i32, i32) {
    %c0_i32 = arith.constant 0 : i32
    return %arg2, %arg1 : i32, i32
  }
  func.func @transform_2(%arg0: i32, %arg1: i32, %arg2: i32) -> (i32, i32) {
    %c0_i32 = arith.constant 0 : i32
    %c0_i32_0 = arith.constant 0 : i32
    return %c0_i32, %arg1 : i32, i32
  }
  func.func @transform_3(%arg0: i32, %arg1: i32, %arg2: i32) -> (i32, i32) {
    %c0_i32 = arith.constant 0 : i32
    %c0_i32_0 = arith.constant 0 : i32
    return %c0_i32, %arg1 : i32, i32
  }
  func.func @transform_4(%arg0: i32, %arg1: i32, %arg2: i32) -> (i32, i32) {
    %c0_i32 = arith.constant 0 : i32
    return %arg0, %arg1 : i32, i32
  }
  func.func @transform_5(%arg0: i32, %arg1: i32, %arg2: i32) -> (i32, i32) {
    %c0_i32 = arith.constant 0 : i32
    return %arg0, %arg1 : i32, i32
  }
}

module attributes {stable_mosaic.version = 11 : i64} {
  func.func @_head_kernel(%arg0: memref<2x16x256xbf16, #tpu.memory_space<vmem>>, %arg1: memref<1x1x256xf32, #tpu.memory_space<vmem>>, %arg2: memref<1x1x256xf32, #tpu.memory_space<vmem>>, %arg3: memref<256x10xf32, #tpu.memory_space<vmem>>, %arg4: memref<1x10xf32, #tpu.memory_space<vmem>>, %arg5: memref<2x10xf32, #tpu.memory_space<vmem>>) attributes {dimension_semantics = [], scalar_prefetch = 0 : i64, scratch_operands = 0 : i64, tpu.core_type = #tpu.core_type<tc>} {
    %c0 = arith.constant 0 : index
    %c0_0 = arith.constant 0 : index
    %c0_1 = arith.constant 0 : index
    %0 = vector.load %arg0[%c0, %c0_0, %c0_1] : memref<2x16x256xbf16, #tpu.memory_space<vmem>>, vector<2x16x256xbf16>
    %1 = arith.extf %0 : vector<2x16x256xbf16> to vector<2x16x256xf32>
    %c0_2 = arith.constant 0 : index
    %c0_3 = arith.constant 0 : index
    %c0_4 = arith.constant 0 : index
    %2 = vector.load %arg1[%c0_2, %c0_3, %c0_4] : memref<1x1x256xf32, #tpu.memory_space<vmem>>, vector<1x1x256xf32>
    %3 = vector.broadcast %2 : vector<1x1x256xf32> to vector<2x16x256xf32>
    %4 = arith.mulf %1, %3 : vector<2x16x256xf32>
    %c0_5 = arith.constant 0 : index
    %c0_6 = arith.constant 0 : index
    %c0_7 = arith.constant 0 : index
    %5 = vector.load %arg2[%c0_5, %c0_6, %c0_7] : memref<1x1x256xf32, #tpu.memory_space<vmem>>, vector<1x1x256xf32>
    %6 = vector.broadcast %5 : vector<1x1x256xf32> to vector<2x16x256xf32>
    %7 = arith.addf %4, %6 : vector<2x16x256xf32>
    %cst = arith.constant 0.000000e+00 : f32
    %8 = vector.broadcast %cst : f32 to vector<2x16x256xf32>
    %9 = arith.maximumf %7, %8 : vector<2x16x256xf32>
    %cst_8 = arith.constant dense<0.000000e+00> : vector<2x256xf32>
    %10 = vector.multi_reduction <add>, %9, %cst_8 [1] : vector<2x16x256xf32> to vector<2x256xf32>
    %cst_9 = arith.constant 6.250000e-02 : f32
    %11 = vector.broadcast %cst_9 : f32 to vector<2x256xf32>
    %12 = arith.mulf %10, %11 : vector<2x256xf32>
    %c0_10 = arith.constant 0 : index
    %c0_11 = arith.constant 0 : index
    %13 = vector.load %arg3[%c0_10, %c0_11] : memref<256x10xf32, #tpu.memory_space<vmem>>, vector<256x10xf32>
    %cst_12 = arith.constant dense<0.000000e+00> : vector<2x10xf32>
    %14 = tpu.matmul %12, %13, %cst_12 {dimension_numbers = #tpu.dot_dimension_numbers<[1], [0], [0], [1], [0, 0, 1, 1], [], []>} : vector<2x256xf32>, vector<256x10xf32>, vector<2x10xf32> -> vector<2x10xf32>
    %c0_13 = arith.constant 0 : index
    %c0_14 = arith.constant 0 : index
    %15 = vector.load %arg4[%c0_13, %c0_14] : memref<1x10xf32, #tpu.memory_space<vmem>>, vector<1x10xf32>
    %16 = vector.broadcast %15 : vector<1x10xf32> to vector<2x10xf32>
    %17 = arith.addf %14, %16 : vector<2x10xf32>
    %c0_15 = arith.constant 0 : index
    %c0_16 = arith.constant 0 : index
    %18 = vector.load %arg5[%c0_15, %c0_16] : memref<2x10xf32, #tpu.memory_space<vmem>>, vector<2x10xf32>
    tpu.vector_store %arg5[%c0_15, %c0_16], %17 {strides = array<i32>} : memref<2x10xf32, #tpu.memory_space<vmem>>, vector<2x10xf32>,
    return
  }
}

</mosaic_0001>

<bundles_post_ra>
// kernel: resnet_forward.8
= control target key start
LH: loop header
LB: loop body
LE: loop exit
PB: predicated region body
PF: predicated region fallthrough
CT: control target
= control target key end

     0   :  { %vm631_vm0 = vcmask 523264   ;;  %vm1422_vm1 = vcmask 519168   ;;  %s2440_s1 = inlined_call_operand.vmem [shape: bf16[128,64], index: 1, kind: input, shape index: {}]   ;;  %s2441_s0 = inlined_call_operand.vmem [shape: bf16[512,128], index: 0, kind: input, shape index: {}]   ;;  %s2442_s2 = inlined_call_operand.vmem [shape: f32[1,64], index: 2, kind: input, shape index: {}]   ;;  %s2443_s3 = inlined_call_operand.vmem [shape: f32[1,64], index: 3, kind: input, shape index: {}]   ;;  %s2444_s4 = inlined_call_operand.vmem [shape: bf16[512,64], index: 4, kind: output, shape index: {}]  }
   0x1   :  { %v1797_v0 = vld [vmem:[%s2440_s1] sm:$0xff]   ;;  %v1798_v1 = vld [vmem:[%s2440_s1 + $0x8] sm:$0xff]   ;;  %v1799_v2 = vld [vmem:[%s2440_s1 + $0x10] sm:$0xff]  }
   0x2   :  { %1701 = vmatprep.subr.bf16.mxu0 %v1797_v0  ;;  %1781 = vmatprep.subr.bf16.mxu1 %v1797_v0  ;;  %v1800_v3 = vld [vmem:[%s2440_s1 + $0x18] sm:$0xff]   ;;  %v1805_v4 = vld [vmem:[%s2441_s0] sm:$0xff]   ;;  %v1802_v7 = vld [vmem:[%s2440_s1 + $0x28] sm:$0xff]  }
   0x3   :  { %1702 = vmatpush3.bf16.msra.mxu0 %v1797_v0  ;;  %1789 = vmatpush3.bf16.msra.mxu1 %v1797_v0  ;;  %v1806_v5 = vld [vmem:[%s2441_s0 + $0x80] sm:$0xff]   ;;  %v1803_v8 = vld [vmem:[%s2440_s1 + $0x30] sm:$0xff]   ;;  %v1804_v9 = vld [vmem:[%s2440_s1 + $0x38] sm:$0xff]  }
   0x4   :  { %1703 = vmatprep.subr.bf16.mxu0 %v1798_v1  ;;  %1782 = vmatprep.subr.bf16.mxu1 %v1798_v1  ;;  %v1801_v6 = vld [vmem:[%s2440_s1 + $0x20] sm:$0xff]   ;;  %v1807_v10 = vld [vmem:[%s2441_s0 + $0x8] sm:$0xff]   ;;  %v1809_v12 = vld [vmem:[%s2441_s0 + $0x10] sm:$0xff]  }
   0x5   :  { %1717 = vmatprep.mubr.bf16.mxu0 %v1805_v4  ;;  %1749 = vmatprep.mubr.bf16.mxu1 %v1806_v5  ;;  %v1808_v11 = vld [vmem:[%s2441_s0 + $0x88] sm:$0xff]   ;;  %v1810_v13 = vld [vmem:[%s2441_s0 + $0x90] sm:$0xff]   ;;  %v1811_v14 = vld [vmem:[%s2441_s0 + $0x18] sm:$0xff]  }
   0x6   :  { %v1812_v15 = vld [vmem:[%s2441_s0 + $0x98] sm:$0xff]   ;;  %v1813_v16 = vld [vmem:[%s2441_s0 + $0x20] sm:$0xff]   ;;  %v1815_v18 = vld [vmem:[%s2441_s0 + $0x28] sm:$0xff]  }
   0x7   :  { %1704 = vmatpush3.bf16.msra.mxu0 %v1798_v1  ;;  %1790 = vmatpush3.bf16.msra.mxu1 %v1798_v1  ;;  %v1814_v17 = vld [vmem:[%s2441_s0 + $0xa0] sm:$0xff]   ;;  %v1816_v19 = vld [vmem:[%s2441_s0 + $0xa8] sm:$0xff]   ;;  %v1817_v20 = vld [vmem:[%s2441_s0 + $0x30] sm:$0xff]  }
   0x8   :  { %1705 = vmatprep.subr.bf16.mxu0 %v1799_v2  ;;  %1783 = vmatprep.subr.bf16.mxu1 %v1799_v2  ;;  %v1818_v21 = vld [vmem:[%s2441_s0 + $0xb0] sm:$0xff]   ;;  %v1819_v22 = vld [vmem:[%s2441_s0 + $0x38] sm:$0xff]   ;;  %v1821_v24 = vld [vmem:[%s2441_s0 + $0x40] sm:$0xff]  }
   0x9   :  { %v1820_v23 = vld [vmem:[%s2441_s0 + $0xb8] sm:$0xff]   ;;  %v1822_v25 = vld [vmem:[%s2441_s0 + $0xc0] sm:$0xff]   ;;  %v1823_v26 = vld [vmem:[%s2441_s0 + $0x48] sm:$0xff]  }
   0xa   :  { %v1824_v27 = vld [vmem:[%s2441_s0 + $0xc8] sm:$0xff]   ;;  %v1825_v28 = vld [vmem:[%s2441_s0 + $0x50] sm:$0xff]   ;;  %v1827_v30 = vld [vmem:[%s2441_s0 + $0x58] sm:$0xff]  }
   0xb   :  { %1706 = vmatpush3.bf16.msra.mxu0 %v1799_v2  ;;  %1791 = vmatpush3.bf16.msra.mxu1 %v1799_v2  ;;  %v1826_v29 = vld [vmem:[%s2441_s0 + $0xd0] sm:$0xff]   ;;  %v1828_v31 = vld [vmem:[%s2441_s0 + $0xd8] sm:$0xff]   ;;  %v1829_v32 = vld [vmem:[%s2441_s0 + $0x60] sm:$0xff]  }
   0xc   :  { %1707 = vmatprep.subr.bf16.mxu0 %v1800_v3  ;;  %1784 = vmatprep.subr.bf16.mxu1 %v1800_v3  ;;  %v1830_v33 = vld [vmem:[%s2441_s0 + $0xe0] sm:$0xff]   ;;  %v1831_v34 = vld [vmem:[%s2441_s0 + $0x68] sm:$0xff]   ;;  %v1833_v36 = vld [vmem:[%s2441_s0 + $0x70] sm:$0xff]  }
   0xd   :  { %v1832_v35 = vld [vmem:[%s2441_s0 + $0xe8] sm:$0xff]   ;;  %v1834_v37 = vld [vmem:[%s2441_s0 + $0xf0] sm:$0xff]   ;;  %v1835_v38 = vld [vmem:[%s2441_s0 + $0x78] sm:$0xff]  }
   0xe   :  { %v1836_v39 = vld [vmem:[%s2441_s0 + $0xf8] sm:$0xff]   ;;  %v1993_v48 = vld [vmem:[%s2442_s2] ss:$0 sm:$0xff] }
   0xf   :  { %1708 = vmatpush3.bf16.msra.mxu0 %v1800_v3  ;;  %1792 = vmatpush3.bf16.msra.mxu1 %v1800_v3  ;;  %v1998_v50 = vld [vmem:[%s2443_s3] ss:$0 sm:$0xff] }
  0x10   :  { %1709 = vmatprep.subr.bf16.mxu0 %v1801_v6  ;;  %1785 = vmatprep.subr.bf16.mxu1 %v1801_v6 }
  0x13   :  { %1710 = vmatpush3.bf16.msra.mxu0 %v1801_v6  ;;  %1793 = vmatpush3.bf16.msra.mxu1 %v1801_v6 }
  0x14   :  { %1711 = vmatprep.subr.bf16.mxu0 %v1802_v7  ;;  %1786 = vmatprep.subr.bf16.mxu1 %v1802_v7 }
  0x17   :  { %1712 = vmatpush3.bf16.msra.mxu0 %v1802_v7  ;;  %1794 = vmatpush3.bf16.msra.mxu1 %v1802_v7 }
  0x18   :  { %1713 = vmatprep.subr.bf16.mxu0 %v1803_v8  ;;  %1787 = vmatprep.subr.bf16.mxu1 %v1803_v8 }
  0x1b   :  { %1714 = vmatpush3.bf16.msra.mxu0 %v1803_v8  ;;  %1795 = vmatpush3.bf16.msra.mxu1 %v1803_v8 }
  0x1c   :  { %1715 = vmatprep.subr.bf16.mxu0 %v1804_v9  ;;  %1788 = vmatprep.subr.bf16.mxu1 %v1804_v9 }
  0x1f   :  { %1716 = vmatpush3.bf16.msra.mxu0 %v1804_v9  ;;  %1796 = vmatpush3.bf16.msra.mxu1 %v1804_v9 }
  0x22   :  { %1718 = vmatmul.mubr.bf16.vlgmr.msra.gmra.mrb[0].mxu0 %v1807_v10  ;;  %1750 = vmatmul.mubr.bf16.vlgmr.msra.gmra.mrb[0].mxu1 %v1808_v11 }
  0x23   :  { %1721 = vmatprep.mubr.bf16.mxu0 %v1809_v12  ;;  %1753 = vmatprep.mubr.bf16.mxu1 %v1810_v13 }
  0x2a   :  { %1722 = vmatmul.mubr.bf16.gmra.mrb[4].mxu0 %v1811_v14  ;;  %1754 = vmatmul.mubr.bf16.gmra.mrb[4].mxu1 %v1812_v15 }
  0x2b   :  { %1725 = vmatprep.mubr.bf16.mxu0 %v1813_v16  ;;  %1757 = vmatprep.mubr.bf16.mxu1 %v1814_v17 }
  0x32   :  { %1726 = vmatmul.mubr.bf16.gmra.mrb[8].mxu0 %v1815_v18  ;;  %1758 = vmatmul.mubr.bf16.gmra.mrb[8].mxu1 %v1816_v19 }
  0x33   :  { %1729 = vmatprep.mubr.bf16.mxu0 %v1817_v20  ;;  %1761 = vmatprep.mubr.bf16.mxu1 %v1818_v21 }
  0x3a   :  { %1730 = vmatmul.mubr.bf16.gmra.mrb[12].mxu0 %v1819_v22  ;;  %1762 = vmatmul.mubr.bf16.gmra.mrb[12].mxu1 %v1820_v23 }
  0x3b   :  { %1733 = vmatprep.mubr.bf16.mxu0 %v1821_v24  ;;  %1765 = vmatprep.mubr.bf16.mxu1 %v1822_v25 }
  0x42   :  { %1734 = vmatmul.mubr.bf16.gmra.mrb[16].mxu0 %v1823_v26  ;;  %1766 = vmatmul.mubr.bf16.gmra.mrb[16].mxu1 %v1824_v27 }
  0x43   :  { %1737 = vmatprep.mubr.bf16.mxu0 %v1825_v28  ;;  %1769 = vmatprep.mubr.bf16.mxu1 %v1826_v29 }
  0x4a   :  { %1738 = vmatmul.mubr.bf16.gmra.mrb[20].mxu0 %v1827_v30  ;;  %1770 = vmatmul.mubr.bf16.gmra.mrb[20].mxu1 %v1828_v31 }
  0x4b   :  { %1741 = vmatprep.mubr.bf16.mxu0 %v1829_v32  ;;  %1773 = vmatprep.mubr.bf16.mxu1 %v1830_v33 }
  0x52   :  { %1742 = vmatmul.mubr.bf16.gmra.mrb[24].mxu0 %v1831_v34  ;;  %1774 = vmatmul.mubr.bf16.gmra.mrb[24].mxu1 %v1832_v35 }
  0x53   :  { %1745 = vmatprep.mubr.bf16.mxu0 %v1833_v36  ;;  %1777 = vmatprep.mubr.bf16.mxu1 %v1834_v37 }
  0x5a   :  { %1746 = vmatmul.mubr.bf16.gmra.mrb[28].mxu0 %v1835_v38  ;;  %1778 = vmatmul.mubr.bf16.gmra.mrb[28].mxu1 %v1836_v39 }
  0xf5   :  { %v1719_v40 = vpop.f32.mrb[0].mxu0  ;;  %v1751_v41 = vpop.f32.mrb[0].mxu1 }
  0xf6   :  { %634 = vst.msk [vmem:[#allocation2 + $0x10] sm:$0xff] %vm631_vm0, %v1719_v40  ;;  %666 = vst.msk [vmem:[#allocation2 + $0x110] sm:$0xff] %vm631_vm0, %v1751_v41  ;;  %v372_v42 = vpop.f32.mrb[1].mxu0  ;;  %v500_v43 = vpop.f32.mrb[1].mxu1 }
  0xf7   :  { %632 = vst.msk [vmem:[#allocation2] sm:$0xff] %vm631_vm0, %v372_v42  ;;  %664 = vst.msk [vmem:[#allocation2 + $0x100] sm:$0xff] %vm631_vm0, %v500_v43  ;;  %v1720_v44 = vpop.f32.mrb[2].mxu0  ;;  %v1752_v45 = vpop.f32.mrb[2].mxu1 }
  0xf8   :  { %635 = vst.msk [vmem:[#allocation2 + $0x18] sm:$0xff] %vm631_vm0, %v1720_v44  ;;  %667 = vst.msk [vmem:[#allocation2 + $0x118] sm:$0xff] %vm631_vm0, %v1752_v45  ;;  %v375_v46 = vpop.f32.mrb[3].mxu0  ;;  %v503_v47 = vpop.f32.mrb[3].mxu1 }
  0xf9   :  { %633 = vst.msk [vmem:[#allocation2 + $0x8] sm:$0xff] %vm631_vm0, %v375_v46  ;;  %665 = vst.msk [vmem:[#allocation2 + $0x108] sm:$0xff] %vm631_vm0, %v503_v47 }
  0xfd   :  { %v898_v49 = vld [vmem:[#allocation2 + $0x10] sm:$0xff]  ;;  %v1723_v52 = vpop.f32.mrb[4].mxu0  ;;  %v1755_v53 = vpop.f32.mrb[4].mxu1 }
  0xfe   :  { %v930_v51 = vld [vmem:[#allocation2 + $0x110] sm:$0xff]  ;;  %v969_v54 = vmul.f32 %v1993_v48, %v898_v49  ;;  %v896_v56 = vld [vmem:[#allocation2] sm:$0xff]  ;;  %638 = vst.msk [vmem:[#allocation2 + $0x30] sm:$0xff] %vm631_vm0, %v1723_v52  ;;  %670 = vst.msk [vmem:[#allocation2 + $0x130] sm:$0xff] %vm631_vm0, %v1755_v53  ;;  %v388_v58 = vpop.f32.mrb[5].mxu0  ;;  %v516_v59 = vpop.f32.mrb[5].mxu1 }
  0xff   :  { %v1001_v55 = vmul.f32 %v1993_v48, %v930_v51  ;;  %v928_v57 = vld [vmem:[#allocation2 + $0x100] sm:$0xff]  ;;  %v967_v60 = vmul.f32 %v1993_v48, %v896_v56  ;;  %v899_v62 = vld [vmem:[#allocation2 + $0x18] sm:$0xff]  ;;  %636 = vst.msk [vmem:[#allocation2 + $0x20] sm:$0xff] %vm631_vm0, %v388_v58  ;;  %668 = vst.msk [vmem:[#allocation2 + $0x120] sm:$0xff] %vm631_vm0, %v516_v59  ;;  %v1724_v0 = vpop.f32.mrb[6].mxu0  ;;  %v1756_v1 = vpop.f32.mrb[6].mxu1 }
 0x100   :  { %v999_v61 = vmul.f32 %v1993_v48, %v928_v57  ;;  %v931_v63 = vld [vmem:[#allocation2 + $0x118] sm:$0xff]  ;;  %v1040_v2 = vadd.f32 %v1998_v50, %v969_v54  ;;  %v970_v4 = vmul.f32 %v1993_v48, %v899_v62  ;;  %v897_v6 = vld [vmem:[#allocation2 + $0x8] sm:$0xff]  ;;  %639 = vst.msk [vmem:[#allocation2 + $0x38] sm:$0xff] %vm631_vm0, %v1724_v0  ;;  %671 = vst.msk [vmem:[#allocation2 + $0x138] sm:$0xff] %vm631_vm0, %v1756_v1  ;;  %v391_v8 = vpop.f32.mrb[7].mxu0  ;;  %v519_v9 = vpop.f32.mrb[7].mxu1 }
 0x101   :  { %v1072_v3 = vadd.f32 %v1998_v50, %v1001_v55  ;;  %v1002_v5 = vmul.f32 %v1993_v48, %v931_v63  ;;  %v929_v7 = vld [vmem:[#allocation2 + $0x108] sm:$0xff]  ;;  %v1038_v10 = vadd.f32 %v1998_v50, %v967_v60  ;;  %v968_v12 = vmul.f32 %v1993_v48, %v897_v6  ;;  %637 = vst.msk [vmem:[#allocation2 + $0x28] sm:$0xff] %vm631_vm0, %v391_v8 }
 0x102   :  { %v1070_v11 = vadd.f32 %v1998_v50, %v999_v61  ;;  %v1000_v13 = vmul.f32 %v1993_v48, %v929_v7  ;;  %669 = vst.msk [vmem:[#allocation2 + $0x128] sm:$0xff] %vm631_vm0, %v519_v9  ;;  %v1104_v14 = vmax.f32 %v1040_v2, 0.0  ;;  %v1041_v16 = vadd.f32 %v1998_v50, %v970_v4 }
 0x103   :  { %v1136_v15 = vmax.f32 %v1072_v3, 0.0  ;;  %v1073_v17 = vadd.f32 %v1998_v50, %v1002_v5  ;;  %v1102_v18 = vmax.f32 %v1038_v10, 0.0  ;;  %v1039_v20 = vadd.f32 %v1998_v50, %v968_v12 }
 0x104   :  { %v1134_v19 = vmax.f32 %v1070_v11, 0.0  ;;  %v1071_v21 = vadd.f32 %v1998_v50, %v1000_v13  ;;  %v1599_v22 = vpack.c.bf16 %v1104_v14, %v1104_v14  ;;  %v1105_v24 = vmax.f32 %v1041_v16, 0.0 }
 0x105   :  { %v1631_v23 = vpack.c.bf16 %v1136_v15, %v1136_v15  ;;  %v1137_v25 = vmax.f32 %v1073_v17, 0.0  ;;  %v1597_v26 = vpack.c.bf16 %v1102_v18, %v1102_v18  ;;  %v1103_v28 = vmax.f32 %v1039_v20, 0.0  ;;  %v902_v30 = vld [vmem:[#allocation2 + $0x30] sm:$0xff]  ;;  %v1727_v32 = vpop.f32.mrb[8].mxu0  ;;  %v1759_v33 = vpop.f32.mrb[8].mxu1 }
 0x106   :  { %v1629_v27 = vpack.c.bf16 %v1134_v19, %v1134_v19  ;;  %v1135_v29 = vmax.f32 %v1071_v21, 0.0  ;;  %v934_v31 = vld [vmem:[#allocation2 + $0x130] sm:$0xff]  ;;  %1425 = vst.msk [vmem:[%s2444_s4 + $0x8] sm:$0xf] %vm1422_vm1, %v1599_v22  ;;  %v1600_v34 = vpack.c.bf16 %v1105_v24, %v1105_v24  ;;  %v973_v36 = vmul.f32 %v1993_v48, %v902_v30  ;;  %v900_v38 = vld [vmem:[#allocation2 + $0x20] sm:$0xff]  ;;  %v404_v40 = vpop.f32.mrb[9].mxu0 }
 0x107   :  { %1457 = vst.msk [vmem:[%s2444_s4 + $0x88] sm:$0xf] %vm1422_vm1, %v1631_v23  ;;  %v1632_v35 = vpack.c.bf16 %v1137_v25, %v1137_v25  ;;  %v1005_v37 = vmul.f32 %v1993_v48, %v934_v31  ;;  %v932_v39 = vld [vmem:[#allocation2 + $0x120] sm:$0xff]  ;;  %v532_v41 = vpop.f32.mrb[9].mxu1  ;;  %1423 = vst.msk [vmem:[%s2444_s4] sm:$0xf] %vm1422_vm1, %v1597_v26  ;;  %v1598_v42 = vpack.c.bf16 %v1103_v28, %v1103_v28 }
 0x108   :  { %642 = vst.msk [vmem:[#allocation2 + $0x50] sm:$0xff] %vm631_vm0, %v1727_v32  ;;  %674 = vst.msk [vmem:[#allocation2 + $0x150] sm:$0xff] %vm631_vm0, %v1759_v33  ;;  %v1630_v43 = vpack.c.bf16 %v1135_v29, %v1135_v29  ;;  %v971_v44 = vmul.f32 %v1993_v48, %v900_v38  ;;  %v1003_v45 = vmul.f32 %v1993_v48, %v932_v39  ;;  %v903_v46 = vld [vmem:[#allocation2 + $0x38] sm:$0xff]  ;;  %v1728_v49 = vpop.f32.mrb[10].mxu0  ;;  %v1760_v51 = vpop.f32.mrb[10].mxu1  ;;  %v901_v56 = vld [vmem:[#allocation2 + $0x28] sm:$0xff] }
 0x109   :  { %1455 = vst.msk [vmem:[%s2444_s4 + $0x80] sm:$0xf] %vm1422_vm1, %v1629_v27  ;;  %v935_v47 = vld [vmem:[#allocation2 + $0x138] sm:$0xff]  ;;  %1426 = vst.msk [vmem:[%s2444_s4 + $0xc] sm:$0xf] %vm1422_vm1, %v1600_v34  ;;  %v1044_v52 = vadd.f32 %v1998_v50, %v973_v36  ;;  %v1076_v53 = vadd.f32 %v1998_v50, %v1005_v37  ;;  %v974_v54 = vmul.f32 %v1993_v48, %v903_v46  ;;  %v933_v57 = vld [vmem:[#allocation2 + $0x128] sm:$0xff] }
 0x10a   :  { %640 = vst.msk [vmem:[#allocation2 + $0x40] sm:$0xff] %vm631_vm0, %v404_v40  ;;  %672 = vst.msk [vmem:[#allocation2 + $0x140] sm:$0xff] %vm631_vm0, %v532_v41  ;;  %v1006_v55 = vmul.f32 %v1993_v48, %v935_v47  ;;  %v407_v58 = vpop.f32.mrb[11].mxu0  ;;  %v535_v59 = vpop.f32.mrb[11].mxu1  ;;  %v1042_v60 = vadd.f32 %v1998_v50, %v971_v44  ;;  %v1074_v61 = vadd.f32 %v1998_v50, %v1003_v45 }
 0x10b   :  { %1458 = vst.msk [vmem:[%s2444_s4 + $0x8c] sm:$0xf] %vm1422_vm1, %v1632_v35  ;;  %1424 = vst.msk [vmem:[%s2444_s4 + $0x4] sm:$0xf] %vm1422_vm1, %v1598_v42  ;;  %v972_v62 = vmul.f32 %v1993_v48, %v901_v56  ;;  %v1004_v63 = vmul.f32 %v1993_v48, %v933_v57  ;;  %v1108_v0 = vmax.f32 %v1044_v52, 0.0  ;;  %v1140_v1 = vmax.f32 %v1076_v53, 0.0 }
 0x10c   :  { %643 = vst.msk [vmem:[#allocation2 + $0x58] sm:$0xff] %vm631_vm0, %v1728_v49  ;;  %675 = vst.msk [vmem:[#allocation2 + $0x158] sm:$0xff] %vm631_vm0, %v1760_v51  ;;  %v1045_v2 = vadd.f32 %v1998_v50, %v974_v54  ;;  %v1077_v3 = vadd.f32 %v1998_v50, %v1006_v55  ;;  %v1106_v4 = vmax.f32 %v1042_v60, 0.0  ;;  %v1138_v5 = vmax.f32 %v1074_v61, 0.0 }
 0x10d   :  { %1456 = vst.msk [vmem:[%s2444_s4 + $0x84] sm:$0xf] %vm1422_vm1, %v1630_v43  ;;  %v1043_v6 = vadd.f32 %v1998_v50, %v972_v62  ;;  %v1075_v7 = vadd.f32 %v1998_v50, %v1004_v63  ;;  %v1603_v8 = vpack.c.bf16 %v1108_v0, %v1108_v0  ;;  %v1635_v9 = vpack.c.bf16 %v1140_v1, %v1140_v1  ;;  %v1731_v18 = vpop.f32.mrb[12].mxu0  ;;  %v1763_v19 = vpop.f32.mrb[12].mxu1 }
 0x10e   :  { %641 = vst.msk [vmem:[#allocation2 + $0x48] sm:$0xff] %vm631_vm0, %v407_v58  ;;  %673 = vst.msk [vmem:[#allocation2 + $0x148] sm:$0xff] %vm631_vm0, %v535_v59  ;;  %v1109_v10 = vmax.f32 %v1045_v2, 0.0  ;;  %v1141_v11 = vmax.f32 %v1077_v3, 0.0  ;;  %v1601_v12 = vpack.c.bf16 %v1106_v4, %v1106_v4  ;;  %v1633_v13 = vpack.c.bf16 %v1138_v5, %v1138_v5  ;;  %v420_v26 = vpop.f32.mrb[13].mxu0  ;;  %v548_v27 = vpop.f32.mrb[13].mxu1 }
 0x10f   :  { %v1107_v14 = vmax.f32 %v1043_v6, 0.0  ;;  %v1139_v15 = vmax.f32 %v1075_v7, 0.0  ;;  %v906_v16 = vld [vmem:[#allocation2 + $0x50] sm:$0xff]  ;;  %1429 = vst.msk [vmem:[%s2444_s4 + $0x18] sm:$0xf] %vm1422_vm1, %v1603_v8  ;;  %v1732_v34 = vpop.f32.mrb[14].mxu0 }
 0x110   :  { %v938_v17 = vld [vmem:[#allocation2 + $0x150] sm:$0xff]  ;;  %1461 = vst.msk [vmem:[%s2444_s4 + $0x98] sm:$0xf] %vm1422_vm1, %v1635_v9  ;;  %v1604_v20 = vpack.c.bf16 %v1109_v10, %v1109_v10  ;;  %v1636_v21 = vpack.c.bf16 %v1141_v11, %v1141_v11  ;;  %v977_v22 = vmul.f32 %v1993_v48, %v906_v16  ;;  %1427 = vst.msk [vmem:[%s2444_s4 + $0x10] sm:$0xf] %vm1422_vm1, %v1601_v12  ;;  %v1764_v35 = vpop.f32.mrb[14].mxu1 }
 0x111   :  { %v1009_v23 = vmul.f32 %v1993_v48, %v938_v17  ;;  %v904_v24 = vld [vmem:[#allocation2 + $0x40] sm:$0xff]  ;;  %646 = vst.msk [vmem:[#allocation2 + $0x70] sm:$0xff] %vm631_vm0, %v1731_v18  ;;  %678 = vst.msk [vmem:[#allocation2 + $0x170] sm:$0xff] %vm631_vm0, %v1763_v19  ;;  %v1602_v28 = vpack.c.bf16 %v1107_v14, %v1107_v14  ;;  %v1634_v29 = vpack.c.bf16 %v1139_v15, %v1139_v15  ;;  %v423_v42 = vpop.f32.mrb[15].mxu0  ;;  %v551_v43 = vpop.f32.mrb[15].mxu1 }
 0x112   :  { %v936_v25 = vld [vmem:[#allocation2 + $0x140] sm:$0xff]  ;;  %1459 = vst.msk [vmem:[%s2444_s4 + $0x90] sm:$0xf] %vm1422_vm1, %v1633_v13  ;;  %v975_v30 = vmul.f32 %v1993_v48, %v904_v24  ;;  %1430 = vst.msk [vmem:[%s2444_s4 + $0x1c] sm:$0xf] %vm1422_vm1, %v1604_v20  ;;  %v1048_v36 = vadd.f32 %v1998_v50, %v977_v22 }
 0x113   :  { %v1007_v31 = vmul.f32 %v1993_v48, %v936_v25  ;;  %v907_v32 = vld [vmem:[#allocation2 + $0x58] sm:$0xff]  ;;  %644 = vst.msk [vmem:[#allocation2 + $0x60] sm:$0xff] %vm631_vm0, %v420_v26  ;;  %676 = vst.msk [vmem:[#allocation2 + $0x160] sm:$0xff] %vm631_vm0, %v548_v27  ;;  %v1080_v37 = vadd.f32 %v1998_v50, %v1009_v23 }
 0x114   :  { %v939_v33 = vld [vmem:[#allocation2 + $0x158] sm:$0xff]  ;;  %1462 = vst.msk [vmem:[%s2444_s4 + $0x9c] sm:$0xf] %vm1422_vm1, %v1636_v21  ;;  %v978_v38 = vmul.f32 %v1993_v48, %v907_v32  ;;  %1428 = vst.msk [vmem:[%s2444_s4 + $0x14] sm:$0xf] %vm1422_vm1, %v1602_v28  ;;  %v1046_v44 = vadd.f32 %v1998_v50, %v975_v30  ;;  %v1112_v49 = vmax.f32 %v1048_v36, 0.0 }
 0x115   :  { %v1010_v39 = vmul.f32 %v1993_v48, %v939_v33  ;;  %v905_v40 = vld [vmem:[#allocation2 + $0x48] sm:$0xff]  ;;  %647 = vst.msk [vmem:[#allocation2 + $0x78] sm:$0xff] %vm631_vm0, %v1732_v34  ;;  %679 = vst.msk [vmem:[#allocation2 + $0x178] sm:$0xff] %vm631_vm0, %v1764_v35  ;;  %v1078_v45 = vadd.f32 %v1998_v50, %v1007_v31  ;;  %v1144_v51 = vmax.f32 %v1080_v37, 0.0  ;;  %v1735_v4 = vpop.f32.mrb[16].mxu0  ;;  %v1767_v5 = vpop.f32.mrb[16].mxu1 }
 0x116   :  { %v937_v41 = vld [vmem:[#allocation2 + $0x148] sm:$0xff]  ;;  %1460 = vst.msk [vmem:[%s2444_s4 + $0x94] sm:$0xf] %vm1422_vm1, %v1634_v29  ;;  %v976_v46 = vmul.f32 %v1993_v48, %v905_v40  ;;  %v1049_v52 = vadd.f32 %v1998_v50, %v978_v38  ;;  %v1110_v54 = vmax.f32 %v1046_v44, 0.0  ;;  %v1607_v58 = vpack.c.bf16 %v1112_v49, %v1112_v49  ;;  %v436_v12 = vpop.f32.mrb[17].mxu0  ;;  %v564_v13 = vpop.f32.mrb[17].mxu1 }
 0x117   :  { %v1008_v47 = vmul.f32 %v1993_v48, %v937_v41  ;;  %645 = vst.msk [vmem:[#allocation2 + $0x68] sm:$0xff] %vm631_vm0, %v423_v42  ;;  %677 = vst.msk [vmem:[#allocation2 + $0x168] sm:$0xff] %vm631_vm0, %v551_v43  ;;  %v1081_v53 = vadd.f32 %v1998_v50, %v1010_v39  ;;  %v1142_v55 = vmax.f32 %v1078_v45, 0.0  ;;  %v1639_v59 = vpack.c.bf16 %v1144_v51, %v1144_v51  ;;  %v1736_v20 = vpop.f32.mrb[18].mxu0  ;;  %v1768_v21 = vpop.f32.mrb[18].mxu1 }
 0x118   :  { %v1047_v56 = vadd.f32 %v1998_v50, %v976_v46  ;;  %v1113_v60 = vmax.f32 %v1049_v52, 0.0  ;;  %v1605_v62 = vpack.c.bf16 %v1110_v54, %v1110_v54  ;;  %v910_v2 = vld [vmem:[#allocation2 + $0x70] sm:$0xff]  ;;  %1433 = vst.msk [vmem:[%s2444_s4 + $0x28] sm:$0xf] %vm1422_vm1, %v1607_v58  ;;  %v439_v28 = vpop.f32.mrb[19].mxu0  ;;  %v567_v29 = vpop.f32.mrb[19].mxu1 }
 0x119   :  { %v1079_v57 = vadd.f32 %v1998_v50, %v1008_v47  ;;  %v1145_v61 = vmax.f32 %v1081_v53, 0.0  ;;  %v1637_v63 = vpack.c.bf16 %v1142_v55, %v1142_v55  ;;  %v942_v3 = vld [vmem:[#allocation2 + $0x170] sm:$0xff]  ;;  %1465 = vst.msk [vmem:[%s2444_s4 + $0xa8] sm:$0xf] %vm1422_vm1, %v1639_v59  ;;  %v981_v8 = vmul.f32 %v1993_v48, %v910_v2 }
 0x11a   :  { %v1111_v0 = vmax.f32 %v1047_v56, 0.0  ;;  %v1608_v6 = vpack.c.bf16 %v1113_v60, %v1113_v60  ;;  %v1013_v9 = vmul.f32 %v1993_v48, %v942_v3  ;;  %v908_v10 = vld [vmem:[#allocation2 + $0x60] sm:$0xff]  ;;  %650 = vst.msk [vmem:[#allocation2 + $0x90] sm:$0xff] %vm631_vm0, %v1735_v4  ;;  %682 = vst.msk [vmem:[#allocation2 + $0x190] sm:$0xff] %vm631_vm0, %v1767_v5 }
 0x11b   :  { %v1143_v1 = vmax.f32 %v1079_v57, 0.0  ;;  %v1640_v7 = vpack.c.bf16 %v1145_v61, %v1145_v61  ;;  %v940_v11 = vld [vmem:[#allocation2 + $0x160] sm:$0xff]  ;;  %1431 = vst.msk [vmem:[%s2444_s4 + $0x20] sm:$0xf] %vm1422_vm1, %v1605_v62  ;;  %1463 = vst.msk [vmem:[%s2444_s4 + $0xa0] sm:$0xf] %vm1422_vm1, %v1637_v63  ;;  %v979_v16 = vmul.f32 %v1993_v48, %v908_v10  ;;  %v1052_v22 = vadd.f32 %v1998_v50, %v981_v8 }
 0x11c   :  { %v1606_v14 = vpack.c.bf16 %v1111_v0, %v1111_v0  ;;  %v1011_v17 = vmul.f32 %v1993_v48, %v940_v11  ;;  %v911_v18 = vld [vmem:[#allocation2 + $0x78] sm:$0xff]  ;;  %648 = vst.msk [vmem:[#allocation2 + $0x80] sm:$0xff] %vm631_vm0, %v436_v12  ;;  %680 = vst.msk [vmem:[#allocation2 + $0x180] sm:$0xff] %vm631_vm0, %v564_v13  ;;  %v1084_v23 = vadd.f32 %v1998_v50, %v1013_v9 }
 0x11d   :  { %v1638_v15 = vpack.c.bf16 %v1143_v1, %v1143_v1  ;;  %v943_v19 = vld [vmem:[#allocation2 + $0x178] sm:$0xff]  ;;  %1434 = vst.msk [vmem:[%s2444_s4 + $0x2c] sm:$0xf] %vm1422_vm1, %v1608_v6  ;;  %1466 = vst.msk [vmem:[%s2444_s4 + $0xac] sm:$0xf] %vm1422_vm1, %v1640_v7  ;;  %v982_v24 = vmul.f32 %v1993_v48, %v911_v18  ;;  %v1050_v30 = vadd.f32 %v1998_v50, %v979_v16  ;;  %v1116_v34 = vmax.f32 %v1052_v22, 0.0 }
 0x11e   :  { %v1014_v25 = vmul.f32 %v1993_v48, %v943_v19  ;;  %v909_v26 = vld [vmem:[#allocation2 + $0x68] sm:$0xff]  ;;  %651 = vst.msk [vmem:[#allocation2 + $0x98] sm:$0xff] %vm631_vm0, %v1736_v20  ;;  %683 = vst.msk [vmem:[#allocation2 + $0x198] sm:$0xff] %vm631_vm0, %v1768_v21  ;;  %v1082_v31 = vadd.f32 %v1998_v50, %v1011_v17  ;;  %v1148_v35 = vmax.f32 %v1084_v23, 0.0  ;;  %v1739_v54 = vpop.f32.mrb[20].mxu0  ;;  %v1771_v55 = vpop.f32.mrb[20].mxu1 }
 0x11f   :  { %v941_v27 = vld [vmem:[#allocation2 + $0x168] sm:$0xff]  ;;  %1432 = vst.msk [vmem:[%s2444_s4 + $0x24] sm:$0xf] %vm1422_vm1, %v1606_v14  ;;  %1464 = vst.msk [vmem:[%s2444_s4 + $0xa4] sm:$0xf] %vm1422_vm1, %v1638_v15  ;;  %v980_v32 = vmul.f32 %v1993_v48, %v909_v26  ;;  %v1053_v36 = vadd.f32 %v1998_v50, %v982_v24  ;;  %v1114_v38 = vmax.f32 %v1050_v30, 0.0  ;;  %v1611_v42 = vpack.c.bf16 %v1116_v34, %v1116_v34 }
 0x120   :  { %v1012_v33 = vmul.f32 %v1993_v48, %v941_v27  ;;  %649 = vst.msk [vmem:[#allocation2 + $0x88] sm:$0xff] %vm631_vm0, %v439_v28  ;;  %681 = vst.msk [vmem:[#allocation2 + $0x188] sm:$0xff] %vm631_vm0, %v567_v29  ;;  %v1085_v37 = vadd.f32 %v1998_v50, %v1014_v25  ;;  %v1146_v39 = vmax.f32 %v1082_v31, 0.0  ;;  %v1643_v43 = vpack.c.bf16 %v1148_v35, %v1148_v35  ;;  %v452_v62 = vpop.f32.mrb[21].mxu0  ;;  %v580_v63 = vpop.f32.mrb[21].mxu1 }
 0x121   :  { %v1051_v40 = vadd.f32 %v1998_v50, %v980_v32  ;;  %v1117_v44 = vmax.f32 %v1053_v36, 0.0  ;;  %v1609_v46 = vpack.c.bf16 %v1114_v38, %v1114_v38  ;;  %v914_v52 = vld [vmem:[#allocation2 + $0x90] sm:$0xff]  ;;  %1437 = vst.msk [vmem:[%s2444_s4 + $0x38] sm:$0xf] %vm1422_vm1, %v1611_v42  ;;  %v1740_v6 = vpop.f32.mrb[22].mxu0  ;;  %v1772_v7 = vpop.f32.mrb[22].mxu1 }
 0x122   :  { %v1083_v41 = vadd.f32 %v1998_v50, %v1012_v33  ;;  %v1149_v45 = vmax.f32 %v1085_v37, 0.0  ;;  %v1641_v47 = vpack.c.bf16 %v1146_v39, %v1146_v39  ;;  %v946_v53 = vld [vmem:[#allocation2 + $0x190] sm:$0xff]  ;;  %1469 = vst.msk [vmem:[%s2444_s4 + $0xb8] sm:$0xf] %vm1422_vm1, %v1643_v43  ;;  %v985_v58 = vmul.f32 %v1993_v48, %v914_v52  ;;  %v455_v14 = vpop.f32.mrb[23].mxu0  ;;  %v583_v15 = vpop.f32.mrb[23].mxu1 }
 0x123   :  { %v1115_v49 = vmax.f32 %v1051_v40, 0.0  ;;  %v1612_v56 = vpack.c.bf16 %v1117_v44, %v1117_v44  ;;  %v1017_v59 = vmul.f32 %v1993_v48, %v946_v53  ;;  %v912_v60 = vld [vmem:[#allocation2 + $0x80] sm:$0xff]  ;;  %654 = vst.msk [vmem:[#allocation2 + $0xb0] sm:$0xff] %vm631_vm0, %v1739_v54  ;;  %686 = vst.msk [vmem:[#allocation2 + $0x1b0] sm:$0xff] %vm631_vm0, %v1771_v55 }
 0x124   :  { %v1147_v51 = vmax.f32 %v1083_v41, 0.0  ;;  %v1644_v57 = vpack.c.bf16 %v1149_v45, %v1149_v45  ;;  %v944_v61 = vld [vmem:[#allocation2 + $0x180] sm:$0xff]  ;;  %1435 = vst.msk [vmem:[%s2444_s4 + $0x30] sm:$0xf] %vm1422_vm1, %v1609_v46  ;;  %1467 = vst.msk [vmem:[%s2444_s4 + $0xb0] sm:$0xf] %vm1422_vm1, %v1641_v47  ;;  %v983_v2 = vmul.f32 %v1993_v48, %v912_v60  ;;  %v1056_v8 = vadd.f32 %v1998_v50, %v985_v58 }
 0x125   :  { %v1610_v0 = vpack.c.bf16 %v1115_v49, %v1115_v49  ;;  %v1015_v3 = vmul.f32 %v1993_v48, %v944_v61  ;;  %v915_v4 = vld [vmem:[#allocation2 + $0x98] sm:$0xff]  ;;  %652 = vst.msk [vmem:[#allocation2 + $0xa0] sm:$0xff] %vm631_vm0, %v452_v62  ;;  %684 = vst.msk [vmem:[#allocation2 + $0x1a0] sm:$0xff] %vm631_vm0, %v580_v63  ;;  %v1088_v9 = vadd.f32 %v1998_v50, %v1017_v59  ;;  %v1743_v38 = vpop.f32.mrb[24].mxu0  ;;  %v1775_v39 = vpop.f32.mrb[24].mxu1 }
 0x126   :  { %v1642_v1 = vpack.c.bf16 %v1147_v51, %v1147_v51  ;;  %v947_v5 = vld [vmem:[#allocation2 + $0x198] sm:$0xff]  ;;  %1438 = vst.msk [vmem:[%s2444_s4 + $0x3c] sm:$0xf] %vm1422_vm1, %v1612_v56  ;;  %1470 = vst.msk [vmem:[%s2444_s4 + $0xbc] sm:$0xf] %vm1422_vm1, %v1644_v57  ;;  %v986_v10 = vmul.f32 %v1993_v48, %v915_v4  ;;  %v1054_v16 = vadd.f32 %v1998_v50, %v983_v2  ;;  %v1120_v20 = vmax.f32 %v1056_v8, 0.0 }
 0x127   :  { %v1018_v11 = vmul.f32 %v1993_v48, %v947_v5  ;;  %v913_v12 = vld [vmem:[#allocation2 + $0x88] sm:$0xff]  ;;  %655 = vst.msk [vmem:[#allocation2 + $0xb8] sm:$0xff] %vm631_vm0, %v1740_v6  ;;  %687 = vst.msk [vmem:[#allocation2 + $0x1b8] sm:$0xff] %vm631_vm0, %v1772_v7  ;;  %v1086_v17 = vadd.f32 %v1998_v50, %v1015_v3  ;;  %v1152_v21 = vmax.f32 %v1088_v9, 0.0  ;;  %v468_v46 = vpop.f32.mrb[25].mxu0  ;;  %v596_v47 = vpop.f32.mrb[25].mxu1 }
 0x128   :  { %v945_v13 = vld [vmem:[#allocation2 + $0x188] sm:$0xff]  ;;  %1436 = vst.msk [vmem:[%s2444_s4 + $0x34] sm:$0xf] %vm1422_vm1, %v1610_v0  ;;  %1468 = vst.msk [vmem:[%s2444_s4 + $0xb4] sm:$0xf] %vm1422_vm1, %v1642_v1  ;;  %v984_v18 = vmul.f32 %v1993_v48, %v913_v12  ;;  %v1057_v22 = vadd.f32 %v1998_v50, %v986_v10  ;;  %v1118_v24 = vmax.f32 %v1054_v16, 0.0  ;;  %v1615_v28 = vpack.c.bf16 %v1120_v20, %v1120_v20 }
 0x129   :  { %v1016_v19 = vmul.f32 %v1993_v48, %v945_v13  ;;  %653 = vst.msk [vmem:[#allocation2 + $0xa8] sm:$0xff] %vm631_vm0, %v455_v14  ;;  %685 = vst.msk [vmem:[#allocation2 + $0x1a8] sm:$0xff] %vm631_vm0, %v583_v15  ;;  %v1089_v23 = vadd.f32 %v1998_v50, %v1018_v11  ;;  %v1150_v25 = vmax.f32 %v1086_v17, 0.0  ;;  %v1647_v29 = vpack.c.bf16 %v1152_v21, %v1152_v21  ;;  %v1744_v56 = vpop.f32.mrb[26].mxu0  ;;  %v1776_v57 = vpop.f32.mrb[26].mxu1 }
 0x12a   :  { %v1055_v26 = vadd.f32 %v1998_v50, %v984_v18  ;;  %v1121_v30 = vmax.f32 %v1057_v22, 0.0  ;;  %v1613_v32 = vpack.c.bf16 %v1118_v24, %v1118_v24  ;;  %v918_v36 = vld [vmem:[#allocation2 + $0xb0] sm:$0xff]  ;;  %1441 = vst.msk [vmem:[%s2444_s4 + $0x48] sm:$0xf] %vm1422_vm1, %v1615_v28  ;;  %v471_v0 = vpop.f32.mrb[27].mxu0  ;;  %v599_v1 = vpop.f32.mrb[27].mxu1 }
 0x12b   :  { %v1087_v27 = vadd.f32 %v1998_v50, %v1016_v19  ;;  %v1153_v31 = vmax.f32 %v1089_v23, 0.0  ;;  %v1645_v33 = vpack.c.bf16 %v1150_v25, %v1150_v25  ;;  %v950_v37 = vld [vmem:[#allocation2 + $0x1b0] sm:$0xff]  ;;  %1473 = vst.msk [vmem:[%s2444_s4 + $0xc8] sm:$0xf] %vm1422_vm1, %v1647_v29  ;;  %v989_v42 = vmul.f32 %v1993_v48, %v918_v36 }
 0x12c   :  { %v1119_v34 = vmax.f32 %v1055_v26, 0.0  ;;  %v1616_v40 = vpack.c.bf16 %v1121_v30, %v1121_v30  ;;  %v1021_v43 = vmul.f32 %v1993_v48, %v950_v37  ;;  %v916_v44 = vld [vmem:[#allocation2 + $0xa0] sm:$0xff]  ;;  %658 = vst.msk [vmem:[#allocation2 + $0xd0] sm:$0xff] %vm631_vm0, %v1743_v38  ;;  %690 = vst.msk [vmem:[#allocation2 + $0x1d0] sm:$0xff] %vm631_vm0, %v1775_v39 }
 0x12d   :  { %v1151_v35 = vmax.f32 %v1087_v27, 0.0  ;;  %v1648_v41 = vpack.c.bf16 %v1153_v31, %v1153_v31  ;;  %v948_v45 = vld [vmem:[#allocation2 + $0x1a0] sm:$0xff]  ;;  %1439 = vst.msk [vmem:[%s2444_s4 + $0x40] sm:$0xf] %vm1422_vm1, %v1613_v32  ;;  %1471 = vst.msk [vmem:[%s2444_s4 + $0xc0] sm:$0xf] %vm1422_vm1, %v1645_v33  ;;  %v987_v52 = vmul.f32 %v1993_v48, %v916_v44  ;;  %v1060_v58 = vadd.f32 %v1998_v50, %v989_v42 }
 0x12e   :  { %v1614_v49 = vpack.c.bf16 %v1119_v34, %v1119_v34  ;;  %v1019_v53 = vmul.f32 %v1993_v48, %v948_v45  ;;  %v919_v54 = vld [vmem:[#allocation2 + $0xb8] sm:$0xff]  ;;  %656 = vst.msk [vmem:[#allocation2 + $0xc0] sm:$0xff] %vm631_vm0, %v468_v46  ;;  %688 = vst.msk [vmem:[#allocation2 + $0x1c0] sm:$0xff] %vm631_vm0, %v596_v47  ;;  %v1092_v59 = vadd.f32 %v1998_v50, %v1021_v43  ;;  %v1747_v24 = vpop.f32.mrb[28].mxu0  ;;  %v1779_v25 = vpop.f32.mrb[28].mxu1 }
 0x12f   :  { %v1646_v51 = vpack.c.bf16 %v1151_v35, %v1151_v35  ;;  %v951_v55 = vld [vmem:[#allocation2 + $0x1b8] sm:$0xff]  ;;  %1442 = vst.msk [vmem:[%s2444_s4 + $0x4c] sm:$0xf] %vm1422_vm1, %v1616_v40  ;;  %1474 = vst.msk [vmem:[%s2444_s4 + $0xcc] sm:$0xf] %vm1422_vm1, %v1648_v41  ;;  %v990_v60 = vmul.f32 %v1993_v48, %v919_v54  ;;  %v1058_v2 = vadd.f32 %v1998_v50, %v987_v52  ;;  %v1124_v6 = vmax.f32 %v1060_v58, 0.0 }
 0x130   :  { %v1022_v61 = vmul.f32 %v1993_v48, %v951_v55  ;;  %v917_v62 = vld [vmem:[#allocation2 + $0xa8] sm:$0xff]  ;;  %659 = vst.msk [vmem:[#allocation2 + $0xd8] sm:$0xff] %vm631_vm0, %v1744_v56  ;;  %691 = vst.msk [vmem:[#allocation2 + $0x1d8] sm:$0xff] %vm631_vm0, %v1776_v57  ;;  %v1090_v3 = vadd.f32 %v1998_v50, %v1019_v53  ;;  %v1156_v7 = vmax.f32 %v1092_v59, 0.0  ;;  %v484_v32 = vpop.f32.mrb[29].mxu0  ;;  %v612_v33 = vpop.f32.mrb[29].mxu1 }
 0x131   :  { %v949_v63 = vld [vmem:[#allocation2 + $0x1a8] sm:$0xff]  ;;  %1440 = vst.msk [vmem:[%s2444_s4 + $0x44] sm:$0xf] %vm1422_vm1, %v1614_v49  ;;  %1472 = vst.msk [vmem:[%s2444_s4 + $0xc4] sm:$0xf] %vm1422_vm1, %v1646_v51  ;;  %v988_v4 = vmul.f32 %v1993_v48, %v917_v62  ;;  %v1061_v8 = vadd.f32 %v1998_v50, %v990_v60  ;;  %v1122_v10 = vmax.f32 %v1058_v2, 0.0  ;;  %v1619_v14 = vpack.c.bf16 %v1124_v6, %v1124_v6 }
 0x132   :  { %v1020_v5 = vmul.f32 %v1993_v48, %v949_v63  ;;  %657 = vst.msk [vmem:[#allocation2 + $0xc8] sm:$0xff] %vm631_vm0, %v471_v0  ;;  %689 = vst.msk [vmem:[#allocation2 + $0x1c8] sm:$0xff] %vm631_vm0, %v599_v1  ;;  %v1093_v9 = vadd.f32 %v1998_v50, %v1022_v61  ;;  %v1154_v11 = vmax.f32 %v1090_v3, 0.0  ;;  %v1651_v15 = vpack.c.bf16 %v1156_v7, %v1156_v7  ;;  %v1748_v40 = vpop.f32.mrb[30].mxu0  ;;  %v1780_v41 = vpop.f32.mrb[30].mxu1 }
 0x133   :  { %v1059_v12 = vadd.f32 %v1998_v50, %v988_v4  ;;  %v1125_v16 = vmax.f32 %v1061_v8, 0.0  ;;  %v1617_v18 = vpack.c.bf16 %v1122_v10, %v1122_v10  ;;  %v922_v22 = vld [vmem:[#allocation2 + $0xd0] sm:$0xff]  ;;  %1445 = vst.msk [vmem:[%s2444_s4 + $0x58] sm:$0xf] %vm1422_vm1, %v1619_v14  ;;  %v487_v49 = vpop.f32.mrb[31].mxu0  ;;  %v615_v51 = vpop.f32.mrb[31].mxu1 }
 0x134   :  { %v1091_v13 = vadd.f32 %v1998_v50, %v1020_v5  ;;  %v1157_v17 = vmax.f32 %v1093_v9, 0.0  ;;  %v1649_v19 = vpack.c.bf16 %v1154_v11, %v1154_v11  ;;  %v954_v23 = vld [vmem:[#allocation2 + $0x1d0] sm:$0xff]  ;;  %1477 = vst.msk [vmem:[%s2444_s4 + $0xd8] sm:$0xf] %vm1422_vm1, %v1651_v15  ;;  %v993_v28 = vmul.f32 %v1993_v48, %v922_v22 }
 0x135   :  { %v1123_v20 = vmax.f32 %v1059_v12, 0.0  ;;  %v1620_v26 = vpack.c.bf16 %v1125_v16, %v1125_v16  ;;  %v1025_v29 = vmul.f32 %v1993_v48, %v954_v23  ;;  %v920_v30 = vld [vmem:[#allocation2 + $0xc0] sm:$0xff]  ;;  %662 = vst.msk [vmem:[#allocation2 + $0xf0] sm:$0xff] %vm631_vm0, %v1747_v24  ;;  %694 = vst.msk [vmem:[#allocation2 + $0x1f0] sm:$0xff] %vm631_vm0, %v1779_v25 }
 0x136   :  { %v1155_v21 = vmax.f32 %v1091_v13, 0.0  ;;  %v1652_v27 = vpack.c.bf16 %v1157_v17, %v1157_v17  ;;  %v952_v31 = vld [vmem:[#allocation2 + $0x1c0] sm:$0xff]  ;;  %1443 = vst.msk [vmem:[%s2444_s4 + $0x50] sm:$0xf] %vm1422_vm1, %v1617_v18  ;;  %1475 = vst.msk [vmem:[%s2444_s4 + $0xd0] sm:$0xf] %vm1422_vm1, %v1649_v19  ;;  %v991_v36 = vmul.f32 %v1993_v48, %v920_v30  ;;  %v1064_v42 = vadd.f32 %v1998_v50, %v993_v28 }
 0x137   :  { %v1618_v34 = vpack.c.bf16 %v1123_v20, %v1123_v20  ;;  %v1023_v37 = vmul.f32 %v1993_v48, %v952_v31  ;;  %v923_v38 = vld [vmem:[#allocation2 + $0xd8] sm:$0xff]  ;;  %660 = vst.msk [vmem:[#allocation2 + $0xe0] sm:$0xff] %vm631_vm0, %v484_v32  ;;  %692 = vst.msk [vmem:[#allocation2 + $0x1e0] sm:$0xff] %vm631_vm0, %v612_v33  ;;  %v1096_v43 = vadd.f32 %v1998_v50, %v1025_v29 }
 0x138   :  { %v1650_v35 = vpack.c.bf16 %v1155_v21, %v1155_v21  ;;  %v955_v39 = vld [vmem:[#allocation2 + $0x1d8] sm:$0xff]  ;;  %1446 = vst.msk [vmem:[%s2444_s4 + $0x5c] sm:$0xf] %vm1422_vm1, %v1620_v26  ;;  %1478 = vst.msk [vmem:[%s2444_s4 + $0xdc] sm:$0xf] %vm1422_vm1, %v1652_v27  ;;  %v994_v44 = vmul.f32 %v1993_v48, %v923_v38  ;;  %v1062_v52 = vadd.f32 %v1998_v50, %v991_v36  ;;  %v1128_v56 = vmax.f32 %v1064_v42, 0.0 }
 0x139   :  { %v1026_v45 = vmul.f32 %v1993_v48, %v955_v39  ;;  %v921_v46 = vld [vmem:[#allocation2 + $0xc8] sm:$0xff]  ;;  %663 = vst.msk [vmem:[#allocation2 + $0xf8] sm:$0xff] %vm631_vm0, %v1748_v40  ;;  %695 = vst.msk [vmem:[#allocation2 + $0x1f8] sm:$0xff] %vm631_vm0, %v1780_v41  ;;  %v1094_v53 = vadd.f32 %v1998_v50, %v1023_v37  ;;  %v1160_v57 = vmax.f32 %v1096_v43, 0.0 }
 0x13a   :  { %v953_v47 = vld [vmem:[#allocation2 + $0x1c8] sm:$0xff]  ;;  %1444 = vst.msk [vmem:[%s2444_s4 + $0x54] sm:$0xf] %vm1422_vm1, %v1618_v34  ;;  %1476 = vst.msk [vmem:[%s2444_s4 + $0xd4] sm:$0xf] %vm1422_vm1, %v1650_v35  ;;  %v992_v54 = vmul.f32 %v1993_v48, %v921_v46  ;;  %v1065_v58 = vadd.f32 %v1998_v50, %v994_v44  ;;  %v1126_v60 = vmax.f32 %v1062_v52, 0.0  ;;  %v1623_v0 = vpack.c.bf16 %v1128_v56, %v1128_v56 }
 0x13b   :  { %v1024_v55 = vmul.f32 %v1993_v48, %v953_v47  ;;  %661 = vst.msk [vmem:[#allocation2 + $0xe8] sm:$0xff] %vm631_vm0, %v487_v49  ;;  %693 = vst.msk [vmem:[#allocation2 + $0x1e8] sm:$0xff] %vm631_vm0, %v615_v51  ;;  %v1097_v59 = vadd.f32 %v1998_v50, %v1026_v45  ;;  %v1158_v61 = vmax.f32 %v1094_v53, 0.0  ;;  %v1655_v1 = vpack.c.bf16 %v1160_v57, %v1160_v57 }
 0x13c   :  { %v1063_v62 = vadd.f32 %v1998_v50, %v992_v54  ;;  %v1129_v2 = vmax.f32 %v1065_v58, 0.0  ;;  %v1621_v4 = vpack.c.bf16 %v1126_v60, %v1126_v60  ;;  %v926_v8 = vld [vmem:[#allocation2 + $0xf0] sm:$0xff]  ;;  %1449 = vst.msk [vmem:[%s2444_s4 + $0x68] sm:$0xf] %vm1422_vm1, %v1623_v0 }
 0x13d   :  { %v1095_v63 = vadd.f32 %v1998_v50, %v1024_v55  ;;  %v1161_v3 = vmax.f32 %v1097_v59, 0.0  ;;  %v1653_v5 = vpack.c.bf16 %v1158_v61, %v1158_v61  ;;  %v958_v9 = vld [vmem:[#allocation2 + $0x1f0] sm:$0xff]  ;;  %1481 = vst.msk [vmem:[%s2444_s4 + $0xe8] sm:$0xf] %vm1422_vm1, %v1655_v1  ;;  %v997_v12 = vmul.f32 %v1993_v48, %v926_v8 }
 0x13e   :  { %v1127_v6 = vmax.f32 %v1063_v62, 0.0  ;;  %v1624_v10 = vpack.c.bf16 %v1129_v2, %v1129_v2  ;;  %v1029_v13 = vmul.f32 %v1993_v48, %v958_v9  ;;  %v924_v14 = vld [vmem:[#allocation2 + $0xe0] sm:$0xff]  ;;  %1447 = vst.msk [vmem:[%s2444_s4 + $0x60] sm:$0xf] %vm1422_vm1, %v1621_v4 }
 0x13f   :  { %v1159_v7 = vmax.f32 %v1095_v63, 0.0  ;;  %v1656_v11 = vpack.c.bf16 %v1161_v3, %v1161_v3  ;;  %v956_v15 = vld [vmem:[#allocation2 + $0x1e0] sm:$0xff]  ;;  %1479 = vst.msk [vmem:[%s2444_s4 + $0xe0] sm:$0xf] %vm1422_vm1, %v1653_v5  ;;  %v995_v18 = vmul.f32 %v1993_v48, %v924_v14  ;;  %v1068_v22 = vadd.f32 %v1998_v50, %v997_v12 }
 0x140   :  { %v1622_v16 = vpack.c.bf16 %v1127_v6, %v1127_v6  ;;  %v1027_v19 = vmul.f32 %v1993_v48, %v956_v15  ;;  %v927_v20 = vld [vmem:[#allocation2 + $0xf8] sm:$0xff]  ;;  %1450 = vst.msk [vmem:[%s2444_s4 + $0x6c] sm:$0xf] %vm1422_vm1, %v1624_v10  ;;  %v1100_v23 = vadd.f32 %v1998_v50, %v1029_v13 }
 0x141   :  { %v1654_v17 = vpack.c.bf16 %v1159_v7, %v1159_v7  ;;  %v959_v21 = vld [vmem:[#allocation2 + $0x1f8] sm:$0xff]  ;;  %1482 = vst.msk [vmem:[%s2444_s4 + $0xec] sm:$0xf] %vm1422_vm1, %v1656_v11  ;;  %v998_v24 = vmul.f32 %v1993_v48, %v927_v20  ;;  %v1066_v28 = vadd.f32 %v1998_v50, %v995_v18  ;;  %v1132_v32 = vmax.f32 %v1068_v22, 0.0 }
 0x142   :  { %v1030_v25 = vmul.f32 %v1993_v48, %v959_v21  ;;  %v925_v26 = vld [vmem:[#allocation2 + $0xe8] sm:$0xff]  ;;  %1448 = vst.msk [vmem:[%s2444_s4 + $0x64] sm:$0xf] %vm1422_vm1, %v1622_v16  ;;  %v1098_v29 = vadd.f32 %v1998_v50, %v1027_v19  ;;  %v1164_v33 = vmax.f32 %v1100_v23, 0.0 }
 0x143   :  { %v957_v27 = vld [vmem:[#allocation2 + $0x1e8] sm:$0xff]  ;;  %1480 = vst.msk [vmem:[%s2444_s4 + $0xe4] sm:$0xf] %vm1422_vm1, %v1654_v17  ;;  %v996_v30 = vmul.f32 %v1993_v48, %v925_v26  ;;  %v1069_v34 = vadd.f32 %v1998_v50, %v998_v24  ;;  %v1130_v36 = vmax.f32 %v1066_v28, 0.0  ;;  %v1627_v40 = vpack.c.bf16 %v1132_v32, %v1132_v32 }
 0x144   :  { %v1028_v31 = vmul.f32 %v1993_v48, %v957_v27  ;;  %v1101_v35 = vadd.f32 %v1998_v50, %v1030_v25  ;;  %v1162_v37 = vmax.f32 %v1098_v29, 0.0  ;;  %v1659_v41 = vpack.c.bf16 %v1164_v33, %v1164_v33 }
 0x145   :  { %v1067_v38 = vadd.f32 %v1998_v50, %v996_v30  ;;  %v1133_v42 = vmax.f32 %v1069_v34, 0.0  ;;  %v1625_v44 = vpack.c.bf16 %v1130_v36, %v1130_v36  ;;  %1453 = vst.msk [vmem:[%s2444_s4 + $0x78] sm:$0xf] %vm1422_vm1, %v1627_v40 }
 0x146   :  { %v1099_v39 = vadd.f32 %v1998_v50, %v1028_v31  ;;  %v1165_v43 = vmax.f32 %v1101_v35, 0.0  ;;  %v1657_v45 = vpack.c.bf16 %v1162_v37, %v1162_v37  ;;  %1485 = vst.msk [vmem:[%s2444_s4 + $0xf8] sm:$0xf] %vm1422_vm1, %v1659_v41 }
 0x147   :  { %v1131_v46 = vmax.f32 %v1067_v38, 0.0  ;;  %v1628_v47 = vpack.c.bf16 %v1133_v42, %v1133_v42  ;;  %1451 = vst.msk [vmem:[%s2444_s4 + $0x70] sm:$0xf] %vm1422_vm1, %v1625_v44 }
 0x148   :  { %v1163_v48 = vmax.f32 %v1099_v39, 0.0  ;;  %v1660_v50 = vpack.c.bf16 %v1165_v43, %v1165_v43  ;;  %1483 = vst.msk [vmem:[%s2444_s4 + $0xf0] sm:$0xf] %vm1422_vm1, %v1657_v45 }
 0x149   :  { %v1626_v49 = vpack.c.bf16 %v1131_v46, %v1131_v46  ;;  %1454 = vst.msk [vmem:[%s2444_s4 + $0x7c] sm:$0xf] %vm1422_vm1, %v1628_v47 }
 0x14a   :  { %v1658_v51 = vpack.c.bf16 %v1163_v48, %v1163_v48  ;;  %1486 = vst.msk [vmem:[%s2444_s4 + $0xfc] sm:$0xf] %vm1422_vm1, %v1660_v50 }
 0x14b   :  { %1452 = vst.msk [vmem:[%s2444_s4 + $0x74] sm:$0xf] %vm1422_vm1, %v1626_v49 }
 0x14c   :  { %1484 = vst.msk [vmem:[%s2444_s4 + $0xf4] sm:$0xf] %vm1422_vm1, %v1658_v51 }

// kernel: resnet_forward.9
= control target key start
LH: loop header
LB: loop body
LE: loop exit
PB: predicated region body
PF: predicated region fallthrough
CT: control target
= control target key end

     0   :  { %v3922_v0 = vmov 0   ;;  %vm2233_vm0 = vcmask 523264   ;;  %vm3024_vm1 = vcmask 519168   ;;  %s5382_s1 = inlined_call_operand.vmem [shape: bf16[640,64], index: 1, kind: input, shape index: {}]   ;;  %s5383_s0 = inlined_call_operand.vmem [shape: bf16[512,640], index: 0, kind: input, shape index: {}]   ;;  %s5384_s2 = inlined_call_operand.vmem [shape: f32[1,64], index: 2, kind: input, shape index: {}]   ;;  %s5385_s3 = inlined_call_operand.vmem [shape: f32[1,64], index: 3, kind: input, shape index: {}]   ;;  %s5386_s4 = inlined_call_operand.vmem [shape: bf16[512,64], index: 4, kind: output, shape index: {}]  }
   0x1   :  { %1362 = vmatprep.subr.bf16.mxu0 %v3922_v0  ;;  %3543 = vmatprep.subr.bf16.mxu1 %v3922_v0  ;;  %v3656_v1 = vld [vmem:[%s5382_s1] sm:$0xff]   ;;  %v3657_v2 = vld [vmem:[%s5382_s1 + $0x8] sm:$0xff]   ;;  %v3658_v3 = vld [vmem:[%s5382_s1 + $0x10] sm:$0xff]  }
   0x2   :  { %1363 = vmatpush1.bf16.msra.mxu0 %v3656_v1  ;;  %3559 = vmatpush1.bf16.msra.mxu1 %v3656_v1  ;;  %v3659_v4 = vld [vmem:[%s5382_s1 + $0x18] sm:$0xff]   ;;  %v3660_v5 = vld [vmem:[%s5382_s1 + $0x20] sm:$0xff]   ;;  %v3661_v7 = vld [vmem:[%s5382_s1 + $0x28] sm:$0xff]  }
   0x3   :  { %1364 = vmatprep.subr.bf16.mxu0 %v3922_v0  ;;  %3544 = vmatprep.subr.bf16.mxu1 %v3922_v0  ;;  %v3674_v6 = vld [vmem:[%s5383_s0 + $0x4] ss:$20 sps:$4 sm:$0xff]   ;;  %v3662_v9 = vld [vmem:[%s5382_s1 + $0x30] sm:$0xff]   ;;  %v3665_v12 = vld [vmem:[%s5382_s1 + $0x48] sm:$0xff]  }
   0x4   :  { %v3677_v8 = vld [vmem:[%s5383_s0 + $0x144] ss:$20 sps:$4 sm:$0xff]   ;;  %1394 = vmatprep.mubr.bf16.mxu0 %v3674_v6  ;;  %v3666_v13 = vld [vmem:[%s5382_s1 + $0x50] sm:$0xff]   ;;  %v3669_v16 = vld [vmem:[%s5382_s1 + $0x68] sm:$0xff]  }
   0x5   :  { %1458 = vmatprep.mubr.bf16.mxu1 %v3677_v8  ;;  %v3663_v10 = vld [vmem:[%s5382_s1 + $0x38] sm:$0xff]   ;;  %v3664_v11 = vld [vmem:[%s5382_s1 + $0x40] sm:$0xff]   ;;  %v3670_v17 = vld [vmem:[%s5382_s1 + $0x70] sm:$0xff]  }
   0x6   :  { %1365 = vmatpush1.bf16.msra.mxu0 %v3657_v2  ;;  %3560 = vmatpush1.bf16.msra.mxu1 %v3657_v2  ;;  %v3667_v14 = vld [vmem:[%s5382_s1 + $0x58] sm:$0xff]   ;;  %v3668_v15 = vld [vmem:[%s5382_s1 + $0x60] sm:$0xff]   ;;  %v3704_v25 = vld [vmem:[%s5382_s1 + $0x108] sm:$0xff]  }
   0x7   :  { %1366 = vmatprep.subr.bf16.mxu0 %v3922_v0  ;;  %3545 = vmatprep.subr.bf16.mxu1 %v3922_v0  ;;  %v3671_v18 = vld [vmem:[%s5382_s1 + $0x78] sm:$0xff]   ;;  %v3679_v19 = vld [vmem:[%s5382_s1 + $0x100] sm:$0xff]   ;;  %v3680_v26 = vld [vmem:[%s5382_s1 + $0x88] sm:$0xff]  }
   0x8   :  { %v3672_v20 = vld [vmem:[%s5383_s0] ss:$20 sps:$4 sm:$0xff]   ;;  %v3685_v28 = vld [vmem:[%s5383_s0 + $0x28] ss:$20 sps:$4 sm:$0xff]   ;;  %v3693_v35 = vld [vmem:[%s5383_s0 + $0x50] ss:$20 sps:$4 sm:$0xff]  }
   0x9   :  { %v3675_v21 = vld [vmem:[%s5383_s0 + $0x140] ss:$20 sps:$4 sm:$0xff]   ;;  %v3686_v29 = vld [vmem:[%s5383_s0 + $0x168] ss:$20 sps:$4 sm:$0xff]   ;;  %v3694_v36 = vld [vmem:[%s5383_s0 + $0x190] ss:$20 sps:$4 sm:$0xff]  }
   0xa   :  { %1367 = vmatpush1.bf16.msra.mxu0 %v3658_v3  ;;  %3561 = vmatpush1.bf16.msra.mxu1 %v3658_v3  ;;  %v3678_v22 = vld [vmem:[%s5382_s1 + $0x80] sm:$0xff]   ;;  %v3729_v27 = vld [vmem:[%s5382_s1 + $0x110] sm:$0xff]   ;;  %v3751_v33 = vld [vmem:[%s5382_s1 + $0x118] sm:$0xff]  }
   0xb   :  { %1368 = vmatprep.subr.bf16.mxu0 %v3922_v0  ;;  %3546 = vmatprep.subr.bf16.mxu1 %v3922_v0  ;;  %v3681_v23 = vld [vmem:[%s5383_s0 + $0x2c] ss:$20 sps:$4 sm:$0xff]   ;;  %v3687_v30 = vld [vmem:[%s5382_s1 + $0x90] sm:$0xff]   ;;  %v3688_v34 = vld [vmem:[%s5382_s1 + $0x98] sm:$0xff]  }
   0xc   :  { %v3683_v24 = vld [vmem:[%s5383_s0 + $0x16c] ss:$20 sps:$4 sm:$0xff]   ;;  %v3689_v31 = vld [vmem:[%s5383_s0 + $0x54] ss:$20 sps:$4 sm:$0xff]   ;;  %v3697_v38 = vld [vmem:[%s5383_s0 + $0x7c] ss:$20 sps:$4 sm:$0xff]  }
   0xd   :  { %v3691_v32 = vld [vmem:[%s5383_s0 + $0x194] ss:$20 sps:$4 sm:$0xff]   ;;  %v3695_v37 = vld [vmem:[%s5382_s1 + $0xa0] sm:$0xff]   ;;  %v3699_v39 = vld [vmem:[%s5383_s0 + $0x1bc] ss:$20 sps:$4 sm:$0xff]  }
   0xe   :  { %1369 = vmatpush1.bf16.msra.mxu0 %v3659_v4  ;;  %3562 = vmatpush1.bf16.msra.mxu1 %v3659_v4  ;;  %v3770_v40 = vld [vmem:[%s5382_s1 + $0x120] sm:$0xff]   ;;  %v3696_v41 = vld [vmem:[%s5382_s1 + $0xa8] sm:$0xff]   ;;  %v3703_v45 = vld [vmem:[%s5382_s1 + $0xb0] sm:$0xff]  }
   0xf   :  { %1370 = vmatprep.subr.bf16.mxu0 %v3922_v0  ;;  %3547 = vmatprep.subr.bf16.mxu1 %v3922_v0  ;;  %v3789_v42 = vld [vmem:[%s5382_s1 + $0x128] sm:$0xff]   ;;  %v3706_v46 = vld [vmem:[%s5383_s0 + $0xa4] ss:$20 sps:$4 sm:$0xff]   ;;  %v3808_v48 = vld [vmem:[%s5382_s1 + $0x130] sm:$0xff]  }
  0x10   :  { %v3701_v43 = vld [vmem:[%s5383_s0 + $0x78] ss:$20 sps:$4 sm:$0xff]   ;;  %v3710_v50 = vld [vmem:[%s5383_s0 + $0xa0] ss:$20 sps:$4 sm:$0xff]   ;;  %v3718_v56 = vld [vmem:[%s5383_s0 + $0xc8] ss:$20 sps:$4 sm:$0xff]  }
  0x11   :  { %v3702_v44 = vld [vmem:[%s5383_s0 + $0x1b8] ss:$20 sps:$4 sm:$0xff]   ;;  %v3711_v51 = vld [vmem:[%s5383_s0 + $0x1e0] ss:$20 sps:$4 sm:$0xff]   ;;  %v3719_v57 = vld [vmem:[%s5383_s0 + $0x208] ss:$20 sps:$4 sm:$0xff]  }
  0x12   :  { %1371 = vmatpush1.bf16.msra.mxu0 %v3660_v5  ;;  %3563 = vmatpush1.bf16.msra.mxu1 %v3660_v5  ;;  %v3708_v47 = vld [vmem:[%s5383_s0 + $0x1e4] ss:$20 sps:$4 sm:$0xff]   ;;  %v3714_v53 = vld [vmem:[%s5383_s0 + $0xcc] ss:$20 sps:$4 sm:$0xff]   ;;  %v3720_v58 = vld [vmem:[%s5382_s1 + $0xd0] sm:$0xff]  }
  0x13   :  { %1372 = vmatprep.subr.bf16.mxu0 %v3922_v0  ;;  %3548 = vmatprep.subr.bf16.mxu1 %v3922_v0  ;;  %v3705_v49 = vld [vmem:[%s5382_s1 + $0xb8] sm:$0xff]   ;;  %v3712_v52 = vld [vmem:[%s5382_s1 + $0xc0] sm:$0xff]   ;;  %v3713_v55 = vld [vmem:[%s5382_s1 + $0xc8] sm:$0xff]  }
  0x14   :  { %v3716_v54 = vld [vmem:[%s5383_s0 + $0x20c] ss:$20 sps:$4 sm:$0xff]   ;;  %v3722_v59 = vld [vmem:[%s5383_s0 + $0xf4] ss:$20 sps:$4 sm:$0xff]   ;;  %v3827_v61 = vld [vmem:[%s5382_s1 + $0x138] sm:$0xff]  }
  0x15   :  { %v3724_v60 = vld [vmem:[%s5383_s0 + $0x234] ss:$20 sps:$4 sm:$0xff]   ;;  %v3721_v62 = vld [vmem:[%s5382_s1 + $0xd8] sm:$0xff]   ;;  %v3726_v63 = vld [vmem:[%s5383_s0 + $0xf0] ss:$20 sps:$4 sm:$0xff]  }
  0x16   :  { %1373 = vmatpush1.bf16.msra.mxu0 %v3661_v7  ;;  %3564 = vmatpush1.bf16.msra.mxu1 %v3661_v7  ;;  %v3727_v1 = vld [vmem:[%s5383_s0 + $0x230] ss:$20 sps:$4 sm:$0xff]   ;;  %v3730_v5 = vld [vmem:[%s5382_s1 + $0xe8] sm:$0xff]  }
  0x17   :  { %1374 = vmatprep.subr.bf16.mxu0 %v3922_v0  ;;  %3549 = vmatprep.subr.bf16.mxu1 %v3922_v0  ;;  %v3728_v2 = vld [vmem:[%s5382_s1 + $0xe0] sm:$0xff]   ;;  %v3731_v3 = vld [vmem:[%s5383_s0 + $0x11c] ss:$20 sps:$4 sm:$0xff]   ;;  %v3735_v6 = vld [vmem:[%s5383_s0 + $0x118] ss:$20 sps:$4 sm:$0xff]  }
  0x18   :  { %v3733_v4 = vld [vmem:[%s5383_s0 + $0x25c] ss:$20 sps:$4 sm:$0xff]   ;;  %v3736_v7 = vld [vmem:[%s5383_s0 + $0x258] ss:$20 sps:$4 sm:$0xff]  }
  0x19   :  { %v3737_v8 = vld [vmem:[%s5382_s1 + $0xf0] sm:$0xff]  }
  0x1a   :  { %1375 = vmatpush1.bf16.msra.mxu0 %v3662_v9  ;;  %3565 = vmatpush1.bf16.msra.mxu1 %v3662_v9  ;;  %v3739_v9 = vld [vmem:[%s5383_s0 + $0x284] ss:$20 sps:$4 sm:$0xff]  }
  0x1b   :  { %1376 = vmatprep.subr.bf16.mxu0 %v3922_v0  ;;  %3550 = vmatprep.subr.bf16.mxu1 %v3922_v0 }
  0x1e   :  { %1377 = vmatpush1.bf16.msra.mxu0 %v3663_v10  ;;  %3566 = vmatpush1.bf16.msra.mxu1 %v3663_v10  ;;  %v3743_v10 = vld [vmem:[%s5383_s0 + $0xc] ss:$20 sps:$4 sm:$0xff]  }
  0x1f   :  { %1378 = vmatprep.subr.bf16.mxu0 %v3922_v0  ;;  %3551 = vmatprep.subr.bf16.mxu1 %v3922_v0 }
  0x22   :  { %1379 = vmatpush1.bf16.msra.mxu0 %v3664_v11  ;;  %3567 = vmatpush1.bf16.msra.mxu1 %v3664_v11  ;;  %v3738_v11 = vld [vmem:[%s5382_s1 + $0xf8] sm:$0xff]  }
  0x23   :  { %1380 = vmatprep.subr.bf16.mxu0 %v3922_v0  ;;  %3552 = vmatprep.subr.bf16.mxu1 %v3922_v0 }
  0x26   :  { %1381 = vmatpush1.bf16.msra.mxu0 %v3665_v12  ;;  %3568 = vmatpush1.bf16.msra.mxu1 %v3665_v12  ;;  %v3741_v12 = vld [vmem:[%s5383_s0 + $0x8] ss:$20 sps:$4 sm:$0xff]  }
  0x27   :  { %1382 = vmatprep.subr.bf16.mxu0 %v3922_v0  ;;  %3553 = vmatprep.subr.bf16.mxu1 %v3922_v0 }
  0x2a   :  { %1383 = vmatpush1.bf16.msra.mxu0 %v3666_v13  ;;  %3569 = vmatpush1.bf16.msra.mxu1 %v3666_v13  ;;  %v3744_v13 = vld [vmem:[%s5383_s0 + $0x280] ss:$20 sps:$4 sm:$0xff]  }
  0x2b   :  { %1384 = vmatprep.subr.bf16.mxu0 %v3922_v0  ;;  %3554 = vmatprep.subr.bf16.mxu1 %v3922_v0 }
  0x2e   :  { %1385 = vmatpush1.bf16.msra.mxu0 %v3667_v14  ;;  %3570 = vmatpush1.bf16.msra.mxu1 %v3667_v14  ;;  %v3745_v14 = vld [vmem:[%s5383_s0 + $0x2ac] ss:$20 sps:$4 sm:$0xff]  }
  0x2f   :  { %1386 = vmatprep.subr.bf16.mxu0 %v3922_v0  ;;  %3555 = vmatprep.subr.bf16.mxu1 %v3922_v0 }
  0x32   :  { %1387 = vmatpush1.bf16.msra.mxu0 %v3668_v15  ;;  %3571 = vmatpush1.bf16.msra.mxu1 %v3668_v15  ;;  %v3747_v15 = vld [vmem:[%s5383_s0 + $0x34] ss:$20 sps:$4 sm:$0xff]  }
  0x33   :  { %1388 = vmatprep.subr.bf16.mxu0 %v3922_v0  ;;  %3556 = vmatprep.subr.bf16.mxu1 %v3922_v0 }
  0x36   :  { %1389 = vmatpush1.bf16.msra.mxu0 %v3669_v16  ;;  %3572 = vmatpush1.bf16.msra.mxu1 %v3669_v16  ;;  %v3750_v16 = vld [vmem:[%s5383_s0 + $0x30] ss:$20 sps:$4 sm:$0xff]  }
  0x37   :  { %1390 = vmatprep.subr.bf16.mxu0 %v3922_v0  ;;  %3557 = vmatprep.subr.bf16.mxu1 %v3922_v0 }
  0x3a   :  { %1391 = vmatpush1.bf16.msra.mxu0 %v3670_v17  ;;  %3573 = vmatpush1.bf16.msra.mxu1 %v3670_v17  ;;  %v3752_v17 = vld [vmem:[%s5383_s0 + $0x2d4] ss:$20 sps:$4 sm:$0xff]  }
  0x3b   :  { %1392 = vmatprep.subr.bf16.mxu0 %v3922_v0  ;;  %3558 = vmatprep.subr.bf16.mxu1 %v3922_v0 }
  0x3e   :  { %1393 = vmatpush1.bf16.msra.mxu0 %v3671_v18  ;;  %3574 = vmatpush1.bf16.msra.mxu1 %v3671_v18  ;;  %v3754_v18 = vld [vmem:[%s5383_s0 + $0x5c] ss:$20 sps:$4 sm:$0xff]  }
  0x3f   :  { %1651 = vmatprep.subr.bf16.mxu0 %v3922_v0  ;;  %3463 = vmatprep.subr.bf16.mxu1 %v3679_v19 }
  0x41   :  { %1395 = vmatmul.mubr.bf16.vlgmr.msra.gmra.mrb[0].mxu0 %v3672_v20  ;;  %1459 = vmatmul.mubr.bf16.vlgmr.msra.gmra.mrb[0].mxu1 %v3675_v21  ;;  %v3757_v20 = vld [vmem:[%s5383_s0 + $0x58] ss:$20 sps:$4 sm:$0xff]   ;;  %v3758_v21 = vld [vmem:[%s5383_s0 + $0x2fc] ss:$20 sps:$4 sm:$0xff]  }
  0x42   :  { %1652 = vmatpush1.bf16.msra.mxu0 %v3678_v22  ;;  %3464 = vmatpush3.bf16.msra.mxu1 %v3679_v19  ;;  %v3756_v19 = vld [vmem:[%s5383_s0 + $0x2d0] ss:$20 sps:$4 sm:$0xff]  }
  0x43   :  { %1653 = vmatprep.subr.bf16.mxu0 %v3922_v0  ;;  %1402 = vmatprep.mubr.bf16.mxu0 %v3681_v23  ;;  %v3760_v22 = vld [vmem:[%s5383_s0 + $0x84] ss:$20 sps:$4 sm:$0xff]  }
  0x44   :  { %1466 = vmatprep.mubr.bf16.mxu1 %v3683_v24  ;;  %3465 = vmatprep.subr.bf16.mxu1 %v3704_v25  ;;  %v3762_v23 = vld [vmem:[%s5383_s0 + $0x2f8] ss:$20 sps:$4 sm:$0xff]   ;;  %v3763_v24 = vld [vmem:[%s5383_s0 + $0x80] ss:$20 sps:$4 sm:$0xff]  }
  0x46   :  { %1654 = vmatpush1.bf16.msra.mxu0 %v3680_v26  ;;  %3466 = vmatpush3.bf16.msra.mxu1 %v3704_v25  ;;  %v3764_v25 = vld [vmem:[%s5383_s0 + $0x324] ss:$20 sps:$4 sm:$0xff]   ;;  %v3766_v26 = vld [vmem:[%s5383_s0 + $0xac] ss:$20 sps:$4 sm:$0xff]  }
  0x47   :  { %1655 = vmatprep.subr.bf16.mxu0 %v3922_v0  ;;  %3467 = vmatprep.subr.bf16.mxu1 %v3729_v27 }
  0x49   :  { %1403 = vmatmul.mubr.bf16.gmra.mrb[4].mxu0 %v3685_v28  ;;  %1467 = vmatmul.mubr.bf16.gmra.mrb[4].mxu1 %v3686_v29  ;;  %v3769_v28 = vld [vmem:[%s5383_s0 + $0xa8] ss:$20 sps:$4 sm:$0xff]   ;;  %v3771_v29 = vld [vmem:[%s5383_s0 + $0x34c] ss:$20 sps:$4 sm:$0xff]  }
  0x4a   :  { %1656 = vmatpush1.bf16.msra.mxu0 %v3687_v30  ;;  %1410 = vmatprep.mubr.bf16.mxu0 %v3689_v31  ;;  %v3773_v30 = vld [vmem:[%s5383_s0 + $0xd4] ss:$20 sps:$4 sm:$0xff]  }
  0x4b   :  { %1657 = vmatprep.subr.bf16.mxu0 %v3922_v0  ;;  %1474 = vmatprep.mubr.bf16.mxu1 %v3691_v32  ;;  %v3775_v31 = vld [vmem:[%s5383_s0 + $0x348] ss:$20 sps:$4 sm:$0xff]   ;;  %v3776_v32 = vld [vmem:[%s5383_s0 + $0xd0] ss:$20 sps:$4 sm:$0xff]  }
  0x4c   :  { %3468 = vmatpush3.bf16.msra.mxu1 %v3729_v27  ;;  %v3768_v27 = vld [vmem:[%s5383_s0 + $0x320] ss:$20 sps:$4 sm:$0xff]  }
  0x4d   :  { %3469 = vmatprep.subr.bf16.mxu1 %v3751_v33 }
  0x4e   :  { %1658 = vmatpush1.bf16.msra.mxu0 %v3688_v34  ;;  %v3779_v34 = vld [vmem:[%s5383_s0 + $0xfc] ss:$20 sps:$4 sm:$0xff]  }
  0x4f   :  { %1659 = vmatprep.subr.bf16.mxu0 %v3922_v0 }
  0x50   :  { %3470 = vmatpush3.bf16.msra.mxu1 %v3751_v33  ;;  %v3777_v33 = vld [vmem:[%s5383_s0 + $0x374] ss:$20 sps:$4 sm:$0xff]  }
  0x51   :  { %1411 = vmatmul.mubr.bf16.gmra.mrb[8].mxu0 %v3693_v35  ;;  %1475 = vmatmul.mubr.bf16.gmra.mrb[8].mxu1 %v3694_v36  ;;  %v3781_v35 = vld [vmem:[%s5383_s0 + $0x370] ss:$20 sps:$4 sm:$0xff]   ;;  %v3782_v36 = vld [vmem:[%s5383_s0 + $0xf8] ss:$20 sps:$4 sm:$0xff]  }
  0x52   :  { %1660 = vmatpush1.bf16.msra.mxu0 %v3695_v37  ;;  %1418 = vmatprep.mubr.bf16.mxu0 %v3697_v38  ;;  %v3783_v37 = vld [vmem:[%s5383_s0 + $0x39c] ss:$20 sps:$4 sm:$0xff]   ;;  %v3785_v38 = vld [vmem:[%s5383_s0 + $0x124] ss:$20 sps:$4 sm:$0xff]  }
  0x53   :  { %1661 = vmatprep.subr.bf16.mxu0 %v3922_v0  ;;  %1482 = vmatprep.mubr.bf16.mxu1 %v3699_v39  ;;  %v3787_v39 = vld [vmem:[%s5383_s0 + $0x398] ss:$20 sps:$4 sm:$0xff]  }
  0x54   :  { %3471 = vmatprep.subr.bf16.mxu1 %v3770_v40 }
  0x55   :  { %3472 = vmatpush3.bf16.msra.mxu1 %v3770_v40  ;;  %v3788_v40 = vld [vmem:[%s5383_s0 + $0x120] ss:$20 sps:$4 sm:$0xff]  }
  0x56   :  { %1662 = vmatpush1.bf16.msra.mxu0 %v3696_v41  ;;  %3473 = vmatprep.subr.bf16.mxu1 %v3789_v42  ;;  %v3790_v41 = vld [vmem:[%s5383_s0 + $0x3c4] ss:$20 sps:$4 sm:$0xff]  }
  0x57   :  { %1663 = vmatprep.subr.bf16.mxu0 %v3922_v0 }
  0x59   :  { %1419 = vmatmul.mubr.bf16.gmra.mrb[12].mxu0 %v3701_v43  ;;  %1483 = vmatmul.mubr.bf16.gmra.mrb[12].mxu1 %v3702_v44  ;;  %v3794_v43 = vld [vmem:[%s5383_s0 + $0x3c0] ss:$20 sps:$4 sm:$0xff]   ;;  %v3795_v44 = vld [vmem:[%s5383_s0 + $0x148] ss:$20 sps:$4 sm:$0xff]  }
  0x5a   :  { %1664 = vmatpush1.bf16.msra.mxu0 %v3703_v45  ;;  %1426 = vmatprep.mubr.bf16.mxu0 %v3706_v46  ;;  %v3796_v45 = vld [vmem:[%s5383_s0 + $0x3ec] ss:$20 sps:$4 sm:$0xff]   ;;  %v3798_v46 = vld [vmem:[%s5383_s0 + $0x174] ss:$20 sps:$4 sm:$0xff]  }
  0x5b   :  { %1665 = vmatprep.subr.bf16.mxu0 %v3922_v0  ;;  %1490 = vmatprep.mubr.bf16.mxu1 %v3708_v47  ;;  %v3800_v47 = vld [vmem:[%s5383_s0 + $0x3e8] ss:$20 sps:$4 sm:$0xff]  }
  0x5c   :  { %3474 = vmatpush3.bf16.msra.mxu1 %v3789_v42  ;;  %v3792_v42 = vld [vmem:[%s5383_s0 + $0x14c] ss:$20 sps:$4 sm:$0xff]  }
  0x5d   :  { %3475 = vmatprep.subr.bf16.mxu1 %v3808_v48 }
  0x5e   :  { %1666 = vmatpush1.bf16.msra.mxu0 %v3705_v49  ;;  %v3802_v49 = vld [vmem:[%s5383_s0 + $0x414] ss:$20 sps:$4 sm:$0xff]  }
  0x5f   :  { %1667 = vmatprep.subr.bf16.mxu0 %v3922_v0 }
  0x60   :  { %3476 = vmatpush3.bf16.msra.mxu1 %v3808_v48  ;;  %v3801_v48 = vld [vmem:[%s5383_s0 + $0x170] ss:$20 sps:$4 sm:$0xff]  }
  0x61   :  { %1427 = vmatmul.mubr.bf16.gmra.mrb[16].mxu0 %v3710_v50  ;;  %1491 = vmatmul.mubr.bf16.gmra.mrb[16].mxu1 %v3711_v51  ;;  %v3804_v50 = vld [vmem:[%s5383_s0 + $0x19c] ss:$20 sps:$4 sm:$0xff]  }
  0x62   :  { %1668 = vmatpush1.bf16.msra.mxu0 %v3712_v52  ;;  %1434 = vmatprep.mubr.bf16.mxu0 %v3714_v53  ;;  %v3806_v51 = vld [vmem:[%s5383_s0 + $0x410] ss:$20 sps:$4 sm:$0xff]   ;;  %v3807_v52 = vld [vmem:[%s5383_s0 + $0x198] ss:$20 sps:$4 sm:$0xff]  }
  0x63   :  { %1669 = vmatprep.subr.bf16.mxu0 %v3922_v0  ;;  %1498 = vmatprep.mubr.bf16.mxu1 %v3716_v54  ;;  %v3809_v53 = vld [vmem:[%s5383_s0 + $0x43c] ss:$20 sps:$4 sm:$0xff]   ;;  %v3811_v54 = vld [vmem:[%s5383_s0 + $0x1c4] ss:$20 sps:$4 sm:$0xff]  }
  0x64   :  { %3477 = vmatprep.subr.bf16.mxu1 %v3827_v61 }
  0x65   :  { %3478 = vmatpush3.bf16.msra.mxu1 %v3827_v61  ;;  %v3821_v61 = vld [vmem:[%s5383_s0 + $0x48c] ss:$20 sps:$4 sm:$0xff]  }
  0x66   :  { %1670 = vmatpush1.bf16.msra.mxu0 %v3713_v55  ;;  %v3813_v55 = vld [vmem:[%s5383_s0 + $0x438] ss:$20 sps:$4 sm:$0xff]  }
  0x67   :  { %1671 = vmatprep.subr.bf16.mxu0 %v3922_v0 }
  0x69   :  { %1435 = vmatmul.mubr.bf16.gmra.mrb[20].mxu0 %v3718_v56  ;;  %1499 = vmatmul.mubr.bf16.gmra.mrb[20].mxu1 %v3719_v57  ;;  %v3814_v56 = vld [vmem:[%s5383_s0 + $0x1c0] ss:$20 sps:$4 sm:$0xff]   ;;  %v3815_v57 = vld [vmem:[%s5383_s0 + $0x464] ss:$20 sps:$4 sm:$0xff]  }
  0x6a   :  { %1672 = vmatpush1.bf16.msra.mxu0 %v3720_v58  ;;  %1442 = vmatprep.mubr.bf16.mxu0 %v3722_v59  ;;  %v3817_v58 = vld [vmem:[%s5383_s0 + $0x1ec] ss:$20 sps:$4 sm:$0xff]  }
  0x6b   :  { %1673 = vmatprep.subr.bf16.mxu0 %v3922_v0  ;;  %1506 = vmatprep.mubr.bf16.mxu1 %v3724_v60  ;;  %v3819_v59 = vld [vmem:[%s5383_s0 + $0x460] ss:$20 sps:$4 sm:$0xff]   ;;  %v3820_v60 = vld [vmem:[%s5383_s0 + $0x1e8] ss:$20 sps:$4 sm:$0xff]  }
  0x6e   :  { %1674 = vmatpush1.bf16.msra.mxu0 %v3721_v62  ;;  %v3823_v62 = vld [vmem:[%s5383_s0 + $0x214] ss:$20 sps:$4 sm:$0xff]  }
  0x6f   :  { %1675 = vmatprep.subr.bf16.mxu0 %v3922_v0 }
  0x71   :  { %1443 = vmatmul.mubr.bf16.gmra.mrb[24].mxu0 %v3726_v63  ;;  %1507 = vmatmul.mubr.bf16.gmra.mrb[24].mxu1 %v3727_v1  ;;  %v3825_v63 = vld [vmem:[%s5383_s0 + $0x488] ss:$20 sps:$4 sm:$0xff]   ;;  %v3826_v1 = vld [vmem:[%s5383_s0 + $0x210] ss:$20 sps:$4 sm:$0xff]  }
  0x72   :  { %1676 = vmatpush1.bf16.msra.mxu0 %v3728_v2  ;;  %1450 = vmatprep.mubr.bf16.mxu0 %v3731_v3  ;;  %v3828_v2 = vld [vmem:[%s5383_s0 + $0x4b4] ss:$20 sps:$4 sm:$0xff]   ;;  %v3830_v3 = vld [vmem:[%s5383_s0 + $0x23c] ss:$20 sps:$4 sm:$0xff]  }
  0x73   :  { %1677 = vmatprep.subr.bf16.mxu0 %v3922_v0  ;;  %1514 = vmatprep.mubr.bf16.mxu1 %v3733_v4  ;;  %v3832_v4 = vld [vmem:[%s5383_s0 + $0x4b0] ss:$20 sps:$4 sm:$0xff]  }
  0x76   :  { %1678 = vmatpush1.bf16.msra.mxu0 %v3730_v5  ;;  %v3833_v5 = vld [vmem:[%s5383_s0 + $0x238] ss:$20 sps:$4 sm:$0xff]  }
  0x77   :  { %1679 = vmatprep.subr.bf16.mxu0 %v3922_v0 }
  0x79   :  { %1451 = vmatmul.mubr.bf16.gmra.mrb[28].mxu0 %v3735_v6  ;;  %1515 = vmatmul.mubr.bf16.gmra.mrb[28].mxu1 %v3736_v7  ;;  %v3834_v6 = vld [vmem:[%s5383_s0 + $0x4dc] ss:$20 sps:$4 sm:$0xff]   ;;  %v3836_v7 = vld [vmem:[%s5383_s0 + $0x264] ss:$20 sps:$4 sm:$0xff]  }
  0x7a   :  { %1680 = vmatpush1.bf16.msra.mxu0 %v3737_v8  ;;  %1522 = vmatprep.mubr.bf16.mxu1 %v3739_v9  ;;  %v3838_v8 = vld [vmem:[%s5383_s0 + $0x4d8] ss:$20 sps:$4 sm:$0xff]   ;;  %v3839_v9 = vld [vmem:[%s5383_s0 + $0x260] ss:$20 sps:$4 sm:$0xff]  }
  0x7b   :  { %1681 = vmatprep.subr.bf16.mxu0 %v3922_v0  ;;  %1683 = vmatprep.mubr.bf16.mxu0 %v3743_v10  ;;  %v3749_v0 = vld [vmem:[%s5383_s0 + $0x2a8] ss:$20 sps:$4 sm:$0xff]   ;;  %v3840_v10 = vld [vmem:[%s5383_s0 + $0x28c] ss:$20 sps:$4 sm:$0xff]  }
  0x7e   :  { %1682 = vmatpush1.bf16.msra.mxu0 %v3738_v11  ;;  %v3842_v11 = vld [vmem:[%s5383_s0 + $0x10] ss:$20 sps:$4 sm:$0xff]  }
  0x81   :  { %1523 = vmatmul.mubr.bf16.gmra.mrb[32].mxu1 %v3744_v13  ;;  %1684 = vmatmul.mubr.bf16.vlgmr.msra.gmra.mrb[0].mxu0 %v3741_v12  ;;  %v3843_v12 = vld [vmem:[%s5383_s0 + $0x288] ss:$20 sps:$4 sm:$0xff]   ;;  %v3844_v13 = vld [vmem:[%s5383_s0 + $0x38] ss:$20 sps:$4 sm:$0xff]  }
  0x82   :  { %1530 = vmatprep.mubr.bf16.mxu1 %v3745_v14  ;;  %1691 = vmatprep.mubr.bf16.mxu0 %v3747_v15  ;;  %v3845_v14 = vld [vmem:[%s5383_s0 + $0x2b4] ss:$20 sps:$4 sm:$0xff]  }
  0x83   :  { %v3847_v15 = vld [vmem:[%s5383_s0 + $0x60] ss:$20 sps:$4 sm:$0xff]  }
  0x89   :  { %1531 = vmatmul.mubr.bf16.gmra.mrb[36].mxu1 %v3749_v0  ;;  %1692 = vmatmul.mubr.bf16.gmra.mrb[4].mxu0 %v3750_v16  ;;  %v3848_v0 = vld [vmem:[%s5383_s0 + $0x2b0] ss:$20 sps:$4 sm:$0xff]   ;;  %v3849_v16 = vld [vmem:[%s5383_s0 + $0x88] ss:$20 sps:$4 sm:$0xff]  }
  0x8a   :  { %1538 = vmatprep.mubr.bf16.mxu1 %v3752_v17  ;;  %1699 = vmatprep.mubr.bf16.mxu0 %v3754_v18  ;;  %v3850_v17 = vld [vmem:[%s5383_s0 + $0x2dc] ss:$20 sps:$4 sm:$0xff]  }
  0x8b   :  { %v3852_v18 = vld [vmem:[%s5383_s0 + $0xb0] ss:$20 sps:$4 sm:$0xff]  }
  0x91   :  { %1539 = vmatmul.mubr.bf16.gmra.mrb[40].mxu1 %v3756_v19  ;;  %1700 = vmatmul.mubr.bf16.gmra.mrb[8].mxu0 %v3757_v20  ;;  %v3853_v19 = vld [vmem:[%s5383_s0 + $0x2d8] ss:$20 sps:$4 sm:$0xff]  }
  0x92   :  { %1546 = vmatprep.mubr.bf16.mxu1 %v3758_v21  ;;  %1707 = vmatprep.mubr.bf16.mxu0 %v3760_v22  ;;  %v3854_v20 = vld [vmem:[%s5383_s0 + $0xd8] ss:$20 sps:$4 sm:$0xff]   ;;  %v3857_v22 = vld [vmem:[%s5383_s0 + $0x100] ss:$20 sps:$4 sm:$0xff]  }
  0x93   :  { %v3855_v21 = vld [vmem:[%s5383_s0 + $0x304] ss:$20 sps:$4 sm:$0xff]  }
  0x99   :  { %1547 = vmatmul.mubr.bf16.gmra.mrb[44].mxu1 %v3762_v23  ;;  %1708 = vmatmul.mubr.bf16.gmra.mrb[12].mxu0 %v3763_v24 }
  0x9a   :  { %1554 = vmatprep.mubr.bf16.mxu1 %v3764_v25  ;;  %1715 = vmatprep.mubr.bf16.mxu0 %v3766_v26  ;;  %v3858_v25 = vld [vmem:[%s5383_s0 + $0x300] ss:$20 sps:$4 sm:$0xff]   ;;  %v3859_v26 = vld [vmem:[%s5383_s0 + $0x128] ss:$20 sps:$4 sm:$0xff]  }
  0xa1   :  { %1555 = vmatmul.mubr.bf16.gmra.mrb[48].mxu1 %v3768_v27  ;;  %1716 = vmatmul.mubr.bf16.gmra.mrb[16].mxu0 %v3769_v28  ;;  %v3860_v28 = vld [vmem:[%s5383_s0 + $0x32c] ss:$20 sps:$4 sm:$0xff]  }
  0xa2   :  { %1562 = vmatprep.mubr.bf16.mxu1 %v3771_v29  ;;  %1723 = vmatprep.mubr.bf16.mxu0 %v3773_v30  ;;  %v3862_v29 = vld [vmem:[%s5383_s0 + $0x150] ss:$20 sps:$4 sm:$0xff]  }
  0xa9   :  { %1563 = vmatmul.mubr.bf16.gmra.mrb[52].mxu1 %v3775_v31  ;;  %1724 = vmatmul.mubr.bf16.gmra.mrb[20].mxu0 %v3776_v32 }
  0xaa   :  { %1570 = vmatprep.mubr.bf16.mxu1 %v3777_v33  ;;  %1731 = vmatprep.mubr.bf16.mxu0 %v3779_v34  ;;  %v3863_v33 = vld [vmem:[%s5383_s0 + $0x328] ss:$20 sps:$4 sm:$0xff]   ;;  %v3864_v34 = vld [vmem:[%s5383_s0 + $0x178] ss:$20 sps:$4 sm:$0xff]  }
  0xb1   :  { %1571 = vmatmul.mubr.bf16.gmra.mrb[56].mxu1 %v3781_v35  ;;  %1732 = vmatmul.mubr.bf16.gmra.mrb[24].mxu0 %v3782_v36  ;;  %v3865_v36 = vld [vmem:[%s5383_s0 + $0x354] ss:$20 sps:$4 sm:$0xff]  }
  0xb2   :  { %1578 = vmatprep.mubr.bf16.mxu1 %v3783_v37  ;;  %1739 = vmatprep.mubr.bf16.mxu0 %v3785_v38  ;;  %v3867_v37 = vld [vmem:[%s5383_s0 + $0x1a0] ss:$20 sps:$4 sm:$0xff]  }
  0xb9   :  { %1579 = vmatmul.mubr.bf16.gmra.mrb[60].mxu1 %v3787_v39  ;;  %1740 = vmatmul.mubr.bf16.gmra.mrb[28].mxu0 %v3788_v40 }
  0xba   :  { %1586 = vmatprep.mubr.bf16.mxu1 %v3790_v41  ;;  %1747 = vmatprep.mubr.bf16.mxu0 %v3792_v42  ;;  %v3868_v41 = vld [vmem:[%s5383_s0 + $0x350] ss:$20 sps:$4 sm:$0xff]   ;;  %v3869_v42 = vld [vmem:[%s5383_s0 + $0x1c8] ss:$20 sps:$4 sm:$0xff]  }
  0xc1   :  { %1587 = vmatmul.mubr.bf16.gmra.mrb[64].mxu1 %v3794_v43  ;;  %1748 = vmatmul.mubr.bf16.gmra.mrb[32].mxu0 %v3795_v44  ;;  %v3870_v44 = vld [vmem:[%s5383_s0 + $0x37c] ss:$20 sps:$4 sm:$0xff]  }
  0xc2   :  { %1594 = vmatprep.mubr.bf16.mxu1 %v3796_v45  ;;  %1755 = vmatprep.mubr.bf16.mxu0 %v3798_v46  ;;  %v3872_v45 = vld [vmem:[%s5383_s0 + $0x1f0] ss:$20 sps:$4 sm:$0xff]  }
  0xc9   :  { %1595 = vmatmul.mubr.bf16.gmra.mrb[68].mxu1 %v3800_v47  ;;  %1756 = vmatmul.mubr.bf16.gmra.mrb[36].mxu0 %v3801_v48 }
  0xca   :  { %1602 = vmatprep.mubr.bf16.mxu1 %v3802_v49  ;;  %1763 = vmatprep.mubr.bf16.mxu0 %v3804_v50  ;;  %v3873_v49 = vld [vmem:[%s5383_s0 + $0x378] ss:$20 sps:$4 sm:$0xff]  }
  0xcb   :  { %v3874_v50 = vld [vmem:[%s5383_s0 + $0x218] ss:$20 sps:$4 sm:$0xff]  }
  0xd1   :  { %1603 = vmatmul.mubr.bf16.gmra.mrb[72].mxu1 %v3806_v51  ;;  %1764 = vmatmul.mubr.bf16.gmra.mrb[40].mxu0 %v3807_v52  ;;  %v3875_v52 = vld [vmem:[%s5383_s0 + $0x3a4] ss:$20 sps:$4 sm:$0xff]  }
  0xd2   :  { %1610 = vmatprep.mubr.bf16.mxu1 %v3809_v53  ;;  %1771 = vmatprep.mubr.bf16.mxu0 %v3811_v54  ;;  %v3877_v53 = vld [vmem:[%s5383_s0 + $0x240] ss:$20 sps:$4 sm:$0xff]  }
  0xd9   :  { %1611 = vmatmul.mubr.bf16.gmra.mrb[76].mxu1 %v3813_v55  ;;  %1772 = vmatmul.mubr.bf16.gmra.mrb[44].mxu0 %v3814_v56 }
  0xda   :  { %1618 = vmatprep.mubr.bf16.mxu1 %v3815_v57  ;;  %1779 = vmatprep.mubr.bf16.mxu0 %v3817_v58  ;;  %v3878_v57 = vld [vmem:[%s5383_s0 + $0x3a0] ss:$20 sps:$4 sm:$0xff]   ;;  %v3879_v58 = vld [vmem:[%s5383_s0 + $0x268] ss:$20 sps:$4 sm:$0xff]  }
  0xe1   :  { %1619 = vmatmul.mubr.bf16.gmra.mrb[80].mxu1 %v3819_v59  ;;  %1780 = vmatmul.mubr.bf16.gmra.mrb[48].mxu0 %v3820_v60  ;;  %v3880_v60 = vld [vmem:[%s5383_s0 + $0x3cc] ss:$20 sps:$4 sm:$0xff]  }
  0xe2   :  { %1626 = vmatprep.mubr.bf16.mxu1 %v3821_v61  ;;  %1787 = vmatprep.mubr.bf16.mxu0 %v3823_v62  ;;  %v3882_v61 = vld [vmem:[%s5383_s0 + $0x290] ss:$20 sps:$4 sm:$0xff]  }
  0xe9   :  { %1627 = vmatmul.mubr.bf16.gmra.mrb[84].mxu1 %v3825_v63  ;;  %1788 = vmatmul.mubr.bf16.gmra.mrb[52].mxu0 %v3826_v1 }
  0xea   :  { %1634 = vmatprep.mubr.bf16.mxu1 %v3828_v2  ;;  %1795 = vmatprep.mubr.bf16.mxu0 %v3830_v3  ;;  %v3883_v2 = vld [vmem:[%s5383_s0 + $0x3c8] ss:$20 sps:$4 sm:$0xff]   ;;  %v3884_v3 = vld [vmem:[%s5383_s0 + $0x2b8] ss:$20 sps:$4 sm:$0xff]  }
  0xf1   :  { %1635 = vmatmul.mubr.bf16.gmra.mrb[88].mxu1 %v3832_v4  ;;  %1796 = vmatmul.mubr.bf16.gmra.mrb[56].mxu0 %v3833_v5  ;;  %v3885_v5 = vld [vmem:[%s5383_s0 + $0x3f4] ss:$20 sps:$4 sm:$0xff]  }
  0xf2   :  { %1642 = vmatprep.mubr.bf16.mxu1 %v3834_v6  ;;  %1803 = vmatprep.mubr.bf16.mxu0 %v3836_v7  ;;  %v3887_v6 = vld [vmem:[%s5383_s0 + $0x2e0] ss:$20 sps:$4 sm:$0xff]  }
  0xf9   :  { %1643 = vmatmul.mubr.bf16.gmra.mrb[92].mxu1 %v3838_v8  ;;  %1804 = vmatmul.mubr.bf16.gmra.mrb[60].mxu0 %v3839_v9 }
  0xfa   :  { %1811 = vmatprep.mubr.bf16.mxu0 %v3840_v10  ;;  %3479 = vmatprep.mubr.bf16.mxu1 %v3842_v11  ;;  %v3888_v10 = vld [vmem:[%s5383_s0 + $0x3f0] ss:$20 sps:$4 sm:$0xff]   ;;  %v3889_v11 = vld [vmem:[%s5383_s0 + $0x308] ss:$20 sps:$4 sm:$0xff]  }
 0x101   :  { %1812 = vmatmul.mubr.bf16.gmra.mrb[64].mxu0 %v3843_v12  ;;  %3480 = vmatmul.mubr.bf16.vlgmr.msra.gmra.mrb[96].mxu1 %v3844_v13  ;;  %v3890_v13 = vld [vmem:[%s5383_s0 + $0x41c] ss:$20 sps:$4 sm:$0xff]  }
 0x102   :  { %1819 = vmatprep.mubr.bf16.mxu0 %v3845_v14  ;;  %3483 = vmatprep.mubr.bf16.mxu1 %v3847_v15  ;;  %v3892_v14 = vld [vmem:[%s5383_s0 + $0x330] ss:$20 sps:$4 sm:$0xff]  }
 0x109   :  { %1820 = vmatmul.mubr.bf16.gmra.mrb[68].mxu0 %v3848_v0  ;;  %3484 = vmatmul.mubr.bf16.gmra.mrb[100].mxu1 %v3849_v16 }
 0x10a   :  { %1827 = vmatprep.mubr.bf16.mxu0 %v3850_v17  ;;  %3487 = vmatprep.mubr.bf16.mxu1 %v3852_v18  ;;  %v3893_v17 = vld [vmem:[%s5383_s0 + $0x418] ss:$20 sps:$4 sm:$0xff]  }
 0x10b   :  { %v3894_v18 = vld [vmem:[%s5383_s0 + $0x358] ss:$20 sps:$4 sm:$0xff]  }
 0x111   :  { %1828 = vmatmul.mubr.bf16.gmra.mrb[72].mxu0 %v3853_v19  ;;  %3488 = vmatmul.mubr.bf16.gmra.mrb[104].mxu1 %v3854_v20  ;;  %v3895_v20 = vld [vmem:[%s5383_s0 + $0x444] ss:$20 sps:$4 sm:$0xff]  }
 0x112   :  { %1835 = vmatprep.mubr.bf16.mxu0 %v3855_v21  ;;  %3491 = vmatprep.mubr.bf16.mxu1 %v3857_v22  ;;  %v3897_v21 = vld [vmem:[%s5383_s0 + $0x380] ss:$20 sps:$4 sm:$0xff]  }
 0x114   :  { %v4446_v23 = vpop.f32.mrb[0].mxu1 }
 0x115   :  { %v1462_v24 = vpop.f32.mrb[1].mxu1 }
 0x116   :  { %v4454_v27 = vpop.f32.mrb[2].mxu1 }
 0x117   :  { %v1465_v30 = vpop.f32.mrb[3].mxu1 }
 0x118   :  { %v3899_v30 = vld [vmem:[%s5383_s0 + $0x3a8] ss:$20 sps:$4 sm:$0xff]  }
 0x119   :  { %1836 = vmatmul.mubr.bf16.gmra.mrb[76].mxu0 %v3858_v25  ;;  %3492 = vmatmul.mubr.bf16.gmra.mrb[108].mxu1 %v3859_v26 }
 0x11a   :  { %1843 = vmatprep.mubr.bf16.mxu0 %v3860_v28  ;;  %3495 = vmatprep.mubr.bf16.mxu1 %v3862_v29  ;;  %v3898_v29 = vld [vmem:[%s5383_s0 + $0x440] ss:$20 sps:$4 sm:$0xff]  }
 0x11c   :  { %v4462_v31 = vpop.f32.mrb[4].mxu1 }
 0x11d   :  { %v1470_v32 = vpop.f32.mrb[5].mxu1 }
 0x11e   :  { %v4470_v35 = vpop.f32.mrb[6].mxu1 }
 0x11f   :  { %v1473_v38 = vpop.f32.mrb[7].mxu1 }
 0x121   :  { %1844 = vmatmul.mubr.bf16.gmra.mrb[80].mxu0 %v3863_v33  ;;  %3496 = vmatmul.mubr.bf16.gmra.mrb[112].mxu1 %v3864_v34  ;;  %v3900_v34 = vld [vmem:[%s5383_s0 + $0x46c] ss:$20 sps:$4 sm:$0xff]  }
 0x122   :  { %1851 = vmatprep.mubr.bf16.mxu0 %v3865_v36  ;;  %3499 = vmatprep.mubr.bf16.mxu1 %v3867_v37  ;;  %v3902_v36 = vld [vmem:[%s5383_s0 + $0x3d0] ss:$20 sps:$4 sm:$0xff]  }
 0x124   :  { %v4478_v39 = vpop.f32.mrb[8].mxu1 }
 0x125   :  { %v1478_v40 = vpop.f32.mrb[9].mxu1 }
 0x126   :  { %v4486_v43 = vpop.f32.mrb[10].mxu1 }
 0x127   :  { %v1481_v46 = vpop.f32.mrb[11].mxu1 }
 0x128   :  { %v3904_v46 = vld [vmem:[%s5383_s0 + $0x3f8] ss:$20 sps:$4 sm:$0xff]  }
 0x129   :  { %1852 = vmatmul.mubr.bf16.gmra.mrb[84].mxu0 %v3868_v41  ;;  %3500 = vmatmul.mubr.bf16.gmra.mrb[116].mxu1 %v3869_v42 }
 0x12a   :  { %1859 = vmatprep.mubr.bf16.mxu0 %v3870_v44  ;;  %3503 = vmatprep.mubr.bf16.mxu1 %v3872_v45  ;;  %v3903_v45 = vld [vmem:[%s5383_s0 + $0x468] ss:$20 sps:$4 sm:$0xff]  }
 0x12c   :  { %v4494_v47 = vpop.f32.mrb[12].mxu1 }
 0x12d   :  { %v1486_v48 = vpop.f32.mrb[13].mxu1 }
 0x12e   :  { %v4502_v51 = vpop.f32.mrb[14].mxu1 }
 0x12f   :  { %v1489_v54 = vpop.f32.mrb[15].mxu1 }
 0x131   :  { %1860 = vmatmul.mubr.bf16.gmra.mrb[88].mxu0 %v3873_v49  ;;  %3504 = vmatmul.mubr.bf16.gmra.mrb[120].mxu1 %v3874_v50  ;;  %v3905_v50 = vld [vmem:[%s5383_s0 + $0x494] ss:$20 sps:$4 sm:$0xff]  }
 0x132   :  { %1867 = vmatprep.mubr.bf16.mxu0 %v3875_v52  ;;  %3507 = vmatprep.mubr.bf16.mxu1 %v3877_v53  ;;  %v3907_v52 = vld [vmem:[%s5383_s0 + $0x420] ss:$20 sps:$4 sm:$0xff]  }
 0x134   :  { %v4510_v55 = vpop.f32.mrb[16].mxu1 }
 0x135   :  { %v1494_v56 = vpop.f32.mrb[17].mxu1 }
 0x136   :  { %v4518_v59 = vpop.f32.mrb[18].mxu1 }
 0x137   :  { %v1497_v62 = vpop.f32.mrb[19].mxu1 }
 0x138   :  { %v3909_v62 = vld [vmem:[%s5383_s0 + $0x448] ss:$20 sps:$4 sm:$0xff]  }
 0x139   :  { %1868 = vmatmul.mubr.bf16.gmra.mrb[92].mxu0 %v3878_v57  ;;  %3508 = vmatmul.mubr.bf16.gmra.mrb[124].mxu1 %v3879_v58 }
 0x13a   :  { %1875 = vmatprep.mubr.bf16.mxu0 %v3880_v60  ;;  %3511 = vmatprep.mubr.bf16.mxu1 %v3882_v61  ;;  %v3908_v61 = vld [vmem:[%s5383_s0 + $0x490] ss:$20 sps:$4 sm:$0xff]  }
 0x13c   :  { %v4526_v63 = vpop.f32.mrb[20].mxu1 }
 0x13d   :  { %v1502_v1 = vpop.f32.mrb[21].mxu1 }
 0x13e   :  { %v4534_v4 = vpop.f32.mrb[22].mxu1 }
 0x13f   :  { %v1505_v7 = vpop.f32.mrb[23].mxu1 }
 0x141   :  { %1876 = vmatmul.mubr.bf16.gmra.mrb[96].mxu0 %v3883_v2  ;;  %3512 = vmatmul.mubr.bf16.gmra.mrb[128].mxu1 %v3884_v3  ;;  %v3910_v3 = vld [vmem:[%s5383_s0 + $0x4bc] ss:$20 sps:$4 sm:$0xff]  }
 0x142   :  { %1883 = vmatprep.mubr.bf16.mxu0 %v3885_v5  ;;  %3515 = vmatprep.mubr.bf16.mxu1 %v3887_v6  ;;  %v3912_v5 = vld [vmem:[%s5383_s0 + $0x470] ss:$20 sps:$4 sm:$0xff]  }
 0x144   :  { %v4542_v8 = vpop.f32.mrb[24].mxu1 }
 0x145   :  { %v1510_v9 = vpop.f32.mrb[25].mxu1 }
 0x146   :  { %v4550_v12 = vpop.f32.mrb[26].mxu1 }
 0x147   :  { %v1513_v15 = vpop.f32.mrb[27].mxu1 }
 0x148   :  { %v3914_v15 = vld [vmem:[%s5383_s0 + $0x498] ss:$20 sps:$4 sm:$0xff]  }
 0x149   :  { %1884 = vmatmul.mubr.bf16.gmra.mrb[100].mxu0 %v3888_v10  ;;  %3516 = vmatmul.mubr.bf16.gmra.mrb[132].mxu1 %v3889_v11 }
 0x14a   :  { %1891 = vmatprep.mubr.bf16.mxu0 %v3890_v13  ;;  %3519 = vmatprep.mubr.bf16.mxu1 %v3892_v14  ;;  %v3913_v14 = vld [vmem:[%s5383_s0 + $0x4b8] ss:$20 sps:$4 sm:$0xff]  }
 0x14c   :  { %v4558_v0 = vpop.f32.mrb[28].mxu1 }
 0x14d   :  { %v1518_v16 = vpop.f32.mrb[29].mxu1 }
 0x14e   :  { %v4566_v19 = vpop.f32.mrb[30].mxu1 }
 0x14f   :  { %v1521_v22 = vpop.f32.mrb[31].mxu1 }
 0x151   :  { %1892 = vmatmul.mubr.bf16.gmra.mrb[104].mxu0 %v3893_v17  ;;  %3520 = vmatmul.mubr.bf16.gmra.mrb[136].mxu1 %v3894_v18  ;;  %v3915_v18 = vld [vmem:[%s5383_s0 + $0x4e4] ss:$20 sps:$4 sm:$0xff]  }
 0x152   :  { %1899 = vmatprep.mubr.bf16.mxu0 %v3895_v20  ;;  %3523 = vmatprep.mubr.bf16.mxu1 %v3897_v21  ;;  %v3917_v20 = vld [vmem:[%s5383_s0 + $0x4c0] ss:$20 sps:$4 sm:$0xff]  }
 0x154   :  { %v4574_v24 = vpop.f32.mrb[32].mxu1  ;;  %v4576_v25 = vpop.f32.mrb[0].mxu0 }
 0x155   :  { %v1526_v26 = vpop.f32.mrb[33].mxu1  ;;  %v1687_v28 = vpop.f32.mrb[1].mxu0 }
 0x156   :  { %v4584_v32 = vpop.f32.mrb[34].mxu1  ;;  %v4586_v33 = vpop.f32.mrb[2].mxu0 }
 0x157   :  { %v1529_v37 = vpop.f32.mrb[35].mxu1  ;;  %v1690_v38 = vpop.f32.mrb[3].mxu0 }
 0x159   :  { %1900 = vmatmul.mubr.bf16.gmra.mrb[108].mxu0 %v3898_v29  ;;  %3524 = vmatmul.mubr.bf16.gmra.mrb[140].mxu1 %v3899_v30 }
 0x15a   :  { %1907 = vmatprep.mubr.bf16.mxu0 %v3900_v34  ;;  %3527 = vmatprep.mubr.bf16.mxu1 %v3902_v36  ;;  %v3918_v34 = vld [vmem:[%s5383_s0 + $0x4e0] ss:$20 sps:$4 sm:$0xff]   ;;  %v3919_v36 = vld [vmem:[%s5383_s0 + $0x4e8] ss:$20 sps:$4 sm:$0xff]  }
 0x15c   :  { %v4594_v40 = vpop.f32.mrb[36].mxu1  ;;  %v4596_v41 = vpop.f32.mrb[4].mxu0 }
 0x15d   :  { %v1534_v42 = vpop.f32.mrb[37].mxu1  ;;  %v1695_v44 = vpop.f32.mrb[5].mxu0 }
 0x15e   :  { %v4604_v48 = vpop.f32.mrb[38].mxu1  ;;  %v4606_v49 = vpop.f32.mrb[6].mxu0 }
 0x15f   :  { %v1537_v53 = vpop.f32.mrb[39].mxu1  ;;  %v1698_v54 = vpop.f32.mrb[7].mxu0 }
 0x161   :  { %1908 = vmatmul.mubr.bf16.gmra.mrb[112].mxu0 %v3903_v45  ;;  %3528 = vmatmul.mubr.bf16.gmra.mrb[144].mxu1 %v3904_v46 }
 0x162   :  { %1915 = vmatprep.mubr.bf16.mxu0 %v3905_v50  ;;  %3531 = vmatprep.mubr.bf16.mxu1 %v3907_v52 }
 0x164   :  { %v4614_v56 = vpop.f32.mrb[40].mxu1  ;;  %v4616_v57 = vpop.f32.mrb[8].mxu0 }
 0x165   :  { %v1542_v58 = vpop.f32.mrb[41].mxu1  ;;  %v1703_v60 = vpop.f32.mrb[9].mxu0 }
 0x166   :  { %v4624_v1 = vpop.f32.mrb[42].mxu1  ;;  %v4626_v2 = vpop.f32.mrb[10].mxu0 }
 0x167   :  { %v1545_v6 = vpop.f32.mrb[43].mxu1  ;;  %v1706_v7 = vpop.f32.mrb[11].mxu0 }
 0x169   :  { %1916 = vmatmul.mubr.bf16.gmra.mrb[116].mxu0 %v3908_v61  ;;  %3532 = vmatmul.mubr.bf16.gmra.mrb[148].mxu1 %v3909_v62 }
 0x16a   :  { %1923 = vmatprep.mubr.bf16.mxu0 %v3910_v3  ;;  %3535 = vmatprep.mubr.bf16.mxu1 %v3912_v5 }
 0x16c   :  { %v4634_v9 = vpop.f32.mrb[44].mxu1  ;;  %v4636_v10 = vpop.f32.mrb[12].mxu0 }
 0x16d   :  { %v1550_v11 = vpop.f32.mrb[45].mxu1  ;;  %v1711_v13 = vpop.f32.mrb[13].mxu0 }
 0x16e   :  { %v4644_v16 = vpop.f32.mrb[46].mxu1  ;;  %v4646_v17 = vpop.f32.mrb[14].mxu0 }
 0x16f   :  { %v1553_v21 = vpop.f32.mrb[47].mxu1  ;;  %v1714_v22 = vpop.f32.mrb[15].mxu0 }
 0x171   :  { %1924 = vmatmul.mubr.bf16.gmra.mrb[120].mxu0 %v3913_v14  ;;  %3536 = vmatmul.mubr.bf16.gmra.mrb[152].mxu1 %v3914_v15 }
 0x172   :  { %1931 = vmatprep.mubr.bf16.mxu0 %v3915_v18  ;;  %3539 = vmatprep.mubr.bf16.mxu1 %v3917_v20 }
 0x174   :  { %v4654_v26 = vpop.f32.mrb[48].mxu1  ;;  %v4656_v28 = vpop.f32.mrb[16].mxu0 }
 0x175   :  { %v1558_v29 = vpop.f32.mrb[49].mxu1  ;;  %v1719_v30 = vpop.f32.mrb[17].mxu0 }
 0x176   :  { %v4664_v37 = vpop.f32.mrb[50].mxu1  ;;  %v4666_v38 = vpop.f32.mrb[18].mxu0 }
 0x177   :  { %v1561_v42 = vpop.f32.mrb[51].mxu1  ;;  %v1722_v44 = vpop.f32.mrb[19].mxu0 }
 0x179   :  { %1932 = vmatmul.mubr.bf16.gmra.mrb[124].mxu0 %v3918_v34  ;;  %3540 = vmatmul.mubr.bf16.gmra.mrb[156].mxu1 %v3919_v36 }
 0x17c   :  { %v4668_v45 = vpop.f32.mrb[52].mxu1  ;;  %v4670_v46 = vpop.f32.mrb[20].mxu0 }
 0x17d   :  { %v1566_v50 = vpop.f32.mrb[53].mxu1  ;;  %v1727_v52 = vpop.f32.mrb[21].mxu0 }
 0x17e   :  { %v4672_v53 = vpop.f32.mrb[54].mxu1  ;;  %v4674_v54 = vpop.f32.mrb[22].mxu0 }
 0x17f   :  { %v1569_v58 = vpop.f32.mrb[55].mxu1  ;;  %v1730_v60 = vpop.f32.mrb[23].mxu0 }
 0x184   :  { %v4676_v61 = vpop.f32.mrb[56].mxu1  ;;  %v4678_v62 = vpop.f32.mrb[24].mxu0 }
 0x185   :  { %v1574_v3 = vpop.f32.mrb[57].mxu1  ;;  %v1735_v5 = vpop.f32.mrb[25].mxu0 }
 0x186   :  { %v4680_v6 = vpop.f32.mrb[58].mxu1  ;;  %v4682_v7 = vpop.f32.mrb[26].mxu0 }
 0x187   :  { %v1577_v11 = vpop.f32.mrb[59].mxu1  ;;  %v1738_v13 = vpop.f32.mrb[27].mxu0 }
 0x18c   :  { %v4684_v14 = vpop.f32.mrb[60].mxu1  ;;  %v4686_v15 = vpop.f32.mrb[28].mxu0 }
 0x18d   :  { %v1582_v18 = vpop.f32.mrb[61].mxu1  ;;  %v1743_v20 = vpop.f32.mrb[29].mxu0 }
 0x18e   :  { %v4688_v21 = vpop.f32.mrb[62].mxu1  ;;  %v4690_v22 = vpop.f32.mrb[30].mxu0 }
 0x18f   :  { %v1585_v29 = vpop.f32.mrb[63].mxu1  ;;  %v1746_v30 = vpop.f32.mrb[31].mxu0 }
 0x194   :  { %v4692_v34 = vpop.f32.mrb[64].mxu1  ;;  %v1749_v36 = vpop.f32.mrb[32].mxu0 }
 0x195   :  { %v4695_v42 = vadd.f32 %v1749_v36, %v4446_v23  ;;  %v1590_v44 = vpop.f32.mrb[65].mxu1  ;;  %v1751_v50 = vpop.f32.mrb[33].mxu0 }
 0x196   :  { %v4697_v52 = vpop.f32.mrb[66].mxu1  ;;  %v1752_v58 = vpop.f32.mrb[34].mxu0 }
 0x197   :  { %v4700_v60 = vadd.f32 %v1752_v58, %v4454_v27  ;;  %v1593_v3 = vpop.f32.mrb[67].mxu1  ;;  %v1754_v5 = vpop.f32.mrb[35].mxu0 }
 0x19c   :  { %v4702_v11 = vpop.f32.mrb[68].mxu1  ;;  %v1757_v13 = vpop.f32.mrb[36].mxu0 }
 0x19d   :  { %5387 = vst [vmem:[#allocation3_spill] sm:$0xff] %v4702_v11  ;;  %v4705_v18 = vadd.f32 %v1757_v13, %v4462_v31  ;;  %v1598_v20 = vpop.f32.mrb[69].mxu1  ;;  %v1759_v29 = vpop.f32.mrb[37].mxu0 }
 0x19e   :  { %v4707_v23 = vpop.f32.mrb[70].mxu1  ;;  %v1760_v30 = vpop.f32.mrb[38].mxu0 }
 0x19f   :  { %5388 = vst [vmem:[#allocation4_spill] sm:$0xff] %v4707_v23  ;;  %v4710_v36 = vadd.f32 %v1760_v30, %v4470_v35  ;;  %v1601_v44 = vpop.f32.mrb[71].mxu1  ;;  %v1762_v50 = vpop.f32.mrb[39].mxu0 }
 0x1a4   :  { %v4712_v27 = vpop.f32.mrb[72].mxu1  ;;  %v1765_v58 = vpop.f32.mrb[40].mxu0 }
 0x1a5   :  { %5389 = vst [vmem:[#allocation5_spill] sm:$0xff] %v4712_v27  ;;  %v4715_v3 = vadd.f32 %v1765_v58, %v4478_v39  ;;  %v1606_v5 = vpop.f32.mrb[73].mxu1  ;;  %v1767_v11 = vpop.f32.mrb[41].mxu0 }
 0x1a6   :  { %v4717_v31 = vpop.f32.mrb[74].mxu1  ;;  %v1768_v13 = vpop.f32.mrb[42].mxu0 }
 0x1a7   :  { %5390 = vst [vmem:[#allocation6_spill] sm:$0xff] %v4717_v31  ;;  %v4720_v20 = vadd.f32 %v1768_v13, %v4486_v43  ;;  %v1609_v29 = vpop.f32.mrb[75].mxu1  ;;  %v1770_v23 = vpop.f32.mrb[43].mxu0 }
 0x1ac   :  { %v4722_v35 = vpop.f32.mrb[76].mxu1  ;;  %v1773_v30 = vpop.f32.mrb[44].mxu0 }
 0x1ad   :  { %5391 = vst [vmem:[#allocation7_spill] sm:$0xff] %v4722_v35  ;;  %v4725_v44 = vadd.f32 %v1773_v30, %v4494_v47  ;;  %v1614_v50 = vpop.f32.mrb[77].mxu1  ;;  %v1775_v27 = vpop.f32.mrb[45].mxu0 }
 0x1ae   :  { %v4727_v39 = vpop.f32.mrb[78].mxu1  ;;  %v1776_v58 = vpop.f32.mrb[46].mxu0 }
 0x1af   :  { %5392 = vst [vmem:[#allocation8_spill] sm:$0xff] %v4727_v39  ;;  %v4730_v11 = vadd.f32 %v1776_v58, %v4502_v51  ;;  %v1617_v5 = vpop.f32.mrb[79].mxu1  ;;  %v1778_v31 = vpop.f32.mrb[47].mxu0 }
 0x1b4   :  { %v4732_v43 = vpop.f32.mrb[80].mxu1  ;;  %v1781_v13 = vpop.f32.mrb[48].mxu0 }
 0x1b5   :  { %5393 = vst [vmem:[#allocation9_spill] sm:$0xff] %v4732_v43  ;;  %v4735_v23 = vadd.f32 %v1781_v13, %v4510_v55  ;;  %v1622_v29 = vpop.f32.mrb[81].mxu1  ;;  %v1783_v35 = vpop.f32.mrb[49].mxu0 }
 0x1b6   :  { %v4737_v47 = vpop.f32.mrb[82].mxu1  ;;  %v1784_v30 = vpop.f32.mrb[50].mxu0 }
 0x1b7   :  { %5394 = vst [vmem:[#allocation10_spill] sm:$0xff] %v4737_v47  ;;  %v4740_v27 = vadd.f32 %v1784_v30, %v4518_v59  ;;  %v1625_v50 = vpop.f32.mrb[83].mxu1  ;;  %v1786_v39 = vpop.f32.mrb[51].mxu0 }
 0x1bc   :  { %v4742_v51 = vpop.f32.mrb[84].mxu1  ;;  %v1789_v58 = vpop.f32.mrb[52].mxu0 }
 0x1bd   :  { %5395 = vst [vmem:[#allocation11_spill] sm:$0xff] %v4742_v51  ;;  %v4745_v31 = vadd.f32 %v1789_v58, %v4526_v63  ;;  %v1630_v5 = vpop.f32.mrb[85].mxu1  ;;  %v1791_v43 = vpop.f32.mrb[53].mxu0 }
 0x1be   :  { %v4747_v55 = vpop.f32.mrb[86].mxu1  ;;  %v1792_v13 = vpop.f32.mrb[54].mxu0 }
 0x1bf   :  { %5396 = vst [vmem:[#allocation12_spill] sm:$0xff] %v4747_v55  ;;  %v4750_v35 = vadd.f32 %v1792_v13, %v4534_v4  ;;  %v1633_v29 = vpop.f32.mrb[87].mxu1  ;;  %v1794_v47 = vpop.f32.mrb[55].mxu0 }
 0x1c4   :  { %v4752_v59 = vpop.f32.mrb[88].mxu1  ;;  %v1797_v30 = vpop.f32.mrb[56].mxu0 }
 0x1c5   :  { %5397 = vst [vmem:[#allocation13_spill] sm:$0xff] %v4752_v59  ;;  %v4755_v39 = vadd.f32 %v1797_v30, %v4542_v8  ;;  %v1638_v50 = vpop.f32.mrb[89].mxu1  ;;  %v1799_v51 = vpop.f32.mrb[57].mxu0 }
 0x1c6   :  { %v4757_v63 = vpop.f32.mrb[90].mxu1  ;;  %v1800_v58 = vpop.f32.mrb[58].mxu0 }
 0x1c7   :  { %5398 = vst [vmem:[#allocation14_spill] sm:$0xff] %v4757_v63  ;;  %v4760_v43 = vadd.f32 %v1800_v58, %v4550_v12  ;;  %v1641_v5 = vpop.f32.mrb[91].mxu1  ;;  %v1802_v55 = vpop.f32.mrb[59].mxu0 }
 0x1cc   :  { %v4762_v4 = vpop.f32.mrb[92].mxu1  ;;  %v1805_v13 = vpop.f32.mrb[60].mxu0 }
 0x1cd   :  { %v4765_v47 = vadd.f32 %v1805_v13, %v4558_v0  ;;  %v1646_v29 = vpop.f32.mrb[93].mxu1  ;;  %v1807_v59 = vpop.f32.mrb[61].mxu0 }
 0x1ce   :  { %v4767_v8 = vpop.f32.mrb[94].mxu1  ;;  %v1808_v30 = vpop.f32.mrb[62].mxu0 }
 0x1cf   :  { %5399 = vst [vmem:[#allocation15_spill] sm:$0xff] %v4767_v8  ;;  %v4770_v51 = vadd.f32 %v1808_v30, %v4566_v19  ;;  %v1649_v50 = vpop.f32.mrb[95].mxu1  ;;  %v1810_v63 = vpop.f32.mrb[63].mxu0 }
 0x1d4   :  { %v1813_v12 = vpop.f32.mrb[64].mxu0  ;;  %v3481_v58 = vpop.f32.mrb[96].mxu1 }
 0x1d5   :  { %v4773_v55 = vadd.f32 %v1813_v12, %v4574_v24  ;;  %v1983_v5 = vadd.f32 %v3481_v58, %v4596_v41  ;;  %v1815_v0 = vpop.f32.mrb[65].mxu0  ;;  %v1974_v13 = vpop.f32.mrb[97].mxu1 }
 0x1d6   :  { %v1975_v59 = vadd.f32 %v1974_v13, %v4576_v25  ;;  %v1816_v29 = vpop.f32.mrb[66].mxu0  ;;  %v3482_v8 = vpop.f32.mrb[98].mxu1  ;;  %v4789_v25 = vld [vmem:[%s5384_s2] ss:$0 sm:$0xff] }
 0x1d7   :  { %2236 = vst.msk [vmem:[#allocation2 + $0x10] sm:$0xff] %vm2233_vm0, %v1983_v5  ;;  %v4779_v19 = vadd.f32 %v1816_v29, %v4584_v32  ;;  %v1986_v63 = vadd.f32 %v3482_v8, %v4606_v49  ;;  %v1818_v30 = vpop.f32.mrb[67].mxu0  ;;  %v1977_v50 = vpop.f32.mrb[99].mxu1 }
 0x1d8   :  { %2234 = vst.msk [vmem:[#allocation2] sm:$0xff] %vm2233_vm0, %v1975_v59  ;;  %v1978_v24 = vadd.f32 %v1977_v50, %v4586_v33  ;;  %v4798_v33 = vld [vmem:[%s5385_s3] ss:$0 sm:$0xff] }
 0x1d9   :  { %2237 = vst.msk [vmem:[#allocation2 + $0x18] sm:$0xff] %vm2233_vm0, %v1986_v63 }
 0x1da   :  { %2235 = vst.msk [vmem:[#allocation2 + $0x8] sm:$0xff] %vm2233_vm0, %v1978_v24 }
 0x1dc   :  { %v1821_v41 = vpop.f32.mrb[68].mxu0  ;;  %v3485_v32 = vpop.f32.mrb[100].mxu1 }
 0x1dd   :  { %v4792_v12 = vadd.f32 %v1821_v41, %v4594_v40  ;;  %v1999_v49 = vadd.f32 %v3485_v32, %v4636_v10  ;;  %v1823_v8 = vpop.f32.mrb[69].mxu0  ;;  %v1990_v58 = vpop.f32.mrb[101].mxu1 }
 0x1de   :  { %v2500_v5 = vld [vmem:[#allocation2 + $0x10] sm:$0xff]  ;;  %v1991_v0 = vadd.f32 %v1990_v58, %v4616_v57  ;;  %v1824_v13 = vpop.f32.mrb[70].mxu0  ;;  %v3486_v59 = vpop.f32.mrb[102].mxu1 }
 0x1df   :  { %v2571_v29 = vmul.f32 %v4789_v25, %v2500_v5  ;;  %v2498_v63 = vld [vmem:[#allocation2] sm:$0xff]  ;;  %2240 = vst.msk [vmem:[#allocation2 + $0x30] sm:$0xff] %vm2233_vm0, %v1999_v49  ;;  %v4804_v40 = vadd.f32 %v1824_v13, %v4604_v48  ;;  %v2002_v10 = vadd.f32 %v3486_v59, %v4646_v17  ;;  %v1826_v30 = vpop.f32.mrb[71].mxu0  ;;  %v1993_v50 = vpop.f32.mrb[103].mxu1 }
 0x1e0   :  { %v2569_v24 = vmul.f32 %v4789_v25, %v2498_v63  ;;  %v2501_v41 = vld [vmem:[#allocation2 + $0x18] sm:$0xff]  ;;  %2238 = vst.msk [vmem:[#allocation2 + $0x20] sm:$0xff] %vm2233_vm0, %v1991_v0  ;;  %v1994_v57 = vadd.f32 %v1993_v50, %v4626_v2 }
 0x1e1   :  { %v2642_v32 = vadd.f32 %v4798_v33, %v2571_v29  ;;  %v2572_v8 = vmul.f32 %v4789_v25, %v2501_v41  ;;  %v2499_v58 = vld [vmem:[#allocation2 + $0x8] sm:$0xff]  ;;  %2241 = vst.msk [vmem:[#allocation2 + $0x38] sm:$0xff] %vm2233_vm0, %v2002_v10 }
 0x1e2   :  { %v2640_v48 = vadd.f32 %v4798_v33, %v2569_v24  ;;  %v2570_v17 = vmul.f32 %v4789_v25, %v2499_v58  ;;  %2239 = vst.msk [vmem:[#allocation2 + $0x28] sm:$0xff] %vm2233_vm0, %v1994_v57 }
 0x1e3   :  { %v2706_v49 = vmax.f32 %v2642_v32, 0.0  ;;  %v2643_v5 = vadd.f32 %v4798_v33, %v2572_v8 }
 0x1e4   :  { %v2704_v0 = vmax.f32 %v2640_v48, 0.0  ;;  %v2641_v2 = vadd.f32 %v4798_v33, %v2570_v17  ;;  %v1829_v13 = vpop.f32.mrb[72].mxu0  ;;  %v3489_v59 = vpop.f32.mrb[104].mxu1 }
 0x1e5   :  { %v3361_v29 = vpack.c.bf16 %v2706_v49, %v2706_v49  ;;  %v2707_v63 = vmax.f32 %v2643_v5, 0.0  ;;  %v4819_v30 = vadd.f32 %v1829_v13, %v4614_v56  ;;  %v2015_v10 = vadd.f32 %v3489_v59, %v4670_v46  ;;  %v1831_v50 = vpop.f32.mrb[73].mxu0  ;;  %v2006_v24 = vpop.f32.mrb[105].mxu1 }
 0x1e6   :  { %v3359_v41 = vpack.c.bf16 %v2704_v0, %v2704_v0  ;;  %v2705_v57 = vmax.f32 %v2641_v2, 0.0  ;;  %v2504_v32 = vld [vmem:[#allocation2 + $0x30] sm:$0xff]  ;;  %v2007_v8 = vadd.f32 %v2006_v24, %v4656_v28  ;;  %v1832_v58 = vpop.f32.mrb[74].mxu0  ;;  %v3490_v48 = vpop.f32.mrb[106].mxu1 }
 0x1e7   :  { %3027 = vst.msk [vmem:[%s5386_s4 + $0x8] sm:$0xf] %vm3024_vm1, %v3361_v29  ;;  %v3362_v17 = vpack.c.bf16 %v2707_v63, %v2707_v63  ;;  %v2575_v56 = vmul.f32 %v4789_v25, %v2504_v32  ;;  %v2502_v49 = vld [vmem:[#allocation2 + $0x20] sm:$0xff]  ;;  %v4830_v46 = vadd.f32 %v1832_v58, %v4624_v1  ;;  %v2018_v5 = vadd.f32 %v3490_v48, %v4674_v54  ;;  %v1834_v0 = vpop.f32.mrb[75].mxu0  ;;  %v2009_v28 = vpop.f32.mrb[107].mxu1 }
 0x1e8   :  { %2244 = vst.msk [vmem:[#allocation2 + $0x50] sm:$0xff] %vm2233_vm0, %v2015_v10  ;;  %v3360_v2 = vpack.c.bf16 %v2705_v57, %v2705_v57  ;;  %v2573_v13 = vmul.f32 %v4789_v25, %v2502_v49  ;;  %v2505_v59 = vld [vmem:[#allocation2 + $0x38] sm:$0xff]  ;;  %2242 = vst.msk [vmem:[#allocation2 + $0x40] sm:$0xff] %vm2233_vm0, %v2007_v8  ;;  %v2010_v29 = vadd.f32 %v2009_v28, %v4666_v38 }
 0x1e9   :  { %3025 = vst.msk [vmem:[%s5386_s4] sm:$0xf] %vm3024_vm1, %v3359_v41  ;;  %3028 = vst.msk [vmem:[%s5386_s4 + $0xc] sm:$0xf] %vm3024_vm1, %v3362_v17  ;;  %v2646_v1 = vadd.f32 %v4798_v33, %v2575_v56  ;;  %v2576_v54 = vmul.f32 %v4789_v25, %v2505_v59  ;;  %v2503_v63 = vld [vmem:[#allocation2 + $0x28] sm:$0xff] }
 0x1ea   :  { %2245 = vst.msk [vmem:[#allocation2 + $0x58] sm:$0xff] %vm2233_vm0, %v2018_v5  ;;  %v2644_v10 = vadd.f32 %v4798_v33, %v2573_v13  ;;  %v2574_v38 = vmul.f32 %v4789_v25, %v2503_v63  ;;  %2243 = vst.msk [vmem:[#allocation2 + $0x48] sm:$0xff] %vm2233_vm0, %v2010_v29 }
 0x1eb   :  { %3026 = vst.msk [vmem:[%s5386_s4 + $0x4] sm:$0xf] %vm3024_vm1, %v3360_v2  ;;  %v2710_v50 = vmax.f32 %v2646_v1, 0.0  ;;  %v2647_v24 = vadd.f32 %v4798_v33, %v2576_v54 }
 0x1ec   :  { %v2708_v41 = vmax.f32 %v2644_v10, 0.0  ;;  %v2645_v57 = vadd.f32 %v4798_v33, %v2574_v38  ;;  %v1837_v32 = vpop.f32.mrb[76].mxu0  ;;  %v3493_v8 = vpop.f32.mrb[108].mxu1 }
 0x1ed   :  { %v3365_v58 = vpack.c.bf16 %v2710_v50, %v2710_v50  ;;  %v2711_v48 = vmax.f32 %v2647_v24, 0.0  ;;  %v4857_v17 = vadd.f32 %v1837_v32, %v4634_v9  ;;  %v2031_v56 = vadd.f32 %v3493_v8, %v4686_v15  ;;  %v1839_v49 = vpop.f32.mrb[77].mxu0  ;;  %v2022_v5 = vpop.f32.mrb[109].mxu1 }
 0x1ee   :  { %v3363_v0 = vpack.c.bf16 %v2708_v41, %v2708_v41  ;;  %v2709_v28 = vmax.f32 %v2645_v57, 0.0  ;;  %v2023_v13 = vadd.f32 %v2022_v5, %v4678_v62  ;;  %v1840_v59 = vpop.f32.mrb[78].mxu0  ;;  %v3494_v29 = vpop.f32.mrb[110].mxu1 }
 0x1ef   :  { %v2508_v2 = vld [vmem:[#allocation2 + $0x50] sm:$0xff]  ;;  %3031 = vst.msk [vmem:[%s5386_s4 + $0x18] sm:$0xf] %vm3024_vm1, %v3365_v58  ;;  %v3366_v1 = vpack.c.bf16 %v2711_v48, %v2711_v48  ;;  %v2506_v54 = vld [vmem:[#allocation2 + $0x40] sm:$0xff]  ;;  %v4868_v15 = vadd.f32 %v1840_v59, %v4644_v16  ;;  %v2034_v63 = vadd.f32 %v3494_v29, %v4690_v22  ;;  %v1842_v10 = vpop.f32.mrb[79].mxu0  ;;  %v2025_v62 = vpop.f32.mrb[111].mxu1 }
 0x1f0   :  { %v2579_v9 = vmul.f32 %v4789_v25, %v2508_v2  ;;  %2248 = vst.msk [vmem:[#allocation2 + $0x70] sm:$0xff] %vm2233_vm0, %v2031_v56  ;;  %v3364_v38 = vpack.c.bf16 %v2709_v28, %v2709_v28  ;;  %v2577_v50 = vmul.f32 %v4789_v25, %v2506_v54  ;;  %2246 = vst.msk [vmem:[#allocation2 + $0x60] sm:$0xff] %vm2233_vm0, %v2023_v13 }
 0x1f1   :  { %3029 = vst.msk [vmem:[%s5386_s4 + $0x10] sm:$0xf] %vm3024_vm1, %v3363_v0  ;;  %v2509_v24 = vld [vmem:[#allocation2 + $0x58] sm:$0xff]  ;;  %v2026_v41 = vadd.f32 %v2025_v62, %v4682_v7  ;;  %3032 = vst.msk [vmem:[%s5386_s4 + $0x1c] sm:$0xf] %vm3024_vm1, %v3366_v1  ;;  %v2507_v57 = vld [vmem:[#allocation2 + $0x48] sm:$0xff] }
 0x1f2   :  { %v2650_v16 = vadd.f32 %v4798_v33, %v2579_v9  ;;  %v2580_v22 = vmul.f32 %v4789_v25, %v2509_v24  ;;  %2249 = vst.msk [vmem:[#allocation2 + $0x78] sm:$0xff] %vm2233_vm0, %v2034_v63  ;;  %v2648_v32 = vadd.f32 %v4798_v33, %v2577_v50  ;;  %v2578_v7 = vmul.f32 %v4789_v25, %v2507_v57 }
 0x1f3   :  { %3030 = vst.msk [vmem:[%s5386_s4 + $0x14] sm:$0xf] %vm3024_vm1, %v3364_v38 }
 0x1f4   :  { %2247 = vst.msk [vmem:[#allocation2 + $0x68] sm:$0xff] %vm2233_vm0, %v2026_v41  ;;  %v2714_v8 = vmax.f32 %v2650_v16, 0.0  ;;  %v2651_v58 = vadd.f32 %v4798_v33, %v2580_v22  ;;  %v2712_v48 = vmax.f32 %v2648_v32, 0.0  ;;  %v2649_v56 = vadd.f32 %v4798_v33, %v2578_v7  ;;  %v1845_v49 = vpop.f32.mrb[80].mxu0  ;;  %v3497_v5 = vpop.f32.mrb[112].mxu1 }
 0x1f5   :  { %v4895_v2 = vadd.f32 %v1845_v49, %v4654_v26  ;;  %v2047_v13 = vadd.f32 %v3497_v5, %v4705_v18  ;;  %v1847_v59 = vpop.f32.mrb[81].mxu0  ;;  %v2038_v29 = vpop.f32.mrb[113].mxu1 }
 0x1f6   :  { %v3369_v0 = vpack.c.bf16 %v2714_v8, %v2714_v8  ;;  %v2715_v28 = vmax.f32 %v2651_v58, 0.0  ;;  %v3367_v1 = vpack.c.bf16 %v2712_v48, %v2712_v48  ;;  %v2713_v9 = vmax.f32 %v2649_v56, 0.0  ;;  %v1848_v10 = vpop.f32.mrb[82].mxu0  ;;  %v3498_v62 = vpop.f32.mrb[114].mxu1 }
 0x1f7   :  { %v2512_v54 = vld [vmem:[#allocation2 + $0x70] sm:$0xff]  ;;  %v2039_v63 = vadd.f32 %v2038_v29, %v4695_v42  ;;  %v2510_v50 = vld [vmem:[#allocation2 + $0x60] sm:$0xff]  ;;  %2252 = vst.msk [vmem:[#allocation2 + $0x90] sm:$0xff] %vm2233_vm0, %v2047_v13  ;;  %v4906_v18 = vadd.f32 %v1848_v10, %v4664_v37  ;;  %v2050_v24 = vadd.f32 %v3498_v62, %v4710_v36  ;;  %v1850_v41 = vpop.f32.mrb[83].mxu0  ;;  %v2041_v42 = vpop.f32.mrb[115].mxu1 }
 0x1f8   :  { %3035 = vst.msk [vmem:[%s5386_s4 + $0x28] sm:$0xf] %vm3024_vm1, %v3369_v0  ;;  %v3370_v38 = vpack.c.bf16 %v2715_v28, %v2715_v28  ;;  %v2583_v26 = vmul.f32 %v4789_v25, %v2512_v54  ;;  %3033 = vst.msk [vmem:[%s5386_s4 + $0x20] sm:$0xf] %vm3024_vm1, %v3367_v1  ;;  %v3368_v16 = vpack.c.bf16 %v2713_v9, %v2713_v9 }
 0x1f9   :  { %v2581_v22 = vmul.f32 %v4789_v25, %v2510_v50  ;;  %v2513_v57 = vld [vmem:[#allocation2 + $0x78] sm:$0xff]  ;;  %2250 = vst.msk [vmem:[#allocation2 + $0x80] sm:$0xff] %vm2233_vm0, %v2039_v63  ;;  %v2042_v32 = vadd.f32 %v2041_v42, %v4700_v60  ;;  %2253 = vst.msk [vmem:[#allocation2 + $0x98] sm:$0xff] %vm2233_vm0, %v2050_v24 }
 0x1fa   :  { %3036 = vst.msk [vmem:[%s5386_s4 + $0x2c] sm:$0xf] %vm3024_vm1, %v3370_v38  ;;  %v2654_v37 = vadd.f32 %v4798_v33, %v2583_v26  ;;  %v2584_v36 = vmul.f32 %v4789_v25, %v2513_v57  ;;  %3034 = vst.msk [vmem:[%s5386_s4 + $0x24] sm:$0xf] %vm3024_vm1, %v3368_v16 }
 0x1fb   :  { %v2511_v7 = vld [vmem:[#allocation2 + $0x68] sm:$0xff]  ;;  %v2652_v8 = vadd.f32 %v4798_v33, %v2581_v22  ;;  %2251 = vst.msk [vmem:[#allocation2 + $0x88] sm:$0xff] %vm2233_vm0, %v2042_v32 }
 0x1fc   :  { %v2582_v60 = vmul.f32 %v4789_v25, %v2511_v7  ;;  %v2718_v58 = vmax.f32 %v2654_v37, 0.0  ;;  %v2655_v48 = vadd.f32 %v4798_v33, %v2584_v36  ;;  %v1853_v5 = vpop.f32.mrb[84].mxu0  ;;  %v3501_v0 = vpop.f32.mrb[116].mxu1 }
 0x1fd   :  { %v2716_v56 = vmax.f32 %v2652_v8, 0.0  ;;  %v4933_v59 = vadd.f32 %v1853_v5, %v4668_v45  ;;  %v2063_v29 = vadd.f32 %v3501_v0, %v4725_v44  ;;  %v1855_v1 = vpop.f32.mrb[85].mxu0  ;;  %v2054_v9 = vpop.f32.mrb[117].mxu1 }
 0x1fe   :  { %v2653_v49 = vadd.f32 %v4798_v33, %v2582_v60  ;;  %v3373_v28 = vpack.c.bf16 %v2718_v58, %v2718_v58  ;;  %v2719_v13 = vmax.f32 %v2655_v48, 0.0  ;;  %v2516_v10 = vld [vmem:[#allocation2 + $0x90] sm:$0xff]  ;;  %v2055_v62 = vadd.f32 %v2054_v9, %v4715_v3  ;;  %v1856_v38 = vpop.f32.mrb[86].mxu0  ;;  %v3502_v26 = vpop.f32.mrb[118].mxu1 }
 0x1ff   :  { %v3371_v54 = vpack.c.bf16 %v2716_v56, %v2716_v56  ;;  %v2587_v45 = vmul.f32 %v4789_v25, %v2516_v10  ;;  %2256 = vst.msk [vmem:[#allocation2 + $0xb0] sm:$0xff] %vm2233_vm0, %v2063_v29  ;;  %v4944_v44 = vadd.f32 %v1856_v38, %v4672_v53  ;;  %v2066_v41 = vadd.f32 %v3502_v26, %v4730_v11  ;;  %v1858_v42 = vpop.f32.mrb[87].mxu0  ;;  %v2057_v3 = vpop.f32.mrb[119].mxu1 }
 0x200   :  { %v2717_v63 = vmax.f32 %v2653_v49, 0.0  ;;  %3039 = vst.msk [vmem:[%s5386_s4 + $0x38] sm:$0xf] %vm3024_vm1, %v3373_v28  ;;  %v3374_v50 = vpack.c.bf16 %v2719_v13, %v2719_v13  ;;  %v2514_v24 = vld [vmem:[#allocation2 + $0x80] sm:$0xff]  ;;  %v2517_v57 = vld [vmem:[#allocation2 + $0x98] sm:$0xff]  ;;  %v2058_v32 = vadd.f32 %v2057_v3, %v4720_v20 }
 0x201   :  { %3037 = vst.msk [vmem:[%s5386_s4 + $0x30] sm:$0xf] %vm3024_vm1, %v3371_v54  ;;  %v2585_v22 = vmul.f32 %v4789_v25, %v2514_v24  ;;  %v2658_v53 = vadd.f32 %v4798_v33, %v2587_v45  ;;  %v2588_v11 = vmul.f32 %v4789_v25, %v2517_v57 }
 0x202   :  { %v3372_v16 = vpack.c.bf16 %v2717_v63, %v2717_v63  ;;  %2254 = vst.msk [vmem:[#allocation2 + $0xa0] sm:$0xff] %vm2233_vm0, %v2055_v62  ;;  %v2515_v37 = vld [vmem:[#allocation2 + $0x88] sm:$0xff]  ;;  %2257 = vst.msk [vmem:[#allocation2 + $0xb8] sm:$0xff] %vm2233_vm0, %v2066_v41 }
 0x203   :  { %3040 = vst.msk [vmem:[%s5386_s4 + $0x3c] sm:$0xf] %vm3024_vm1, %v3374_v50  ;;  %v2656_v36 = vadd.f32 %v4798_v33, %v2585_v22  ;;  %v2586_v20 = vmul.f32 %v4789_v25, %v2515_v37  ;;  %v2722_v7 = vmax.f32 %v2658_v53, 0.0  ;;  %v2659_v8 = vadd.f32 %v4798_v33, %v2588_v11 }
 0x204   :  { %3038 = vst.msk [vmem:[%s5386_s4 + $0x34] sm:$0xf] %vm3024_vm1, %v3372_v16  ;;  %v1861_v48 = vpop.f32.mrb[88].mxu0  ;;  %v3505_v56 = vpop.f32.mrb[120].mxu1 }
 0x205   :  { %2255 = vst.msk [vmem:[#allocation2 + $0xa8] sm:$0xff] %vm2233_vm0, %v2058_v32  ;;  %v2720_v60 = vmax.f32 %v2656_v36, 0.0  ;;  %v2657_v58 = vadd.f32 %v4798_v33, %v2586_v20  ;;  %v3377_v49 = vpack.c.bf16 %v2722_v7, %v2722_v7  ;;  %v2723_v5 = vmax.f32 %v2659_v8, 0.0  ;;  %v1863_v13 = vpop.f32.mrb[89].mxu0  ;;  %v2070_v29 = vpop.f32.mrb[121].mxu1 }
 0x206   :  { %v4971_v0 = vadd.f32 %v1861_v48, %v4676_v61  ;;  %v2079_v28 = vadd.f32 %v3505_v56, %v4745_v31  ;;  %v2520_v54 = vld [vmem:[#allocation2 + $0xb0] sm:$0xff]  ;;  %v2071_v63 = vadd.f32 %v2070_v29, %v4735_v23  ;;  %v1864_v10 = vpop.f32.mrb[90].mxu0  ;;  %v3506_v62 = vpop.f32.mrb[122].mxu1 }
 0x207   :  { %v3375_v1 = vpack.c.bf16 %v2720_v60, %v2720_v60  ;;  %v2721_v9 = vmax.f32 %v2657_v58, 0.0  ;;  %3043 = vst.msk [vmem:[%s5386_s4 + $0x48] sm:$0xf] %vm3024_vm1, %v3377_v49  ;;  %v3378_v38 = vpack.c.bf16 %v2723_v5, %v2723_v5  ;;  %v2591_v61 = vmul.f32 %v4789_v25, %v2520_v54  ;;  %v1866_v45 = vpop.f32.mrb[91].mxu0  ;;  %v2073_v23 = vpop.f32.mrb[123].mxu1 }
 0x208   :  { %2260 = vst.msk [vmem:[#allocation2 + $0xd0] sm:$0xff] %vm2233_vm0, %v2079_v28  ;;  %v4982_v31 = vadd.f32 %v1864_v10, %v4680_v6  ;;  %v2082_v50 = vadd.f32 %v3506_v62, %v4750_v35  ;;  %2258 = vst.msk [vmem:[#allocation2 + $0xc0] sm:$0xff] %vm2233_vm0, %v2071_v63  ;;  %v2074_v3 = vadd.f32 %v2073_v23, %v4740_v27 }
 0x209   :  { %v2518_v26 = vld [vmem:[#allocation2 + $0xa0] sm:$0xff]  ;;  %3041 = vst.msk [vmem:[%s5386_s4 + $0x40] sm:$0xf] %vm3024_vm1, %v3375_v1  ;;  %v3376_v24 = vpack.c.bf16 %v2721_v9, %v2721_v9  ;;  %v2521_v42 = vld [vmem:[#allocation2 + $0xb8] sm:$0xff]  ;;  %3044 = vst.msk [vmem:[%s5386_s4 + $0x4c] sm:$0xf] %vm3024_vm1, %v3378_v38  ;;  %v2662_v6 = vadd.f32 %v4798_v33, %v2591_v61 }
 0x20a   :  { %v2589_v41 = vmul.f32 %v4789_v25, %v2518_v26  ;;  %v2592_v35 = vmul.f32 %v4789_v25, %v2521_v42  ;;  %2261 = vst.msk [vmem:[#allocation2 + $0xd8] sm:$0xff] %vm2233_vm0, %v2082_v50  ;;  %2259 = vst.msk [vmem:[#allocation2 + $0xc8] sm:$0xff] %vm2233_vm0, %v2074_v3 }
 0x20b   :  { %3042 = vst.msk [vmem:[%s5386_s4 + $0x44] sm:$0xf] %vm3024_vm1, %v3376_v24  ;;  %v2726_v57 = vmax.f32 %v2662_v6, 0.0 }
 0x20c   :  { %v2519_v16 = vld [vmem:[#allocation2 + $0xa8] sm:$0xff]  ;;  %v2660_v22 = vadd.f32 %v4798_v33, %v2589_v41  ;;  %v2663_v32 = vadd.f32 %v4798_v33, %v2592_v35  ;;  %v1869_v37 = vpop.f32.mrb[92].mxu0  ;;  %v3509_v36 = vpop.f32.mrb[124].mxu1 }
 0x20d   :  { %v2590_v27 = vmul.f32 %v4789_v25, %v2519_v16  ;;  %v3381_v20 = vpack.c.bf16 %v2726_v57, %v2726_v57  ;;  %v5009_v8 = vadd.f32 %v1869_v37, %v4684_v14  ;;  %v2095_v60 = vadd.f32 %v3509_v36, %v4765_v47  ;;  %v1871_v58 = vpop.f32.mrb[93].mxu0  ;;  %v2086_v48 = vpop.f32.mrb[125].mxu1 }
 0x20e   :  { %v2724_v53 = vmax.f32 %v2660_v22, 0.0  ;;  %v2727_v7 = vmax.f32 %v2663_v32, 0.0  ;;  %v2087_v28 = vadd.f32 %v2086_v48, %v4755_v39  ;;  %v1872_v13 = vpop.f32.mrb[94].mxu0  ;;  %v3510_v29 = vpop.f32.mrb[126].mxu1 }
 0x20f   :  { %v2661_v11 = vadd.f32 %v4798_v33, %v2590_v27  ;;  %v2524_v5 = vld [vmem:[#allocation2 + $0xd0] sm:$0xff]  ;;  %3047 = vst.msk [vmem:[%s5386_s4 + $0x58] sm:$0xf] %vm3024_vm1, %v3381_v20  ;;  %v2522_v9 = vld [vmem:[#allocation2 + $0xc0] sm:$0xff]  ;;  %v5020_v47 = vadd.f32 %v1872_v13, %v4688_v21  ;;  %v2098_v54 = vadd.f32 %v3510_v29, %v4770_v51  ;;  %v1874_v63 = vpop.f32.mrb[95].mxu0  ;;  %v2089_v39 = vpop.f32.mrb[127].mxu1 }
 0x210   :  { %v3379_v56 = vpack.c.bf16 %v2724_v53, %v2724_v53  ;;  %v3382_v1 = vpack.c.bf16 %v2727_v7, %v2727_v7  ;;  %v2595_v14 = vmul.f32 %v4789_v25, %v2524_v5  ;;  %2264 = vst.msk [vmem:[#allocation2 + $0xf0] sm:$0xff] %vm2233_vm0, %v2095_v60  ;;  %v2593_v62 = vmul.f32 %v4789_v25, %v2522_v9 }
 0x211   :  { %v2725_v49 = vmax.f32 %v2661_v11, 0.0  ;;  %v2525_v38 = vld [vmem:[#allocation2 + $0xd8] sm:$0xff]  ;;  %2262 = vst.msk [vmem:[#allocation2 + $0xe0] sm:$0xff] %vm2233_vm0, %v2087_v28  ;;  %v2090_v61 = vadd.f32 %v2089_v39, %v4760_v43  ;;  %v2523_v26 = vld [vmem:[#allocation2 + $0xc8] sm:$0xff]  ;;  %2265 = vst.msk [vmem:[#allocation2 + $0xf8] sm:$0xff] %vm2233_vm0, %v2098_v54 }
 0x212   :  { %3045 = vst.msk [vmem:[%s5386_s4 + $0x50] sm:$0xf] %vm3024_vm1, %v3379_v56  ;;  %3048 = vst.msk [vmem:[%s5386_s4 + $0x5c] sm:$0xf] %vm3024_vm1, %v3382_v1  ;;  %v2666_v21 = vadd.f32 %v4798_v33, %v2595_v14  ;;  %v2596_v51 = vmul.f32 %v4789_v25, %v2525_v38  ;;  %v2664_v50 = vadd.f32 %v4798_v33, %v2593_v62  ;;  %v5400_v38 = vld [vmem:[#allocation3_spill] sm:$0xff] }
 0x213   :  { %v3380_v10 = vpack.c.bf16 %v2725_v49, %v2725_v49  ;;  %v2594_v43 = vmul.f32 %v4789_v25, %v2523_v26  ;;  %2263 = vst.msk [vmem:[#allocation2 + $0xe8] sm:$0xff] %vm2233_vm0, %v2090_v61 }
 0x214   :  { %v2730_v45 = vmax.f32 %v2666_v21, 0.0  ;;  %v2667_v23 = vadd.f32 %v4798_v33, %v2596_v51  ;;  %v2728_v24 = vmax.f32 %v2664_v50, 0.0  ;;  %v1877_v42 = vpop.f32.mrb[96].mxu0  ;;  %v3513_v3 = vpop.f32.mrb[128].mxu1 }
 0x215   :  { %3046 = vst.msk [vmem:[%s5386_s4 + $0x54] sm:$0xf] %vm3024_vm1, %v3380_v10  ;;  %v2665_v41 = vadd.f32 %v4798_v33, %v2594_v43  ;;  %v5047_v16 = vadd.f32 %v1877_v42, %v4692_v34  ;;  %v2111_v22 = vadd.f32 %v3513_v3, %v4792_v12  ;;  %v1879_v27 = vpop.f32.mrb[97].mxu0  ;;  %v2102_v57 = vpop.f32.mrb[129].mxu1 }
 0x216   :  { %v3385_v6 = vpack.c.bf16 %v2730_v45, %v2730_v45  ;;  %v2731_v35 = vmax.f32 %v2667_v23, 0.0  ;;  %v3383_v32 = vpack.c.bf16 %v2728_v24, %v2728_v24  ;;  %v2103_v37 = vadd.f32 %v2102_v57, %v4773_v55  ;;  %v1880_v36 = vpop.f32.mrb[98].mxu0  ;;  %v3514_v20 = vpop.f32.mrb[130].mxu1 }
 0x217   :  { %v2729_v53 = vmax.f32 %v2665_v41, 0.0  ;;  %v2528_v11 = vld [vmem:[#allocation2 + $0xf0] sm:$0xff]  ;;  %2268 = vst.msk [vmem:[#allocation2 + $0x110] sm:$0xff] %vm2233_vm0, %v2111_v22  ;;  %v5058_v12 = vadd.f32 %v1880_v36, %v4697_v52  ;;  %v2114_v58 = vadd.f32 %v3514_v20, %v4804_v40  ;;  %v1882_v48 = vpop.f32.mrb[99].mxu0  ;;  %v2105_v55 = vpop.f32.mrb[131].mxu1 }
 0x218   :  { %3051 = vst.msk [vmem:[%s5386_s4 + $0x68] sm:$0xf] %vm3024_vm1, %v3385_v6  ;;  %v3386_v7 = vpack.c.bf16 %v2731_v35, %v2731_v35  ;;  %v2599_v34 = vmul.f32 %v4789_v25, %v2528_v11  ;;  %v2526_v60 = vld [vmem:[#allocation2 + $0xe0] sm:$0xff]  ;;  %3049 = vst.msk [vmem:[%s5386_s4 + $0x60] sm:$0xf] %vm3024_vm1, %v3383_v32  ;;  %v2529_v5 = vld [vmem:[#allocation2 + $0xf8] sm:$0xff]  ;;  %v2106_v28 = vadd.f32 %v2105_v55, %v4779_v19 }
 0x219   :  { %v3384_v56 = vpack.c.bf16 %v2729_v53, %v2729_v53  ;;  %v2597_v49 = vmul.f32 %v4789_v25, %v2526_v60  ;;  %2266 = vst.msk [vmem:[#allocation2 + $0x100] sm:$0xff] %vm2233_vm0, %v2103_v37  ;;  %v2600_v40 = vmul.f32 %v4789_v25, %v2529_v5  ;;  %2269 = vst.msk [vmem:[#allocation2 + $0x118] sm:$0xff] %vm2233_vm0, %v2114_v58  ;;  %v5402_v5 = vld [vmem:[#allocation5_spill] sm:$0xff] }
 0x21a   :  { %3052 = vst.msk [vmem:[%s5386_s4 + $0x6c] sm:$0xf] %vm3024_vm1, %v3386_v7  ;;  %v2670_v52 = vadd.f32 %v4798_v33, %v2599_v34  ;;  %v2527_v13 = vld [vmem:[#allocation2 + $0xe8] sm:$0xff] }
 0x21b   :  { %3050 = vst.msk [vmem:[%s5386_s4 + $0x64] sm:$0xf] %vm3024_vm1, %v3384_v56  ;;  %v2668_v29 = vadd.f32 %v4798_v33, %v2597_v49  ;;  %v2598_v19 = vmul.f32 %v4789_v25, %v2527_v13  ;;  %v2671_v14 = vadd.f32 %v4798_v33, %v2600_v40 }
 0x21c   :  { %2267 = vst.msk [vmem:[#allocation2 + $0x108] sm:$0xff] %vm2233_vm0, %v2106_v28  ;;  %v2734_v1 = vmax.f32 %v2670_v52, 0.0  ;;  %v1885_v63 = vpop.f32.mrb[100].mxu0  ;;  %v3517_v39 = vpop.f32.mrb[132].mxu1 }
 0x21d   :  { %v2732_v9 = vmax.f32 %v2668_v29, 0.0  ;;  %v2669_v54 = vadd.f32 %v4798_v33, %v2598_v19  ;;  %v2735_v62 = vmax.f32 %v2671_v14, 0.0  ;;  %v5085_v61 = vadd.f32 %v1885_v63, %v5400_v38  ;;  %v1887_v51 = vpop.f32.mrb[101].mxu0  ;;  %v2118_v26 = vpop.f32.mrb[133].mxu1 }
 0x21e   :  { %v3389_v10 = vpack.c.bf16 %v2734_v1, %v2734_v1  ;;  %v2127_v21 = vadd.f32 %v3517_v39, %v4857_v17  ;;  %v2532_v45 = vld [vmem:[#allocation2 + $0x110] sm:$0xff]  ;;  %v2119_v23 = vadd.f32 %v2118_v26, %v4819_v30  ;;  %v1888_v24 = vpop.f32.mrb[102].mxu0  ;;  %v3518_v41 = vpop.f32.mrb[134].mxu1  ;;  %v5401_v17 = vld [vmem:[#allocation4_spill] sm:$0xff] }
 0x21f   :  { %v3387_v50 = vpack.c.bf16 %v2732_v9, %v2732_v9  ;;  %v2733_v43 = vmax.f32 %v2669_v54, 0.0  ;;  %v3390_v42 = vpack.c.bf16 %v2735_v62, %v2735_v62  ;;  %v2603_v3 = vmul.f32 %v4789_v25, %v2532_v45  ;;  %v1890_v27 = vpop.f32.mrb[103].mxu0  ;;  %v2121_v30 = vpop.f32.mrb[135].mxu1 }
 0x220   :  { %3055 = vst.msk [vmem:[%s5386_s4 + $0x78] sm:$0xf] %vm3024_vm1, %v3389_v10  ;;  %v2530_v6 = vld [vmem:[#allocation2 + $0x100] sm:$0xff]  ;;  %v5096_v35 = vadd.f32 %v1888_v24, %v5401_v17  ;;  %v2130_v22 = vadd.f32 %v3518_v41, %v4868_v15  ;;  %v2533_v53 = vld [vmem:[#allocation2 + $0x118] sm:$0xff]  ;;  %v2122_v11 = vadd.f32 %v2121_v30, %v4830_v46 }
 0x221   :  { %2272 = vst.msk [vmem:[#allocation2 + $0x130] sm:$0xff] %vm2233_vm0, %v2127_v21  ;;  %v3388_v57 = vpack.c.bf16 %v2733_v43, %v2733_v43  ;;  %v2601_v32 = vmul.f32 %v4789_v25, %v2530_v6  ;;  %2270 = vst.msk [vmem:[#allocation2 + $0x120] sm:$0xff] %vm2233_vm0, %v2119_v23  ;;  %v2674_v15 = vadd.f32 %v4798_v33, %v2603_v3 }
 0x222   :  { %3053 = vst.msk [vmem:[%s5386_s4 + $0x70] sm:$0xf] %vm3024_vm1, %v3387_v50  ;;  %3056 = vst.msk [vmem:[%s5386_s4 + $0x7c] sm:$0xf] %vm3024_vm1, %v3390_v42  ;;  %v2604_v37 = vmul.f32 %v4789_v25, %v2533_v53 }
 0x223   :  { %v2531_v36 = vld [vmem:[#allocation2 + $0x108] sm:$0xff]  ;;  %2273 = vst.msk [vmem:[#allocation2 + $0x138] sm:$0xff] %vm2233_vm0, %v2130_v22  ;;  %v2672_v20 = vadd.f32 %v4798_v33, %v2601_v32  ;;  %2271 = vst.msk [vmem:[#allocation2 + $0x128] sm:$0xff] %vm2233_vm0, %v2122_v11  ;;  %v2738_v7 = vmax.f32 %v2674_v15, 0.0 }
 0x224   :  { %3054 = vst.msk [vmem:[%s5386_s4 + $0x74] sm:$0xf] %vm3024_vm1, %v3388_v57  ;;  %v2602_v46 = vmul.f32 %v4789_v25, %v2531_v36  ;;  %v2675_v34 = vadd.f32 %v4798_v33, %v2604_v37  ;;  %v1893_v48 = vpop.f32.mrb[104].mxu0  ;;  %v3521_v55 = vpop.f32.mrb[136].mxu1  ;;  %v5404_v57 = vld [vmem:[#allocation7_spill] sm:$0xff] }
 0x225   :  { %v2736_v60 = vmax.f32 %v2672_v20, 0.0  ;;  %v3393_v56 = vpack.c.bf16 %v2738_v7, %v2738_v7  ;;  %v5123_v28 = vadd.f32 %v1893_v48, %v5402_v5  ;;  %v2143_v52 = vadd.f32 %v3521_v55, %v4933_v59  ;;  %v1895_v40 = vpop.f32.mrb[105].mxu0  ;;  %v2134_v13 = vpop.f32.mrb[137].mxu1  ;;  %v5403_v59 = vld [vmem:[#allocation6_spill] sm:$0xff] }
 0x226   :  { %v2673_v58 = vadd.f32 %v4798_v33, %v2602_v46  ;;  %v2739_v49 = vmax.f32 %v2675_v34, 0.0  ;;  %v2135_v14 = vadd.f32 %v2134_v13, %v4895_v2  ;;  %v1896_v9 = vpop.f32.mrb[106].mxu0  ;;  %v3522_v54 = vpop.f32.mrb[138].mxu1 }
 0x227   :  { %v3391_v29 = vpack.c.bf16 %v2736_v60, %v2736_v60  ;;  %3059 = vst.msk [vmem:[%s5386_s4 + $0x88] sm:$0xf] %vm3024_vm1, %v3393_v56  ;;  %v5134_v62 = vadd.f32 %v1896_v9, %v5403_v59  ;;  %v2146_v38 = vadd.f32 %v3522_v54, %v4944_v44  ;;  %v1898_v21 = vpop.f32.mrb[107].mxu0  ;;  %v2137_v2 = vpop.f32.mrb[139].mxu1 }
 0x228   :  { %v2737_v19 = vmax.f32 %v2673_v58, 0.0  ;;  %v2536_v1 = vld [vmem:[#allocation2 + $0x130] sm:$0xff]  ;;  %v3394_v63 = vpack.c.bf16 %v2739_v49, %v2739_v49  ;;  %v2534_v10 = vld [vmem:[#allocation2 + $0x120] sm:$0xff]  ;;  %2276 = vst.msk [vmem:[#allocation2 + $0x150] sm:$0xff] %vm2233_vm0, %v2143_v52  ;;  %2274 = vst.msk [vmem:[#allocation2 + $0x140] sm:$0xff] %vm2233_vm0, %v2135_v14  ;;  %v2138_v43 = vadd.f32 %v2137_v2, %v4906_v18 }
 0x229   :  { %v2607_v39 = vmul.f32 %v4789_v25, %v2536_v1  ;;  %3057 = vst.msk [vmem:[%s5386_s4 + $0x80] sm:$0xf] %vm3024_vm1, %v3391_v29  ;;  %v2605_v26 = vmul.f32 %v4789_v25, %v2534_v10  ;;  %v5406_v21 = vld [vmem:[#allocation9_spill] sm:$0xff] }
 0x22a   :  { %v3392_v51 = vpack.c.bf16 %v2737_v19, %v2737_v19  ;;  %v2537_v50 = vld [vmem:[#allocation2 + $0x138] sm:$0xff]  ;;  %3060 = vst.msk [vmem:[%s5386_s4 + $0x8c] sm:$0xf] %vm3024_vm1, %v3394_v63  ;;  %v2535_v23 = vld [vmem:[#allocation2 + $0x128] sm:$0xff] }
 0x22b   :  { %v2678_v44 = vadd.f32 %v4798_v33, %v2607_v39  ;;  %v2608_v45 = vmul.f32 %v4789_v25, %v2537_v50  ;;  %2277 = vst.msk [vmem:[#allocation2 + $0x158] sm:$0xff] %vm2233_vm0, %v2146_v38  ;;  %v2676_v24 = vadd.f32 %v4798_v33, %v2605_v26  ;;  %v2606_v18 = vmul.f32 %v4789_v25, %v2535_v23 }
 0x22c   :  { %3058 = vst.msk [vmem:[%s5386_s4 + $0x84] sm:$0xf] %vm3024_vm1, %v3392_v51  ;;  %v1901_v17 = vpop.f32.mrb[108].mxu0  ;;  %v3525_v22 = vpop.f32.mrb[140].mxu1 }
 0x22d   :  { %2275 = vst.msk [vmem:[#allocation2 + $0x148] sm:$0xff] %vm2233_vm0, %v2138_v43  ;;  %v2742_v41 = vmax.f32 %v2678_v44, 0.0  ;;  %v2679_v42 = vadd.f32 %v4798_v33, %v2608_v45  ;;  %v2740_v3 = vmax.f32 %v2676_v24, 0.0  ;;  %v2677_v6 = vadd.f32 %v4798_v33, %v2606_v18  ;;  %v1903_v11 = vpop.f32.mrb[109].mxu0  ;;  %v2150_v15 = vpop.f32.mrb[141].mxu1 }
 0x22e   :  { %v5161_v32 = vadd.f32 %v1901_v17, %v5404_v57  ;;  %v2159_v53 = vadd.f32 %v3525_v22, %v5009_v8  ;;  %v2151_v46 = vadd.f32 %v2150_v15, %v4971_v0  ;;  %v1904_v7 = vpop.f32.mrb[110].mxu0  ;;  %v3526_v34 = vpop.f32.mrb[142].mxu1  ;;  %v5405_v8 = vld [vmem:[#allocation8_spill] sm:$0xff] }
 0x22f   :  { %v3397_v27 = vpack.c.bf16 %v2742_v41, %v2742_v41  ;;  %v2743_v30 = vmax.f32 %v2679_v42, 0.0  ;;  %v3395_v37 = vpack.c.bf16 %v2740_v3, %v2740_v3  ;;  %v2741_v36 = vmax.f32 %v2677_v6, 0.0  ;;  %v2540_v20 = vld [vmem:[#allocation2 + $0x150] sm:$0xff]  ;;  %v2538_v48 = vld [vmem:[#allocation2 + $0x140] sm:$0xff]  ;;  %v1906_v49 = vpop.f32.mrb[111].mxu0  ;;  %v2153_v0 = vpop.f32.mrb[143].mxu1 }
 0x230   :  { %v2611_v58 = vmul.f32 %v4789_v25, %v2540_v20  ;;  %2280 = vst.msk [vmem:[#allocation2 + $0x170] sm:$0xff] %vm2233_vm0, %v2159_v53  ;;  %v5172_v55 = vadd.f32 %v1904_v7, %v5405_v8  ;;  %v2162_v56 = vadd.f32 %v3526_v34, %v5020_v47  ;;  %v2609_v52 = vmul.f32 %v4789_v25, %v2538_v48  ;;  %v5408_v8 = vld [vmem:[#allocation11_spill] sm:$0xff] }
 0x231   :  { %3063 = vst.msk [vmem:[%s5386_s4 + $0x98] sm:$0xf] %vm3024_vm1, %v3397_v27  ;;  %v3398_v60 = vpack.c.bf16 %v2743_v30, %v2743_v30  ;;  %3061 = vst.msk [vmem:[%s5386_s4 + $0x90] sm:$0xf] %vm3024_vm1, %v3395_v37  ;;  %v3396_v5 = vpack.c.bf16 %v2741_v36, %v2741_v36  ;;  %v2154_v13 = vadd.f32 %v2153_v0, %v4982_v31 }
 0x232   :  { %v2541_v40 = vld [vmem:[#allocation2 + $0x158] sm:$0xff]  ;;  %2278 = vst.msk [vmem:[#allocation2 + $0x160] sm:$0xff] %vm2233_vm0, %v2151_v46  ;;  %v2682_v47 = vadd.f32 %v4798_v33, %v2611_v58  ;;  %2281 = vst.msk [vmem:[#allocation2 + $0x178] sm:$0xff] %vm2233_vm0, %v2162_v56  ;;  %v2680_v1 = vadd.f32 %v4798_v33, %v2609_v52 }
 0x233   :  { %3064 = vst.msk [vmem:[%s5386_s4 + $0x9c] sm:$0xf] %vm3024_vm1, %v3398_v60  ;;  %v2612_v29 = vmul.f32 %v4789_v25, %v2541_v40  ;;  %3062 = vst.msk [vmem:[%s5386_s4 + $0x94] sm:$0xf] %vm3024_vm1, %v3396_v5 }
 0x234   :  { %v2539_v19 = vld [vmem:[#allocation2 + $0x148] sm:$0xff]  ;;  %2279 = vst.msk [vmem:[#allocation2 + $0x168] sm:$0xff] %vm2233_vm0, %v2154_v13  ;;  %v2746_v14 = vmax.f32 %v2682_v47, 0.0  ;;  %v2744_v54 = vmax.f32 %v2680_v1, 0.0  ;;  %v1909_v39 = vpop.f32.mrb[112].mxu0  ;;  %v3529_v10 = vpop.f32.mrb[144].mxu1 }
 0x235   :  { %v2610_v31 = vmul.f32 %v4789_v25, %v2539_v19  ;;  %v2683_v9 = vadd.f32 %v4798_v33, %v2612_v29  ;;  %v5199_v2 = vadd.f32 %v1909_v39, %v5406_v21  ;;  %v2175_v51 = vadd.f32 %v3529_v10, %v5085_v61  ;;  %v1911_v26 = vpop.f32.mrb[113].mxu0  ;;  %v2166_v50 = vpop.f32.mrb[145].mxu1  ;;  %v5407_v61 = vld [vmem:[#allocation10_spill] sm:$0xff]  ;;  %v5246_v19 = vld [vmem:[%s5384_s2] ss:$0 sm:$0xff] }
 0x236   :  { %v3401_v59 = vpack.c.bf16 %v2746_v14, %v2746_v14  ;;  %v3399_v43 = vpack.c.bf16 %v2744_v54, %v2744_v54  ;;  %v2167_v23 = vadd.f32 %v2166_v50, %v5047_v16  ;;  %v1912_v24 = vpop.f32.mrb[114].mxu0  ;;  %v3530_v18 = vpop.f32.mrb[146].mxu1 }
 0x237   :  { %v2681_v63 = vadd.f32 %v4798_v33, %v2610_v31  ;;  %v2747_v38 = vmax.f32 %v2683_v9, 0.0  ;;  %v2544_v45 = vld [vmem:[#allocation2 + $0x170] sm:$0xff]  ;;  %2284 = vst.msk [vmem:[#allocation2 + $0x190] sm:$0xff] %vm2233_vm0, %v2175_v51  ;;  %v5210_v6 = vadd.f32 %v1912_v24, %v5407_v61  ;;  %v2178_v17 = vadd.f32 %v3530_v18, %v5096_v35  ;;  %v1914_v22 = vpop.f32.mrb[115].mxu0  ;;  %v2169_v16 = vpop.f32.mrb[147].mxu1  ;;  %v5409_v31 = vld [vmem:[#allocation12_spill] sm:$0xff] }
 0x238   :  { %3067 = vst.msk [vmem:[%s5386_s4 + $0xa8] sm:$0xf] %vm3024_vm1, %v3401_v59  ;;  %v2615_v42 = vmul.f32 %v4789_v25, %v2544_v45  ;;  %3065 = vst.msk [vmem:[%s5386_s4 + $0xa0] sm:$0xf] %vm3024_vm1, %v3399_v43  ;;  %v2170_v53 = vadd.f32 %v2169_v16, %v5058_v12 }
 0x239   :  { %v2745_v44 = vmax.f32 %v2681_v63, 0.0  ;;  %v3402_v41 = vpack.c.bf16 %v2747_v38, %v2747_v38  ;;  %v2542_v3 = vld [vmem:[#allocation2 + $0x160] sm:$0xff]  ;;  %v2545_v57 = vld [vmem:[#allocation2 + $0x178] sm:$0xff]  ;;  %2282 = vst.msk [vmem:[#allocation2 + $0x180] sm:$0xff] %vm2233_vm0, %v2167_v23  ;;  %2285 = vst.msk [vmem:[#allocation2 + $0x198] sm:$0xff] %vm2233_vm0, %v2178_v17 }
 0x23a   :  { %v2613_v30 = vmul.f32 %v4789_v25, %v2542_v3  ;;  %v2686_v35 = vadd.f32 %v4798_v33, %v2615_v42  ;;  %v2616_v11 = vmul.f32 %v4789_v25, %v2545_v57  ;;  %2283 = vst.msk [vmem:[#allocation2 + $0x188] sm:$0xff] %vm2233_vm0, %v2170_v53  ;;  %v5410_v42 = vld [vmem:[#allocation13_spill] sm:$0xff] }
 0x23b   :  { %v3400_v27 = vpack.c.bf16 %v2745_v44, %v2745_v44  ;;  %3068 = vst.msk [vmem:[%s5386_s4 + $0xac] sm:$0xf] %vm3024_vm1, %v3402_v41  ;;  %v2543_v15 = vld [vmem:[#allocation2 + $0x168] sm:$0xff] }
 0x23c   :  { %v2684_v37 = vadd.f32 %v4798_v33, %v2613_v30  ;;  %v2614_v12 = vmul.f32 %v4789_v25, %v2543_v15  ;;  %v2750_v36 = vmax.f32 %v2686_v35, 0.0  ;;  %v2687_v20 = vadd.f32 %v4798_v33, %v2616_v11  ;;  %v1917_v34 = vpop.f32.mrb[116].mxu0  ;;  %v3533_v60 = vpop.f32.mrb[148].mxu1 }
 0x23d   :  { %3066 = vst.msk [vmem:[%s5386_s4 + $0xa4] sm:$0xf] %vm3024_vm1, %v3400_v27  ;;  %v1918_v56 = vadd.f32 %v1917_v34, %v5408_v8  ;;  %v2191_v49 = vadd.f32 %v3533_v60, %v5161_v32  ;;  %v1919_v0 = vpop.f32.mrb[117].mxu0  ;;  %v2182_v5 = vpop.f32.mrb[149].mxu1 }
 0x23e   :  { %v2748_v46 = vmax.f32 %v2684_v37, 0.0  ;;  %v2685_v7 = vadd.f32 %v4798_v33, %v2614_v12  ;;  %v3405_v58 = vpack.c.bf16 %v2750_v36, %v2750_v36  ;;  %v2751_v48 = vmax.f32 %v2687_v20, 0.0  ;;  %v2548_v40 = vld [vmem:[#allocation2 + $0x190] sm:$0xff]  ;;  %v1920_v47 = vpop.f32.mrb[118].mxu0  ;;  %v3534_v29 = vpop.f32.mrb[150].mxu1  ;;  %v5411_v12 = vld [vmem:[#allocation14_spill] sm:$0xff] }
 0x23f   :  { %v2183_v13 = vadd.f32 %v2182_v5, %v5123_v28  ;;  %v2619_v32 = vmul.f32 %v5246_v19, %v2548_v40  ;;  %2288 = vst.msk [vmem:[#allocation2 + $0x1b0] sm:$0xff] %vm2233_vm0, %v2191_v49  ;;  %v1921_v28 = vadd.f32 %v1920_v47, %v5409_v31  ;;  %v2194_v14 = vadd.f32 %v3534_v29, %v5172_v55  ;;  %v1922_v9 = vpop.f32.mrb[119].mxu0  ;;  %v2185_v54 = vpop.f32.mrb[151].mxu1  ;;  %v5266_v55 = vld [vmem:[%s5385_s3] ss:$0 sm:$0xff] }
 0x240   :  { %v3403_v52 = vpack.c.bf16 %v2748_v46, %v2748_v46  ;;  %v2749_v25 = vmax.f32 %v2685_v7, 0.0  ;;  %3071 = vst.msk [vmem:[%s5386_s4 + $0xb8] sm:$0xf] %vm3024_vm1, %v3405_v58  ;;  %v3406_v33 = vpack.c.bf16 %v2751_v48, %v2751_v48  ;;  %v2546_v1 = vld [vmem:[#allocation2 + $0x180] sm:$0xff]  ;;  %v2549_v10 = vld [vmem:[#allocation2 + $0x198] sm:$0xff]  ;;  %v2186_v59 = vadd.f32 %v2185_v54, %v5134_v62 }
 0x241   :  { %v2617_v39 = vmul.f32 %v5246_v19, %v2546_v1  ;;  %2286 = vst.msk [vmem:[#allocation2 + $0x1a0] sm:$0xff] %vm2233_vm0, %v2183_v13  ;;  %v2690_v38 = vadd.f32 %v5266_v55, %v2619_v32  ;;  %v2620_v21 = vmul.f32 %v5246_v19, %v2549_v10  ;;  %v2547_v51 = vld [vmem:[#allocation2 + $0x188] sm:$0xff]  ;;  %2289 = vst.msk [vmem:[#allocation2 + $0x1b8] sm:$0xff] %vm2233_vm0, %v2194_v14 }
 0x242   :  { %3069 = vst.msk [vmem:[%s5386_s4 + $0xb0] sm:$0xf] %vm3024_vm1, %v3403_v52  ;;  %v3404_v63 = vpack.c.bf16 %v2749_v25, %v2749_v25  ;;  %3072 = vst.msk [vmem:[%s5386_s4 + $0xbc] sm:$0xf] %vm3024_vm1, %v3406_v33  ;;  %v2618_v26 = vmul.f32 %v5246_v19, %v2547_v51 }
 0x243   :  { %v2688_v62 = vadd.f32 %v5266_v55, %v2617_v39  ;;  %2287 = vst.msk [vmem:[#allocation2 + $0x1a8] sm:$0xff] %vm2233_vm0, %v2186_v59  ;;  %v2754_v50 = vmax.f32 %v2690_v38, 0.0  ;;  %v2691_v43 = vadd.f32 %v5266_v55, %v2620_v21  ;;  %v5412_v21 = vld [vmem:[#allocation15_spill] sm:$0xff] }
 0x244   :  { %3070 = vst.msk [vmem:[%s5386_s4 + $0xb4] sm:$0xf] %vm3024_vm1, %v3404_v63  ;;  %v2689_v45 = vadd.f32 %v5266_v55, %v2618_v26  ;;  %v1925_v23 = vpop.f32.mrb[120].mxu0  ;;  %v3537_v24 = vpop.f32.mrb[152].mxu1 }
 0x245   :  { %v2752_v44 = vmax.f32 %v2688_v62, 0.0  ;;  %v3409_v18 = vpack.c.bf16 %v2754_v50, %v2754_v50  ;;  %v2755_v41 = vmax.f32 %v2691_v43, 0.0  ;;  %v1926_v3 = vadd.f32 %v1925_v23, %v5410_v42  ;;  %v1927_v17 = vpop.f32.mrb[121].mxu0  ;;  %v2198_v22 = vpop.f32.mrb[153].mxu1 }
 0x246   :  { %v2207_v61 = vadd.f32 %v3537_v24, %v1918_v56  ;;  %v2753_v27 = vmax.f32 %v2689_v45, 0.0  ;;  %v2552_v30 = vld [vmem:[#allocation2 + $0x1b0] sm:$0xff]  ;;  %v2199_v57 = vadd.f32 %v2198_v22, %v5199_v2  ;;  %v1928_v53 = vpop.f32.mrb[122].mxu0  ;;  %v3538_v35 = vpop.f32.mrb[154].mxu1 }
 0x247   :  { %v3407_v16 = vpack.c.bf16 %v2752_v44, %v2752_v44  ;;  %3075 = vst.msk [vmem:[%s5386_s4 + $0xc8] sm:$0xf] %vm3024_vm1, %v3409_v18  ;;  %v3410_v11 = vpack.c.bf16 %v2755_v41, %v2755_v41  ;;  %v2623_v15 = vmul.f32 %v5246_v19, %v2552_v30  ;;  %v1929_v36 = vadd.f32 %v1928_v53, %v5411_v12  ;;  %v1930_v46 = vpop.f32.mrb[123].mxu0  ;;  %v2201_v7 = vpop.f32.mrb[155].mxu1 }
 0x248   :  { %v2550_v37 = vld [vmem:[#allocation2 + $0x1a0] sm:$0xff]  ;;  %2292 = vst.msk [vmem:[#allocation2 + $0x1d0] sm:$0xff] %vm2233_vm0, %v2207_v61  ;;  %v2210_v20 = vadd.f32 %v3538_v35, %v1921_v28  ;;  %v3408_v2 = vpack.c.bf16 %v2753_v27, %v2753_v27  ;;  %v2553_v60 = vld [vmem:[#allocation2 + $0x1b8] sm:$0xff]  ;;  %2290 = vst.msk [vmem:[#allocation2 + $0x1c0] sm:$0xff] %vm2233_vm0, %v2199_v57  ;;  %v2202_v58 = vadd.f32 %v2201_v7, %v5210_v6 }
 0x249   :  { %3073 = vst.msk [vmem:[%s5386_s4 + $0xc0] sm:$0xf] %vm3024_vm1, %v3407_v16  ;;  %v2621_v34 = vmul.f32 %v5246_v19, %v2550_v37  ;;  %3076 = vst.msk [vmem:[%s5386_s4 + $0xcc] sm:$0xf] %vm3024_vm1, %v3410_v11  ;;  %v2694_v48 = vadd.f32 %v5266_v55, %v2623_v15  ;;  %v2624_v8 = vmul.f32 %v5246_v19, %v2553_v60 }
 0x24a   :  { %v2551_v56 = vld [vmem:[#allocation2 + $0x1a8] sm:$0xff]  ;;  %2293 = vst.msk [vmem:[#allocation2 + $0x1d8] sm:$0xff] %vm2233_vm0, %v2210_v20  ;;  %2291 = vst.msk [vmem:[#allocation2 + $0x1c8] sm:$0xff] %vm2233_vm0, %v2202_v58 }
 0x24b   :  { %3074 = vst.msk [vmem:[%s5386_s4 + $0xc4] sm:$0xf] %vm3024_vm1, %v3408_v2  ;;  %v2692_v49 = vadd.f32 %v5266_v55, %v2621_v34  ;;  %v2622_v6 = vmul.f32 %v5246_v19, %v2551_v56  ;;  %v2758_v0 = vmax.f32 %v2694_v48, 0.0  ;;  %v2695_v5 = vadd.f32 %v5266_v55, %v2624_v8 }
 0x24c   :  { %v1933_v40 = vpop.f32.mrb[124].mxu0  ;;  %v3541_v13 = vpop.f32.mrb[156].mxu1 }
 0x24d   :  { %v2756_v52 = vmax.f32 %v2692_v49, 0.0  ;;  %v2693_v25 = vadd.f32 %v5266_v55, %v2622_v6  ;;  %v3413_v47 = vpack.c.bf16 %v2758_v0, %v2758_v0  ;;  %v2759_v29 = vmax.f32 %v2695_v5, 0.0  ;;  %v1935_v32 = vpop.f32.mrb[125].mxu0  ;;  %v2214_v1 = vpop.f32.mrb[157].mxu1 }
 0x24e   :  { %v1934_v33 = vadd.f32 %v1933_v40, %v4762_v4  ;;  %v2215_v9 = vadd.f32 %v2214_v1, %v1926_v3  ;;  %v1936_v54 = vpop.f32.mrb[126].mxu0  ;;  %v3542_v63 = vpop.f32.mrb[158].mxu1 }
 0x24f   :  { %v3411_v31 = vpack.c.bf16 %v2756_v52, %v2756_v52  ;;  %v2757_v28 = vmax.f32 %v2693_v25, 0.0  ;;  %v2556_v14 = vld [vmem:[#allocation2 + $0x1d0] sm:$0xff]  ;;  %3079 = vst.msk [vmem:[%s5386_s4 + $0xd8] sm:$0xf] %vm3024_vm1, %v3413_v47  ;;  %v3414_v39 = vpack.c.bf16 %v2759_v29, %v2759_v29  ;;  %v2554_v59 = vld [vmem:[#allocation2 + $0x1c0] sm:$0xff]  ;;  %v1937_v4 = vadd.f32 %v1936_v54, %v5412_v21  ;;  %v1938_v51 = vpop.f32.mrb[127].mxu0 }
 0x250   :  { %v2627_v10 = vmul.f32 %v5246_v19, %v2556_v14  ;;  %v2223_v38 = vadd.f32 %v3541_v13, %v1934_v33  ;;  %v2217_v62 = vpop.f32.mrb[159].mxu1  ;;  %v2625_v50 = vmul.f32 %v5246_v19, %v2554_v59  ;;  %2294 = vst.msk [vmem:[#allocation2 + $0x1e0] sm:$0xff] %vm2233_vm0, %v2215_v9 }
 0x251   :  { %3077 = vst.msk [vmem:[%s5386_s4 + $0xd0] sm:$0xf] %vm3024_vm1, %v3411_v31  ;;  %v3412_v26 = vpack.c.bf16 %v2757_v28, %v2757_v28  ;;  %v2557_v43 = vld [vmem:[#allocation2 + $0x1d8] sm:$0xff]  ;;  %v2218_v44 = vadd.f32 %v2217_v62, %v1929_v36  ;;  %3080 = vst.msk [vmem:[%s5386_s4 + $0xdc] sm:$0xf] %vm3024_vm1, %v3414_v39  ;;  %v2555_v24 = vld [vmem:[#allocation2 + $0x1c8] sm:$0xff]  ;;  %v2226_v18 = vadd.f32 %v3542_v63, %v1937_v4 }
 0x252   :  { %v2698_v45 = vadd.f32 %v5266_v55, %v2627_v10  ;;  %v2628_v23 = vmul.f32 %v5246_v19, %v2557_v43  ;;  %2296 = vst.msk [vmem:[#allocation2 + $0x1f0] sm:$0xff] %vm2233_vm0, %v2223_v38  ;;  %v2696_v41 = vadd.f32 %v5266_v55, %v2625_v50  ;;  %v2626_v42 = vmul.f32 %v5246_v19, %v2555_v24 }
 0x253   :  { %3078 = vst.msk [vmem:[%s5386_s4 + $0xd4] sm:$0xf] %vm3024_vm1, %v3412_v26 }
 0x254   :  { %2295 = vst.msk [vmem:[#allocation2 + $0x1e8] sm:$0xff] %vm2233_vm0, %v2218_v44  ;;  %v2762_v3 = vmax.f32 %v2698_v45, 0.0  ;;  %v2699_v61 = vadd.f32 %v5266_v55, %v2628_v23  ;;  %2297 = vst.msk [vmem:[#allocation2 + $0x1f8] sm:$0xff] %vm2233_vm0, %v2226_v18  ;;  %v2760_v17 = vmax.f32 %v2696_v41, 0.0  ;;  %v2697_v22 = vadd.f32 %v5266_v55, %v2626_v42 }
 0x256   :  { %v3417_v16 = vpack.c.bf16 %v2762_v3, %v2762_v3  ;;  %v2763_v27 = vmax.f32 %v2699_v61, 0.0  ;;  %v3415_v30 = vpack.c.bf16 %v2760_v17, %v2760_v17  ;;  %v2761_v57 = vmax.f32 %v2697_v22, 0.0 }
 0x257   :  { %v2558_v35 = vld [vmem:[#allocation2 + $0x1e0] sm:$0xff] }
 0x258   :  { %3083 = vst.msk [vmem:[%s5386_s4 + $0xe8] sm:$0xf] %vm3024_vm1, %v3417_v16  ;;  %v3418_v53 = vpack.c.bf16 %v2763_v27, %v2763_v27  ;;  %3081 = vst.msk [vmem:[%s5386_s4 + $0xe0] sm:$0xf] %vm3024_vm1, %v3415_v30  ;;  %v3416_v11 = vpack.c.bf16 %v2761_v57, %v2761_v57  ;;  %v2629_v37 = vmul.f32 %v5246_v19, %v2558_v35 }
 0x259   :  { %v2560_v15 = vld [vmem:[#allocation2 + $0x1f0] sm:$0xff] }
 0x25a   :  { %3084 = vst.msk [vmem:[%s5386_s4 + $0xec] sm:$0xf] %vm3024_vm1, %v3418_v53  ;;  %v2631_v12 = vmul.f32 %v5246_v19, %v2560_v15  ;;  %3082 = vst.msk [vmem:[%s5386_s4 + $0xe4] sm:$0xf] %vm3024_vm1, %v3416_v11  ;;  %v2700_v20 = vadd.f32 %v5266_v55, %v2629_v37 }
 0x25b   :  { %v2559_v36 = vld [vmem:[#allocation2 + $0x1e8] sm:$0xff]  ;;  %v2561_v46 = vld [vmem:[#allocation2 + $0x1f8] sm:$0xff] }
 0x25c   :  { %v2630_v7 = vmul.f32 %v5246_v19, %v2559_v36  ;;  %v2702_v2 = vadd.f32 %v5266_v55, %v2631_v12  ;;  %v2632_v34 = vmul.f32 %v5246_v19, %v2561_v46  ;;  %v2764_v60 = vmax.f32 %v2700_v20, 0.0 }
 0x25e   :  { %v2701_v58 = vadd.f32 %v5266_v55, %v2630_v7  ;;  %v2766_v48 = vmax.f32 %v2702_v2, 0.0  ;;  %v2703_v8 = vadd.f32 %v5266_v55, %v2632_v34  ;;  %v3419_v56 = vpack.c.bf16 %v2764_v60, %v2764_v60 }
 0x260   :  { %v2765_v49 = vmax.f32 %v2701_v58, 0.0  ;;  %v3421_v6 = vpack.c.bf16 %v2766_v48, %v2766_v48  ;;  %v2767_v0 = vmax.f32 %v2703_v8, 0.0  ;;  %3085 = vst.msk [vmem:[%s5386_s4 + $0xf0] sm:$0xf] %vm3024_vm1, %v3419_v56 }
 0x262   :  { %v3420_v5 = vpack.c.bf16 %v2765_v49, %v2765_v49  ;;  %3087 = vst.msk [vmem:[%s5386_s4 + $0xf8] sm:$0xf] %vm3024_vm1, %v3421_v6  ;;  %v3422_v19 = vpack.c.bf16 %v2767_v0, %v2767_v0 }
 0x264   :  { %3086 = vst.msk [vmem:[%s5386_s4 + $0xf4] sm:$0xf] %vm3024_vm1, %v3420_v5  ;;  %3088 = vst.msk [vmem:[%s5386_s4 + $0xfc] sm:$0xf] %vm3024_vm1, %v3422_v19 }

// kernel: resnet_forward.11
= control target key start
LH: loop header
LB: loop body
LE: loop exit
PB: predicated region body
PF: predicated region fallthrough
CT: control target
= control target key end

     0   :  { %s1938_s1 = inlined_call_operand.vmem [shape: bf16[640,128], index: 1, kind: input, shape index: {}]   ;;  %s1939_s0 = inlined_call_operand.vmem [shape: bf16[128,640], index: 0, kind: input, shape index: {}]   ;;  %s1940_s2 = inlined_call_operand.vmem [shape: f32[1,128], index: 2, kind: input, shape index: {}]   ;;  %s1941_s3 = inlined_call_operand.vmem [shape: f32[1,128], index: 3, kind: input, shape index: {}]   ;;  %s1942_s4 = inlined_call_operand.vmem [shape: bf16[128,128], index: 4, kind: output, shape index: {}]  }
   0x1   :  { %v1475_v0 = vld [vmem:[%s1938_s1 + $0x40] sm:$0xff]   ;;  %v1479_v4 = vld [vmem:[%s1938_s1 + $0x48] sm:$0xff]   ;;  %v1483_v8 = vld [vmem:[%s1938_s1 + $0x50] sm:$0xff]  }
   0x2   :  { %v1476_v1 = vld [vmem:[%s1938_s1 + $0xc0] sm:$0xff]   ;;  %1283 = vmatprep.subr.bf16.mxu0 %v1475_v0  ;;  %v1480_v5 = vld [vmem:[%s1938_s1 + $0xc8] sm:$0xff]   ;;  %v1484_v9 = vld [vmem:[%s1938_s1 + $0xd0] sm:$0xff]  }
   0x3   :  { %v1477_v2 = vld [vmem:[%s1938_s1] sm:$0xff]   ;;  %1347 = vmatprep.subr.bf16.mxu1 %v1476_v1  ;;  %v1481_v6 = vld [vmem:[%s1938_s1 + $0x8] sm:$0xff]   ;;  %v1485_v10 = vld [vmem:[%s1938_s1 + $0x10] sm:$0xff]  }
   0x4   :  { %v1478_v3 = vld [vmem:[%s1938_s1 + $0x80] sm:$0xff]   ;;  %1284 = vmatpush3.bf16.msra.mxu0 %v1477_v2  ;;  %v1482_v7 = vld [vmem:[%s1938_s1 + $0x88] sm:$0xff]   ;;  %v1486_v11 = vld [vmem:[%s1938_s1 + $0x90] sm:$0xff]  }
   0x5   :  { %1348 = vmatpush3.bf16.msra.mxu1 %v1478_v3  ;;  %1285 = vmatprep.subr.bf16.mxu0 %v1479_v4  ;;  %v1487_v12 = vld [vmem:[%s1938_s1 + $0x58] sm:$0xff]   ;;  %v1491_v16 = vld [vmem:[%s1938_s1 + $0x60] sm:$0xff]   ;;  %v1495_v20 = vld [vmem:[%s1938_s1 + $0x68] sm:$0xff]  }
   0x6   :  { %1349 = vmatprep.subr.bf16.mxu1 %v1480_v5  ;;  %v1488_v13 = vld [vmem:[%s1938_s1 + $0xd8] sm:$0xff]   ;;  %v1492_v17 = vld [vmem:[%s1938_s1 + $0xe0] sm:$0xff]   ;;  %v1496_v21 = vld [vmem:[%s1938_s1 + $0xe8] sm:$0xff]  }
   0x7   :  { %v1489_v14 = vld [vmem:[%s1938_s1 + $0x18] sm:$0xff]   ;;  %v1493_v18 = vld [vmem:[%s1938_s1 + $0x20] sm:$0xff]   ;;  %v1497_v22 = vld [vmem:[%s1938_s1 + $0x28] sm:$0xff]  }
   0x8   :  { %1286 = vmatpush3.bf16.msra.mxu0 %v1481_v6  ;;  %v1490_v15 = vld [vmem:[%s1938_s1 + $0x98] sm:$0xff]   ;;  %v1494_v19 = vld [vmem:[%s1938_s1 + $0xa0] sm:$0xff]   ;;  %v1498_v23 = vld [vmem:[%s1938_s1 + $0xa8] sm:$0xff]  }
   0x9   :  { %1350 = vmatpush3.bf16.msra.mxu1 %v1482_v7  ;;  %1287 = vmatprep.subr.bf16.mxu0 %v1483_v8  ;;  %v1499_v24 = vld [vmem:[%s1938_s1 + $0x70] sm:$0xff]   ;;  %v1503_v28 = vld [vmem:[%s1938_s1 + $0x78] sm:$0xff]   ;;  %v1512_v35 = vld [vmem:[%s1939_s0 + $0xc] ss:$20 sps:$4 sm:$0xff]  }
   0xa   :  { %1351 = vmatprep.subr.bf16.mxu1 %v1484_v9  ;;  %v1500_v25 = vld [vmem:[%s1938_s1 + $0xf0] sm:$0xff]   ;;  %v1504_v29 = vld [vmem:[%s1938_s1 + $0xf8] sm:$0xff]   ;;  %v1513_v36 = vld [vmem:[%s1938_s1 + $0x100] sm:$0xff]   ;;  %723 = vmatprep.mubr.bf16.mxu1 %v1512_v35 }
   0xb   :  { %v1501_v26 = vld [vmem:[%s1938_s1 + $0x30] sm:$0xff]   ;;  %v1505_v30 = vld [vmem:[%s1938_s1 + $0x38] sm:$0xff]   ;;  %v1514_v37 = vld [vmem:[%s1939_s0 + $0x2c] ss:$20 sps:$4 sm:$0xff]  }
   0xc   :  { %1288 = vmatpush3.bf16.msra.mxu0 %v1485_v10  ;;  %v1502_v27 = vld [vmem:[%s1938_s1 + $0xb0] sm:$0xff]   ;;  %v1506_v31 = vld [vmem:[%s1938_s1 + $0xb8] sm:$0xff]   ;;  %v1520_v39 = vld [vmem:[%s1938_s1 + $0x108] sm:$0xff]  }
   0xd   :  { %1352 = vmatpush3.bf16.msra.mxu1 %v1486_v11  ;;  %1289 = vmatprep.subr.bf16.mxu0 %v1487_v12  ;;  %v1507_v32 = vld [vmem:[%s1939_s0] ss:$20 sps:$4 sm:$0xff]   ;;  %v1509_v33 = vld [vmem:[%s1939_s0 + $0x4] ss:$20 sps:$4 sm:$0xff]   ;;  %v1510_v34 = vld [vmem:[%s1939_s0 + $0x8] ss:$20 sps:$4 sm:$0xff]  }
   0xe   :  { %1353 = vmatprep.subr.bf16.mxu1 %v1488_v13  ;;  %626 = vmatprep.mubr.bf16.mxu0 %v1509_v33  ;;  %v1516_v38 = vld [vmem:[%s1939_s0 + $0x34] ss:$20 sps:$4 sm:$0xff]   ;;  %v1519_v41 = vld [vmem:[%s1939_s0 + $0x30] ss:$20 sps:$4 sm:$0xff]   ;;  %v1534_v45 = vld [vmem:[%s1938_s1 + $0x118] sm:$0xff]  }
   0xf   :  { %v1518_v40 = vld [vmem:[%s1939_s0 + $0x28] ss:$20 sps:$4 sm:$0xff]   ;;  %v1527_v44 = vld [vmem:[%s1938_s1 + $0x110] sm:$0xff]   ;;  %v1526_v47 = vld [vmem:[%s1939_s0 + $0x58] ss:$20 sps:$4 sm:$0xff]  }
  0x10   :  { %1290 = vmatpush3.bf16.msra.mxu0 %v1489_v14  ;;  %v1521_v42 = vld [vmem:[%s1939_s0 + $0x54] ss:$20 sps:$4 sm:$0xff]   ;;  %v1523_v43 = vld [vmem:[%s1939_s0 + $0x5c] ss:$20 sps:$4 sm:$0xff]   ;;  %v1530_v49 = vld [vmem:[%s1939_s0 + $0x84] ss:$20 sps:$4 sm:$0xff]  }
  0x11   :  { %1354 = vmatpush3.bf16.msra.mxu1 %v1490_v15  ;;  %1291 = vmatprep.subr.bf16.mxu0 %v1491_v16  ;;  %v1525_v46 = vld [vmem:[%s1939_s0 + $0x50] ss:$20 sps:$4 sm:$0xff]   ;;  %v1548_v51 = vld [vmem:[%s1938_s1 + $0x128] sm:$0xff]   ;;  %v1533_v53 = vld [vmem:[%s1939_s0 + $0x80] ss:$20 sps:$4 sm:$0xff]  }
  0x12   :  { %1355 = vmatprep.subr.bf16.mxu1 %v1492_v17  ;;  %v1528_v48 = vld [vmem:[%s1939_s0 + $0x7c] ss:$20 sps:$4 sm:$0xff]   ;;  %v1541_v50 = vld [vmem:[%s1938_s1 + $0x120] sm:$0xff]   ;;  %v1532_v52 = vld [vmem:[%s1939_s0 + $0x78] ss:$20 sps:$4 sm:$0xff]  }
  0x13   :  { %v1535_v54 = vld [vmem:[%s1939_s0 + $0xa4] ss:$20 sps:$4 sm:$0xff]   ;;  %v1555_v55 = vld [vmem:[%s1938_s1 + $0x130] sm:$0xff]   ;;  %v1537_v56 = vld [vmem:[%s1939_s0 + $0xac] ss:$20 sps:$4 sm:$0xff]  }
  0x14   :  { %1292 = vmatpush3.bf16.msra.mxu0 %v1493_v18  ;;  %v1562_v57 = vld [vmem:[%s1938_s1 + $0x138] sm:$0xff]   ;;  %v1539_v58 = vld [vmem:[%s1939_s0 + $0xa0] ss:$20 sps:$4 sm:$0xff]   ;;  %v1547_v63 = vld [vmem:[%s1939_s0 + $0xd0] ss:$20 sps:$4 sm:$0xff]  }
  0x15   :  { %1356 = vmatpush3.bf16.msra.mxu1 %v1494_v19  ;;  %1293 = vmatprep.subr.bf16.mxu0 %v1495_v20  ;;  %v1540_v59 = vld [vmem:[%s1939_s0 + $0xa8] ss:$20 sps:$4 sm:$0xff]   ;;  %v1542_v60 = vld [vmem:[%s1939_s0 + $0xcc] ss:$20 sps:$4 sm:$0xff]   ;;  %v1553_v2 = vld [vmem:[%s1939_s0 + $0xf0] ss:$20 sps:$4 sm:$0xff]  }
  0x16   :  { %1357 = vmatprep.subr.bf16.mxu1 %v1496_v21  ;;  %v1544_v61 = vld [vmem:[%s1939_s0 + $0xd4] ss:$20 sps:$4 sm:$0xff]   ;;  %v1551_v1 = vld [vmem:[%s1939_s0 + $0xfc] ss:$20 sps:$4 sm:$0xff]   ;;  %v1554_v3 = vld [vmem:[%s1939_s0 + $0xf8] ss:$20 sps:$4 sm:$0xff]  }
  0x17   :  { %v1546_v62 = vld [vmem:[%s1939_s0 + $0xc8] ss:$20 sps:$4 sm:$0xff]   ;;  %v1558_v5 = vld [vmem:[%s1939_s0 + $0x124] ss:$20 sps:$4 sm:$0xff]   ;;  %v1561_v7 = vld [vmem:[%s1939_s0 + $0x120] ss:$20 sps:$4 sm:$0xff]  }
  0x18   :  { %1294 = vmatpush3.bf16.msra.mxu0 %v1497_v22  ;;  %v1549_v0 = vld [vmem:[%s1939_s0 + $0xf4] ss:$20 sps:$4 sm:$0xff]   ;;  %v1556_v4 = vld [vmem:[%s1939_s0 + $0x11c] ss:$20 sps:$4 sm:$0xff]   ;;  %v1560_v6 = vld [vmem:[%s1939_s0 + $0x118] ss:$20 sps:$4 sm:$0xff]  }
  0x19   :  { %1358 = vmatpush3.bf16.msra.mxu1 %v1498_v23  ;;  %1295 = vmatprep.subr.bf16.mxu0 %v1499_v24  ;;  %v1563_v8 = vld [vmem:[%s1939_s0 + $0x10] ss:$20 sps:$4 sm:$0xff]   ;;  %v1565_v10 = vld [vmem:[%s1939_s0 + $0x38] ss:$20 sps:$4 sm:$0xff]   ;;  %v1567_v12 = vld [vmem:[%s1939_s0 + $0x60] ss:$20 sps:$4 sm:$0xff]  }
  0x1a   :  { %1359 = vmatprep.subr.bf16.mxu1 %v1500_v25  ;;  %v1564_v9 = vld [vmem:[%s1939_s0 + $0xb0] ss:$20 sps:$4 sm:$0xff]   ;;  %v1566_v11 = vld [vmem:[%s1939_s0 + $0xd8] ss:$20 sps:$4 sm:$0xff]   ;;  %v1568_v13 = vld [vmem:[%s1939_s0 + $0x100] ss:$20 sps:$4 sm:$0xff]  }
  0x1b   :  { %v1569_v14 = vld [vmem:[%s1939_s0 + $0x88] ss:$20 sps:$4 sm:$0xff]  }
  0x1c   :  { %1296 = vmatpush3.bf16.msra.mxu0 %v1501_v26  ;;  %v1570_v15 = vld [vmem:[%s1939_s0 + $0x128] ss:$20 sps:$4 sm:$0xff]  }
  0x1d   :  { %1360 = vmatpush3.bf16.msra.mxu1 %v1502_v27  ;;  %1297 = vmatprep.subr.bf16.mxu0 %v1503_v28 }
  0x1e   :  { %1361 = vmatprep.subr.bf16.mxu1 %v1504_v29 }
  0x20   :  { %1298 = vmatpush3.bf16.msra.mxu0 %v1505_v30 }
  0x21   :  { %1362 = vmatpush3.bf16.msra.mxu1 %v1506_v31  ;;  %1427 = vmatprep.subr.bf16.mxu0 %v1513_v36 }
  0x22   :  { %1459 = vmatprep.subr.bf16.mxu1 %v1513_v36 }
  0x23   :  { %627 = vmatmul.mubr.bf16.vlgmr.msra.gmra.mrb[0].mxu0 %v1507_v32 }
  0x24   :  { %724 = vmatmul.mubr.bf16.vlgmr.msra.gmra.mrb[0].mxu1 %v1510_v34  ;;  %1428 = vmatpush3.bf16.msra.mxu0 %v1513_v36 }
  0x25   :  { %1467 = vmatpush3.bf16.msra.mxu1 %v1513_v36  ;;  %634 = vmatprep.mubr.bf16.mxu0 %v1514_v37 }
  0x26   :  { %731 = vmatprep.mubr.bf16.mxu1 %v1516_v38  ;;  %1429 = vmatprep.subr.bf16.mxu0 %v1520_v39 }
  0x27   :  { %1460 = vmatprep.subr.bf16.mxu1 %v1520_v39 }
  0x28   :  { %1430 = vmatpush3.bf16.msra.mxu0 %v1520_v39 }
  0x29   :  { %1468 = vmatpush3.bf16.msra.mxu1 %v1520_v39  ;;  %1431 = vmatprep.subr.bf16.mxu0 %v1527_v44 }
  0x2a   :  { %1461 = vmatprep.subr.bf16.mxu1 %v1527_v44 }
  0x2b   :  { %635 = vmatmul.mubr.bf16.gmra.mrb[4].mxu0 %v1518_v40 }
  0x2c   :  { %732 = vmatmul.mubr.bf16.gmra.mrb[4].mxu1 %v1519_v41  ;;  %642 = vmatprep.mubr.bf16.mxu0 %v1521_v42 }
  0x2d   :  { %739 = vmatprep.mubr.bf16.mxu1 %v1523_v43  ;;  %1432 = vmatpush3.bf16.msra.mxu0 %v1527_v44 }
  0x2e   :  { %1469 = vmatpush3.bf16.msra.mxu1 %v1527_v44  ;;  %1433 = vmatprep.subr.bf16.mxu0 %v1534_v45 }
  0x2f   :  { %1462 = vmatprep.subr.bf16.mxu1 %v1534_v45 }
  0x31   :  { %1434 = vmatpush3.bf16.msra.mxu0 %v1534_v45 }
  0x32   :  { %1470 = vmatpush3.bf16.msra.mxu1 %v1534_v45  ;;  %1435 = vmatprep.subr.bf16.mxu0 %v1541_v50 }
  0x33   :  { %643 = vmatmul.mubr.bf16.gmra.mrb[8].mxu0 %v1525_v46  ;;  %1463 = vmatprep.subr.bf16.mxu1 %v1541_v50 }
  0x34   :  { %740 = vmatmul.mubr.bf16.gmra.mrb[8].mxu1 %v1526_v47  ;;  %650 = vmatprep.mubr.bf16.mxu0 %v1528_v48 }
  0x35   :  { %747 = vmatprep.mubr.bf16.mxu1 %v1530_v49  ;;  %1436 = vmatpush3.bf16.msra.mxu0 %v1541_v50 }
  0x36   :  { %1471 = vmatpush3.bf16.msra.mxu1 %v1541_v50  ;;  %1437 = vmatprep.subr.bf16.mxu0 %v1548_v51 }
  0x37   :  { %1464 = vmatprep.subr.bf16.mxu1 %v1548_v51 }
  0x39   :  { %1438 = vmatpush3.bf16.msra.mxu0 %v1548_v51 }
  0x3a   :  { %1472 = vmatpush3.bf16.msra.mxu1 %v1548_v51  ;;  %1439 = vmatprep.subr.bf16.mxu0 %v1555_v55 }
  0x3b   :  { %651 = vmatmul.mubr.bf16.gmra.mrb[12].mxu0 %v1532_v52  ;;  %1465 = vmatprep.subr.bf16.mxu1 %v1555_v55 }
  0x3c   :  { %748 = vmatmul.mubr.bf16.gmra.mrb[12].mxu1 %v1533_v53  ;;  %658 = vmatprep.mubr.bf16.mxu0 %v1535_v54 }
  0x3d   :  { %755 = vmatprep.mubr.bf16.mxu1 %v1537_v56  ;;  %1440 = vmatpush3.bf16.msra.mxu0 %v1555_v55 }
  0x3e   :  { %1473 = vmatpush3.bf16.msra.mxu1 %v1555_v55  ;;  %1441 = vmatprep.subr.bf16.mxu0 %v1562_v57 }
  0x3f   :  { %1466 = vmatprep.subr.bf16.mxu1 %v1562_v57 }
  0x41   :  { %1442 = vmatpush3.bf16.msra.mxu0 %v1562_v57 }
  0x42   :  { %1474 = vmatpush3.bf16.msra.mxu1 %v1562_v57 }
  0x43   :  { %659 = vmatmul.mubr.bf16.gmra.mrb[16].mxu0 %v1539_v58 }
  0x44   :  { %756 = vmatmul.mubr.bf16.gmra.mrb[16].mxu1 %v1540_v59  ;;  %666 = vmatprep.mubr.bf16.mxu0 %v1542_v60 }
  0x45   :  { %763 = vmatprep.mubr.bf16.mxu1 %v1544_v61 }
  0x4b   :  { %667 = vmatmul.mubr.bf16.gmra.mrb[20].mxu0 %v1546_v62 }
  0x4c   :  { %764 = vmatmul.mubr.bf16.gmra.mrb[20].mxu1 %v1547_v63  ;;  %674 = vmatprep.mubr.bf16.mxu0 %v1549_v0 }
  0x4d   :  { %771 = vmatprep.mubr.bf16.mxu1 %v1551_v1 }
  0x53   :  { %675 = vmatmul.mubr.bf16.gmra.mrb[24].mxu0 %v1553_v2 }
  0x54   :  { %772 = vmatmul.mubr.bf16.gmra.mrb[24].mxu1 %v1554_v3  ;;  %682 = vmatprep.mubr.bf16.mxu0 %v1556_v4 }
  0x55   :  { %779 = vmatprep.mubr.bf16.mxu1 %v1558_v5 }
  0x5b   :  { %683 = vmatmul.mubr.bf16.gmra.mrb[28].mxu0 %v1560_v6 }
  0x5c   :  { %780 = vmatmul.mubr.bf16.gmra.mrb[28].mxu1 %v1561_v7  ;;  %1443 = vmatprep.mubr.bf16.mxu0 %v1563_v8 }
  0x5d   :  { %1451 = vmatprep.mubr.bf16.mxu1 %v1564_v9 }
  0x63   :  { %1444 = vmatmul.mubr.bf16.vlgmr.msra.gmra.mrb[32].mxu0 %v1565_v10 }
  0x64   :  { %1452 = vmatmul.mubr.bf16.vlgmr.msra.gmra.mrb[32].mxu1 %v1566_v11  ;;  %1447 = vmatprep.mubr.bf16.mxu0 %v1567_v12 }
  0x65   :  { %1455 = vmatprep.mubr.bf16.mxu1 %v1568_v13 }
  0x6b   :  { %1448 = vmatmul.mubr.bf16.gmra.mrb[36].mxu0 %v1569_v14 }
  0x6c   :  { %1456 = vmatmul.mubr.bf16.gmra.mrb[36].mxu1 %v1570_v15 }
  0xf6   :  { %v1299_v16 = vpop.f32.mrb[0].mxu0 }
  0xf7   :  { %v1363_v17 = vpop.f32.mrb[0].mxu1  ;;  %v1300_v18 = vpop.f32.mrb[1].mxu0 }
  0xf8   :  { %v1301_v19 = vadd.f32 %v1300_v18, %v1299_v16  ;;  %v1364_v20 = vpop.f32.mrb[1].mxu1  ;;  %v1302_v21 = vpop.f32.mrb[2].mxu0 }
  0xf9   :  { %v1365_v22 = vadd.f32 %v1364_v20, %v1363_v17  ;;  %v1366_v23 = vpop.f32.mrb[2].mxu1  ;;  %v1303_v24 = vpop.f32.mrb[3].mxu0 }
  0xfa   :  { %v1304_v25 = vadd.f32 %v1303_v24, %v1302_v21  ;;  %v1367_v26 = vpop.f32.mrb[3].mxu1 }
  0xfb   :  { %v1368_v27 = vadd.f32 %v1367_v26, %v1366_v23  ;;  %v1836_v28 = vadd.f32 %v1365_v22, %v1301_v19 }
  0xfd   :  { %v1838_v29 = vadd.f32 %v1368_v27, %v1304_v25 }
  0xfe   :  { %v1305_v30 = vpop.f32.mrb[4].mxu0 }
  0xff   :  { %v1369_v31 = vpop.f32.mrb[4].mxu1  ;;  %v1306_v32 = vpop.f32.mrb[5].mxu0 }
 0x100   :  { %v1307_v33 = vadd.f32 %v1306_v32, %v1305_v30  ;;  %v1370_v34 = vpop.f32.mrb[5].mxu1  ;;  %v1308_v35 = vpop.f32.mrb[6].mxu0 }
 0x101   :  { %v1371_v36 = vadd.f32 %v1370_v34, %v1369_v31  ;;  %v1372_v37 = vpop.f32.mrb[6].mxu1  ;;  %v1309_v38 = vpop.f32.mrb[7].mxu0 }
 0x102   :  { %v1310_v39 = vadd.f32 %v1309_v38, %v1308_v35  ;;  %v1373_v40 = vpop.f32.mrb[7].mxu1 }
 0x103   :  { %v1374_v41 = vadd.f32 %v1373_v40, %v1372_v37  ;;  %v1840_v42 = vadd.f32 %v1371_v36, %v1307_v33 }
 0x105   :  { %v1842_v43 = vadd.f32 %v1374_v41, %v1310_v39 }
 0x106   :  { %v1311_v44 = vpop.f32.mrb[8].mxu0 }
 0x107   :  { %v1375_v45 = vpop.f32.mrb[8].mxu1  ;;  %v1312_v46 = vpop.f32.mrb[9].mxu0 }
 0x108   :  { %v1313_v47 = vadd.f32 %v1312_v46, %v1311_v44  ;;  %v1376_v48 = vpop.f32.mrb[9].mxu1  ;;  %v1314_v49 = vpop.f32.mrb[10].mxu0 }
 0x109   :  { %v1377_v50 = vadd.f32 %v1376_v48, %v1375_v45  ;;  %v1378_v51 = vpop.f32.mrb[10].mxu1  ;;  %v1315_v52 = vpop.f32.mrb[11].mxu0 }
 0x10a   :  { %v1316_v53 = vadd.f32 %v1315_v52, %v1314_v49  ;;  %v1379_v54 = vpop.f32.mrb[11].mxu1 }
 0x10b   :  { %v1380_v55 = vadd.f32 %v1379_v54, %v1378_v51  ;;  %v1844_v56 = vadd.f32 %v1377_v50, %v1313_v47 }
 0x10d   :  { %v1846_v57 = vadd.f32 %v1380_v55, %v1316_v53 }
 0x10e   :  { %v1317_v58 = vpop.f32.mrb[12].mxu0 }
 0x10f   :  { %v1381_v59 = vpop.f32.mrb[12].mxu1  ;;  %v1318_v60 = vpop.f32.mrb[13].mxu0 }
 0x110   :  { %v1319_v61 = vadd.f32 %v1318_v60, %v1317_v58  ;;  %v1382_v62 = vpop.f32.mrb[13].mxu1  ;;  %v1320_v63 = vpop.f32.mrb[14].mxu0 }
 0x111   :  { %v1383_v0 = vadd.f32 %v1382_v62, %v1381_v59  ;;  %v1384_v1 = vpop.f32.mrb[14].mxu1  ;;  %v1321_v2 = vpop.f32.mrb[15].mxu0 }
 0x112   :  { %v1322_v3 = vadd.f32 %v1321_v2, %v1320_v63  ;;  %v1385_v4 = vpop.f32.mrb[15].mxu1 }
 0x113   :  { %v1386_v5 = vadd.f32 %v1385_v4, %v1384_v1  ;;  %v1848_v6 = vadd.f32 %v1383_v0, %v1319_v61 }
 0x115   :  { %v1850_v7 = vadd.f32 %v1386_v5, %v1322_v3 }
 0x116   :  { %v1323_v8 = vpop.f32.mrb[16].mxu0 }
 0x117   :  { %v1387_v9 = vpop.f32.mrb[16].mxu1  ;;  %v1324_v10 = vpop.f32.mrb[17].mxu0 }
 0x118   :  { %v1325_v11 = vadd.f32 %v1324_v10, %v1323_v8  ;;  %v1388_v12 = vpop.f32.mrb[17].mxu1  ;;  %v1326_v13 = vpop.f32.mrb[18].mxu0 }
 0x119   :  { %v1389_v14 = vadd.f32 %v1388_v12, %v1387_v9  ;;  %v1390_v15 = vpop.f32.mrb[18].mxu1  ;;  %v1327_v16 = vpop.f32.mrb[19].mxu0  ;;  %v1863_v9 = vld [vmem:[%s1940_s2] ss:$0 sm:$0xff] }
 0x11a   :  { %v1328_v17 = vadd.f32 %v1327_v16, %v1326_v13  ;;  %v1391_v18 = vpop.f32.mrb[19].mxu1  ;;  %v1869_v13 = vld [vmem:[%s1941_s3] ss:$0 sm:$0xff] }
 0x11b   :  { %v1392_v19 = vadd.f32 %v1391_v18, %v1390_v15  ;;  %v758_v20 = vadd.f32 %v1389_v14, %v1325_v11 }
 0x11d   :  { %v1852_v21 = vadd.f32 %v1392_v19, %v1328_v17 }
 0x11e   :  { %v1329_v22 = vpop.f32.mrb[20].mxu0 }
 0x11f   :  { %v1393_v23 = vpop.f32.mrb[20].mxu1  ;;  %v1330_v24 = vpop.f32.mrb[21].mxu0 }
 0x120   :  { %v1331_v25 = vadd.f32 %v1330_v24, %v1329_v22  ;;  %v1394_v26 = vpop.f32.mrb[21].mxu1  ;;  %v1332_v27 = vpop.f32.mrb[22].mxu0 }
 0x121   :  { %v1395_v30 = vadd.f32 %v1394_v26, %v1393_v23  ;;  %v1396_v31 = vpop.f32.mrb[22].mxu1  ;;  %v1333_v32 = vpop.f32.mrb[23].mxu0 }
 0x122   :  { %v1334_v33 = vadd.f32 %v1333_v32, %v1332_v27  ;;  %v1397_v34 = vpop.f32.mrb[23].mxu1 }
 0x123   :  { %v1398_v35 = vadd.f32 %v1397_v34, %v1396_v31  ;;  %v766_v36 = vadd.f32 %v1395_v30, %v1331_v25 }
 0x125   :  { %v769_v37 = vadd.f32 %v1398_v35, %v1334_v33 }
 0x126   :  { %v1335_v38 = vpop.f32.mrb[24].mxu0 }
 0x127   :  { %v1399_v39 = vpop.f32.mrb[24].mxu1  ;;  %v1336_v40 = vpop.f32.mrb[25].mxu0 }
 0x128   :  { %v1337_v41 = vadd.f32 %v1336_v40, %v1335_v38  ;;  %v1400_v44 = vpop.f32.mrb[25].mxu1  ;;  %v1338_v45 = vpop.f32.mrb[26].mxu0 }
 0x129   :  { %v1401_v46 = vadd.f32 %v1400_v44, %v1399_v39  ;;  %v1402_v47 = vpop.f32.mrb[26].mxu1  ;;  %v1339_v48 = vpop.f32.mrb[27].mxu0 }
 0x12a   :  { %v1340_v49 = vadd.f32 %v1339_v48, %v1338_v45  ;;  %v1403_v50 = vpop.f32.mrb[27].mxu1 }
 0x12b   :  { %v1404_v51 = vadd.f32 %v1403_v50, %v1402_v47  ;;  %v1854_v52 = vadd.f32 %v1401_v46, %v1337_v41 }
 0x12d   :  { %v1856_v53 = vadd.f32 %v1404_v51, %v1340_v49 }
 0x12e   :  { %v1341_v54 = vpop.f32.mrb[28].mxu0 }
 0x12f   :  { %v1405_v55 = vpop.f32.mrb[28].mxu1  ;;  %v1342_v58 = vpop.f32.mrb[29].mxu0 }
 0x130   :  { %v1343_v59 = vadd.f32 %v1342_v58, %v1341_v54  ;;  %v1406_v60 = vpop.f32.mrb[29].mxu1  ;;  %v1344_v61 = vpop.f32.mrb[30].mxu0 }
 0x131   :  { %v1407_v62 = vadd.f32 %v1406_v60, %v1405_v55  ;;  %v1408_v63 = vpop.f32.mrb[30].mxu1  ;;  %v1345_v0 = vpop.f32.mrb[31].mxu0 }
 0x132   :  { %v1346_v1 = vadd.f32 %v1345_v0, %v1344_v61  ;;  %v1409_v2 = vpop.f32.mrb[31].mxu1 }
 0x133   :  { %v1410_v3 = vadd.f32 %v1409_v2, %v1408_v63  ;;  %v782_v4 = vadd.f32 %v1407_v62, %v1343_v59 }
 0x135   :  { %v1858_v5 = vadd.f32 %v1410_v3, %v1346_v1 }
 0x136   :  { %v1445_v8 = vpop.f32.mrb[32].mxu0 }
 0x137   :  { %v831_v10 = vadd.f32 %v1445_v8, %v1840_v42  ;;  %v1453_v11 = vpop.f32.mrb[32].mxu1  ;;  %v822_v12 = vpop.f32.mrb[33].mxu0 }
 0x138   :  { %v863_v14 = vadd.f32 %v1453_v11, %v766_v36  ;;  %v823_v15 = vadd.f32 %v822_v12, %v1836_v28  ;;  %v854_v16 = vpop.f32.mrb[33].mxu1  ;;  %v1446_v17 = vpop.f32.mrb[34].mxu0 }
 0x139   :  { %v985_v18 = vmul.f32 %v1863_v9, %v831_v10  ;;  %v855_v19 = vadd.f32 %v854_v16, %v758_v20  ;;  %v834_v22 = vadd.f32 %v1446_v17, %v1842_v43  ;;  %v1454_v23 = vpop.f32.mrb[34].mxu1  ;;  %v825_v24 = vpop.f32.mrb[35].mxu0 }
 0x13a   :  { %v993_v42 = vmul.f32 %v1863_v9, %v863_v14  ;;  %v983_v25 = vmul.f32 %v1863_v9, %v823_v15  ;;  %v866_v26 = vadd.f32 %v1454_v23, %v769_v37  ;;  %v826_v27 = vadd.f32 %v825_v24, %v1838_v29  ;;  %v857_v30 = vpop.f32.mrb[35].mxu1 }
 0x13b   :  { %v1008_v31 = vadd.f32 %v1869_v13, %v985_v18  ;;  %v991_v28 = vmul.f32 %v1863_v9, %v855_v19  ;;  %v986_v32 = vmul.f32 %v1863_v9, %v834_v22  ;;  %v858_v20 = vadd.f32 %v857_v30, %v1852_v21 }
 0x13c   :  { %v1016_v43 = vadd.f32 %v1869_v13, %v993_v42  ;;  %v1006_v33 = vadd.f32 %v1869_v13, %v983_v25  ;;  %v994_v34 = vmul.f32 %v1863_v9, %v866_v26  ;;  %v984_v35 = vmul.f32 %v1863_v9, %v826_v27 }
 0x13d   :  { %v1024_v36 = vmax.f32 %v1008_v31, 0.0  ;;  %v1014_v29 = vadd.f32 %v1869_v13, %v991_v28  ;;  %v1009_v37 = vadd.f32 %v1869_v13, %v986_v32  ;;  %v992_v38 = vmul.f32 %v1863_v9, %v858_v20 }
 0x13e   :  { %v1032_v39 = vmax.f32 %v1016_v43, 0.0  ;;  %v1022_v40 = vmax.f32 %v1006_v33, 0.0  ;;  %v1017_v41 = vadd.f32 %v1869_v13, %v994_v34  ;;  %v1007_v21 = vadd.f32 %v1869_v13, %v984_v35  ;;  %v1449_v44 = vpop.f32.mrb[36].mxu0 }
 0x13f   :  { %v1030_v45 = vmax.f32 %v1014_v29, 0.0  ;;  %v1025_v46 = vmax.f32 %v1009_v37, 0.0  ;;  %v1015_v47 = vadd.f32 %v1869_v13, %v992_v38  ;;  %v847_v48 = vadd.f32 %v1449_v44, %v1848_v6  ;;  %v1457_v49 = vpop.f32.mrb[36].mxu1  ;;  %v838_v50 = vpop.f32.mrb[37].mxu0 }
 0x140   :  { %v1033_v51 = vmax.f32 %v1017_v41, 0.0  ;;  %v1023_v54 = vmax.f32 %v1007_v21, 0.0  ;;  %v879_v55 = vadd.f32 %v1457_v49, %v782_v4  ;;  %v839_v58 = vadd.f32 %v838_v50, %v1844_v56  ;;  %v870_v59 = vpop.f32.mrb[37].mxu1  ;;  %v1450_v60 = vpop.f32.mrb[38].mxu0 }
 0x141   :  { %v1244_v61 = vpack.c.bf16 %v1025_v46, %v1024_v36  ;;  %v1031_v62 = vmax.f32 %v1015_v47, 0.0  ;;  %v989_v63 = vmul.f32 %v1863_v9, %v847_v48  ;;  %v871_v0 = vadd.f32 %v870_v59, %v1854_v52  ;;  %v1458_v1 = vpop.f32.mrb[38].mxu1  ;;  %v841_v2 = vpop.f32.mrb[39].mxu0 }
 0x142   :  { %v1264_v3 = vpack.c.bf16 %v1033_v51, %v1032_v39  ;;  %v1239_v8 = vpack.c.bf16 %v1023_v54, %v1022_v40  ;;  %v997_v6 = vmul.f32 %v1863_v9, %v879_v55  ;;  %v987_v10 = vmul.f32 %v1863_v9, %v839_v58  ;;  %v873_v11 = vpop.f32.mrb[39].mxu1 }
 0x143   :  { %1276 = vst [vmem:[%s1942_s4 + $0x8] sm:$0xff] %v1244_v61   ;;  %v1259_v56 = vpack.c.bf16 %v1031_v62, %v1030_v45  ;;  %v995_v4 = vmul.f32 %v1863_v9, %v871_v0  ;;  %v850_v12 = vadd.f32 %v1450_v60, %v1850_v7  ;;  %v882_v52 = vadd.f32 %v1458_v1, %v1858_v5 }
 0x144   :  { %1280 = vst [vmem:[%s1942_s4 + $0x28] sm:$0xff] %v1264_v3   ;;  %1240 = vst [vmem:[%s1942_s4] sm:$0xff] %v1239_v8   ;;  %v842_v14 = vadd.f32 %v841_v2, %v1846_v57  ;;  %v1012_v15 = vadd.f32 %v1869_v13, %v989_v63  ;;  %v874_v16 = vadd.f32 %v873_v11, %v1856_v53 }
 0x145   :  { %1279 = vst [vmem:[%s1942_s4 + $0x20] sm:$0xff] %v1259_v56   ;;  %v990_v7 = vmul.f32 %v1863_v9, %v850_v12  ;;  %v1020_v17 = vadd.f32 %v1869_v13, %v997_v6  ;;  %v1010_v18 = vadd.f32 %v1869_v13, %v987_v10  ;;  %v998_v19 = vmul.f32 %v1863_v9, %v882_v52 }
 0x146   :  { %v988_v5 = vmul.f32 %v1863_v9, %v842_v14  ;;  %v1018_v57 = vadd.f32 %v1869_v13, %v995_v4  ;;  %v996_v23 = vmul.f32 %v1863_v9, %v874_v16  ;;  %v1028_v25 = vmax.f32 %v1012_v15, 0.0 }
 0x147   :  { %v1013_v22 = vadd.f32 %v1869_v13, %v990_v7  ;;  %v1021_v24 = vadd.f32 %v1869_v13, %v998_v19  ;;  %v1036_v27 = vmax.f32 %v1020_v17, 0.0  ;;  %v1026_v30 = vmax.f32 %v1010_v18, 0.0 }
 0x148   :  { %v1011_v42 = vadd.f32 %v1869_v13, %v988_v5  ;;  %v1019_v26 = vadd.f32 %v1869_v13, %v996_v23  ;;  %v1034_v32 = vmax.f32 %v1018_v57, 0.0 }
 0x149   :  { %v1029_v53 = vmax.f32 %v1013_v22, 0.0  ;;  %v1037_v31 = vmax.f32 %v1021_v24, 0.0 }
 0x14a   :  { %v1027_v28 = vmax.f32 %v1011_v42, 0.0  ;;  %v1035_v43 = vmax.f32 %v1019_v26, 0.0 }
 0x14b   :  { %v1254_v20 = vpack.c.bf16 %v1029_v53, %v1028_v25  ;;  %v1274_v33 = vpack.c.bf16 %v1037_v31, %v1036_v27 }
 0x14c   :  { %v1249_v34 = vpack.c.bf16 %v1027_v28, %v1026_v30  ;;  %v1269_v9 = vpack.c.bf16 %v1035_v43, %v1034_v32 }
 0x14d   :  { %1278 = vst [vmem:[%s1942_s4 + $0x18] sm:$0xff] %v1254_v20   ;;  %1282 = vst [vmem:[%s1942_s4 + $0x38] sm:$0xff] %v1274_v33  }
 0x14e   :  { %1277 = vst [vmem:[%s1942_s4 + $0x10] sm:$0xff] %v1249_v34   ;;  %1281 = vst [vmem:[%s1942_s4 + $0x30] sm:$0xff] %v1269_v9  }

// kernel: resnet_forward.10
= control target key start
LH: loop header
LB: loop body
LE: loop exit
PB: predicated region body
PF: predicated region fallthrough
CT: control target
= control target key end

     0   :  { %v4276_v0 = vmov 0   ;;  %vm2236_vm0 = vcmask 523264   ;;  %vm3219_vm1 = vcmask 519168   ;;  %s5952_s1 = inlined_call_operand.vmem [shape: bf16[640,64], index: 1, kind: input, shape index: {}]   ;;  %s5953_s0 = inlined_call_operand.vmem [shape: bf16[512,640], index: 0, kind: input, shape index: {}]   ;;  %s5954_s2 = inlined_call_operand.vmem [shape: f32[1,64], index: 2, kind: input, shape index: {}]   ;;  %s5955_s4 = inlined_call_operand.vmem [shape: bf16[512,64], index: 4, kind: input, shape index: {}]   ;;  %s5956_s3 = inlined_call_operand.vmem [shape: f32[1,64], index: 3, kind: input, shape index: {}]   ;;  %s5957_s5 = inlined_call_operand.vmem [shape: bf16[512,64], index: 5, kind: output, shape index: {}]  }
   0x1   :  { %1365 = vmatprep.subr.bf16.mxu0 %v4276_v0  ;;  %3897 = vmatprep.subr.bf16.mxu1 %v4276_v0  ;;  %v4010_v1 = vld [vmem:[%s5952_s1] sm:$0xff]   ;;  %v4011_v2 = vld [vmem:[%s5952_s1 + $0x8] sm:$0xff]   ;;  %v4012_v3 = vld [vmem:[%s5952_s1 + $0x10] sm:$0xff]  }
   0x2   :  { %1366 = vmatpush1.bf16.msra.mxu0 %v4010_v1  ;;  %3913 = vmatpush1.bf16.msra.mxu1 %v4010_v1  ;;  %v4013_v4 = vld [vmem:[%s5952_s1 + $0x18] sm:$0xff]   ;;  %v4014_v5 = vld [vmem:[%s5952_s1 + $0x20] sm:$0xff]   ;;  %v4015_v7 = vld [vmem:[%s5952_s1 + $0x28] sm:$0xff]  }
   0x3   :  { %1367 = vmatprep.subr.bf16.mxu0 %v4276_v0  ;;  %3898 = vmatprep.subr.bf16.mxu1 %v4276_v0  ;;  %v4028_v6 = vld [vmem:[%s5953_s0 + $0x4] ss:$20 sps:$4 sm:$0xff]   ;;  %v4016_v9 = vld [vmem:[%s5952_s1 + $0x30] sm:$0xff]   ;;  %v4019_v12 = vld [vmem:[%s5952_s1 + $0x48] sm:$0xff]  }
   0x4   :  { %v4031_v8 = vld [vmem:[%s5953_s0 + $0x144] ss:$20 sps:$4 sm:$0xff]   ;;  %1397 = vmatprep.mubr.bf16.mxu0 %v4028_v6  ;;  %v4020_v13 = vld [vmem:[%s5952_s1 + $0x50] sm:$0xff]   ;;  %v4023_v16 = vld [vmem:[%s5952_s1 + $0x68] sm:$0xff]  }
   0x5   :  { %1461 = vmatprep.mubr.bf16.mxu1 %v4031_v8  ;;  %v4017_v10 = vld [vmem:[%s5952_s1 + $0x38] sm:$0xff]   ;;  %v4018_v11 = vld [vmem:[%s5952_s1 + $0x40] sm:$0xff]   ;;  %v4024_v17 = vld [vmem:[%s5952_s1 + $0x70] sm:$0xff]  }
   0x6   :  { %1368 = vmatpush1.bf16.msra.mxu0 %v4011_v2  ;;  %3914 = vmatpush1.bf16.msra.mxu1 %v4011_v2  ;;  %v4021_v14 = vld [vmem:[%s5952_s1 + $0x58] sm:$0xff]   ;;  %v4022_v15 = vld [vmem:[%s5952_s1 + $0x60] sm:$0xff]   ;;  %v4058_v25 = vld [vmem:[%s5952_s1 + $0x108] sm:$0xff]  }
   0x7   :  { %1369 = vmatprep.subr.bf16.mxu0 %v4276_v0  ;;  %3899 = vmatprep.subr.bf16.mxu1 %v4276_v0  ;;  %v4025_v18 = vld [vmem:[%s5952_s1 + $0x78] sm:$0xff]   ;;  %v4033_v19 = vld [vmem:[%s5952_s1 + $0x100] sm:$0xff]   ;;  %v4034_v26 = vld [vmem:[%s5952_s1 + $0x88] sm:$0xff]  }
   0x8   :  { %v4026_v20 = vld [vmem:[%s5953_s0] ss:$20 sps:$4 sm:$0xff]   ;;  %v4039_v28 = vld [vmem:[%s5953_s0 + $0x28] ss:$20 sps:$4 sm:$0xff]   ;;  %v4047_v35 = vld [vmem:[%s5953_s0 + $0x50] ss:$20 sps:$4 sm:$0xff]  }
   0x9   :  { %v4029_v21 = vld [vmem:[%s5953_s0 + $0x140] ss:$20 sps:$4 sm:$0xff]   ;;  %v4040_v29 = vld [vmem:[%s5953_s0 + $0x168] ss:$20 sps:$4 sm:$0xff]   ;;  %v4048_v36 = vld [vmem:[%s5953_s0 + $0x190] ss:$20 sps:$4 sm:$0xff]  }
   0xa   :  { %1370 = vmatpush1.bf16.msra.mxu0 %v4012_v3  ;;  %3915 = vmatpush1.bf16.msra.mxu1 %v4012_v3  ;;  %v4032_v22 = vld [vmem:[%s5952_s1 + $0x80] sm:$0xff]   ;;  %v4083_v27 = vld [vmem:[%s5952_s1 + $0x110] sm:$0xff]   ;;  %v4105_v33 = vld [vmem:[%s5952_s1 + $0x118] sm:$0xff]  }
   0xb   :  { %1371 = vmatprep.subr.bf16.mxu0 %v4276_v0  ;;  %3900 = vmatprep.subr.bf16.mxu1 %v4276_v0  ;;  %v4035_v23 = vld [vmem:[%s5953_s0 + $0x2c] ss:$20 sps:$4 sm:$0xff]   ;;  %v4041_v30 = vld [vmem:[%s5952_s1 + $0x90] sm:$0xff]   ;;  %v4042_v34 = vld [vmem:[%s5952_s1 + $0x98] sm:$0xff]  }
   0xc   :  { %v4037_v24 = vld [vmem:[%s5953_s0 + $0x16c] ss:$20 sps:$4 sm:$0xff]   ;;  %v4043_v31 = vld [vmem:[%s5953_s0 + $0x54] ss:$20 sps:$4 sm:$0xff]   ;;  %v4051_v38 = vld [vmem:[%s5953_s0 + $0x7c] ss:$20 sps:$4 sm:$0xff]  }
   0xd   :  { %v4045_v32 = vld [vmem:[%s5953_s0 + $0x194] ss:$20 sps:$4 sm:$0xff]   ;;  %v4049_v37 = vld [vmem:[%s5952_s1 + $0xa0] sm:$0xff]   ;;  %v4053_v39 = vld [vmem:[%s5953_s0 + $0x1bc] ss:$20 sps:$4 sm:$0xff]  }
   0xe   :  { %1372 = vmatpush1.bf16.msra.mxu0 %v4013_v4  ;;  %3916 = vmatpush1.bf16.msra.mxu1 %v4013_v4  ;;  %v4124_v40 = vld [vmem:[%s5952_s1 + $0x120] sm:$0xff]   ;;  %v4050_v41 = vld [vmem:[%s5952_s1 + $0xa8] sm:$0xff]   ;;  %v4057_v45 = vld [vmem:[%s5952_s1 + $0xb0] sm:$0xff]  }
   0xf   :  { %1373 = vmatprep.subr.bf16.mxu0 %v4276_v0  ;;  %3901 = vmatprep.subr.bf16.mxu1 %v4276_v0  ;;  %v4143_v42 = vld [vmem:[%s5952_s1 + $0x128] sm:$0xff]   ;;  %v4060_v46 = vld [vmem:[%s5953_s0 + $0xa4] ss:$20 sps:$4 sm:$0xff]   ;;  %v4162_v48 = vld [vmem:[%s5952_s1 + $0x130] sm:$0xff]  }
  0x10   :  { %v4055_v43 = vld [vmem:[%s5953_s0 + $0x78] ss:$20 sps:$4 sm:$0xff]   ;;  %v4064_v50 = vld [vmem:[%s5953_s0 + $0xa0] ss:$20 sps:$4 sm:$0xff]   ;;  %v4072_v56 = vld [vmem:[%s5953_s0 + $0xc8] ss:$20 sps:$4 sm:$0xff]  }
  0x11   :  { %v4056_v44 = vld [vmem:[%s5953_s0 + $0x1b8] ss:$20 sps:$4 sm:$0xff]   ;;  %v4065_v51 = vld [vmem:[%s5953_s0 + $0x1e0] ss:$20 sps:$4 sm:$0xff]   ;;  %v4073_v57 = vld [vmem:[%s5953_s0 + $0x208] ss:$20 sps:$4 sm:$0xff]  }
  0x12   :  { %1374 = vmatpush1.bf16.msra.mxu0 %v4014_v5  ;;  %3917 = vmatpush1.bf16.msra.mxu1 %v4014_v5  ;;  %v4062_v47 = vld [vmem:[%s5953_s0 + $0x1e4] ss:$20 sps:$4 sm:$0xff]   ;;  %v4068_v53 = vld [vmem:[%s5953_s0 + $0xcc] ss:$20 sps:$4 sm:$0xff]   ;;  %v4074_v58 = vld [vmem:[%s5952_s1 + $0xd0] sm:$0xff]  }
  0x13   :  { %1375 = vmatprep.subr.bf16.mxu0 %v4276_v0  ;;  %3902 = vmatprep.subr.bf16.mxu1 %v4276_v0  ;;  %v4059_v49 = vld [vmem:[%s5952_s1 + $0xb8] sm:$0xff]   ;;  %v4066_v52 = vld [vmem:[%s5952_s1 + $0xc0] sm:$0xff]   ;;  %v4067_v55 = vld [vmem:[%s5952_s1 + $0xc8] sm:$0xff]  }
  0x14   :  { %v4070_v54 = vld [vmem:[%s5953_s0 + $0x20c] ss:$20 sps:$4 sm:$0xff]   ;;  %v4076_v59 = vld [vmem:[%s5953_s0 + $0xf4] ss:$20 sps:$4 sm:$0xff]   ;;  %v4181_v61 = vld [vmem:[%s5952_s1 + $0x138] sm:$0xff]  }
  0x15   :  { %v4078_v60 = vld [vmem:[%s5953_s0 + $0x234] ss:$20 sps:$4 sm:$0xff]   ;;  %v4075_v62 = vld [vmem:[%s5952_s1 + $0xd8] sm:$0xff]   ;;  %v4080_v63 = vld [vmem:[%s5953_s0 + $0xf0] ss:$20 sps:$4 sm:$0xff]  }
  0x16   :  { %1376 = vmatpush1.bf16.msra.mxu0 %v4015_v7  ;;  %3918 = vmatpush1.bf16.msra.mxu1 %v4015_v7  ;;  %v4081_v1 = vld [vmem:[%s5953_s0 + $0x230] ss:$20 sps:$4 sm:$0xff]   ;;  %v4084_v5 = vld [vmem:[%s5952_s1 + $0xe8] sm:$0xff]  }
  0x17   :  { %1377 = vmatprep.subr.bf16.mxu0 %v4276_v0  ;;  %3903 = vmatprep.subr.bf16.mxu1 %v4276_v0  ;;  %v4082_v2 = vld [vmem:[%s5952_s1 + $0xe0] sm:$0xff]   ;;  %v4085_v3 = vld [vmem:[%s5953_s0 + $0x11c] ss:$20 sps:$4 sm:$0xff]   ;;  %v4089_v6 = vld [vmem:[%s5953_s0 + $0x118] ss:$20 sps:$4 sm:$0xff]  }
  0x18   :  { %v4087_v4 = vld [vmem:[%s5953_s0 + $0x25c] ss:$20 sps:$4 sm:$0xff]   ;;  %v4090_v7 = vld [vmem:[%s5953_s0 + $0x258] ss:$20 sps:$4 sm:$0xff]  }
  0x19   :  { %v4091_v8 = vld [vmem:[%s5952_s1 + $0xf0] sm:$0xff]  }
  0x1a   :  { %1378 = vmatpush1.bf16.msra.mxu0 %v4016_v9  ;;  %3919 = vmatpush1.bf16.msra.mxu1 %v4016_v9  ;;  %v4093_v9 = vld [vmem:[%s5953_s0 + $0x284] ss:$20 sps:$4 sm:$0xff]  }
  0x1b   :  { %1379 = vmatprep.subr.bf16.mxu0 %v4276_v0  ;;  %3904 = vmatprep.subr.bf16.mxu1 %v4276_v0 }
  0x1e   :  { %1380 = vmatpush1.bf16.msra.mxu0 %v4017_v10  ;;  %3920 = vmatpush1.bf16.msra.mxu1 %v4017_v10  ;;  %v4097_v10 = vld [vmem:[%s5953_s0 + $0xc] ss:$20 sps:$4 sm:$0xff]  }
  0x1f   :  { %1381 = vmatprep.subr.bf16.mxu0 %v4276_v0  ;;  %3905 = vmatprep.subr.bf16.mxu1 %v4276_v0 }
  0x22   :  { %1382 = vmatpush1.bf16.msra.mxu0 %v4018_v11  ;;  %3921 = vmatpush1.bf16.msra.mxu1 %v4018_v11  ;;  %v4092_v11 = vld [vmem:[%s5952_s1 + $0xf8] sm:$0xff]  }
  0x23   :  { %1383 = vmatprep.subr.bf16.mxu0 %v4276_v0  ;;  %3906 = vmatprep.subr.bf16.mxu1 %v4276_v0 }
  0x26   :  { %1384 = vmatpush1.bf16.msra.mxu0 %v4019_v12  ;;  %3922 = vmatpush1.bf16.msra.mxu1 %v4019_v12  ;;  %v4095_v12 = vld [vmem:[%s5953_s0 + $0x8] ss:$20 sps:$4 sm:$0xff]  }
  0x27   :  { %1385 = vmatprep.subr.bf16.mxu0 %v4276_v0  ;;  %3907 = vmatprep.subr.bf16.mxu1 %v4276_v0 }
  0x2a   :  { %1386 = vmatpush1.bf16.msra.mxu0 %v4020_v13  ;;  %3923 = vmatpush1.bf16.msra.mxu1 %v4020_v13  ;;  %v4098_v13 = vld [vmem:[%s5953_s0 + $0x280] ss:$20 sps:$4 sm:$0xff]  }
  0x2b   :  { %1387 = vmatprep.subr.bf16.mxu0 %v4276_v0  ;;  %3908 = vmatprep.subr.bf16.mxu1 %v4276_v0 }
  0x2e   :  { %1388 = vmatpush1.bf16.msra.mxu0 %v4021_v14  ;;  %3924 = vmatpush1.bf16.msra.mxu1 %v4021_v14  ;;  %v4099_v14 = vld [vmem:[%s5953_s0 + $0x2ac] ss:$20 sps:$4 sm:$0xff]  }
  0x2f   :  { %1389 = vmatprep.subr.bf16.mxu0 %v4276_v0  ;;  %3909 = vmatprep.subr.bf16.mxu1 %v4276_v0 }
  0x32   :  { %1390 = vmatpush1.bf16.msra.mxu0 %v4022_v15  ;;  %3925 = vmatpush1.bf16.msra.mxu1 %v4022_v15  ;;  %v4101_v15 = vld [vmem:[%s5953_s0 + $0x34] ss:$20 sps:$4 sm:$0xff]  }
  0x33   :  { %1391 = vmatprep.subr.bf16.mxu0 %v4276_v0  ;;  %3910 = vmatprep.subr.bf16.mxu1 %v4276_v0 }
  0x36   :  { %1392 = vmatpush1.bf16.msra.mxu0 %v4023_v16  ;;  %3926 = vmatpush1.bf16.msra.mxu1 %v4023_v16  ;;  %v4104_v16 = vld [vmem:[%s5953_s0 + $0x30] ss:$20 sps:$4 sm:$0xff]  }
  0x37   :  { %1393 = vmatprep.subr.bf16.mxu0 %v4276_v0  ;;  %3911 = vmatprep.subr.bf16.mxu1 %v4276_v0 }
  0x3a   :  { %1394 = vmatpush1.bf16.msra.mxu0 %v4024_v17  ;;  %3927 = vmatpush1.bf16.msra.mxu1 %v4024_v17  ;;  %v4106_v17 = vld [vmem:[%s5953_s0 + $0x2d4] ss:$20 sps:$4 sm:$0xff]  }
  0x3b   :  { %1395 = vmatprep.subr.bf16.mxu0 %v4276_v0  ;;  %3912 = vmatprep.subr.bf16.mxu1 %v4276_v0 }
  0x3e   :  { %1396 = vmatpush1.bf16.msra.mxu0 %v4025_v18  ;;  %3928 = vmatpush1.bf16.msra.mxu1 %v4025_v18  ;;  %v4108_v18 = vld [vmem:[%s5953_s0 + $0x5c] ss:$20 sps:$4 sm:$0xff]  }
  0x3f   :  { %1654 = vmatprep.subr.bf16.mxu0 %v4276_v0  ;;  %3817 = vmatprep.subr.bf16.mxu1 %v4033_v19 }
  0x41   :  { %1398 = vmatmul.mubr.bf16.vlgmr.msra.gmra.mrb[0].mxu0 %v4026_v20  ;;  %1462 = vmatmul.mubr.bf16.vlgmr.msra.gmra.mrb[0].mxu1 %v4029_v21  ;;  %v4111_v20 = vld [vmem:[%s5953_s0 + $0x58] ss:$20 sps:$4 sm:$0xff]   ;;  %v4112_v21 = vld [vmem:[%s5953_s0 + $0x2fc] ss:$20 sps:$4 sm:$0xff]  }
  0x42   :  { %1655 = vmatpush1.bf16.msra.mxu0 %v4032_v22  ;;  %3818 = vmatpush3.bf16.msra.mxu1 %v4033_v19  ;;  %v4110_v19 = vld [vmem:[%s5953_s0 + $0x2d0] ss:$20 sps:$4 sm:$0xff]  }
  0x43   :  { %1656 = vmatprep.subr.bf16.mxu0 %v4276_v0  ;;  %1405 = vmatprep.mubr.bf16.mxu0 %v4035_v23  ;;  %v4114_v22 = vld [vmem:[%s5953_s0 + $0x84] ss:$20 sps:$4 sm:$0xff]  }
  0x44   :  { %1469 = vmatprep.mubr.bf16.mxu1 %v4037_v24  ;;  %3819 = vmatprep.subr.bf16.mxu1 %v4058_v25  ;;  %v4116_v23 = vld [vmem:[%s5953_s0 + $0x2f8] ss:$20 sps:$4 sm:$0xff]   ;;  %v4117_v24 = vld [vmem:[%s5953_s0 + $0x80] ss:$20 sps:$4 sm:$0xff]  }
  0x46   :  { %1657 = vmatpush1.bf16.msra.mxu0 %v4034_v26  ;;  %3820 = vmatpush3.bf16.msra.mxu1 %v4058_v25  ;;  %v4118_v25 = vld [vmem:[%s5953_s0 + $0x324] ss:$20 sps:$4 sm:$0xff]   ;;  %v4120_v26 = vld [vmem:[%s5953_s0 + $0xac] ss:$20 sps:$4 sm:$0xff]  }
  0x47   :  { %1658 = vmatprep.subr.bf16.mxu0 %v4276_v0  ;;  %3821 = vmatprep.subr.bf16.mxu1 %v4083_v27 }
  0x49   :  { %1406 = vmatmul.mubr.bf16.gmra.mrb[4].mxu0 %v4039_v28  ;;  %1470 = vmatmul.mubr.bf16.gmra.mrb[4].mxu1 %v4040_v29  ;;  %v4123_v28 = vld [vmem:[%s5953_s0 + $0xa8] ss:$20 sps:$4 sm:$0xff]   ;;  %v4125_v29 = vld [vmem:[%s5953_s0 + $0x34c] ss:$20 sps:$4 sm:$0xff]  }
  0x4a   :  { %1659 = vmatpush1.bf16.msra.mxu0 %v4041_v30  ;;  %1413 = vmatprep.mubr.bf16.mxu0 %v4043_v31  ;;  %v4127_v30 = vld [vmem:[%s5953_s0 + $0xd4] ss:$20 sps:$4 sm:$0xff]  }
  0x4b   :  { %1660 = vmatprep.subr.bf16.mxu0 %v4276_v0  ;;  %1477 = vmatprep.mubr.bf16.mxu1 %v4045_v32  ;;  %v4129_v31 = vld [vmem:[%s5953_s0 + $0x348] ss:$20 sps:$4 sm:$0xff]   ;;  %v4130_v32 = vld [vmem:[%s5953_s0 + $0xd0] ss:$20 sps:$4 sm:$0xff]  }
  0x4c   :  { %3822 = vmatpush3.bf16.msra.mxu1 %v4083_v27  ;;  %v4122_v27 = vld [vmem:[%s5953_s0 + $0x320] ss:$20 sps:$4 sm:$0xff]  }
  0x4d   :  { %3823 = vmatprep.subr.bf16.mxu1 %v4105_v33 }
  0x4e   :  { %1661 = vmatpush1.bf16.msra.mxu0 %v4042_v34  ;;  %v4133_v34 = vld [vmem:[%s5953_s0 + $0xfc] ss:$20 sps:$4 sm:$0xff]  }
  0x4f   :  { %1662 = vmatprep.subr.bf16.mxu0 %v4276_v0 }
  0x50   :  { %3824 = vmatpush3.bf16.msra.mxu1 %v4105_v33  ;;  %v4131_v33 = vld [vmem:[%s5953_s0 + $0x374] ss:$20 sps:$4 sm:$0xff]  }
  0x51   :  { %1414 = vmatmul.mubr.bf16.gmra.mrb[8].mxu0 %v4047_v35  ;;  %1478 = vmatmul.mubr.bf16.gmra.mrb[8].mxu1 %v4048_v36  ;;  %v4135_v35 = vld [vmem:[%s5953_s0 + $0x370] ss:$20 sps:$4 sm:$0xff]   ;;  %v4136_v36 = vld [vmem:[%s5953_s0 + $0xf8] ss:$20 sps:$4 sm:$0xff]  }
  0x52   :  { %1663 = vmatpush1.bf16.msra.mxu0 %v4049_v37  ;;  %1421 = vmatprep.mubr.bf16.mxu0 %v4051_v38  ;;  %v4137_v37 = vld [vmem:[%s5953_s0 + $0x39c] ss:$20 sps:$4 sm:$0xff]   ;;  %v4139_v38 = vld [vmem:[%s5953_s0 + $0x124] ss:$20 sps:$4 sm:$0xff]  }
  0x53   :  { %1664 = vmatprep.subr.bf16.mxu0 %v4276_v0  ;;  %1485 = vmatprep.mubr.bf16.mxu1 %v4053_v39  ;;  %v4141_v39 = vld [vmem:[%s5953_s0 + $0x398] ss:$20 sps:$4 sm:$0xff]  }
  0x54   :  { %3825 = vmatprep.subr.bf16.mxu1 %v4124_v40 }
  0x55   :  { %3826 = vmatpush3.bf16.msra.mxu1 %v4124_v40  ;;  %v4142_v40 = vld [vmem:[%s5953_s0 + $0x120] ss:$20 sps:$4 sm:$0xff]  }
  0x56   :  { %1665 = vmatpush1.bf16.msra.mxu0 %v4050_v41  ;;  %3827 = vmatprep.subr.bf16.mxu1 %v4143_v42  ;;  %v4144_v41 = vld [vmem:[%s5953_s0 + $0x3c4] ss:$20 sps:$4 sm:$0xff]  }
  0x57   :  { %1666 = vmatprep.subr.bf16.mxu0 %v4276_v0 }
  0x59   :  { %1422 = vmatmul.mubr.bf16.gmra.mrb[12].mxu0 %v4055_v43  ;;  %1486 = vmatmul.mubr.bf16.gmra.mrb[12].mxu1 %v4056_v44  ;;  %v4148_v43 = vld [vmem:[%s5953_s0 + $0x3c0] ss:$20 sps:$4 sm:$0xff]   ;;  %v4149_v44 = vld [vmem:[%s5953_s0 + $0x148] ss:$20 sps:$4 sm:$0xff]  }
  0x5a   :  { %1667 = vmatpush1.bf16.msra.mxu0 %v4057_v45  ;;  %1429 = vmatprep.mubr.bf16.mxu0 %v4060_v46  ;;  %v4150_v45 = vld [vmem:[%s5953_s0 + $0x3ec] ss:$20 sps:$4 sm:$0xff]   ;;  %v4152_v46 = vld [vmem:[%s5953_s0 + $0x174] ss:$20 sps:$4 sm:$0xff]  }
  0x5b   :  { %1668 = vmatprep.subr.bf16.mxu0 %v4276_v0  ;;  %1493 = vmatprep.mubr.bf16.mxu1 %v4062_v47  ;;  %v4154_v47 = vld [vmem:[%s5953_s0 + $0x3e8] ss:$20 sps:$4 sm:$0xff]  }
  0x5c   :  { %3828 = vmatpush3.bf16.msra.mxu1 %v4143_v42  ;;  %v4146_v42 = vld [vmem:[%s5953_s0 + $0x14c] ss:$20 sps:$4 sm:$0xff]  }
  0x5d   :  { %3829 = vmatprep.subr.bf16.mxu1 %v4162_v48 }
  0x5e   :  { %1669 = vmatpush1.bf16.msra.mxu0 %v4059_v49  ;;  %v4156_v49 = vld [vmem:[%s5953_s0 + $0x414] ss:$20 sps:$4 sm:$0xff]  }
  0x5f   :  { %1670 = vmatprep.subr.bf16.mxu0 %v4276_v0 }
  0x60   :  { %3830 = vmatpush3.bf16.msra.mxu1 %v4162_v48  ;;  %v4155_v48 = vld [vmem:[%s5953_s0 + $0x170] ss:$20 sps:$4 sm:$0xff]  }
  0x61   :  { %1430 = vmatmul.mubr.bf16.gmra.mrb[16].mxu0 %v4064_v50  ;;  %1494 = vmatmul.mubr.bf16.gmra.mrb[16].mxu1 %v4065_v51  ;;  %v4158_v50 = vld [vmem:[%s5953_s0 + $0x19c] ss:$20 sps:$4 sm:$0xff]  }
  0x62   :  { %1671 = vmatpush1.bf16.msra.mxu0 %v4066_v52  ;;  %1437 = vmatprep.mubr.bf16.mxu0 %v4068_v53  ;;  %v4160_v51 = vld [vmem:[%s5953_s0 + $0x410] ss:$20 sps:$4 sm:$0xff]   ;;  %v4161_v52 = vld [vmem:[%s5953_s0 + $0x198] ss:$20 sps:$4 sm:$0xff]  }
  0x63   :  { %1672 = vmatprep.subr.bf16.mxu0 %v4276_v0  ;;  %1501 = vmatprep.mubr.bf16.mxu1 %v4070_v54  ;;  %v4163_v53 = vld [vmem:[%s5953_s0 + $0x43c] ss:$20 sps:$4 sm:$0xff]   ;;  %v4165_v54 = vld [vmem:[%s5953_s0 + $0x1c4] ss:$20 sps:$4 sm:$0xff]  }
  0x64   :  { %3831 = vmatprep.subr.bf16.mxu1 %v4181_v61 }
  0x65   :  { %3832 = vmatpush3.bf16.msra.mxu1 %v4181_v61  ;;  %v4175_v61 = vld [vmem:[%s5953_s0 + $0x48c] ss:$20 sps:$4 sm:$0xff]  }
  0x66   :  { %1673 = vmatpush1.bf16.msra.mxu0 %v4067_v55  ;;  %v4167_v55 = vld [vmem:[%s5953_s0 + $0x438] ss:$20 sps:$4 sm:$0xff]  }
  0x67   :  { %1674 = vmatprep.subr.bf16.mxu0 %v4276_v0 }
  0x69   :  { %1438 = vmatmul.mubr.bf16.gmra.mrb[20].mxu0 %v4072_v56  ;;  %1502 = vmatmul.mubr.bf16.gmra.mrb[20].mxu1 %v4073_v57  ;;  %v4168_v56 = vld [vmem:[%s5953_s0 + $0x1c0] ss:$20 sps:$4 sm:$0xff]   ;;  %v4169_v57 = vld [vmem:[%s5953_s0 + $0x464] ss:$20 sps:$4 sm:$0xff]  }
  0x6a   :  { %1675 = vmatpush1.bf16.msra.mxu0 %v4074_v58  ;;  %1445 = vmatprep.mubr.bf16.mxu0 %v4076_v59  ;;  %v4171_v58 = vld [vmem:[%s5953_s0 + $0x1ec] ss:$20 sps:$4 sm:$0xff]  }
  0x6b   :  { %1676 = vmatprep.subr.bf16.mxu0 %v4276_v0  ;;  %1509 = vmatprep.mubr.bf16.mxu1 %v4078_v60  ;;  %v4173_v59 = vld [vmem:[%s5953_s0 + $0x460] ss:$20 sps:$4 sm:$0xff]   ;;  %v4174_v60 = vld [vmem:[%s5953_s0 + $0x1e8] ss:$20 sps:$4 sm:$0xff]  }
  0x6e   :  { %1677 = vmatpush1.bf16.msra.mxu0 %v4075_v62  ;;  %v4177_v62 = vld [vmem:[%s5953_s0 + $0x214] ss:$20 sps:$4 sm:$0xff]  }
  0x6f   :  { %1678 = vmatprep.subr.bf16.mxu0 %v4276_v0 }
  0x71   :  { %1446 = vmatmul.mubr.bf16.gmra.mrb[24].mxu0 %v4080_v63  ;;  %1510 = vmatmul.mubr.bf16.gmra.mrb[24].mxu1 %v4081_v1  ;;  %v4179_v63 = vld [vmem:[%s5953_s0 + $0x488] ss:$20 sps:$4 sm:$0xff]   ;;  %v4180_v1 = vld [vmem:[%s5953_s0 + $0x210] ss:$20 sps:$4 sm:$0xff]  }
  0x72   :  { %1679 = vmatpush1.bf16.msra.mxu0 %v4082_v2  ;;  %1453 = vmatprep.mubr.bf16.mxu0 %v4085_v3  ;;  %v4182_v2 = vld [vmem:[%s5953_s0 + $0x4b4] ss:$20 sps:$4 sm:$0xff]   ;;  %v4184_v3 = vld [vmem:[%s5953_s0 + $0x23c] ss:$20 sps:$4 sm:$0xff]  }
  0x73   :  { %1680 = vmatprep.subr.bf16.mxu0 %v4276_v0  ;;  %1517 = vmatprep.mubr.bf16.mxu1 %v4087_v4  ;;  %v4186_v4 = vld [vmem:[%s5953_s0 + $0x4b0] ss:$20 sps:$4 sm:$0xff]  }
  0x76   :  { %1681 = vmatpush1.bf16.msra.mxu0 %v4084_v5  ;;  %v4187_v5 = vld [vmem:[%s5953_s0 + $0x238] ss:$20 sps:$4 sm:$0xff]  }
  0x77   :  { %1682 = vmatprep.subr.bf16.mxu0 %v4276_v0 }
  0x79   :  { %1454 = vmatmul.mubr.bf16.gmra.mrb[28].mxu0 %v4089_v6  ;;  %1518 = vmatmul.mubr.bf16.gmra.mrb[28].mxu1 %v4090_v7  ;;  %v4188_v6 = vld [vmem:[%s5953_s0 + $0x4dc] ss:$20 sps:$4 sm:$0xff]   ;;  %v4190_v7 = vld [vmem:[%s5953_s0 + $0x264] ss:$20 sps:$4 sm:$0xff]  }
  0x7a   :  { %1683 = vmatpush1.bf16.msra.mxu0 %v4091_v8  ;;  %1525 = vmatprep.mubr.bf16.mxu1 %v4093_v9  ;;  %v4192_v8 = vld [vmem:[%s5953_s0 + $0x4d8] ss:$20 sps:$4 sm:$0xff]   ;;  %v4193_v9 = vld [vmem:[%s5953_s0 + $0x260] ss:$20 sps:$4 sm:$0xff]  }
  0x7b   :  { %1684 = vmatprep.subr.bf16.mxu0 %v4276_v0  ;;  %1686 = vmatprep.mubr.bf16.mxu0 %v4097_v10  ;;  %v4103_v0 = vld [vmem:[%s5953_s0 + $0x2a8] ss:$20 sps:$4 sm:$0xff]   ;;  %v4194_v10 = vld [vmem:[%s5953_s0 + $0x28c] ss:$20 sps:$4 sm:$0xff]  }
  0x7e   :  { %1685 = vmatpush1.bf16.msra.mxu0 %v4092_v11  ;;  %v4196_v11 = vld [vmem:[%s5953_s0 + $0x10] ss:$20 sps:$4 sm:$0xff]  }
  0x81   :  { %1526 = vmatmul.mubr.bf16.gmra.mrb[32].mxu1 %v4098_v13  ;;  %1687 = vmatmul.mubr.bf16.vlgmr.msra.gmra.mrb[0].mxu0 %v4095_v12  ;;  %v4197_v12 = vld [vmem:[%s5953_s0 + $0x288] ss:$20 sps:$4 sm:$0xff]   ;;  %v4198_v13 = vld [vmem:[%s5953_s0 + $0x38] ss:$20 sps:$4 sm:$0xff]  }
  0x82   :  { %1533 = vmatprep.mubr.bf16.mxu1 %v4099_v14  ;;  %1694 = vmatprep.mubr.bf16.mxu0 %v4101_v15  ;;  %v4199_v14 = vld [vmem:[%s5953_s0 + $0x2b4] ss:$20 sps:$4 sm:$0xff]  }
  0x83   :  { %v4201_v15 = vld [vmem:[%s5953_s0 + $0x60] ss:$20 sps:$4 sm:$0xff]  }
  0x89   :  { %1534 = vmatmul.mubr.bf16.gmra.mrb[36].mxu1 %v4103_v0  ;;  %1695 = vmatmul.mubr.bf16.gmra.mrb[4].mxu0 %v4104_v16  ;;  %v4202_v0 = vld [vmem:[%s5953_s0 + $0x2b0] ss:$20 sps:$4 sm:$0xff]   ;;  %v4203_v16 = vld [vmem:[%s5953_s0 + $0x88] ss:$20 sps:$4 sm:$0xff]  }
  0x8a   :  { %1541 = vmatprep.mubr.bf16.mxu1 %v4106_v17  ;;  %1702 = vmatprep.mubr.bf16.mxu0 %v4108_v18  ;;  %v4204_v17 = vld [vmem:[%s5953_s0 + $0x2dc] ss:$20 sps:$4 sm:$0xff]  }
  0x8b   :  { %v4206_v18 = vld [vmem:[%s5953_s0 + $0xb0] ss:$20 sps:$4 sm:$0xff]  }
  0x91   :  { %1542 = vmatmul.mubr.bf16.gmra.mrb[40].mxu1 %v4110_v19  ;;  %1703 = vmatmul.mubr.bf16.gmra.mrb[8].mxu0 %v4111_v20  ;;  %v4207_v19 = vld [vmem:[%s5953_s0 + $0x2d8] ss:$20 sps:$4 sm:$0xff]  }
  0x92   :  { %1549 = vmatprep.mubr.bf16.mxu1 %v4112_v21  ;;  %1710 = vmatprep.mubr.bf16.mxu0 %v4114_v22  ;;  %v4208_v20 = vld [vmem:[%s5953_s0 + $0xd8] ss:$20 sps:$4 sm:$0xff]   ;;  %v4211_v22 = vld [vmem:[%s5953_s0 + $0x100] ss:$20 sps:$4 sm:$0xff]  }
  0x93   :  { %v4209_v21 = vld [vmem:[%s5953_s0 + $0x304] ss:$20 sps:$4 sm:$0xff]  }
  0x99   :  { %1550 = vmatmul.mubr.bf16.gmra.mrb[44].mxu1 %v4116_v23  ;;  %1711 = vmatmul.mubr.bf16.gmra.mrb[12].mxu0 %v4117_v24 }
  0x9a   :  { %1557 = vmatprep.mubr.bf16.mxu1 %v4118_v25  ;;  %1718 = vmatprep.mubr.bf16.mxu0 %v4120_v26  ;;  %v4212_v25 = vld [vmem:[%s5953_s0 + $0x300] ss:$20 sps:$4 sm:$0xff]   ;;  %v4213_v26 = vld [vmem:[%s5953_s0 + $0x128] ss:$20 sps:$4 sm:$0xff]  }
  0xa1   :  { %1558 = vmatmul.mubr.bf16.gmra.mrb[48].mxu1 %v4122_v27  ;;  %1719 = vmatmul.mubr.bf16.gmra.mrb[16].mxu0 %v4123_v28  ;;  %v4214_v28 = vld [vmem:[%s5953_s0 + $0x32c] ss:$20 sps:$4 sm:$0xff]  }
  0xa2   :  { %1565 = vmatprep.mubr.bf16.mxu1 %v4125_v29  ;;  %1726 = vmatprep.mubr.bf16.mxu0 %v4127_v30  ;;  %v4216_v29 = vld [vmem:[%s5953_s0 + $0x150] ss:$20 sps:$4 sm:$0xff]  }
  0xa9   :  { %1566 = vmatmul.mubr.bf16.gmra.mrb[52].mxu1 %v4129_v31  ;;  %1727 = vmatmul.mubr.bf16.gmra.mrb[20].mxu0 %v4130_v32 }
  0xaa   :  { %1573 = vmatprep.mubr.bf16.mxu1 %v4131_v33  ;;  %1734 = vmatprep.mubr.bf16.mxu0 %v4133_v34  ;;  %v4217_v33 = vld [vmem:[%s5953_s0 + $0x328] ss:$20 sps:$4 sm:$0xff]   ;;  %v4218_v34 = vld [vmem:[%s5953_s0 + $0x178] ss:$20 sps:$4 sm:$0xff]  }
  0xb1   :  { %1574 = vmatmul.mubr.bf16.gmra.mrb[56].mxu1 %v4135_v35  ;;  %1735 = vmatmul.mubr.bf16.gmra.mrb[24].mxu0 %v4136_v36  ;;  %v4219_v36 = vld [vmem:[%s5953_s0 + $0x354] ss:$20 sps:$4 sm:$0xff]  }
  0xb2   :  { %1581 = vmatprep.mubr.bf16.mxu1 %v4137_v37  ;;  %1742 = vmatprep.mubr.bf16.mxu0 %v4139_v38  ;;  %v4221_v37 = vld [vmem:[%s5953_s0 + $0x1a0] ss:$20 sps:$4 sm:$0xff]  }
  0xb9   :  { %1582 = vmatmul.mubr.bf16.gmra.mrb[60].mxu1 %v4141_v39  ;;  %1743 = vmatmul.mubr.bf16.gmra.mrb[28].mxu0 %v4142_v40 }
  0xba   :  { %1589 = vmatprep.mubr.bf16.mxu1 %v4144_v41  ;;  %1750 = vmatprep.mubr.bf16.mxu0 %v4146_v42  ;;  %v4222_v41 = vld [vmem:[%s5953_s0 + $0x350] ss:$20 sps:$4 sm:$0xff]   ;;  %v4223_v42 = vld [vmem:[%s5953_s0 + $0x1c8] ss:$20 sps:$4 sm:$0xff]  }
  0xc1   :  { %1590 = vmatmul.mubr.bf16.gmra.mrb[64].mxu1 %v4148_v43  ;;  %1751 = vmatmul.mubr.bf16.gmra.mrb[32].mxu0 %v4149_v44  ;;  %v4224_v44 = vld [vmem:[%s5953_s0 + $0x37c] ss:$20 sps:$4 sm:$0xff]  }
  0xc2   :  { %1597 = vmatprep.mubr.bf16.mxu1 %v4150_v45  ;;  %1758 = vmatprep.mubr.bf16.mxu0 %v4152_v46  ;;  %v4226_v45 = vld [vmem:[%s5953_s0 + $0x1f0] ss:$20 sps:$4 sm:$0xff]  }
  0xc9   :  { %1598 = vmatmul.mubr.bf16.gmra.mrb[68].mxu1 %v4154_v47  ;;  %1759 = vmatmul.mubr.bf16.gmra.mrb[36].mxu0 %v4155_v48 }
  0xca   :  { %1605 = vmatprep.mubr.bf16.mxu1 %v4156_v49  ;;  %1766 = vmatprep.mubr.bf16.mxu0 %v4158_v50  ;;  %v4227_v49 = vld [vmem:[%s5953_s0 + $0x378] ss:$20 sps:$4 sm:$0xff]  }
  0xcb   :  { %v4228_v50 = vld [vmem:[%s5953_s0 + $0x218] ss:$20 sps:$4 sm:$0xff]  }
  0xd1   :  { %1606 = vmatmul.mubr.bf16.gmra.mrb[72].mxu1 %v4160_v51  ;;  %1767 = vmatmul.mubr.bf16.gmra.mrb[40].mxu0 %v4161_v52  ;;  %v4229_v52 = vld [vmem:[%s5953_s0 + $0x3a4] ss:$20 sps:$4 sm:$0xff]  }
  0xd2   :  { %1613 = vmatprep.mubr.bf16.mxu1 %v4163_v53  ;;  %1774 = vmatprep.mubr.bf16.mxu0 %v4165_v54  ;;  %v4231_v53 = vld [vmem:[%s5953_s0 + $0x240] ss:$20 sps:$4 sm:$0xff]  }
  0xd9   :  { %1614 = vmatmul.mubr.bf16.gmra.mrb[76].mxu1 %v4167_v55  ;;  %1775 = vmatmul.mubr.bf16.gmra.mrb[44].mxu0 %v4168_v56 }
  0xda   :  { %1621 = vmatprep.mubr.bf16.mxu1 %v4169_v57  ;;  %1782 = vmatprep.mubr.bf16.mxu0 %v4171_v58  ;;  %v4232_v57 = vld [vmem:[%s5953_s0 + $0x3a0] ss:$20 sps:$4 sm:$0xff]   ;;  %v4233_v58 = vld [vmem:[%s5953_s0 + $0x268] ss:$20 sps:$4 sm:$0xff]  }
  0xe1   :  { %1622 = vmatmul.mubr.bf16.gmra.mrb[80].mxu1 %v4173_v59  ;;  %1783 = vmatmul.mubr.bf16.gmra.mrb[48].mxu0 %v4174_v60  ;;  %v4234_v60 = vld [vmem:[%s5953_s0 + $0x3cc] ss:$20 sps:$4 sm:$0xff]  }
  0xe2   :  { %1629 = vmatprep.mubr.bf16.mxu1 %v4175_v61  ;;  %1790 = vmatprep.mubr.bf16.mxu0 %v4177_v62  ;;  %v4236_v61 = vld [vmem:[%s5953_s0 + $0x290] ss:$20 sps:$4 sm:$0xff]  }
  0xe9   :  { %1630 = vmatmul.mubr.bf16.gmra.mrb[84].mxu1 %v4179_v63  ;;  %1791 = vmatmul.mubr.bf16.gmra.mrb[52].mxu0 %v4180_v1 }
  0xea   :  { %1637 = vmatprep.mubr.bf16.mxu1 %v4182_v2  ;;  %1798 = vmatprep.mubr.bf16.mxu0 %v4184_v3  ;;  %v4237_v2 = vld [vmem:[%s5953_s0 + $0x3c8] ss:$20 sps:$4 sm:$0xff]   ;;  %v4238_v3 = vld [vmem:[%s5953_s0 + $0x2b8] ss:$20 sps:$4 sm:$0xff]  }
  0xf1   :  { %1638 = vmatmul.mubr.bf16.gmra.mrb[88].mxu1 %v4186_v4  ;;  %1799 = vmatmul.mubr.bf16.gmra.mrb[56].mxu0 %v4187_v5  ;;  %v4239_v5 = vld [vmem:[%s5953_s0 + $0x3f4] ss:$20 sps:$4 sm:$0xff]  }
  0xf2   :  { %1645 = vmatprep.mubr.bf16.mxu1 %v4188_v6  ;;  %1806 = vmatprep.mubr.bf16.mxu0 %v4190_v7  ;;  %v4241_v6 = vld [vmem:[%s5953_s0 + $0x2e0] ss:$20 sps:$4 sm:$0xff]  }
  0xf9   :  { %1646 = vmatmul.mubr.bf16.gmra.mrb[92].mxu1 %v4192_v8  ;;  %1807 = vmatmul.mubr.bf16.gmra.mrb[60].mxu0 %v4193_v9 }
  0xfa   :  { %1814 = vmatprep.mubr.bf16.mxu0 %v4194_v10  ;;  %3833 = vmatprep.mubr.bf16.mxu1 %v4196_v11  ;;  %v4242_v10 = vld [vmem:[%s5953_s0 + $0x3f0] ss:$20 sps:$4 sm:$0xff]   ;;  %v4243_v11 = vld [vmem:[%s5953_s0 + $0x308] ss:$20 sps:$4 sm:$0xff]  }
 0x101   :  { %1815 = vmatmul.mubr.bf16.gmra.mrb[64].mxu0 %v4197_v12  ;;  %3834 = vmatmul.mubr.bf16.vlgmr.msra.gmra.mrb[96].mxu1 %v4198_v13  ;;  %v4244_v13 = vld [vmem:[%s5953_s0 + $0x41c] ss:$20 sps:$4 sm:$0xff]  }
 0x102   :  { %1822 = vmatprep.mubr.bf16.mxu0 %v4199_v14  ;;  %3837 = vmatprep.mubr.bf16.mxu1 %v4201_v15  ;;  %v4246_v14 = vld [vmem:[%s5953_s0 + $0x330] ss:$20 sps:$4 sm:$0xff]  }
 0x109   :  { %1823 = vmatmul.mubr.bf16.gmra.mrb[68].mxu0 %v4202_v0  ;;  %3838 = vmatmul.mubr.bf16.gmra.mrb[100].mxu1 %v4203_v16 }
 0x10a   :  { %1830 = vmatprep.mubr.bf16.mxu0 %v4204_v17  ;;  %3841 = vmatprep.mubr.bf16.mxu1 %v4206_v18  ;;  %v4247_v17 = vld [vmem:[%s5953_s0 + $0x418] ss:$20 sps:$4 sm:$0xff]  }
 0x10b   :  { %v4248_v18 = vld [vmem:[%s5953_s0 + $0x358] ss:$20 sps:$4 sm:$0xff]  }
 0x111   :  { %1831 = vmatmul.mubr.bf16.gmra.mrb[72].mxu0 %v4207_v19  ;;  %3842 = vmatmul.mubr.bf16.gmra.mrb[104].mxu1 %v4208_v20  ;;  %v4249_v20 = vld [vmem:[%s5953_s0 + $0x444] ss:$20 sps:$4 sm:$0xff]  }
 0x112   :  { %1838 = vmatprep.mubr.bf16.mxu0 %v4209_v21  ;;  %3845 = vmatprep.mubr.bf16.mxu1 %v4211_v22  ;;  %v4251_v21 = vld [vmem:[%s5953_s0 + $0x380] ss:$20 sps:$4 sm:$0xff]  }
 0x114   :  { %v4805_v23 = vpop.f32.mrb[0].mxu1 }
 0x115   :  { %v1465_v24 = vpop.f32.mrb[1].mxu1 }
 0x116   :  { %v4813_v27 = vpop.f32.mrb[2].mxu1 }
 0x117   :  { %v1468_v30 = vpop.f32.mrb[3].mxu1 }
 0x118   :  { %v4253_v30 = vld [vmem:[%s5953_s0 + $0x3a8] ss:$20 sps:$4 sm:$0xff]  }
 0x119   :  { %1839 = vmatmul.mubr.bf16.gmra.mrb[76].mxu0 %v4212_v25  ;;  %3846 = vmatmul.mubr.bf16.gmra.mrb[108].mxu1 %v4213_v26 }
 0x11a   :  { %1846 = vmatprep.mubr.bf16.mxu0 %v4214_v28  ;;  %3849 = vmatprep.mubr.bf16.mxu1 %v4216_v29  ;;  %v4252_v29 = vld [vmem:[%s5953_s0 + $0x440] ss:$20 sps:$4 sm:$0xff]  }
 0x11c   :  { %v4821_v31 = vpop.f32.mrb[4].mxu1 }
 0x11d   :  { %v1473_v32 = vpop.f32.mrb[5].mxu1 }
 0x11e   :  { %v4829_v35 = vpop.f32.mrb[6].mxu1 }
 0x11f   :  { %v1476_v38 = vpop.f32.mrb[7].mxu1 }
 0x121   :  { %1847 = vmatmul.mubr.bf16.gmra.mrb[80].mxu0 %v4217_v33  ;;  %3850 = vmatmul.mubr.bf16.gmra.mrb[112].mxu1 %v4218_v34  ;;  %v4254_v34 = vld [vmem:[%s5953_s0 + $0x46c] ss:$20 sps:$4 sm:$0xff]  }
 0x122   :  { %1854 = vmatprep.mubr.bf16.mxu0 %v4219_v36  ;;  %3853 = vmatprep.mubr.bf16.mxu1 %v4221_v37  ;;  %v4256_v36 = vld [vmem:[%s5953_s0 + $0x3d0] ss:$20 sps:$4 sm:$0xff]  }
 0x124   :  { %v4837_v39 = vpop.f32.mrb[8].mxu1 }
 0x125   :  { %v1481_v40 = vpop.f32.mrb[9].mxu1 }
 0x126   :  { %v4845_v43 = vpop.f32.mrb[10].mxu1 }
 0x127   :  { %v1484_v46 = vpop.f32.mrb[11].mxu1 }
 0x128   :  { %v4258_v46 = vld [vmem:[%s5953_s0 + $0x3f8] ss:$20 sps:$4 sm:$0xff]  }
 0x129   :  { %1855 = vmatmul.mubr.bf16.gmra.mrb[84].mxu0 %v4222_v41  ;;  %3854 = vmatmul.mubr.bf16.gmra.mrb[116].mxu1 %v4223_v42 }
 0x12a   :  { %1862 = vmatprep.mubr.bf16.mxu0 %v4224_v44  ;;  %3857 = vmatprep.mubr.bf16.mxu1 %v4226_v45  ;;  %v4257_v45 = vld [vmem:[%s5953_s0 + $0x468] ss:$20 sps:$4 sm:$0xff]  }
 0x12c   :  { %v4853_v47 = vpop.f32.mrb[12].mxu1 }
 0x12d   :  { %v1489_v48 = vpop.f32.mrb[13].mxu1 }
 0x12e   :  { %v4861_v51 = vpop.f32.mrb[14].mxu1 }
 0x12f   :  { %v1492_v54 = vpop.f32.mrb[15].mxu1 }
 0x131   :  { %1863 = vmatmul.mubr.bf16.gmra.mrb[88].mxu0 %v4227_v49  ;;  %3858 = vmatmul.mubr.bf16.gmra.mrb[120].mxu1 %v4228_v50  ;;  %v4259_v50 = vld [vmem:[%s5953_s0 + $0x494] ss:$20 sps:$4 sm:$0xff]  }
 0x132   :  { %1870 = vmatprep.mubr.bf16.mxu0 %v4229_v52  ;;  %3861 = vmatprep.mubr.bf16.mxu1 %v4231_v53  ;;  %v4261_v52 = vld [vmem:[%s5953_s0 + $0x420] ss:$20 sps:$4 sm:$0xff]  }
 0x134   :  { %v4869_v55 = vpop.f32.mrb[16].mxu1 }
 0x135   :  { %v1497_v56 = vpop.f32.mrb[17].mxu1 }
 0x136   :  { %v4877_v59 = vpop.f32.mrb[18].mxu1 }
 0x137   :  { %v1500_v62 = vpop.f32.mrb[19].mxu1 }
 0x138   :  { %v4263_v62 = vld [vmem:[%s5953_s0 + $0x448] ss:$20 sps:$4 sm:$0xff]  }
 0x139   :  { %1871 = vmatmul.mubr.bf16.gmra.mrb[92].mxu0 %v4232_v57  ;;  %3862 = vmatmul.mubr.bf16.gmra.mrb[124].mxu1 %v4233_v58 }
 0x13a   :  { %1878 = vmatprep.mubr.bf16.mxu0 %v4234_v60  ;;  %3865 = vmatprep.mubr.bf16.mxu1 %v4236_v61  ;;  %v4262_v61 = vld [vmem:[%s5953_s0 + $0x490] ss:$20 sps:$4 sm:$0xff]  }
 0x13c   :  { %v4885_v63 = vpop.f32.mrb[20].mxu1 }
 0x13d   :  { %v1505_v1 = vpop.f32.mrb[21].mxu1 }
 0x13e   :  { %v4893_v4 = vpop.f32.mrb[22].mxu1 }
 0x13f   :  { %v1508_v7 = vpop.f32.mrb[23].mxu1 }
 0x141   :  { %1879 = vmatmul.mubr.bf16.gmra.mrb[96].mxu0 %v4237_v2  ;;  %3866 = vmatmul.mubr.bf16.gmra.mrb[128].mxu1 %v4238_v3  ;;  %v4264_v3 = vld [vmem:[%s5953_s0 + $0x4bc] ss:$20 sps:$4 sm:$0xff]  }
 0x142   :  { %1886 = vmatprep.mubr.bf16.mxu0 %v4239_v5  ;;  %3869 = vmatprep.mubr.bf16.mxu1 %v4241_v6  ;;  %v4266_v5 = vld [vmem:[%s5953_s0 + $0x470] ss:$20 sps:$4 sm:$0xff]  }
 0x144   :  { %v4901_v8 = vpop.f32.mrb[24].mxu1 }
 0x145   :  { %v1513_v9 = vpop.f32.mrb[25].mxu1 }
 0x146   :  { %v4909_v12 = vpop.f32.mrb[26].mxu1 }
 0x147   :  { %v1516_v15 = vpop.f32.mrb[27].mxu1 }
 0x148   :  { %v4268_v15 = vld [vmem:[%s5953_s0 + $0x498] ss:$20 sps:$4 sm:$0xff]  }
 0x149   :  { %1887 = vmatmul.mubr.bf16.gmra.mrb[100].mxu0 %v4242_v10  ;;  %3870 = vmatmul.mubr.bf16.gmra.mrb[132].mxu1 %v4243_v11 }
 0x14a   :  { %1894 = vmatprep.mubr.bf16.mxu0 %v4244_v13  ;;  %3873 = vmatprep.mubr.bf16.mxu1 %v4246_v14  ;;  %v4267_v14 = vld [vmem:[%s5953_s0 + $0x4b8] ss:$20 sps:$4 sm:$0xff]  }
 0x14c   :  { %v4917_v0 = vpop.f32.mrb[28].mxu1 }
 0x14d   :  { %v1521_v16 = vpop.f32.mrb[29].mxu1 }
 0x14e   :  { %v4925_v19 = vpop.f32.mrb[30].mxu1 }
 0x14f   :  { %v1524_v22 = vpop.f32.mrb[31].mxu1 }
 0x151   :  { %1895 = vmatmul.mubr.bf16.gmra.mrb[104].mxu0 %v4247_v17  ;;  %3874 = vmatmul.mubr.bf16.gmra.mrb[136].mxu1 %v4248_v18  ;;  %v4269_v18 = vld [vmem:[%s5953_s0 + $0x4e4] ss:$20 sps:$4 sm:$0xff]  }
 0x152   :  { %1902 = vmatprep.mubr.bf16.mxu0 %v4249_v20  ;;  %3877 = vmatprep.mubr.bf16.mxu1 %v4251_v21  ;;  %v4271_v20 = vld [vmem:[%s5953_s0 + $0x4c0] ss:$20 sps:$4 sm:$0xff]  }
 0x154   :  { %v4933_v24 = vpop.f32.mrb[32].mxu1  ;;  %v4935_v25 = vpop.f32.mrb[0].mxu0 }
 0x155   :  { %v1529_v26 = vpop.f32.mrb[33].mxu1  ;;  %v1690_v28 = vpop.f32.mrb[1].mxu0 }
 0x156   :  { %v4943_v32 = vpop.f32.mrb[34].mxu1  ;;  %v4945_v33 = vpop.f32.mrb[2].mxu0 }
 0x157   :  { %v1532_v37 = vpop.f32.mrb[35].mxu1  ;;  %v1693_v38 = vpop.f32.mrb[3].mxu0 }
 0x159   :  { %1903 = vmatmul.mubr.bf16.gmra.mrb[108].mxu0 %v4252_v29  ;;  %3878 = vmatmul.mubr.bf16.gmra.mrb[140].mxu1 %v4253_v30 }
 0x15a   :  { %1910 = vmatprep.mubr.bf16.mxu0 %v4254_v34  ;;  %3881 = vmatprep.mubr.bf16.mxu1 %v4256_v36  ;;  %v4272_v34 = vld [vmem:[%s5953_s0 + $0x4e0] ss:$20 sps:$4 sm:$0xff]   ;;  %v4273_v36 = vld [vmem:[%s5953_s0 + $0x4e8] ss:$20 sps:$4 sm:$0xff]  }
 0x15c   :  { %v4953_v40 = vpop.f32.mrb[36].mxu1  ;;  %v4955_v41 = vpop.f32.mrb[4].mxu0 }
 0x15d   :  { %v1537_v42 = vpop.f32.mrb[37].mxu1  ;;  %v1698_v44 = vpop.f32.mrb[5].mxu0 }
 0x15e   :  { %v4963_v48 = vpop.f32.mrb[38].mxu1  ;;  %v4965_v49 = vpop.f32.mrb[6].mxu0 }
 0x15f   :  { %v1540_v53 = vpop.f32.mrb[39].mxu1  ;;  %v1701_v54 = vpop.f32.mrb[7].mxu0 }
 0x161   :  { %1911 = vmatmul.mubr.bf16.gmra.mrb[112].mxu0 %v4257_v45  ;;  %3882 = vmatmul.mubr.bf16.gmra.mrb[144].mxu1 %v4258_v46 }
 0x162   :  { %1918 = vmatprep.mubr.bf16.mxu0 %v4259_v50  ;;  %3885 = vmatprep.mubr.bf16.mxu1 %v4261_v52 }
 0x164   :  { %v4973_v56 = vpop.f32.mrb[40].mxu1  ;;  %v4975_v57 = vpop.f32.mrb[8].mxu0 }
 0x165   :  { %v1545_v58 = vpop.f32.mrb[41].mxu1  ;;  %v1706_v60 = vpop.f32.mrb[9].mxu0 }
 0x166   :  { %v4983_v1 = vpop.f32.mrb[42].mxu1  ;;  %v4985_v2 = vpop.f32.mrb[10].mxu0 }
 0x167   :  { %v1548_v6 = vpop.f32.mrb[43].mxu1  ;;  %v1709_v7 = vpop.f32.mrb[11].mxu0 }
 0x169   :  { %1919 = vmatmul.mubr.bf16.gmra.mrb[116].mxu0 %v4262_v61  ;;  %3886 = vmatmul.mubr.bf16.gmra.mrb[148].mxu1 %v4263_v62 }
 0x16a   :  { %1926 = vmatprep.mubr.bf16.mxu0 %v4264_v3  ;;  %3889 = vmatprep.mubr.bf16.mxu1 %v4266_v5 }
 0x16c   :  { %v4993_v9 = vpop.f32.mrb[44].mxu1  ;;  %v4995_v10 = vpop.f32.mrb[12].mxu0 }
 0x16d   :  { %v1553_v11 = vpop.f32.mrb[45].mxu1  ;;  %v1714_v13 = vpop.f32.mrb[13].mxu0 }
 0x16e   :  { %v5003_v16 = vpop.f32.mrb[46].mxu1  ;;  %v5005_v17 = vpop.f32.mrb[14].mxu0 }
 0x16f   :  { %v1556_v21 = vpop.f32.mrb[47].mxu1  ;;  %v1717_v22 = vpop.f32.mrb[15].mxu0 }
 0x171   :  { %1927 = vmatmul.mubr.bf16.gmra.mrb[120].mxu0 %v4267_v14  ;;  %3890 = vmatmul.mubr.bf16.gmra.mrb[152].mxu1 %v4268_v15 }
 0x172   :  { %1934 = vmatprep.mubr.bf16.mxu0 %v4269_v18  ;;  %3893 = vmatprep.mubr.bf16.mxu1 %v4271_v20 }
 0x174   :  { %v5013_v26 = vpop.f32.mrb[48].mxu1  ;;  %v5015_v28 = vpop.f32.mrb[16].mxu0 }
 0x175   :  { %v1561_v29 = vpop.f32.mrb[49].mxu1  ;;  %v1722_v30 = vpop.f32.mrb[17].mxu0 }
 0x176   :  { %v5023_v37 = vpop.f32.mrb[50].mxu1  ;;  %v5025_v38 = vpop.f32.mrb[18].mxu0 }
 0x177   :  { %v1564_v42 = vpop.f32.mrb[51].mxu1  ;;  %v1725_v44 = vpop.f32.mrb[19].mxu0 }
 0x179   :  { %1935 = vmatmul.mubr.bf16.gmra.mrb[124].mxu0 %v4272_v34  ;;  %3894 = vmatmul.mubr.bf16.gmra.mrb[156].mxu1 %v4273_v36 }
 0x17c   :  { %v5027_v45 = vpop.f32.mrb[52].mxu1  ;;  %v5029_v46 = vpop.f32.mrb[20].mxu0 }
 0x17d   :  { %v1569_v50 = vpop.f32.mrb[53].mxu1  ;;  %v1730_v52 = vpop.f32.mrb[21].mxu0 }
 0x17e   :  { %v5031_v53 = vpop.f32.mrb[54].mxu1  ;;  %v5033_v54 = vpop.f32.mrb[22].mxu0 }
 0x17f   :  { %v1572_v58 = vpop.f32.mrb[55].mxu1  ;;  %v1733_v60 = vpop.f32.mrb[23].mxu0 }
 0x184   :  { %v5035_v61 = vpop.f32.mrb[56].mxu1  ;;  %v5037_v62 = vpop.f32.mrb[24].mxu0 }
 0x185   :  { %v1577_v3 = vpop.f32.mrb[57].mxu1  ;;  %v1738_v5 = vpop.f32.mrb[25].mxu0 }
 0x186   :  { %v5039_v6 = vpop.f32.mrb[58].mxu1  ;;  %v5041_v7 = vpop.f32.mrb[26].mxu0 }
 0x187   :  { %v1580_v11 = vpop.f32.mrb[59].mxu1  ;;  %v1741_v13 = vpop.f32.mrb[27].mxu0 }
 0x18c   :  { %v5043_v14 = vpop.f32.mrb[60].mxu1  ;;  %v5045_v15 = vpop.f32.mrb[28].mxu0 }
 0x18d   :  { %v1585_v18 = vpop.f32.mrb[61].mxu1  ;;  %v1746_v20 = vpop.f32.mrb[29].mxu0 }
 0x18e   :  { %v5047_v21 = vpop.f32.mrb[62].mxu1  ;;  %v5049_v22 = vpop.f32.mrb[30].mxu0 }
 0x18f   :  { %v1588_v29 = vpop.f32.mrb[63].mxu1  ;;  %v1749_v30 = vpop.f32.mrb[31].mxu0 }
 0x194   :  { %v5051_v34 = vpop.f32.mrb[64].mxu1  ;;  %v1752_v36 = vpop.f32.mrb[32].mxu0 }
 0x195   :  { %5958 = vst [vmem:[#allocation3_spill] sm:$0xff] %v5051_v34  ;;  %v5054_v42 = vadd.f32 %v1752_v36, %v4805_v23  ;;  %v1593_v44 = vpop.f32.mrb[65].mxu1  ;;  %v1754_v50 = vpop.f32.mrb[33].mxu0 }
 0x196   :  { %v5056_v52 = vpop.f32.mrb[66].mxu1  ;;  %v1755_v58 = vpop.f32.mrb[34].mxu0 }
 0x197   :  { %5959 = vst [vmem:[#allocation4_spill] sm:$0xff] %v5056_v52  ;;  %v5059_v60 = vadd.f32 %v1755_v58, %v4813_v27  ;;  %v1596_v3 = vpop.f32.mrb[67].mxu1  ;;  %v1757_v5 = vpop.f32.mrb[35].mxu0 }
 0x19c   :  { %v5061_v11 = vpop.f32.mrb[68].mxu1  ;;  %v1760_v13 = vpop.f32.mrb[36].mxu0 }
 0x19d   :  { %5960 = vst [vmem:[#allocation5_spill] sm:$0xff] %v5061_v11  ;;  %v5064_v18 = vadd.f32 %v1760_v13, %v4821_v31  ;;  %v1601_v20 = vpop.f32.mrb[69].mxu1  ;;  %v1762_v29 = vpop.f32.mrb[37].mxu0 }
 0x19e   :  { %v5066_v23 = vpop.f32.mrb[70].mxu1  ;;  %v1763_v30 = vpop.f32.mrb[38].mxu0 }
 0x19f   :  { %5961 = vst [vmem:[#allocation6_spill] sm:$0xff] %v5066_v23  ;;  %v5069_v36 = vadd.f32 %v1763_v30, %v4829_v35  ;;  %v1604_v44 = vpop.f32.mrb[71].mxu1  ;;  %v1765_v50 = vpop.f32.mrb[39].mxu0 }
 0x1a4   :  { %v5071_v27 = vpop.f32.mrb[72].mxu1  ;;  %v1768_v58 = vpop.f32.mrb[40].mxu0 }
 0x1a5   :  { %5962 = vst [vmem:[#allocation7_spill] sm:$0xff] %v5071_v27  ;;  %v5074_v3 = vadd.f32 %v1768_v58, %v4837_v39  ;;  %v1609_v5 = vpop.f32.mrb[73].mxu1  ;;  %v1770_v11 = vpop.f32.mrb[41].mxu0 }
 0x1a6   :  { %v5076_v31 = vpop.f32.mrb[74].mxu1  ;;  %v1771_v13 = vpop.f32.mrb[42].mxu0 }
 0x1a7   :  { %5963 = vst [vmem:[#allocation8_spill] sm:$0xff] %v5076_v31  ;;  %v5079_v20 = vadd.f32 %v1771_v13, %v4845_v43  ;;  %v1612_v29 = vpop.f32.mrb[75].mxu1  ;;  %v1773_v23 = vpop.f32.mrb[43].mxu0 }
 0x1ac   :  { %v5081_v35 = vpop.f32.mrb[76].mxu1  ;;  %v1776_v30 = vpop.f32.mrb[44].mxu0 }
 0x1ad   :  { %5964 = vst [vmem:[#allocation9_spill] sm:$0xff] %v5081_v35  ;;  %v5084_v44 = vadd.f32 %v1776_v30, %v4853_v47  ;;  %v1617_v50 = vpop.f32.mrb[77].mxu1  ;;  %v1778_v27 = vpop.f32.mrb[45].mxu0 }
 0x1ae   :  { %v5086_v39 = vpop.f32.mrb[78].mxu1  ;;  %v1779_v58 = vpop.f32.mrb[46].mxu0 }
 0x1af   :  { %5965 = vst [vmem:[#allocation10_spill] sm:$0xff] %v5086_v39  ;;  %v5089_v11 = vadd.f32 %v1779_v58, %v4861_v51  ;;  %v1620_v5 = vpop.f32.mrb[79].mxu1  ;;  %v1781_v31 = vpop.f32.mrb[47].mxu0 }
 0x1b4   :  { %v5091_v43 = vpop.f32.mrb[80].mxu1  ;;  %v1784_v13 = vpop.f32.mrb[48].mxu0 }
 0x1b5   :  { %5966 = vst [vmem:[#allocation11_spill] sm:$0xff] %v5091_v43  ;;  %v5094_v23 = vadd.f32 %v1784_v13, %v4869_v55  ;;  %v1625_v29 = vpop.f32.mrb[81].mxu1  ;;  %v1786_v35 = vpop.f32.mrb[49].mxu0 }
 0x1b6   :  { %v5096_v47 = vpop.f32.mrb[82].mxu1  ;;  %v1787_v30 = vpop.f32.mrb[50].mxu0 }
 0x1b7   :  { %5967 = vst [vmem:[#allocation12_spill] sm:$0xff] %v5096_v47  ;;  %v5099_v27 = vadd.f32 %v1787_v30, %v4877_v59  ;;  %v1628_v50 = vpop.f32.mrb[83].mxu1  ;;  %v1789_v39 = vpop.f32.mrb[51].mxu0 }
 0x1bc   :  { %v5101_v51 = vpop.f32.mrb[84].mxu1  ;;  %v1792_v58 = vpop.f32.mrb[52].mxu0 }
 0x1bd   :  { %5968 = vst [vmem:[#allocation13_spill] sm:$0xff] %v5101_v51  ;;  %v5104_v31 = vadd.f32 %v1792_v58, %v4885_v63  ;;  %v1633_v5 = vpop.f32.mrb[85].mxu1  ;;  %v1794_v43 = vpop.f32.mrb[53].mxu0 }
 0x1be   :  { %v5106_v55 = vpop.f32.mrb[86].mxu1  ;;  %v1795_v13 = vpop.f32.mrb[54].mxu0 }
 0x1bf   :  { %5969 = vst [vmem:[#allocation14_spill] sm:$0xff] %v5106_v55  ;;  %v5109_v35 = vadd.f32 %v1795_v13, %v4893_v4  ;;  %v1636_v29 = vpop.f32.mrb[87].mxu1  ;;  %v1797_v47 = vpop.f32.mrb[55].mxu0 }
 0x1c4   :  { %v5111_v59 = vpop.f32.mrb[88].mxu1  ;;  %v1800_v30 = vpop.f32.mrb[56].mxu0 }
 0x1c5   :  { %5970 = vst [vmem:[#allocation15_spill] sm:$0xff] %v5111_v59  ;;  %v5114_v39 = vadd.f32 %v1800_v30, %v4901_v8  ;;  %v1641_v50 = vpop.f32.mrb[89].mxu1  ;;  %v1802_v51 = vpop.f32.mrb[57].mxu0 }
 0x1c6   :  { %v5116_v63 = vpop.f32.mrb[90].mxu1  ;;  %v1803_v58 = vpop.f32.mrb[58].mxu0 }
 0x1c7   :  { %5971 = vst [vmem:[#allocation16_spill] sm:$0xff] %v5116_v63  ;;  %v5119_v43 = vadd.f32 %v1803_v58, %v4909_v12  ;;  %v1644_v5 = vpop.f32.mrb[91].mxu1  ;;  %v1805_v55 = vpop.f32.mrb[59].mxu0 }
 0x1c9   :  { %5972 = vst [vmem:[#allocation17_spill] sm:$0xff] %v5119_v43 }
 0x1cc   :  { %v5121_v4 = vpop.f32.mrb[92].mxu1  ;;  %v1808_v13 = vpop.f32.mrb[60].mxu0 }
 0x1cd   :  { %5973 = vst [vmem:[#allocation18_spill] sm:$0xff] %v5121_v4  ;;  %v5124_v47 = vadd.f32 %v1808_v13, %v4917_v0  ;;  %v1649_v29 = vpop.f32.mrb[93].mxu1  ;;  %v1810_v59 = vpop.f32.mrb[61].mxu0 }
 0x1ce   :  { %v5126_v8 = vpop.f32.mrb[94].mxu1  ;;  %v1811_v30 = vpop.f32.mrb[62].mxu0 }
 0x1cf   :  { %5974 = vst [vmem:[#allocation19_spill] sm:$0xff] %v5126_v8  ;;  %v5129_v51 = vadd.f32 %v1811_v30, %v4925_v19  ;;  %v1652_v50 = vpop.f32.mrb[95].mxu1  ;;  %v1813_v63 = vpop.f32.mrb[63].mxu0 }
 0x1d4   :  { %v1816_v12 = vpop.f32.mrb[64].mxu0  ;;  %v3835_v58 = vpop.f32.mrb[96].mxu1 }
 0x1d5   :  { %v5132_v55 = vadd.f32 %v1816_v12, %v4933_v24  ;;  %v1986_v5 = vadd.f32 %v3835_v58, %v4955_v41  ;;  %v1818_v0 = vpop.f32.mrb[65].mxu0  ;;  %v1977_v13 = vpop.f32.mrb[97].mxu1 }
 0x1d6   :  { %v1978_v59 = vadd.f32 %v1977_v13, %v4935_v25  ;;  %v1819_v29 = vpop.f32.mrb[66].mxu0  ;;  %v3836_v8 = vpop.f32.mrb[98].mxu1  ;;  %v5148_v25 = vld [vmem:[%s5954_s2] ss:$0 sm:$0xff] }
 0x1d7   :  { %5975 = vst [vmem:[#allocation20_spill] sm:$0xff] %v5132_v55  ;;  %2239 = vst.msk [vmem:[#allocation2 + $0x10] sm:$0xff] %vm2236_vm0, %v1986_v5  ;;  %v5138_v19 = vadd.f32 %v1819_v29, %v4943_v32  ;;  %v1989_v63 = vadd.f32 %v3836_v8, %v4965_v49  ;;  %v1821_v30 = vpop.f32.mrb[67].mxu0  ;;  %v1980_v50 = vpop.f32.mrb[99].mxu1  ;;  %v3746_v32 = vld [vmem:[%s5955_s4 + $0x8] sm:$0xff]   ;;  %v3619_v8 = vld [vmem:[%s5955_s4] sm:$0xff]  }
 0x1d8   :  { %2237 = vst.msk [vmem:[#allocation2] sm:$0xff] %vm2236_vm0, %v1978_v59  ;;  %v1981_v24 = vadd.f32 %v1980_v50, %v4945_v33  ;;  %v5163_v13 = vld [vmem:[%s5956_s3] ss:$0 sm:$0xff]  ;;  %v3624_v50 = vunpack.c.l.bf16 %v3746_v32  ;;  %v3620_v4 = vunpack.c.l.bf16 %v3619_v8 }
 0x1d9   :  { %5976 = vst [vmem:[#allocation21_spill] sm:$0xff] %v5138_v19  ;;  %2240 = vst.msk [vmem:[#allocation2 + $0x18] sm:$0xff] %vm2236_vm0, %v1989_v63 }
 0x1da   :  { %2238 = vst.msk [vmem:[#allocation2 + $0x8] sm:$0xff] %vm2236_vm0, %v1981_v24 }
 0x1dc   :  { %v1824_v41 = vpop.f32.mrb[68].mxu0  ;;  %v3839_v49 = vpop.f32.mrb[100].mxu1 }
 0x1dd   :  { %v5157_v33 = vadd.f32 %v1824_v41, %v4953_v40  ;;  %v2002_v12 = vadd.f32 %v3839_v49, %v4995_v10  ;;  %v1826_v58 = vpop.f32.mrb[69].mxu0  ;;  %v1993_v5 = vpop.f32.mrb[101].mxu1 }
 0x1de   :  { %v2503_v0 = vld [vmem:[#allocation2 + $0x10] sm:$0xff]  ;;  %v1994_v59 = vadd.f32 %v1993_v5, %v4975_v57  ;;  %v1827_v29 = vpop.f32.mrb[70].mxu0  ;;  %v3840_v63 = vpop.f32.mrb[102].mxu1 }
 0x1df   :  { %5977 = vst [vmem:[#allocation22_spill] sm:$0xff] %v5157_v33  ;;  %v2574_v30 = vmul.f32 %v5148_v25, %v2503_v0  ;;  %v2501_v24 = vld [vmem:[#allocation2] sm:$0xff]  ;;  %2243 = vst.msk [vmem:[#allocation2 + $0x30] sm:$0xff] %vm2236_vm0, %v2002_v12  ;;  %v5169_v40 = vadd.f32 %v1827_v29, %v4963_v48  ;;  %v2005_v10 = vadd.f32 %v3840_v63, %v5005_v17  ;;  %v1829_v41 = vpop.f32.mrb[71].mxu0  ;;  %v1996_v49 = vpop.f32.mrb[103].mxu1  ;;  %v3625_v12 = vunpack.c.h.bf16 %v3746_v32  ;;  %v5180_v48 = vld [vmem:[%s5955_s4 + $0x18] sm:$0xff]  }
 0x1e0   :  { %v2572_v58 = vmul.f32 %v5148_v25, %v2501_v24  ;;  %v2504_v19 = vld [vmem:[#allocation2 + $0x18] sm:$0xff]  ;;  %2241 = vst.msk [vmem:[#allocation2 + $0x20] sm:$0xff] %vm2236_vm0, %v1994_v59  ;;  %v1997_v57 = vadd.f32 %v1996_v49, %v4985_v2  ;;  %v5185_v17 = vld [vmem:[%s5955_s4 + $0x10] sm:$0xff]   ;;  %v3621_v29 = vunpack.c.h.bf16 %v3619_v8  ;;  %v3632_v24 = vunpack.c.l.bf16 %v5180_v48 }
 0x1e1   :  { %5978 = vst [vmem:[#allocation23_spill] sm:$0xff] %v5169_v40  ;;  %v2645_v5 = vadd.f32 %v5163_v13, %v2574_v30  ;;  %v2575_v0 = vmul.f32 %v5148_v25, %v2504_v19  ;;  %v2502_v52 = vld [vmem:[#allocation2 + $0x8] sm:$0xff]  ;;  %2244 = vst.msk [vmem:[#allocation2 + $0x38] sm:$0xff] %vm2236_vm0, %v2005_v10  ;;  %v3628_v41 = vunpack.c.l.bf16 %v5185_v17 }
 0x1e2   :  { %v2643_v2 = vadd.f32 %v5163_v13, %v2572_v58  ;;  %v2573_v59 = vmul.f32 %v5148_v25, %v2502_v52  ;;  %2242 = vst.msk [vmem:[#allocation2 + $0x28] sm:$0xff] %vm2236_vm0, %v1997_v57 }
 0x1e3   :  { %v2837_v19 = vadd.f32 %v3624_v50, %v2645_v5  ;;  %v2646_v32 = vadd.f32 %v5163_v13, %v2575_v0 }
 0x1e4   :  { %v2835_v63 = vadd.f32 %v3620_v4, %v2643_v2  ;;  %v2644_v30 = vadd.f32 %v5163_v13, %v2573_v59  ;;  %v1832_v49 = vpop.f32.mrb[72].mxu0  ;;  %v3843_v10 = vpop.f32.mrb[104].mxu1  ;;  %v3633_v2 = vunpack.c.h.bf16 %v5180_v48 }
 0x1e5   :  { %v2901_v40 = vmax.f32 %v2837_v19, 0.0  ;;  %v2838_v58 = vadd.f32 %v3625_v12, %v2646_v32  ;;  %v5196_v52 = vadd.f32 %v1832_v49, %v4973_v56  ;;  %v2018_v8 = vadd.f32 %v3843_v10, %v5029_v46  ;;  %v1834_v50 = vpop.f32.mrb[73].mxu0  ;;  %v2009_v57 = vpop.f32.mrb[105].mxu1  ;;  %v5218_v10 = vld [vmem:[%s5955_s4 + $0x28] sm:$0xff]  }
 0x1e6   :  { %v2899_v5 = vmax.f32 %v2835_v63, 0.0  ;;  %v2836_v0 = vadd.f32 %v3621_v29, %v2644_v30  ;;  %v2507_v4 = vld [vmem:[#allocation2 + $0x30] sm:$0xff]  ;;  %v2010_v59 = vadd.f32 %v2009_v57, %v5015_v28  ;;  %v1835_v55 = vpop.f32.mrb[74].mxu0  ;;  %v3844_v33 = vpop.f32.mrb[106].mxu1  ;;  %v5237_v50 = vld [vmem:[%s5955_s4 + $0x20] sm:$0xff]  }
 0x1e7   :  { %v3556_v34 = vpack.c.bf16 %v2901_v40, %v2901_v40  ;;  %v2902_v43 = vmax.f32 %v2838_v58, 0.0  ;;  %v2578_v12 = vmul.f32 %v5148_v25, %v2507_v4  ;;  %v2505_v19 = vld [vmem:[#allocation2 + $0x20] sm:$0xff]  ;;  %2247 = vst.msk [vmem:[#allocation2 + $0x50] sm:$0xff] %vm2236_vm0, %v2018_v8  ;;  %v5204_v56 = vadd.f32 %v1835_v55, %v4983_v1  ;;  %v1837_v46 = vpop.f32.mrb[75].mxu0  ;;  %v2012_v32 = vpop.f32.mrb[107].mxu1 }
 0x1e8   :  { %v3554_v29 = vpack.c.bf16 %v2899_v5, %v2899_v5  ;;  %v2900_v63 = vmax.f32 %v2836_v0, 0.0  ;;  %v2576_v48 = vmul.f32 %v5148_v25, %v2505_v19  ;;  %v2508_v30 = vld [vmem:[#allocation2 + $0x38] sm:$0xff]  ;;  %2245 = vst.msk [vmem:[#allocation2 + $0x40] sm:$0xff] %vm2236_vm0, %v2010_v59  ;;  %v2021_v28 = vadd.f32 %v3844_v33, %v5033_v54 }
 0x1e9   :  { %3222 = vst.msk [vmem:[%s5957_s5 + $0x8] sm:$0xf] %vm3219_vm1, %v3556_v34  ;;  %v3557_v40 = vpack.c.bf16 %v2902_v43, %v2902_v43  ;;  %v2649_v1 = vadd.f32 %v5163_v13, %v2578_v12  ;;  %v2579_v55 = vmul.f32 %v5148_v25, %v2508_v30  ;;  %v2506_v49 = vld [vmem:[#allocation2 + $0x28] sm:$0xff]  ;;  %v2013_v58 = vadd.f32 %v2012_v32, %v5025_v38 }
 0x1ea   :  { %3220 = vst.msk [vmem:[%s5957_s5] sm:$0xf] %vm3219_vm1, %v3554_v29  ;;  %v3555_v54 = vpack.c.bf16 %v2900_v63, %v2900_v63  ;;  %v2647_v34 = vadd.f32 %v5163_v13, %v2576_v48  ;;  %v2577_v43 = vmul.f32 %v5148_v25, %v2506_v49  ;;  %v3629_v33 = vunpack.c.h.bf16 %v5185_v17 }
 0x1eb   :  { %2248 = vst.msk [vmem:[#allocation2 + $0x58] sm:$0xff] %vm2236_vm0, %v2021_v28  ;;  %v2841_v38 = vadd.f32 %v3632_v24, %v2649_v1  ;;  %v2650_v8 = vadd.f32 %v5163_v13, %v2579_v55  ;;  %2246 = vst.msk [vmem:[#allocation2 + $0x48] sm:$0xff] %vm2236_vm0, %v2013_v58  ;;  %v3640_v5 = vunpack.c.l.bf16 %v5218_v10 }
 0x1ec   :  { %3223 = vst.msk [vmem:[%s5957_s5 + $0xc] sm:$0xf] %vm3219_vm1, %v3557_v40  ;;  %3221 = vst.msk [vmem:[%s5957_s5 + $0x4] sm:$0xf] %vm3219_vm1, %v3555_v54  ;;  %v2839_v17 = vadd.f32 %v3628_v41, %v2647_v34  ;;  %v2648_v57 = vadd.f32 %v5163_v13, %v2577_v43  ;;  %v1840_v24 = vpop.f32.mrb[76].mxu0  ;;  %v3847_v0 = vpop.f32.mrb[108].mxu1  ;;  %v3636_v41 = vunpack.c.l.bf16 %v5237_v50 }
 0x1ed   :  { %v2905_v4 = vmax.f32 %v2841_v38, 0.0  ;;  %v2842_v59 = vadd.f32 %v3633_v2, %v2650_v8  ;;  %v5247_v12 = vadd.f32 %v1840_v24, %v4993_v9  ;;  %v2034_v19 = vadd.f32 %v3847_v0, %v5045_v15  ;;  %v1842_v46 = vpop.f32.mrb[77].mxu0  ;;  %v2025_v32 = vpop.f32.mrb[109].mxu1  ;;  %v5268_v8 = vld [vmem:[%s5955_s4 + $0x38] sm:$0xff]  }
 0x1ee   :  { %v2903_v29 = vmax.f32 %v2839_v17, 0.0  ;;  %v2840_v63 = vadd.f32 %v3629_v33, %v2648_v57  ;;  %v2511_v48 = vld [vmem:[#allocation2 + $0x50] sm:$0xff]  ;;  %v2026_v30 = vadd.f32 %v2025_v32, %v5037_v62  ;;  %v1843_v28 = vpop.f32.mrb[78].mxu0  ;;  %v3848_v40 = vpop.f32.mrb[110].mxu1  ;;  %v3641_v0 = vunpack.c.h.bf16 %v5218_v10 }
 0x1ef   :  { %v3560_v1 = vpack.c.bf16 %v2905_v4, %v2905_v4  ;;  %v2906_v55 = vmax.f32 %v2842_v59, 0.0  ;;  %v2582_v2 = vmul.f32 %v5148_v25, %v2511_v48  ;;  %v2509_v49 = vld [vmem:[#allocation2 + $0x40] sm:$0xff]  ;;  %2251 = vst.msk [vmem:[#allocation2 + $0x70] sm:$0xff] %vm2236_vm0, %v2034_v19  ;;  %v5255_v9 = vadd.f32 %v1843_v28, %v5003_v16  ;;  %v1845_v15 = vpop.f32.mrb[79].mxu0  ;;  %v2028_v58 = vpop.f32.mrb[111].mxu1  ;;  %v5288_v46 = vld [vmem:[%s5955_s4 + $0x30] sm:$0xff]  }
 0x1f0   :  { %v3558_v54 = vpack.c.bf16 %v2903_v29, %v2903_v29  ;;  %v2904_v34 = vmax.f32 %v2840_v63, 0.0  ;;  %v2580_v43 = vmul.f32 %v5148_v25, %v2509_v49  ;;  %2249 = vst.msk [vmem:[#allocation2 + $0x60] sm:$0xff] %vm2236_vm0, %v2026_v30  ;;  %v2037_v62 = vadd.f32 %v3848_v40, %v5049_v22 }
 0x1f1   :  { %3226 = vst.msk [vmem:[%s5957_s5 + $0x18] sm:$0xf] %vm3219_vm1, %v3560_v1  ;;  %v3561_v33 = vpack.c.bf16 %v2906_v55, %v2906_v55  ;;  %v2653_v38 = vadd.f32 %v5163_v13, %v2582_v2  ;;  %v2029_v17 = vadd.f32 %v2028_v58, %v5041_v7  ;;  %v3637_v19 = vunpack.c.h.bf16 %v5237_v50 }
 0x1f2   :  { %v2512_v16 = vld [vmem:[#allocation2 + $0x58] sm:$0xff]  ;;  %3224 = vst.msk [vmem:[%s5957_s5 + $0x10] sm:$0xf] %vm3219_vm1, %v3558_v54  ;;  %v3559_v22 = vpack.c.bf16 %v2904_v34, %v2904_v34  ;;  %v2651_v57 = vadd.f32 %v5163_v13, %v2580_v43  ;;  %v2510_v4 = vld [vmem:[#allocation2 + $0x48] sm:$0xff] }
 0x1f3   :  { %v2583_v24 = vmul.f32 %v5148_v25, %v2512_v16  ;;  %2252 = vst.msk [vmem:[#allocation2 + $0x78] sm:$0xff] %vm2236_vm0, %v2037_v62  ;;  %v2845_v7 = vadd.f32 %v3640_v5, %v2653_v38  ;;  %v2581_v59 = vmul.f32 %v5148_v25, %v2510_v4  ;;  %2250 = vst.msk [vmem:[#allocation2 + $0x68] sm:$0xff] %vm2236_vm0, %v2029_v17  ;;  %v3648_v5 = vunpack.c.l.bf16 %v5268_v8 }
 0x1f4   :  { %3227 = vst.msk [vmem:[%s5957_s5 + $0x1c] sm:$0xf] %vm3219_vm1, %v3561_v33  ;;  %3225 = vst.msk [vmem:[%s5957_s5 + $0x14] sm:$0xf] %vm3219_vm1, %v3559_v22  ;;  %v2843_v10 = vadd.f32 %v3636_v41, %v2651_v57  ;;  %v1848_v29 = vpop.f32.mrb[80].mxu0  ;;  %v3851_v63 = vpop.f32.mrb[112].mxu1  ;;  %v3644_v41 = vunpack.c.l.bf16 %v5288_v46 }
 0x1f5   :  { %v2654_v32 = vadd.f32 %v5163_v13, %v2583_v24  ;;  %v2909_v50 = vmax.f32 %v2845_v7, 0.0  ;;  %v2652_v48 = vadd.f32 %v5163_v13, %v2581_v59  ;;  %v5299_v30 = vadd.f32 %v1848_v29, %v5013_v26  ;;  %v1850_v40 = vpop.f32.mrb[81].mxu0  ;;  %v2041_v1 = vpop.f32.mrb[113].mxu1 }
 0x1f6   :  { %v2050_v28 = vadd.f32 %v3851_v63, %v5064_v18  ;;  %v2907_v55 = vmax.f32 %v2843_v10, 0.0  ;;  %v2515_v49 = vld [vmem:[#allocation2 + $0x70] sm:$0xff]  ;;  %v2042_v15 = vadd.f32 %v2041_v1, %v5054_v42  ;;  %v1851_v58 = vpop.f32.mrb[82].mxu0  ;;  %v3852_v54 = vpop.f32.mrb[114].mxu1 }
 0x1f7   :  { %v2846_v2 = vadd.f32 %v3641_v0, %v2654_v32  ;;  %v3564_v34 = vpack.c.bf16 %v2909_v50, %v2909_v50  ;;  %v2844_v43 = vadd.f32 %v3637_v19, %v2652_v48  ;;  %v2586_v62 = vmul.f32 %v5148_v25, %v2515_v49  ;;  %v2513_v33 = vld [vmem:[#allocation2 + $0x60] sm:$0xff]  ;;  %v1853_v18 = vpop.f32.mrb[83].mxu0  ;;  %v2044_v38 = vpop.f32.mrb[115].mxu1  ;;  %v5320_v0 = vld [vmem:[%s5955_s4 + $0x48] sm:$0xff]  }
 0x1f8   :  { %2255 = vst.msk [vmem:[#allocation2 + $0x90] sm:$0xff] %vm2236_vm0, %v2050_v28  ;;  %v5307_v26 = vadd.f32 %v1851_v58, %v5023_v37  ;;  %v3562_v16 = vpack.c.bf16 %v2907_v55, %v2907_v55  ;;  %v2584_v22 = vmul.f32 %v5148_v25, %v2513_v33  ;;  %2253 = vst.msk [vmem:[#allocation2 + $0x80] sm:$0xff] %vm2236_vm0, %v2042_v15  ;;  %v3649_v19 = vunpack.c.h.bf16 %v5268_v8  ;;  %v5336_v50 = vld [vmem:[%s5955_s4 + $0x40] sm:$0xff]  }
 0x1f9   :  { %v2910_v17 = vmax.f32 %v2846_v2, 0.0  ;;  %v2053_v42 = vadd.f32 %v3852_v54, %v5069_v36  ;;  %3230 = vst.msk [vmem:[%s5957_s5 + $0x28] sm:$0xf] %vm3219_vm1, %v3564_v34  ;;  %v2908_v57 = vmax.f32 %v2844_v43, 0.0  ;;  %v2657_v24 = vadd.f32 %v5163_v13, %v2586_v62 }
 0x1fa   :  { %v2516_v37 = vld [vmem:[#allocation2 + $0x78] sm:$0xff]  ;;  %v2045_v4 = vadd.f32 %v2044_v38, %v5059_v60  ;;  %3228 = vst.msk [vmem:[%s5957_s5 + $0x20] sm:$0xf] %vm3219_vm1, %v3562_v16  ;;  %v2655_v7 = vadd.f32 %v5163_v13, %v2584_v22  ;;  %v2514_v10 = vld [vmem:[#allocation2 + $0x68] sm:$0xff]  ;;  %v3645_v60 = vunpack.c.h.bf16 %v5288_v46  ;;  %v3652_v34 = vunpack.c.l.bf16 %v5336_v50 }
 0x1fb   :  { %v3565_v36 = vpack.c.bf16 %v2910_v17, %v2910_v17  ;;  %v2587_v59 = vmul.f32 %v5148_v25, %v2516_v37  ;;  %2256 = vst.msk [vmem:[#allocation2 + $0x98] sm:$0xff] %vm2236_vm0, %v2053_v42  ;;  %v3563_v32 = vpack.c.bf16 %v2908_v57, %v2908_v57  ;;  %v2849_v29 = vadd.f32 %v3648_v5, %v2657_v24 }
 0x1fc   :  { %v2585_v63 = vmul.f32 %v5148_v25, %v2514_v10  ;;  %2254 = vst.msk [vmem:[#allocation2 + $0x88] sm:$0xff] %vm2236_vm0, %v2045_v4  ;;  %v2847_v8 = vadd.f32 %v3644_v41, %v2655_v7  ;;  %v3656_v5 = vunpack.c.l.bf16 %v5320_v0  ;;  %v1856_v28 = vpop.f32.mrb[84].mxu0  ;;  %v3855_v40 = vpop.f32.mrb[116].mxu1  ;;  %v3657_v10 = vunpack.c.h.bf16 %v5320_v0 }
 0x1fd   :  { %3231 = vst.msk [vmem:[%s5957_s5 + $0x2c] sm:$0xf] %vm3219_vm1, %v3565_v36  ;;  %v2658_v48 = vadd.f32 %v5163_v13, %v2587_v59  ;;  %3229 = vst.msk [vmem:[%s5957_s5 + $0x24] sm:$0xf] %vm3219_vm1, %v3563_v32  ;;  %v2913_v46 = vmax.f32 %v2849_v29, 0.0  ;;  %v5351_v55 = vadd.f32 %v1856_v28, %v5027_v45  ;;  %v2066_v2 = vadd.f32 %v3855_v40, %v5084_v44  ;;  %v1858_v49 = vpop.f32.mrb[85].mxu0 }
 0x1fe   :  { %v2656_v1 = vadd.f32 %v5163_v13, %v2585_v63  ;;  %v2057_v41 = vpop.f32.mrb[117].mxu1  ;;  %v2911_v15 = vmax.f32 %v2847_v8, 0.0  ;;  %v1859_v62 = vpop.f32.mrb[86].mxu0  ;;  %v5372_v36 = vld [vmem:[%s5955_s4 + $0x58] sm:$0xff]   ;;  %v5388_v8 = vld [vmem:[%s5955_s4 + $0x50] sm:$0xff]  }
 0x1ff   :  { %v2850_v58 = vadd.f32 %v3649_v19, %v2658_v48  ;;  %v2519_v54 = vld [vmem:[#allocation2 + $0x90] sm:$0xff]  ;;  %v2058_v43 = vadd.f32 %v2057_v41, %v5074_v3  ;;  %v3856_v33 = vpop.f32.mrb[118].mxu1  ;;  %v3568_v18 = vpack.c.bf16 %v2913_v46, %v2913_v46  ;;  %v2517_v17 = vld [vmem:[#allocation2 + $0x80] sm:$0xff]  ;;  %2259 = vst.msk [vmem:[#allocation2 + $0xb0] sm:$0xff] %vm2236_vm0, %v2066_v2  ;;  %v5359_v45 = vadd.f32 %v1859_v62, %v5031_v53  ;;  %v1861_v44 = vpop.f32.mrb[87].mxu0 }
 0x200   :  { %v2848_v38 = vadd.f32 %v3645_v60, %v2656_v1  ;;  %v2590_v16 = vmul.f32 %v5148_v25, %v2519_v54  ;;  %v2060_v22 = vpop.f32.mrb[119].mxu1  ;;  %v3566_v42 = vpack.c.bf16 %v2911_v15, %v2911_v15  ;;  %v2588_v24 = vmul.f32 %v5148_v25, %v2517_v17 }
 0x201   :  { %v2914_v57 = vmax.f32 %v2850_v58, 0.0  ;;  %2257 = vst.msk [vmem:[#allocation2 + $0xa0] sm:$0xff] %vm2236_vm0, %v2058_v43  ;;  %v2069_v3 = vadd.f32 %v3856_v33, %v5089_v11  ;;  %v2061_v7 = vadd.f32 %v2060_v22, %v5079_v20  ;;  %v3653_v20 = vunpack.c.h.bf16 %v5336_v50 }
 0x202   :  { %3234 = vst.msk [vmem:[%s5957_s5 + $0x38] sm:$0xf] %vm3219_vm1, %v3568_v18  ;;  %v2912_v37 = vmax.f32 %v2848_v38, 0.0  ;;  %v2661_v4 = vadd.f32 %v5163_v13, %v2590_v16  ;;  %v2520_v53 = vld [vmem:[#allocation2 + $0x98] sm:$0xff]  ;;  %3232 = vst.msk [vmem:[%s5957_s5 + $0x30] sm:$0xf] %vm3219_vm1, %v3566_v42  ;;  %v2659_v59 = vadd.f32 %v5163_v13, %v2588_v24 }
 0x203   :  { %v3569_v11 = vpack.c.bf16 %v2914_v57, %v2914_v57  ;;  %v2591_v19 = vmul.f32 %v5148_v25, %v2520_v53  ;;  %v2518_v32 = vld [vmem:[#allocation2 + $0x88] sm:$0xff]  ;;  %2260 = vst.msk [vmem:[#allocation2 + $0xb8] sm:$0xff] %vm2236_vm0, %v2069_v3  ;;  %2258 = vst.msk [vmem:[#allocation2 + $0xa8] sm:$0xff] %vm2236_vm0, %v2061_v7 }
 0x204   :  { %v3567_v29 = vpack.c.bf16 %v2912_v37, %v2912_v37  ;;  %v2853_v63 = vadd.f32 %v3656_v5, %v2661_v4  ;;  %v2589_v60 = vmul.f32 %v5148_v25, %v2518_v32  ;;  %v2851_v0 = vadd.f32 %v3652_v34, %v2659_v59  ;;  %v1864_v28 = vpop.f32.mrb[88].mxu0  ;;  %v3859_v40 = vpop.f32.mrb[120].mxu1  ;;  %v5424_v37 = vld [vmem:[%s5955_s4 + $0x68] sm:$0xff]  }
 0x205   :  { %3235 = vst.msk [vmem:[%s5957_s5 + $0x3c] sm:$0xf] %vm3219_vm1, %v3569_v11  ;;  %v2662_v48 = vadd.f32 %v5163_v13, %v2591_v19  ;;  %v3664_v5 = vunpack.c.l.bf16 %v5372_v36  ;;  %v5403_v1 = vadd.f32 %v1864_v28, %v5035_v61  ;;  %v2082_v2 = vadd.f32 %v3859_v40, %v5104_v31  ;;  %v1866_v49 = vpop.f32.mrb[89].mxu0  ;;  %v2073_v41 = vpop.f32.mrb[121].mxu1 }
 0x206   :  { %3233 = vst.msk [vmem:[%s5957_s5 + $0x34] sm:$0xf] %vm3219_vm1, %v3567_v29  ;;  %v2917_v50 = vmax.f32 %v2853_v63, 0.0  ;;  %v2660_v46 = vadd.f32 %v5163_v13, %v2589_v60  ;;  %v2915_v15 = vmax.f32 %v2851_v0, 0.0  ;;  %v2523_v54 = vld [vmem:[#allocation2 + $0xb0] sm:$0xff]  ;;  %v3660_v34 = vunpack.c.l.bf16 %v5388_v8  ;;  %v1867_v62 = vpop.f32.mrb[90].mxu0 }
 0x207   :  { %v2854_v58 = vadd.f32 %v3657_v10, %v2662_v48  ;;  %v2074_v43 = vadd.f32 %v2073_v41, %v5094_v23  ;;  %v3860_v33 = vpop.f32.mrb[122].mxu1  ;;  %v2594_v16 = vmul.f32 %v5148_v25, %v2523_v54  ;;  %2263 = vst.msk [vmem:[#allocation2 + $0xd0] sm:$0xff] %vm2236_vm0, %v2082_v2  ;;  %v5411_v61 = vadd.f32 %v1867_v62, %v5039_v6  ;;  %v1869_v31 = vpop.f32.mrb[91].mxu0  ;;  %v5440_v29 = vld [vmem:[%s5955_s4 + $0x60] sm:$0xff]  }
 0x208   :  { %v3572_v18 = vpack.c.bf16 %v2917_v50, %v2917_v50  ;;  %v2852_v38 = vadd.f32 %v3653_v20, %v2660_v46  ;;  %v2521_v17 = vld [vmem:[#allocation2 + $0xa0] sm:$0xff]  ;;  %v2076_v44 = vpop.f32.mrb[123].mxu1  ;;  %v3570_v22 = vpack.c.bf16 %v2915_v15, %v2915_v15  ;;  %v2085_v23 = vadd.f32 %v3860_v33, %v5109_v35 }
 0x209   :  { %v2918_v42 = vmax.f32 %v2854_v58, 0.0  ;;  %v2592_v57 = vmul.f32 %v5148_v25, %v2521_v17  ;;  %2261 = vst.msk [vmem:[#allocation2 + $0xc0] sm:$0xff] %vm2236_vm0, %v2074_v43  ;;  %v2665_v3 = vadd.f32 %v5163_v13, %v2594_v16  ;;  %v2077_v4 = vadd.f32 %v2076_v44, %v5099_v27 }
 0x20a   :  { %3238 = vst.msk [vmem:[%s5957_s5 + $0x48] sm:$0xf] %vm3219_vm1, %v3572_v18  ;;  %v2916_v24 = vmax.f32 %v2852_v38, 0.0  ;;  %v2524_v6 = vld [vmem:[#allocation2 + $0xb8] sm:$0xff]  ;;  %3236 = vst.msk [vmem:[%s5957_s5 + $0x40] sm:$0xf] %vm3219_vm1, %v3570_v22  ;;  %v3665_v11 = vunpack.c.h.bf16 %v5372_v36  ;;  %v3661_v27 = vunpack.c.h.bf16 %v5388_v8  ;;  %v3672_v60 = vunpack.c.l.bf16 %v5424_v37 }
 0x20b   :  { %v3573_v35 = vpack.c.bf16 %v2918_v42, %v2918_v42  ;;  %v2663_v53 = vadd.f32 %v5163_v13, %v2592_v57  ;;  %v2595_v7 = vmul.f32 %v5148_v25, %v2524_v6  ;;  %v2522_v59 = vld [vmem:[#allocation2 + $0xa8] sm:$0xff]  ;;  %2264 = vst.msk [vmem:[#allocation2 + $0xd8] sm:$0xff] %vm2236_vm0, %v2085_v23  ;;  %v2857_v10 = vadd.f32 %v3664_v5, %v2665_v3  ;;  %v5476_v22 = vld [vmem:[%s5955_s4 + $0x78] sm:$0xff]   ;;  %v5979_v42 = vld [vmem:[#allocation17_spill] sm:$0xff] }
 0x20c   :  { %v3571_v19 = vpack.c.bf16 %v2916_v24, %v2916_v24  ;;  %v2593_v32 = vmul.f32 %v5148_v25, %v2522_v59  ;;  %2262 = vst.msk [vmem:[#allocation2 + $0xc8] sm:$0xff] %vm2236_vm0, %v2077_v4  ;;  %v1872_v20 = vpop.f32.mrb[92].mxu0  ;;  %v3863_v0 = vpop.f32.mrb[124].mxu1  ;;  %v3668_v41 = vunpack.c.l.bf16 %v5440_v29  ;;  %v3673_v3 = vunpack.c.h.bf16 %v5424_v37 }
 0x20d   :  { %3239 = vst.msk [vmem:[%s5957_s5 + $0x4c] sm:$0xf] %vm3219_vm1, %v3573_v35  ;;  %v2855_v36 = vadd.f32 %v3660_v34, %v2663_v53  ;;  %v2666_v63 = vadd.f32 %v5163_v13, %v2595_v7  ;;  %v2921_v8 = vmax.f32 %v2857_v10, 0.0  ;;  %v5455_v5 = vadd.f32 %v1872_v20, %v5043_v14  ;;  %v1874_v40 = vpop.f32.mrb[93].mxu0  ;;  %v2089_v50 = vpop.f32.mrb[125].mxu1 }
 0x20e   :  { %3237 = vst.msk [vmem:[%s5957_s5 + $0x44] sm:$0xf] %vm3219_vm1, %v3571_v19  ;;  %v2664_v48 = vadd.f32 %v5163_v13, %v2593_v32  ;;  %v2098_v28 = vadd.f32 %v3863_v0, %v5124_v47  ;;  %v2527_v49 = vld [vmem:[#allocation2 + $0xd0] sm:$0xff]  ;;  %v2090_v15 = vadd.f32 %v2089_v50, %v5114_v39  ;;  %v1875_v58 = vpop.f32.mrb[94].mxu0  ;;  %v3864_v54 = vpop.f32.mrb[126].mxu1  ;;  %v3669_v7 = vunpack.c.h.bf16 %v5440_v29 }
 0x20f   :  { %v2919_v46 = vmax.f32 %v2855_v36, 0.0  ;;  %v2858_v2 = vadd.f32 %v3665_v11, %v2666_v63  ;;  %v3576_v34 = vpack.c.bf16 %v2921_v8, %v2921_v8  ;;  %v2598_v62 = vmul.f32 %v5148_v25, %v2527_v49  ;;  %v1877_v47 = vpop.f32.mrb[95].mxu0  ;;  %v2092_v18 = vpop.f32.mrb[127].mxu1  ;;  %v5492_v11 = vld [vmem:[%s5955_s4 + $0x70] sm:$0xff]   ;;  %v5980_v36 = vld [vmem:[#allocation3_spill] sm:$0xff] }
 0x210   :  { %v2856_v43 = vadd.f32 %v3661_v27, %v2664_v48  ;;  %v2525_v33 = vld [vmem:[#allocation2 + $0xc0] sm:$0xff]  ;;  %2267 = vst.msk [vmem:[#allocation2 + $0xf0] sm:$0xff] %vm2236_vm0, %v2098_v28  ;;  %v5463_v14 = vadd.f32 %v1875_v58, %v5047_v21  ;;  %2265 = vst.msk [vmem:[#allocation2 + $0xe0] sm:$0xff] %vm2236_vm0, %v2090_v15  ;;  %v2101_v39 = vadd.f32 %v3864_v54, %v5129_v51  ;;  %v3680_v19 = vunpack.c.l.bf16 %v5476_v22 }
 0x211   :  { %v3574_v38 = vpack.c.bf16 %v2919_v46, %v2919_v46  ;;  %v2922_v16 = vmax.f32 %v2858_v2, 0.0  ;;  %v2596_v17 = vmul.f32 %v5148_v25, %v2525_v33  ;;  %3242 = vst.msk [vmem:[%s5957_s5 + $0x58] sm:$0xf] %vm3219_vm1, %v3576_v34  ;;  %v2669_v44 = vadd.f32 %v5163_v13, %v2598_v62  ;;  %v5982_v46 = vld [vmem:[#allocation20_spill] sm:$0xff] }
 0x212   :  { %v2920_v31 = vmax.f32 %v2856_v43, 0.0  ;;  %v2528_v21 = vld [vmem:[#allocation2 + $0xd8] sm:$0xff]  ;;  %v2093_v57 = vadd.f32 %v2092_v18, %v5979_v42  ;;  %2268 = vst.msk [vmem:[#allocation2 + $0xf8] sm:$0xff] %vm2236_vm0, %v2101_v39  ;;  %v3676_v50 = vunpack.c.l.bf16 %v5492_v11  ;;  %v5983_v43 = vld [vmem:[#allocation4_spill] sm:$0xff] }
 0x213   :  { %3240 = vst.msk [vmem:[%s5957_s5 + $0x50] sm:$0xf] %vm3219_vm1, %v3574_v38  ;;  %v3577_v51 = vpack.c.bf16 %v2922_v16, %v2922_v16  ;;  %v2667_v23 = vadd.f32 %v5163_v13, %v2596_v17  ;;  %v2599_v24 = vmul.f32 %v5148_v25, %v2528_v21  ;;  %v2526_v6 = vld [vmem:[#allocation2 + $0xc8] sm:$0xff]  ;;  %v2861_v35 = vadd.f32 %v3672_v60, %v2669_v44  ;;  %v5981_v60 = vld [vmem:[#allocation22_spill] sm:$0xff]  ;;  %v5984_v17 = vld [vmem:[#allocation23_spill] sm:$0xff] }
 0x214   :  { %v3575_v4 = vpack.c.bf16 %v2920_v31, %v2920_v31  ;;  %v2597_v53 = vmul.f32 %v5148_v25, %v2526_v6  ;;  %2266 = vst.msk [vmem:[#allocation2 + $0xe8] sm:$0xff] %vm2236_vm0, %v2093_v57  ;;  %v1880_v10 = vpop.f32.mrb[96].mxu0  ;;  %v3867_v32 = vpop.f32.mrb[128].mxu1  ;;  %v5528_v42 = vld [vmem:[%s5955_s4 + $0x88] sm:$0xff]   ;;  %v5985_v57 = vld [vmem:[#allocation21_spill] sm:$0xff]  ;;  %v3681_v6 = vunpack.c.h.bf16 %v5476_v22 }
 0x215   :  { %3243 = vst.msk [vmem:[%s5957_s5 + $0x5c] sm:$0xf] %vm3219_vm1, %v3577_v51  ;;  %v2859_v37 = vadd.f32 %v3668_v41, %v2667_v23  ;;  %v2670_v59 = vadd.f32 %v5163_v13, %v2599_v24  ;;  %v2925_v27 = vmax.f32 %v2861_v35, 0.0  ;;  %v5507_v63 = vadd.f32 %v1880_v10, %v5980_v36  ;;  %v1882_v0 = vpop.f32.mrb[97].mxu0  ;;  %v2105_v8 = vpop.f32.mrb[129].mxu1  ;;  %v5986_v36 = vld [vmem:[#allocation5_spill] sm:$0xff] }
 0x216   :  { %3241 = vst.msk [vmem:[%s5957_s5 + $0x54] sm:$0xf] %vm3219_vm1, %v3575_v4  ;;  %v2668_v29 = vadd.f32 %v5163_v13, %v2597_v53  ;;  %v2114_v20 = vadd.f32 %v3867_v32, %v5981_v60  ;;  %v2106_v2 = vadd.f32 %v2105_v8, %v5982_v46  ;;  %v1883_v49 = vpop.f32.mrb[98].mxu0  ;;  %v3868_v41 = vpop.f32.mrb[130].mxu1 }
 0x217   :  { %v2923_v48 = vmax.f32 %v2859_v37, 0.0  ;;  %v2862_v28 = vadd.f32 %v3673_v3, %v2670_v59  ;;  %v2531_v40 = vld [vmem:[#allocation2 + $0xf0] sm:$0xff]  ;;  %v3580_v15 = vpack.c.bf16 %v2925_v27, %v2925_v27  ;;  %v2529_v34 = vld [vmem:[#allocation2 + $0xe0] sm:$0xff]  ;;  %v5515_v62 = vadd.f32 %v1883_v49, %v5983_v43  ;;  %v1885_v33 = vpop.f32.mrb[99].mxu0  ;;  %v2108_v47 = vpop.f32.mrb[131].mxu1 }
 0x218   :  { %v2860_v58 = vadd.f32 %v3669_v7, %v2668_v29  ;;  %v2602_v54 = vmul.f32 %v5148_v25, %v2531_v40  ;;  %2271 = vst.msk [vmem:[#allocation2 + $0x110] sm:$0xff] %vm2236_vm0, %v2114_v20  ;;  %v2600_v16 = vmul.f32 %v5148_v25, %v2529_v34  ;;  %2269 = vst.msk [vmem:[#allocation2 + $0x100] sm:$0xff] %vm2236_vm0, %v2106_v2  ;;  %v3677_v37 = vunpack.c.h.bf16 %v5492_v11  ;;  %v5544_v59 = vld [vmem:[%s5955_s4 + $0x80] sm:$0xff]   ;;  %v5987_v34 = vld [vmem:[#allocation6_spill] sm:$0xff] }
 0x219   :  { %v3578_v18 = vpack.c.bf16 %v2923_v48, %v2923_v48  ;;  %v2926_v38 = vmax.f32 %v2862_v28, 0.0  ;;  %v2117_v39 = vadd.f32 %v3868_v41, %v5984_v17  ;;  %3246 = vst.msk [vmem:[%s5957_s5 + $0x68] sm:$0xf] %vm3219_vm1, %v3580_v15  ;;  %v2532_v21 = vld [vmem:[#allocation2 + $0xf8] sm:$0xff]  ;;  %v2109_v51 = vadd.f32 %v2108_v47, %v5985_v57 }
 0x21a   :  { %v2924_v31 = vmax.f32 %v2860_v58, 0.0  ;;  %v2673_v44 = vadd.f32 %v5163_v13, %v2602_v54  ;;  %v2671_v24 = vadd.f32 %v5163_v13, %v2600_v16  ;;  %v2603_v3 = vmul.f32 %v5148_v25, %v2532_v21 }
 0x21b   :  { %3244 = vst.msk [vmem:[%s5957_s5 + $0x60] sm:$0xf] %vm3219_vm1, %v3578_v18  ;;  %v3581_v23 = vpack.c.bf16 %v2926_v38, %v2926_v38  ;;  %v2530_v4 = vld [vmem:[#allocation2 + $0xe8] sm:$0xff] }
 0x21c   :  { %2272 = vst.msk [vmem:[#allocation2 + $0x118] sm:$0xff] %vm2236_vm0, %v2117_v39  ;;  %v3579_v35 = vpack.c.bf16 %v2924_v31, %v2924_v31  ;;  %v2865_v53 = vadd.f32 %v3680_v19, %v2673_v44  ;;  %v2601_v7 = vmul.f32 %v5148_v25, %v2530_v4  ;;  %2270 = vst.msk [vmem:[#allocation2 + $0x108] sm:$0xff] %vm2236_vm0, %v2109_v51  ;;  %v3688_v19 = vunpack.c.l.bf16 %v5528_v42  ;;  %v1888_v32 = vpop.f32.mrb[100].mxu0  ;;  %v3871_v27 = vpop.f32.mrb[132].mxu1  ;;  %v5580_v31 = vld [vmem:[%s5955_s4 + $0x98] sm:$0xff]   ;;  %v5596_v4 = vld [vmem:[%s5955_s4 + $0x90] sm:$0xff]  }
 0x21d   :  { %3247 = vst.msk [vmem:[%s5957_s5 + $0x6c] sm:$0xf] %vm3219_vm1, %v3581_v23  ;;  %v2863_v22 = vadd.f32 %v3676_v50, %v2671_v24  ;;  %v2674_v10 = vadd.f32 %v5163_v13, %v2603_v3  ;;  %v5559_v60 = vadd.f32 %v1888_v32, %v5986_v36  ;;  %v2130_v20 = vadd.f32 %v3871_v27, %v5247_v12  ;;  %v1890_v0 = vpop.f32.mrb[101].mxu0  ;;  %v2121_v8 = vpop.f32.mrb[133].mxu1 }
 0x21e   :  { %3245 = vst.msk [vmem:[%s5957_s5 + $0x64] sm:$0xf] %vm3219_vm1, %v3579_v35  ;;  %v2929_v11 = vmax.f32 %v2865_v53, 0.0  ;;  %v2672_v29 = vadd.f32 %v5163_v13, %v2601_v7  ;;  %v3684_v50 = vunpack.c.l.bf16 %v5544_v59  ;;  %v2122_v46 = vadd.f32 %v2121_v8, %v5196_v52  ;;  %v1891_v2 = vpop.f32.mrb[102].mxu0  ;;  %v3872_v49 = vpop.f32.mrb[134].mxu1 }
 0x21f   :  { %v2927_v48 = vmax.f32 %v2863_v22, 0.0  ;;  %v2866_v28 = vadd.f32 %v3681_v6, %v2674_v10  ;;  %v2535_v40 = vld [vmem:[#allocation2 + $0x110] sm:$0xff]  ;;  %v2533_v54 = vld [vmem:[#allocation2 + $0x100] sm:$0xff]  ;;  %2275 = vst.msk [vmem:[#allocation2 + $0x130] sm:$0xff] %vm2236_vm0, %v2130_v20  ;;  %v5567_v12 = vadd.f32 %v1891_v2, %v5987_v34  ;;  %v1893_v43 = vpop.f32.mrb[103].mxu0  ;;  %v2124_v33 = vpop.f32.mrb[135].mxu1  ;;  %v2133_v52 = vadd.f32 %v3872_v49, %v5255_v9 }
 0x220   :  { %v3584_v41 = vpack.c.bf16 %v2929_v11, %v2929_v11  ;;  %v2864_v15 = vadd.f32 %v3677_v37, %v2672_v29  ;;  %v2606_v58 = vmul.f32 %v5148_v25, %v2535_v40  ;;  %v2604_v38 = vmul.f32 %v5148_v25, %v2533_v54  ;;  %2273 = vst.msk [vmem:[#allocation2 + $0x120] sm:$0xff] %vm2236_vm0, %v2122_v46  ;;  %v5988_v10 = vld [vmem:[#allocation7_spill] sm:$0xff]  ;;  %v5989_v49 = vld [vmem:[#allocation8_spill] sm:$0xff] }
 0x221   :  { %v3582_v47 = vpack.c.bf16 %v2927_v48, %v2927_v48  ;;  %v2930_v18 = vmax.f32 %v2866_v28, 0.0  ;;  %v2125_v44 = vadd.f32 %v2124_v33, %v5204_v56  ;;  %v3689_v51 = vunpack.c.h.bf16 %v5528_v42  ;;  %2276 = vst.msk [vmem:[#allocation2 + $0x138] sm:$0xff] %vm2236_vm0, %v2133_v52 }
 0x222   :  { %3250 = vst.msk [vmem:[%s5957_s5 + $0x78] sm:$0xf] %vm3219_vm1, %v3584_v41  ;;  %v2928_v16 = vmax.f32 %v2864_v15, 0.0  ;;  %v2677_v17 = vadd.f32 %v5163_v13, %v2606_v58  ;;  %v2675_v21 = vadd.f32 %v5163_v13, %v2604_v38  ;;  %v3685_v56 = vunpack.c.h.bf16 %v5544_v59 }
 0x223   :  { %v2536_v39 = vld [vmem:[#allocation2 + $0x118] sm:$0xff]  ;;  %3248 = vst.msk [vmem:[%s5957_s5 + $0x70] sm:$0xf] %vm3219_vm1, %v3582_v47  ;;  %v3585_v9 = vpack.c.bf16 %v2930_v18, %v2930_v18  ;;  %v2534_v23 = vld [vmem:[#allocation2 + $0x108] sm:$0xff]  ;;  %v3696_v53 = vunpack.c.l.bf16 %v5580_v31  ;;  %v3692_v0 = vunpack.c.l.bf16 %v5596_v4 }
 0x224   :  { %v2607_v57 = vmul.f32 %v5148_v25, %v2536_v39  ;;  %v3583_v24 = vpack.c.bf16 %v2928_v16, %v2928_v16  ;;  %v2869_v3 = vadd.f32 %v3688_v19, %v2677_v17  ;;  %v2605_v6 = vmul.f32 %v5148_v25, %v2534_v23  ;;  %2274 = vst.msk [vmem:[#allocation2 + $0x128] sm:$0xff] %vm2236_vm0, %v2125_v44  ;;  %v1896_v7 = vpop.f32.mrb[104].mxu0  ;;  %v3875_v37 = vpop.f32.mrb[136].mxu1  ;;  %v5632_v18 = vld [vmem:[%s5955_s4 + $0xa8] sm:$0xff]  }
 0x225   :  { %3251 = vst.msk [vmem:[%s5957_s5 + $0x7c] sm:$0xf] %vm3219_vm1, %v3585_v9  ;;  %v2867_v42 = vadd.f32 %v3684_v50, %v2675_v21  ;;  %v5611_v19 = vadd.f32 %v1896_v7, %v5988_v10  ;;  %v2146_v32 = vadd.f32 %v3875_v37, %v5351_v55  ;;  %v1898_v27 = vpop.f32.mrb[105].mxu0  ;;  %v2137_v11 = vpop.f32.mrb[137].mxu1  ;;  %v3697_v17 = vunpack.c.h.bf16 %v5580_v31 }
 0x226   :  { %v2678_v35 = vadd.f32 %v5163_v13, %v2607_v57  ;;  %3249 = vst.msk [vmem:[%s5957_s5 + $0x74] sm:$0xf] %vm3219_vm1, %v3583_v24  ;;  %v2933_v59 = vmax.f32 %v2869_v3, 0.0  ;;  %v2676_v22 = vadd.f32 %v5163_v13, %v2605_v6  ;;  %v2539_v20 = vld [vmem:[#allocation2 + $0x130] sm:$0xff]  ;;  %v2138_v8 = vadd.f32 %v2137_v11, %v5299_v30  ;;  %v1899_v48 = vpop.f32.mrb[106].mxu0  ;;  %v3876_v28 = vpop.f32.mrb[138].mxu1 }
 0x227   :  { %v2931_v29 = vmax.f32 %v2867_v42, 0.0  ;;  %v2610_v46 = vmul.f32 %v5148_v25, %v2539_v20  ;;  %v2537_v2 = vld [vmem:[#allocation2 + $0x120] sm:$0xff]  ;;  %2279 = vst.msk [vmem:[#allocation2 + $0x150] sm:$0xff] %vm2236_vm0, %v2146_v32  ;;  %v5619_v55 = vadd.f32 %v1899_v48, %v5989_v49  ;;  %v1901_v41 = vpop.f32.mrb[107].mxu0  ;;  %v2140_v15 = vpop.f32.mrb[139].mxu1  ;;  %v2149_v30 = vadd.f32 %v3876_v28, %v5359_v45  ;;  %v5991_v20 = vld [vmem:[#allocation10_spill] sm:$0xff] }
 0x228   :  { %v2870_v36 = vadd.f32 %v3689_v51, %v2678_v35  ;;  %v3588_v40 = vpack.c.bf16 %v2933_v59, %v2933_v59  ;;  %v2868_v50 = vadd.f32 %v3685_v56, %v2676_v22  ;;  %v2608_v34 = vmul.f32 %v5148_v25, %v2537_v2  ;;  %2277 = vst.msk [vmem:[#allocation2 + $0x140] sm:$0xff] %vm2236_vm0, %v2138_v8  ;;  %v2540_v47 = vld [vmem:[#allocation2 + $0x138] sm:$0xff]  ;;  %v5648_v57 = vld [vmem:[%s5955_s4 + $0xa0] sm:$0xff]   ;;  %v5990_v56 = vld [vmem:[#allocation9_spill] sm:$0xff] }
 0x229   :  { %v3586_v58 = vpack.c.bf16 %v2931_v29, %v2931_v29  ;;  %v2681_v33 = vadd.f32 %v5163_v13, %v2610_v46  ;;  %v2141_v38 = vadd.f32 %v2140_v15, %v5307_v26  ;;  %v2611_v16 = vmul.f32 %v5148_v25, %v2540_v47  ;;  %2280 = vst.msk [vmem:[#allocation2 + $0x158] sm:$0xff] %vm2236_vm0, %v2149_v30  ;;  %v5688_v2 = vld [vmem:[%s5956_s3] ss:$0 sm:$0xff]  ;;  %v5694_v15 = vld [vmem:[%s5955_s4 + $0xb8] sm:$0xff]  }
 0x22a   :  { %v2934_v54 = vmax.f32 %v2870_v36, 0.0  ;;  %3254 = vst.msk [vmem:[%s5957_s5 + $0x88] sm:$0xf] %vm3219_vm1, %v3588_v40  ;;  %v2932_v43 = vmax.f32 %v2868_v50, 0.0  ;;  %v2679_v52 = vadd.f32 %v5163_v13, %v2608_v34  ;;  %v3693_v26 = vunpack.c.h.bf16 %v5596_v4 }
 0x22b   :  { %3252 = vst.msk [vmem:[%s5957_s5 + $0x80] sm:$0xf] %vm3219_vm1, %v3586_v58  ;;  %v2538_v39 = vld [vmem:[#allocation2 + $0x128] sm:$0xff]  ;;  %v2873_v9 = vadd.f32 %v3696_v53, %v2681_v33  ;;  %v2682_v51 = vadd.f32 %v5163_v13, %v2611_v16  ;;  %v3704_v23 = vunpack.c.l.bf16 %v5632_v18  ;;  %v3700_v22 = vunpack.c.l.bf16 %v5648_v57 }
 0x22c   :  { %v3589_v45 = vpack.c.bf16 %v2934_v54, %v2934_v54  ;;  %v3587_v44 = vpack.c.bf16 %v2932_v43, %v2932_v43  ;;  %v2609_v21 = vmul.f32 %v5148_v25, %v2538_v39  ;;  %2278 = vst.msk [vmem:[#allocation2 + $0x148] sm:$0xff] %vm2236_vm0, %v2141_v38  ;;  %v2871_v31 = vadd.f32 %v3692_v0, %v2679_v52  ;;  %v1904_v25 = vpop.f32.mrb[108].mxu0  ;;  %v3879_v24 = vpop.f32.mrb[140].mxu1 }
 0x22d   :  { %v2937_v3 = vmax.f32 %v2873_v9, 0.0  ;;  %v5663_v4 = vadd.f32 %v1904_v25, %v5990_v56  ;;  %v2162_v42 = vadd.f32 %v3879_v24, %v5455_v5  ;;  %v1906_v35 = vpop.f32.mrb[109].mxu0  ;;  %v2153_v53 = vpop.f32.mrb[141].mxu1  ;;  %v2874_v37 = vadd.f32 %v3697_v17, %v2682_v51 }
 0x22e   :  { %3255 = vst.msk [vmem:[%s5957_s5 + $0x8c] sm:$0xf] %vm3219_vm1, %v3589_v45  ;;  %3253 = vst.msk [vmem:[%s5957_s5 + $0x84] sm:$0xf] %vm3219_vm1, %v3587_v44  ;;  %v2680_v6 = vadd.f32 %v5163_v13, %v2609_v21  ;;  %v2935_v7 = vmax.f32 %v2871_v31, 0.0  ;;  %v2543_v59 = vld [vmem:[#allocation2 + $0x150] sm:$0xff]  ;;  %v2154_v10 = vadd.f32 %v2153_v53, %v5403_v1  ;;  %v3705_v30 = vunpack.c.h.bf16 %v5632_v18 }
 0x22f   :  { %v1907_v32 = vpop.f32.mrb[110].mxu0  ;;  %v3880_v27 = vpop.f32.mrb[142].mxu1  ;;  %v3592_v11 = vpack.c.bf16 %v2937_v3, %v2937_v3  ;;  %v5671_v13 = vld [vmem:[%s5954_s2] ss:$0 sm:$0xff]  ;;  %2283 = vst.msk [vmem:[#allocation2 + $0x170] sm:$0xff] %vm2236_vm0, %v2162_v42  ;;  %v2938_v28 = vmax.f32 %v2874_v37, 0.0  ;;  %v3712_v16 = vunpack.c.l.bf16 %v5694_v15 }
 0x230   :  { %v2872_v29 = vadd.f32 %v3693_v26, %v2680_v6  ;;  %v2614_v5 = vmul.f32 %v5671_v13, %v2543_v59  ;;  %v2541_v36 = vld [vmem:[#allocation2 + $0x140] sm:$0xff]  ;;  %v5676_v0 = vadd.f32 %v1907_v32, %v5991_v20  ;;  %v1909_v8 = vpop.f32.mrb[111].mxu0  ;;  %v2156_v48 = vpop.f32.mrb[143].mxu1  ;;  %v3590_v1 = vpack.c.bf16 %v2935_v7, %v2935_v7  ;;  %2281 = vst.msk [vmem:[#allocation2 + $0x160] sm:$0xff] %vm2236_vm0, %v2154_v10  ;;  %v2544_v41 = vld [vmem:[#allocation2 + $0x158] sm:$0xff]  ;;  %v5710_v45 = vld [vmem:[%s5955_s4 + $0xb0] sm:$0xff]  }
 0x231   :  { %v2612_v40 = vmul.f32 %v5671_v13, %v2541_v36  ;;  %v2165_v50 = vadd.f32 %v3880_v27, %v5463_v14  ;;  %3258 = vst.msk [vmem:[%s5957_s5 + $0x98] sm:$0xf] %vm3219_vm1, %v3592_v11  ;;  %v2157_v14 = vadd.f32 %v2156_v48, %v5411_v61  ;;  %v3593_v58 = vpack.c.bf16 %v2938_v28, %v2938_v28  ;;  %v5992_v21 = vld [vmem:[#allocation11_spill] sm:$0xff]  ;;  %v5993_v59 = vld [vmem:[#allocation12_spill] sm:$0xff] }
 0x232   :  { %v2936_v46 = vmax.f32 %v2872_v29, 0.0  ;;  %v2685_v49 = vadd.f32 %v5688_v2, %v2614_v5  ;;  %3256 = vst.msk [vmem:[%s5957_s5 + $0x90] sm:$0xf] %vm3219_vm1, %v3590_v1  ;;  %v2615_v34 = vmul.f32 %v5671_v13, %v2544_v41  ;;  %v3701_v61 = vunpack.c.h.bf16 %v5648_v57  ;;  %v5746_v20 = vld [vmem:[%s5955_s4 + $0xc8] sm:$0xff]   ;;  %v5762_v41 = vld [vmem:[%s5955_s4 + $0xc0] sm:$0xff]  }
 0x233   :  { %v2683_v54 = vadd.f32 %v5688_v2, %v2612_v40  ;;  %v2542_v43 = vld [vmem:[#allocation2 + $0x148] sm:$0xff]  ;;  %2284 = vst.msk [vmem:[#allocation2 + $0x178] sm:$0xff] %vm2236_vm0, %v2165_v50  ;;  %2282 = vst.msk [vmem:[#allocation2 + $0x168] sm:$0xff] %vm2236_vm0, %v2157_v14  ;;  %v3708_v3 = vunpack.c.l.bf16 %v5710_v45  ;;  %v3713_v28 = vunpack.c.h.bf16 %v5694_v15 }
 0x234   :  { %v3591_v33 = vpack.c.bf16 %v2936_v46, %v2936_v46  ;;  %v2877_v47 = vadd.f32 %v3704_v23, %v2685_v49  ;;  %v2613_v38 = vmul.f32 %v5671_v13, %v2542_v43  ;;  %3259 = vst.msk [vmem:[%s5957_s5 + $0x9c] sm:$0xf] %vm3219_vm1, %v3593_v58  ;;  %v2686_v52 = vadd.f32 %v5688_v2, %v2615_v34  ;;  %v1912_v17 = vpop.f32.mrb[112].mxu0  ;;  %v3883_v39 = vpop.f32.mrb[144].mxu1 }
 0x235   :  { %v2875_v18 = vadd.f32 %v3700_v22, %v2683_v54  ;;  %v5725_v26 = vadd.f32 %v1912_v17, %v5992_v21  ;;  %v2178_v57 = vadd.f32 %v3883_v39, %v5559_v60  ;;  %v1914_v31 = vpop.f32.mrb[113].mxu0  ;;  %v2169_v51 = vpop.f32.mrb[145].mxu1  ;;  %v3720_v58 = vunpack.c.l.bf16 %v5746_v20 }
 0x236   :  { %3257 = vst.msk [vmem:[%s5957_s5 + $0x94] sm:$0xf] %vm3219_vm1, %v3591_v33  ;;  %v2941_v44 = vmax.f32 %v2877_v47, 0.0  ;;  %v2684_v9 = vadd.f32 %v5688_v2, %v2613_v38  ;;  %v2878_v25 = vadd.f32 %v3705_v30, %v2686_v52  ;;  %v2547_v24 = vld [vmem:[#allocation2 + $0x170] sm:$0xff]  ;;  %v2170_v6 = vadd.f32 %v2169_v51, %v5507_v63  ;;  %v1915_v56 = vpop.f32.mrb[114].mxu0  ;;  %v3884_v42 = vpop.f32.mrb[146].mxu1 }
 0x237   :  { %v2939_v23 = vmax.f32 %v2875_v18, 0.0  ;;  %v2618_v7 = vmul.f32 %v5671_v13, %v2547_v24  ;;  %v2545_v37 = vld [vmem:[#allocation2 + $0x160] sm:$0xff]  ;;  %2287 = vst.msk [vmem:[#allocation2 + $0x190] sm:$0xff] %vm2236_vm0, %v2178_v57  ;;  %v5733_v60 = vadd.f32 %v1915_v56, %v5993_v59  ;;  %v1917_v22 = vpop.f32.mrb[115].mxu0  ;;  %v2172_v10 = vpop.f32.mrb[147].mxu1  ;;  %v2181_v63 = vadd.f32 %v3884_v42, %v5567_v12  ;;  %v5994_v33 = vld [vmem:[#allocation13_spill] sm:$0xff] }
 0x238   :  { %v3596_v35 = vpack.c.bf16 %v2941_v44, %v2941_v44  ;;  %v2876_v53 = vadd.f32 %v3701_v61, %v2684_v9  ;;  %v2942_v27 = vmax.f32 %v2878_v25, 0.0  ;;  %v2616_v11 = vmul.f32 %v5671_v13, %v2545_v37  ;;  %2285 = vst.msk [vmem:[#allocation2 + $0x180] sm:$0xff] %vm2236_vm0, %v2170_v6 }
 0x239   :  { %v3594_v32 = vpack.c.bf16 %v2939_v23, %v2939_v23  ;;  %v2689_v5 = vadd.f32 %v5688_v2, %v2618_v7  ;;  %v2173_v8 = vadd.f32 %v2172_v10, %v5515_v62  ;;  %2288 = vst.msk [vmem:[#allocation2 + $0x198] sm:$0xff] %vm2236_vm0, %v2181_v63  ;;  %v3709_v62 = vunpack.c.h.bf16 %v5710_v45  ;;  %v5995_v23 = vld [vmem:[#allocation14_spill] sm:$0xff] }
 0x23a   :  { %3262 = vst.msk [vmem:[%s5957_s5 + $0xa8] sm:$0xf] %vm3219_vm1, %v3596_v35  ;;  %v2940_v29 = vmax.f32 %v2876_v53, 0.0  ;;  %v2548_v36 = vld [vmem:[#allocation2 + $0x178] sm:$0xff]  ;;  %v3597_v12 = vpack.c.bf16 %v2942_v27, %v2942_v27  ;;  %v2687_v48 = vadd.f32 %v5688_v2, %v2616_v11  ;;  %v2546_v40 = vld [vmem:[#allocation2 + $0x168] sm:$0xff]  ;;  %v3716_v17 = vunpack.c.l.bf16 %v5762_v41 }
 0x23b   :  { %3260 = vst.msk [vmem:[%s5957_s5 + $0xa0] sm:$0xf] %vm3219_vm1, %v3594_v32  ;;  %v2619_v1 = vmul.f32 %v5671_v13, %v2548_v36  ;;  %v2881_v46 = vadd.f32 %v3712_v16, %v2689_v5  ;;  %v2617_v49 = vmul.f32 %v5671_v13, %v2546_v40  ;;  %v5794_v7 = vld [vmem:[%s5955_s4 + $0xd8] sm:$0xff]   ;;  %v3721_v10 = vunpack.c.h.bf16 %v5746_v20 }
 0x23c   :  { %v3595_v50 = vpack.c.bf16 %v2940_v29, %v2940_v29  ;;  %2286 = vst.msk [vmem:[#allocation2 + $0x188] sm:$0xff] %vm2236_vm0, %v2173_v8  ;;  %v2879_v15 = vadd.f32 %v3708_v3, %v2687_v48  ;;  %v1920_v54 = vpop.f32.mrb[116].mxu0  ;;  %v3887_v34 = vpop.f32.mrb[148].mxu1  ;;  %v5810_v29 = vld [vmem:[%s5955_s4 + $0xd0] sm:$0xff]   ;;  %v3728_v20 = vunpack.c.l.bf16 %v5794_v7 }
 0x23d   :  { %3263 = vst.msk [vmem:[%s5957_s5 + $0xac] sm:$0xf] %vm3219_vm1, %v3597_v12  ;;  %v2690_v14 = vadd.f32 %v5688_v2, %v2619_v1  ;;  %v2945_v30 = vmax.f32 %v2881_v46, 0.0  ;;  %v2688_v43 = vadd.f32 %v5688_v2, %v2617_v49  ;;  %v1921_v47 = vadd.f32 %v1920_v54, %v5994_v33  ;;  %v1922_v61 = vpop.f32.mrb[117].mxu0  ;;  %v2185_v45 = vpop.f32.mrb[149].mxu1 }
 0x23e   :  { %3261 = vst.msk [vmem:[%s5957_s5 + $0xa4] sm:$0xf] %vm3219_vm1, %v3595_v50  ;;  %v2194_v38 = vadd.f32 %v3887_v34, %v5663_v4  ;;  %v2943_v18 = vmax.f32 %v2879_v15, 0.0  ;;  %v2551_v16 = vld [vmem:[#allocation2 + $0x190] sm:$0xff]  ;;  %v2186_v39 = vadd.f32 %v2185_v45, %v5611_v19  ;;  %v1923_v44 = vpop.f32.mrb[118].mxu0  ;;  %v3888_v9 = vpop.f32.mrb[150].mxu1 }
 0x23f   :  { %v2882_v52 = vadd.f32 %v3713_v28, %v2690_v14  ;;  %v3600_v21 = vpack.c.bf16 %v2945_v30, %v2945_v30  ;;  %v2880_v57 = vadd.f32 %v3709_v62, %v2688_v43  ;;  %v2622_v31 = vmul.f32 %v5671_v13, %v2551_v16  ;;  %v2549_v51 = vld [vmem:[#allocation2 + $0x180] sm:$0xff]  ;;  %v1925_v25 = vpop.f32.mrb[119].mxu0  ;;  %v2188_v24 = vpop.f32.mrb[151].mxu1  ;;  %v5997_v61 = vld [vmem:[#allocation16_spill] sm:$0xff] }
 0x240   :  { %2291 = vst.msk [vmem:[#allocation2 + $0x1b0] sm:$0xff] %vm2236_vm0, %v2194_v38  ;;  %v1924_v4 = vadd.f32 %v1923_v44, %v5995_v23  ;;  %v3598_v3 = vpack.c.bf16 %v2943_v18, %v2943_v18  ;;  %v2620_v56 = vmul.f32 %v5671_v13, %v2549_v51  ;;  %2289 = vst.msk [vmem:[#allocation2 + $0x1a0] sm:$0xff] %vm2236_vm0, %v2186_v39  ;;  %v2552_v53 = vld [vmem:[#allocation2 + $0x198] sm:$0xff]  ;;  %v5996_v28 = vld [vmem:[#allocation15_spill] sm:$0xff]  ;;  %v3724_v14 = vunpack.c.l.bf16 %v5810_v29 }
 0x241   :  { %v2946_v6 = vmax.f32 %v2882_v52, 0.0  ;;  %v2197_v19 = vadd.f32 %v3888_v9, %v5676_v0  ;;  %3266 = vst.msk [vmem:[%s5957_s5 + $0xb8] sm:$0xf] %vm3219_vm1, %v3600_v21  ;;  %v2944_v42 = vmax.f32 %v2880_v57, 0.0  ;;  %v2693_v35 = vadd.f32 %v5688_v2, %v2622_v31  ;;  %v5850_v25 = vld [vmem:[%s5955_s4 + $0xe8] sm:$0xff]  }
 0x242   :  { %v2189_v37 = vadd.f32 %v2188_v24, %v5619_v55  ;;  %3264 = vst.msk [vmem:[%s5957_s5 + $0xb0] sm:$0xf] %vm3219_vm1, %v3598_v3  ;;  %v2691_v59 = vadd.f32 %v5688_v2, %v2620_v56  ;;  %v2623_v22 = vmul.f32 %v5671_v13, %v2552_v53  ;;  %v3717_v55 = vunpack.c.h.bf16 %v5762_v41  ;;  %v5858_v56 = vld [vmem:[%s5955_s4 + $0xe0] sm:$0xff]  }
 0x243   :  { %v3601_v0 = vpack.c.bf16 %v2946_v6, %v2946_v6  ;;  %v2550_v32 = vld [vmem:[#allocation2 + $0x188] sm:$0xff]  ;;  %2292 = vst.msk [vmem:[#allocation2 + $0x1b8] sm:$0xff] %vm2236_vm0, %v2197_v19  ;;  %v3599_v27 = vpack.c.bf16 %v2944_v42, %v2944_v42  ;;  %v2885_v11 = vadd.f32 %v3720_v58, %v2693_v35  ;;  %v3729_v23 = vunpack.c.h.bf16 %v5794_v7 }
 0x244   :  { %v2621_v63 = vmul.f32 %v5671_v13, %v2550_v32  ;;  %2290 = vst.msk [vmem:[#allocation2 + $0x1a8] sm:$0xff] %vm2236_vm0, %v2189_v37  ;;  %v2883_v5 = vadd.f32 %v3716_v17, %v2691_v59  ;;  %v2694_v36 = vadd.f32 %v5688_v2, %v2623_v22  ;;  %v1928_v8 = vpop.f32.mrb[120].mxu0  ;;  %v3891_v12 = vpop.f32.mrb[152].mxu1  ;;  %v3725_v6 = vunpack.c.h.bf16 %v5810_v29  ;;  %v5998_v59 = vld [vmem:[#allocation18_spill] sm:$0xff] }
 0x245   :  { %3267 = vst.msk [vmem:[%s5957_s5 + $0xbc] sm:$0xf] %vm3219_vm1, %v3601_v0  ;;  %3265 = vst.msk [vmem:[%s5957_s5 + $0xb4] sm:$0xf] %vm3219_vm1, %v3599_v27  ;;  %v2949_v48 = vmax.f32 %v2885_v11, 0.0  ;;  %v1929_v40 = vadd.f32 %v1928_v8, %v5996_v28  ;;  %v2210_v50 = vadd.f32 %v3891_v12, %v1921_v47  ;;  %v1930_v46 = vpop.f32.mrb[121].mxu0  ;;  %v3736_v0 = vunpack.c.l.bf16 %v5850_v25 }
 0x246   :  { %v2692_v1 = vadd.f32 %v5688_v2, %v2621_v63  ;;  %v2201_v49 = vpop.f32.mrb[153].mxu1  ;;  %v2947_v62 = vmax.f32 %v2883_v5, 0.0  ;;  %v2886_v41 = vadd.f32 %v3721_v10, %v2694_v36  ;;  %v1931_v54 = vpop.f32.mrb[122].mxu0 }
 0x247   :  { %v2555_v15 = vld [vmem:[#allocation2 + $0x1b0] sm:$0xff]  ;;  %v2202_v58 = vadd.f32 %v2201_v49, %v5725_v26  ;;  %v3892_v34 = vpop.f32.mrb[154].mxu1  ;;  %v3604_v30 = vpack.c.bf16 %v2949_v48, %v2949_v48  ;;  %v2553_v38 = vld [vmem:[#allocation2 + $0x1a0] sm:$0xff]  ;;  %2295 = vst.msk [vmem:[#allocation2 + $0x1d0] sm:$0xff] %vm2236_vm0, %v2210_v50  ;;  %v5830_v47 = vadd.f32 %v1931_v54, %v5997_v61  ;;  %v1933_v45 = vpop.f32.mrb[123].mxu0  ;;  %v3737_v54 = vunpack.c.h.bf16 %v5850_v25 }
 0x248   :  { %v2884_v43 = vadd.f32 %v3717_v55, %v2692_v1  ;;  %v2626_v33 = vmul.f32 %v5671_v13, %v2555_v15  ;;  %v2204_v18 = vpop.f32.mrb[155].mxu1  ;;  %v3602_v52 = vpack.c.bf16 %v2947_v62, %v2947_v62  ;;  %v2950_v16 = vmax.f32 %v2886_v41, 0.0  ;;  %v5999_v41 = vld [vmem:[#allocation19_spill] sm:$0xff] }
 0x249   :  { %v2624_v17 = vmul.f32 %v5671_v13, %v2553_v38  ;;  %2293 = vst.msk [vmem:[#allocation2 + $0x1c0] sm:$0xff] %vm2236_vm0, %v2202_v58  ;;  %v2213_v26 = vadd.f32 %v3892_v34, %v1924_v4  ;;  %v2205_v21 = vadd.f32 %v2204_v18, %v5733_v60  ;;  %v3732_v55 = vunpack.c.l.bf16 %v5858_v56 }
 0x24a   :  { %3270 = vst.msk [vmem:[%s5957_s5 + $0xc8] sm:$0xf] %vm3219_vm1, %v3604_v30  ;;  %v2948_v39 = vmax.f32 %v2884_v43, 0.0  ;;  %v2697_v44 = vadd.f32 %v5688_v2, %v2626_v33  ;;  %v2556_v9 = vld [vmem:[#allocation2 + $0x1b8] sm:$0xff]  ;;  %3268 = vst.msk [vmem:[%s5957_s5 + $0xc0] sm:$0xf] %vm3219_vm1, %v3602_v52  ;;  %v3605_v57 = vpack.c.bf16 %v2950_v16, %v2950_v16  ;;  %v3733_v16 = vunpack.c.h.bf16 %v5858_v56 }
 0x24b   :  { %v2695_v31 = vadd.f32 %v5688_v2, %v2624_v17  ;;  %v2627_v51 = vmul.f32 %v5671_v13, %v2556_v9  ;;  %v2554_v4 = vld [vmem:[#allocation2 + $0x1a8] sm:$0xff]  ;;  %2296 = vst.msk [vmem:[#allocation2 + $0x1d8] sm:$0xff] %vm2236_vm0, %v2213_v26  ;;  %2294 = vst.msk [vmem:[#allocation2 + $0x1c8] sm:$0xff] %vm2236_vm0, %v2205_v21 }
 0x24c   :  { %v3603_v60 = vpack.c.bf16 %v2948_v39, %v2948_v39  ;;  %v2889_v24 = vadd.f32 %v3728_v20, %v2697_v44  ;;  %v2625_v3 = vmul.f32 %v5671_v13, %v2554_v4  ;;  %3271 = vst.msk [vmem:[%s5957_s5 + $0xcc] sm:$0xf] %vm3219_vm1, %v3605_v57  ;;  %v1936_v35 = vpop.f32.mrb[124].mxu0  ;;  %v3895_v53 = vpop.f32.mrb[156].mxu1  ;;  %v3775_v44 = vld [vmem:[%s5955_s4 + $0xf0] sm:$0xff]   ;;  %v3776_v57 = vld [vmem:[%s5955_s4 + $0xf8] sm:$0xff]  }
 0x24d   :  { %v2887_v19 = vadd.f32 %v3724_v14, %v2695_v31  ;;  %v2698_v42 = vadd.f32 %v5688_v2, %v2627_v51  ;;  %v1937_v22 = vadd.f32 %v1936_v35, %v5998_v59  ;;  %v1938_v10 = vpop.f32.mrb[125].mxu0  ;;  %v2217_v32 = vpop.f32.mrb[157].mxu1 }
 0x24e   :  { %3269 = vst.msk [vmem:[%s5957_s5 + $0xc4] sm:$0xf] %vm3219_vm1, %v3603_v60  ;;  %v2953_v7 = vmax.f32 %v2889_v24, 0.0  ;;  %v2696_v37 = vadd.f32 %v5688_v2, %v2625_v3  ;;  %v2559_v63 = vld [vmem:[#allocation2 + $0x1d0] sm:$0xff]  ;;  %v2218_v29 = vadd.f32 %v2217_v32, %v1929_v40  ;;  %v1939_v5 = vpop.f32.mrb[126].mxu0  ;;  %v3896_v36 = vpop.f32.mrb[158].mxu1  ;;  %v3740_v3 = vunpack.c.l.bf16 %v3775_v44 }
 0x24f   :  { %v2951_v27 = vmax.f32 %v2887_v19, 0.0  ;;  %v2890_v11 = vadd.f32 %v3729_v23, %v2698_v42  ;;  %v2630_v12 = vmul.f32 %v5671_v13, %v2559_v63  ;;  %v2226_v1 = vadd.f32 %v3895_v53, %v1937_v22  ;;  %v1941_v28 = vpop.f32.mrb[127].mxu0  ;;  %v2220_v50 = vpop.f32.mrb[159].mxu1 }
 0x250   :  { %v3608_v20 = vpack.c.bf16 %v2953_v7, %v2953_v7  ;;  %v2888_v8 = vadd.f32 %v3725_v6, %v2696_v37  ;;  %v2557_v48 = vld [vmem:[#allocation2 + $0x1c0] sm:$0xff]  ;;  %2297 = vst.msk [vmem:[#allocation2 + $0x1e0] sm:$0xff] %vm2236_vm0, %v2218_v29  ;;  %v1940_v15 = vadd.f32 %v1939_v5, %v5999_v41  ;;  %v2221_v34 = vadd.f32 %v2220_v50, %v5830_v47 }
 0x251   :  { %v3606_v46 = vpack.c.bf16 %v2951_v27, %v2951_v27  ;;  %v2954_v49 = vmax.f32 %v2890_v11, 0.0  ;;  %v2628_v62 = vmul.f32 %v5671_v13, %v2557_v48  ;;  %v2701_v14 = vadd.f32 %v5688_v2, %v2630_v12  ;;  %2299 = vst.msk [vmem:[#allocation2 + $0x1f0] sm:$0xff] %vm2236_vm0, %v2226_v1 }
 0x252   :  { %3274 = vst.msk [vmem:[%s5957_s5 + $0xd8] sm:$0xf] %vm3219_vm1, %v3608_v20  ;;  %v2952_v40 = vmax.f32 %v2888_v8, 0.0  ;;  %v2560_v58 = vld [vmem:[#allocation2 + $0x1d8] sm:$0xff]  ;;  %v2558_v38 = vld [vmem:[#allocation2 + $0x1c8] sm:$0xff]  ;;  %v2229_v61 = vadd.f32 %v3896_v36, %v1940_v15  ;;  %v3744_v19 = vunpack.c.l.bf16 %v3776_v57  ;;  %v3741_v22 = vunpack.c.h.bf16 %v3775_v44 }
 0x253   :  { %3272 = vst.msk [vmem:[%s5957_s5 + $0xd0] sm:$0xf] %vm3219_vm1, %v3606_v46  ;;  %v3609_v30 = vpack.c.bf16 %v2954_v49, %v2954_v49  ;;  %v2699_v43 = vadd.f32 %v5688_v2, %v2628_v62  ;;  %v2631_v33 = vmul.f32 %v5671_v13, %v2560_v58  ;;  %v2893_v18 = vadd.f32 %v3736_v0, %v2701_v14 }
 0x254   :  { %v3607_v45 = vpack.c.bf16 %v2952_v40, %v2952_v40  ;;  %v2629_v52 = vmul.f32 %v5671_v13, %v2558_v38  ;;  %2298 = vst.msk [vmem:[#allocation2 + $0x1e8] sm:$0xff] %vm2236_vm0, %v2221_v34  ;;  %2300 = vst.msk [vmem:[#allocation2 + $0x1f8] sm:$0xff] %vm2236_vm0, %v2229_v61  ;;  %v3745_v27 = vunpack.c.h.bf16 %v3776_v57 }
 0x255   :  { %3275 = vst.msk [vmem:[%s5957_s5 + $0xdc] sm:$0xf] %vm3219_vm1, %v3609_v30  ;;  %v2891_v47 = vadd.f32 %v3732_v55, %v2699_v43  ;;  %v2702_v17 = vadd.f32 %v5688_v2, %v2631_v33  ;;  %v2957_v26 = vmax.f32 %v2893_v18, 0.0 }
 0x256   :  { %3273 = vst.msk [vmem:[%s5957_s5 + $0xd4] sm:$0xf] %vm3219_vm1, %v3607_v45  ;;  %v2700_v39 = vadd.f32 %v5688_v2, %v2629_v52 }
 0x257   :  { %v2955_v9 = vmax.f32 %v2891_v47, 0.0  ;;  %v2894_v21 = vadd.f32 %v3737_v54, %v2702_v17  ;;  %v3612_v31 = vpack.c.bf16 %v2957_v26, %v2957_v26  ;;  %v2561_v23 = vld [vmem:[#allocation2 + $0x1e0] sm:$0xff] }
 0x258   :  { %v2892_v51 = vadd.f32 %v3733_v16, %v2700_v39  ;;  %v2563_v60 = vld [vmem:[#allocation2 + $0x1f0] sm:$0xff]  ;;  %v2632_v24 = vmul.f32 %v5671_v13, %v2561_v23 }
 0x259   :  { %v3610_v4 = vpack.c.bf16 %v2955_v9, %v2955_v9  ;;  %v2958_v25 = vmax.f32 %v2894_v21, 0.0  ;;  %3278 = vst.msk [vmem:[%s5957_s5 + $0xe8] sm:$0xf] %vm3219_vm1, %v3612_v31  ;;  %v2634_v56 = vmul.f32 %v5671_v13, %v2563_v60 }
 0x25a   :  { %v2956_v6 = vmax.f32 %v2892_v51, 0.0  ;;  %v2703_v35 = vadd.f32 %v5688_v2, %v2632_v24 }
 0x25b   :  { %3276 = vst.msk [vmem:[%s5957_s5 + $0xe0] sm:$0xf] %vm3219_vm1, %v3610_v4  ;;  %v3613_v42 = vpack.c.bf16 %v2958_v25, %v2958_v25  ;;  %v2562_v53 = vld [vmem:[#allocation2 + $0x1e8] sm:$0xff]  ;;  %v2705_v37 = vadd.f32 %v5688_v2, %v2634_v56  ;;  %v2564_v0 = vld [vmem:[#allocation2 + $0x1f8] sm:$0xff] }
 0x25c   :  { %v3611_v7 = vpack.c.bf16 %v2956_v6, %v2956_v6  ;;  %v2633_v59 = vmul.f32 %v5671_v13, %v2562_v53  ;;  %v2895_v10 = vadd.f32 %v3740_v3, %v2703_v35  ;;  %v2635_v32 = vmul.f32 %v5671_v13, %v2564_v0 }
 0x25d   :  { %3279 = vst.msk [vmem:[%s5957_s5 + $0xec] sm:$0xf] %vm3219_vm1, %v3613_v42  ;;  %v2897_v11 = vadd.f32 %v3744_v19, %v2705_v37 }
 0x25e   :  { %3277 = vst.msk [vmem:[%s5957_s5 + $0xe4] sm:$0xf] %vm3219_vm1, %v3611_v7  ;;  %v2704_v63 = vadd.f32 %v5688_v2, %v2633_v59  ;;  %v2959_v55 = vmax.f32 %v2895_v10, 0.0  ;;  %v2706_v29 = vadd.f32 %v5688_v2, %v2635_v32 }
 0x25f   :  { %v2961_v5 = vmax.f32 %v2897_v11, 0.0 }
 0x260   :  { %v2896_v36 = vadd.f32 %v3741_v22, %v2704_v63  ;;  %v3614_v20 = vpack.c.bf16 %v2959_v55, %v2959_v55  ;;  %v2898_v8 = vadd.f32 %v3745_v27, %v2706_v29 }
 0x261   :  { %v3616_v12 = vpack.c.bf16 %v2961_v5, %v2961_v5 }
 0x262   :  { %v2960_v48 = vmax.f32 %v2896_v36, 0.0  ;;  %3280 = vst.msk [vmem:[%s5957_s5 + $0xf0] sm:$0xf] %vm3219_vm1, %v3614_v20  ;;  %v2962_v13 = vmax.f32 %v2898_v8, 0.0 }
 0x263   :  { %3282 = vst.msk [vmem:[%s5957_s5 + $0xf8] sm:$0xf] %vm3219_vm1, %v3616_v12 }
 0x264   :  { %v3615_v1 = vpack.c.bf16 %v2960_v48, %v2960_v48  ;;  %v3617_v28 = vpack.c.bf16 %v2962_v13, %v2962_v13 }
 0x266   :  { %3281 = vst.msk [vmem:[%s5957_s5 + $0xf4] sm:$0xf] %vm3219_vm1, %v3615_v1  ;;  %3283 = vst.msk [vmem:[%s5957_s5 + $0xfc] sm:$0xf] %vm3219_vm1, %v3617_v28 }

// kernel: resnet_forward.12
= control target key start
LH: loop header
LB: loop body
LE: loop exit
PB: predicated region body
PF: predicated region fallthrough
CT: control target
= control target key end

     0   :  { %s3260_s1 = inlined_call_operand.vmem [shape: bf16[1152,128], index: 1, kind: input, shape index: {}]   ;;  %s3261_s0 = inlined_call_operand.vmem [shape: bf16[128,1152], index: 0, kind: input, shape index: {}]   ;;  %s3262_s4 = inlined_call_operand.vmem [shape: bf16[128,128], index: 4, kind: input, shape index: {}]   ;;  %s3263_s2 = inlined_call_operand.vmem [shape: f32[1,128], index: 2, kind: input, shape index: {}]   ;;  %s3264_s3 = inlined_call_operand.vmem [shape: f32[1,128], index: 3, kind: input, shape index: {}]   ;;  %s3265_s5 = inlined_call_operand.vmem [shape: bf16[128,128], index: 5, kind: output, shape index: {}]  }
   0x1   :  { %v2399_v0 = vld [vmem:[%s3260_s1 + $0x40] sm:$0xff]   ;;  %v2403_v4 = vld [vmem:[%s3260_s1 + $0x48] sm:$0xff]   ;;  %v2407_v8 = vld [vmem:[%s3260_s1 + $0x50] sm:$0xff]  }
   0x2   :  { %v2400_v1 = vld [vmem:[%s3260_s1 + $0xc0] sm:$0xff]   ;;  %2079 = vmatprep.subr.bf16.mxu0 %v2399_v0  ;;  %v2404_v5 = vld [vmem:[%s3260_s1 + $0xc8] sm:$0xff]   ;;  %v2408_v9 = vld [vmem:[%s3260_s1 + $0xd0] sm:$0xff]  }
   0x3   :  { %v2401_v2 = vld [vmem:[%s3260_s1] sm:$0xff]   ;;  %2143 = vmatprep.subr.bf16.mxu1 %v2400_v1  ;;  %v2405_v6 = vld [vmem:[%s3260_s1 + $0x8] sm:$0xff]   ;;  %v2409_v10 = vld [vmem:[%s3260_s1 + $0x10] sm:$0xff]  }
   0x4   :  { %v2402_v3 = vld [vmem:[%s3260_s1 + $0x80] sm:$0xff]   ;;  %2080 = vmatpush3.bf16.msra.mxu0 %v2401_v2  ;;  %v2406_v7 = vld [vmem:[%s3260_s1 + $0x88] sm:$0xff]   ;;  %v2410_v11 = vld [vmem:[%s3260_s1 + $0x90] sm:$0xff]  }
   0x5   :  { %2144 = vmatpush3.bf16.msra.mxu1 %v2402_v3  ;;  %2081 = vmatprep.subr.bf16.mxu0 %v2403_v4  ;;  %v2411_v12 = vld [vmem:[%s3260_s1 + $0x58] sm:$0xff]   ;;  %v2415_v16 = vld [vmem:[%s3260_s1 + $0x60] sm:$0xff]   ;;  %v2419_v20 = vld [vmem:[%s3260_s1 + $0x68] sm:$0xff]  }
   0x6   :  { %2145 = vmatprep.subr.bf16.mxu1 %v2404_v5  ;;  %v2412_v13 = vld [vmem:[%s3260_s1 + $0xd8] sm:$0xff]   ;;  %v2416_v17 = vld [vmem:[%s3260_s1 + $0xe0] sm:$0xff]   ;;  %v2420_v21 = vld [vmem:[%s3260_s1 + $0xe8] sm:$0xff]  }
   0x7   :  { %v2413_v14 = vld [vmem:[%s3260_s1 + $0x18] sm:$0xff]   ;;  %v2417_v18 = vld [vmem:[%s3260_s1 + $0x20] sm:$0xff]   ;;  %v2421_v22 = vld [vmem:[%s3260_s1 + $0x28] sm:$0xff]  }
   0x8   :  { %2082 = vmatpush3.bf16.msra.mxu0 %v2405_v6  ;;  %v2414_v15 = vld [vmem:[%s3260_s1 + $0x98] sm:$0xff]   ;;  %v2418_v19 = vld [vmem:[%s3260_s1 + $0xa0] sm:$0xff]   ;;  %v2422_v23 = vld [vmem:[%s3260_s1 + $0xa8] sm:$0xff]  }
   0x9   :  { %2146 = vmatpush3.bf16.msra.mxu1 %v2406_v7  ;;  %2083 = vmatprep.subr.bf16.mxu0 %v2407_v8  ;;  %v2423_v24 = vld [vmem:[%s3260_s1 + $0x70] sm:$0xff]   ;;  %v2427_v28 = vld [vmem:[%s3260_s1 + $0x78] sm:$0xff]   ;;  %v2431_v32 = vld [vmem:[%s3261_s0] ss:$36 sps:$4 sm:$0xff]  }
   0xa   :  { %2147 = vmatprep.subr.bf16.mxu1 %v2408_v9  ;;  %v2424_v25 = vld [vmem:[%s3260_s1 + $0xf0] sm:$0xff]   ;;  %v2428_v29 = vld [vmem:[%s3260_s1 + $0xf8] sm:$0xff]   ;;  %v2433_v33 = vld [vmem:[%s3261_s0 + $0x4] ss:$36 sps:$4 sm:$0xff]  }
   0xb   :  { %v2425_v26 = vld [vmem:[%s3260_s1 + $0x30] sm:$0xff]   ;;  %v2429_v30 = vld [vmem:[%s3260_s1 + $0x38] sm:$0xff]   ;;  %v2434_v34 = vld [vmem:[%s3261_s0 + $0x8] ss:$36 sps:$4 sm:$0xff]   ;;  %1077 = vmatprep.mubr.bf16.mxu0 %v2433_v33 }
   0xc   :  { %2084 = vmatpush3.bf16.msra.mxu0 %v2409_v10  ;;  %v2426_v27 = vld [vmem:[%s3260_s1 + $0xb0] sm:$0xff]   ;;  %v2430_v31 = vld [vmem:[%s3260_s1 + $0xb8] sm:$0xff]   ;;  %v2437_v36 = vld [vmem:[%s3260_s1 + $0x140] sm:$0xff]  }
   0xd   :  { %2148 = vmatpush3.bf16.msra.mxu1 %v2410_v11  ;;  %2085 = vmatprep.subr.bf16.mxu0 %v2411_v12  ;;  %v2436_v35 = vld [vmem:[%s3261_s0 + $0xc] ss:$36 sps:$4 sm:$0xff]   ;;  %v2438_v37 = vld [vmem:[%s3260_s1 + $0x1c0] sm:$0xff]   ;;  %v2443_v41 = vld [vmem:[%s3261_s0 + $0x54] ss:$36 sps:$4 sm:$0xff]  }
   0xe   :  { %2149 = vmatprep.subr.bf16.mxu1 %v2412_v13  ;;  %1174 = vmatprep.mubr.bf16.mxu1 %v2436_v35  ;;  %v2439_v38 = vld [vmem:[%s3260_s1 + $0x100] sm:$0xff]   ;;  %v2441_v40 = vld [vmem:[%s3261_s0 + $0x4c] ss:$36 sps:$4 sm:$0xff]   ;;  %v2451_v48 = vld [vmem:[%s3261_s0 + $0x94] ss:$36 sps:$4 sm:$0xff]  }
   0xf   :  { %v2440_v39 = vld [vmem:[%s3260_s1 + $0x180] sm:$0xff]   ;;  %v2445_v42 = vld [vmem:[%s3261_s0 + $0x48] ss:$36 sps:$4 sm:$0xff]   ;;  %v2446_v43 = vld [vmem:[%s3261_s0 + $0x50] ss:$36 sps:$4 sm:$0xff]  }
  0x10   :  { %2086 = vmatpush3.bf16.msra.mxu0 %v2413_v14  ;;  %v2447_v44 = vld [vmem:[%s3260_s1 + $0x148] sm:$0xff]   ;;  %v2453_v49 = vld [vmem:[%s3261_s0 + $0x9c] ss:$36 sps:$4 sm:$0xff]   ;;  %v2455_v50 = vld [vmem:[%s3261_s0 + $0x90] ss:$36 sps:$4 sm:$0xff]  }
  0x11   :  { %2150 = vmatpush3.bf16.msra.mxu1 %v2414_v15  ;;  %2087 = vmatprep.subr.bf16.mxu0 %v2415_v16  ;;  %v2448_v45 = vld [vmem:[%s3260_s1 + $0x1c8] sm:$0xff]   ;;  %v2456_v51 = vld [vmem:[%s3261_s0 + $0x98] ss:$36 sps:$4 sm:$0xff]   ;;  %v2457_v52 = vld [vmem:[%s3260_s1 + $0x150] sm:$0xff]  }
  0x12   :  { %2151 = vmatprep.subr.bf16.mxu1 %v2416_v17  ;;  %v2449_v46 = vld [vmem:[%s3260_s1 + $0x108] sm:$0xff]   ;;  %v2458_v53 = vld [vmem:[%s3260_s1 + $0x1d0] sm:$0xff]   ;;  %v2461_v56 = vld [vmem:[%s3261_s0 + $0xdc] ss:$36 sps:$4 sm:$0xff]  }
  0x13   :  { %v2450_v47 = vld [vmem:[%s3260_s1 + $0x188] sm:$0xff]   ;;  %v2459_v54 = vld [vmem:[%s3260_s1 + $0x110] sm:$0xff]   ;;  %v2465_v58 = vld [vmem:[%s3261_s0 + $0xd8] ss:$36 sps:$4 sm:$0xff]  }
  0x14   :  { %2088 = vmatpush3.bf16.msra.mxu0 %v2417_v18  ;;  %v2460_v55 = vld [vmem:[%s3260_s1 + $0x190] sm:$0xff]   ;;  %v2463_v57 = vld [vmem:[%s3261_s0 + $0xe4] ss:$36 sps:$4 sm:$0xff]   ;;  %v2467_v60 = vld [vmem:[%s3260_s1 + $0x158] sm:$0xff]  }
  0x15   :  { %2152 = vmatpush3.bf16.msra.mxu1 %v2418_v19  ;;  %2089 = vmatprep.subr.bf16.mxu0 %v2419_v20  ;;  %v2466_v59 = vld [vmem:[%s3261_s0 + $0xe0] ss:$36 sps:$4 sm:$0xff]   ;;  %v2468_v61 = vld [vmem:[%s3260_s1 + $0x1d8] sm:$0xff]   ;;  %v2473_v1 = vld [vmem:[%s3261_s0 + $0x12c] ss:$36 sps:$4 sm:$0xff]  }
  0x16   :  { %2153 = vmatprep.subr.bf16.mxu1 %v2420_v21  ;;  %v2469_v62 = vld [vmem:[%s3260_s1 + $0x118] sm:$0xff]   ;;  %v2471_v0 = vld [vmem:[%s3261_s0 + $0x124] ss:$36 sps:$4 sm:$0xff]   ;;  %v2481_v8 = vld [vmem:[%s3261_s0 + $0x16c] ss:$36 sps:$4 sm:$0xff]  }
  0x17   :  { %v2470_v63 = vld [vmem:[%s3260_s1 + $0x198] sm:$0xff]   ;;  %v2475_v2 = vld [vmem:[%s3261_s0 + $0x120] ss:$36 sps:$4 sm:$0xff]   ;;  %v2476_v4 = vld [vmem:[%s3261_s0 + $0x128] ss:$36 sps:$4 sm:$0xff]  }
  0x18   :  { %2090 = vmatpush3.bf16.msra.mxu0 %v2421_v22  ;;  %v2477_v3 = vld [vmem:[%s3260_s1 + $0x160] sm:$0xff]   ;;  %v2483_v9 = vld [vmem:[%s3261_s0 + $0x174] ss:$36 sps:$4 sm:$0xff]   ;;  %v2487_v10 = vld [vmem:[%s3260_s1 + $0x168] sm:$0xff]  }
  0x19   :  { %2154 = vmatpush3.bf16.msra.mxu1 %v2422_v23  ;;  %2091 = vmatprep.subr.bf16.mxu0 %v2423_v24  ;;  %v2478_v5 = vld [vmem:[%s3260_s1 + $0x1e0] sm:$0xff]   ;;  %v2488_v11 = vld [vmem:[%s3260_s1 + $0x1e8] sm:$0xff]   ;;  %v2486_v15 = vld [vmem:[%s3261_s0 + $0x170] ss:$36 sps:$4 sm:$0xff]  }
  0x1a   :  { %2155 = vmatprep.subr.bf16.mxu1 %v2424_v25  ;;  %v2479_v6 = vld [vmem:[%s3260_s1 + $0x120] sm:$0xff]   ;;  %v2485_v12 = vld [vmem:[%s3261_s0 + $0x168] ss:$36 sps:$4 sm:$0xff]   ;;  %v2491_v16 = vld [vmem:[%s3261_s0 + $0x1b4] ss:$36 sps:$4 sm:$0xff]  }
  0x1b   :  { %v2480_v7 = vld [vmem:[%s3260_s1 + $0x1a0] sm:$0xff]   ;;  %v2489_v13 = vld [vmem:[%s3260_s1 + $0x128] sm:$0xff]   ;;  %v2497_v18 = vld [vmem:[%s3260_s1 + $0x170] sm:$0xff]  }
  0x1c   :  { %2092 = vmatpush3.bf16.msra.mxu0 %v2425_v26  ;;  %v2490_v14 = vld [vmem:[%s3260_s1 + $0x1a8] sm:$0xff]   ;;  %v2493_v17 = vld [vmem:[%s3261_s0 + $0x1bc] ss:$36 sps:$4 sm:$0xff]   ;;  %v2498_v19 = vld [vmem:[%s3260_s1 + $0x1f0] sm:$0xff]  }
  0x1d   :  { %2156 = vmatpush3.bf16.msra.mxu1 %v2426_v27  ;;  %2093 = vmatprep.subr.bf16.mxu0 %v2427_v28  ;;  %v2499_v20 = vld [vmem:[%s3260_s1 + $0x130] sm:$0xff]   ;;  %v2496_v23 = vld [vmem:[%s3261_s0 + $0x1b8] ss:$36 sps:$4 sm:$0xff]   ;;  %v2503_v25 = vld [vmem:[%s3261_s0 + $0x204] ss:$36 sps:$4 sm:$0xff]  }
  0x1e   :  { %2157 = vmatprep.subr.bf16.mxu1 %v2428_v29  ;;  %v2500_v21 = vld [vmem:[%s3260_s1 + $0x1b0] sm:$0xff]   ;;  %v2501_v24 = vld [vmem:[%s3261_s0 + $0x1fc] ss:$36 sps:$4 sm:$0xff]  }
  0x1f   :  { %v2495_v22 = vld [vmem:[%s3261_s0 + $0x1b0] ss:$36 sps:$4 sm:$0xff]   ;;  %v2507_v26 = vld [vmem:[%s3260_s1 + $0x178] sm:$0xff]  }
  0x20   :  { %2094 = vmatpush3.bf16.msra.mxu0 %v2429_v30  ;;  %v2508_v27 = vld [vmem:[%s3260_s1 + $0x1f8] sm:$0xff]   ;;  %v2511_v35 = vld [vmem:[%s3261_s0 + $0x10] ss:$36 sps:$4 sm:$0xff]  }
  0x21   :  { %2158 = vmatpush3.bf16.msra.mxu1 %v2430_v31  ;;  %2207 = vmatprep.subr.bf16.mxu0 %v2437_v36  ;;  %v2509_v28 = vld [vmem:[%s3260_s1 + $0x138] sm:$0xff]   ;;  %v2506_v31 = vld [vmem:[%s3261_s0 + $0x200] ss:$36 sps:$4 sm:$0xff]  }
  0x22   :  { %2271 = vmatprep.subr.bf16.mxu1 %v2438_v37  ;;  %v2510_v29 = vld [vmem:[%s3260_s1 + $0x1b8] sm:$0xff]  }
  0x23   :  { %1078 = vmatmul.mubr.bf16.vlgmr.msra.gmra.mrb[0].mxu0 %v2431_v32  ;;  %v2505_v30 = vld [vmem:[%s3261_s0 + $0x1f8] ss:$36 sps:$4 sm:$0xff]   ;;  %v2517_v32 = vld [vmem:[%s3260_s1 + $0x200] sm:$0xff]  }
  0x24   :  { %1175 = vmatmul.mubr.bf16.vlgmr.msra.gmra.mrb[0].mxu1 %v2434_v34  ;;  %2208 = vmatpush3.bf16.msra.mxu0 %v2439_v38  ;;  %v2513_v33 = vld [vmem:[%s3261_s0 + $0x14] ss:$36 sps:$4 sm:$0xff]   ;;  %v2516_v34 = vld [vmem:[%s3261_s0 + $0x1c] ss:$36 sps:$4 sm:$0xff]   ;;  %v2520_v38 = vld [vmem:[%s3261_s0 + $0x64] ss:$36 sps:$4 sm:$0xff]  }
  0x25   :  { %2272 = vmatpush3.bf16.msra.mxu1 %v2440_v39  ;;  %1085 = vmatprep.mubr.bf16.mxu0 %v2441_v40  ;;  %v2514_v36 = vld [vmem:[%s3261_s0 + $0x18] ss:$36 sps:$4 sm:$0xff]   ;;  %v2524_v39 = vld [vmem:[%s3260_s1 + $0x208] sm:$0xff]   ;;  %v2531_v40 = vld [vmem:[%s3260_s1 + $0x210] sm:$0xff]  }
  0x26   :  { %1182 = vmatprep.mubr.bf16.mxu1 %v2443_v41  ;;  %2209 = vmatprep.subr.bf16.mxu0 %v2447_v44  ;;  %v2518_v37 = vld [vmem:[%s3261_s0 + $0x5c] ss:$36 sps:$4 sm:$0xff]   ;;  %v2527_v44 = vld [vmem:[%s3261_s0 + $0xac] ss:$36 sps:$4 sm:$0xff]  }
  0x27   :  { %2273 = vmatprep.subr.bf16.mxu1 %v2448_v45  ;;  %v2522_v41 = vld [vmem:[%s3261_s0 + $0x58] ss:$36 sps:$4 sm:$0xff]  }
  0x28   :  { %2210 = vmatpush3.bf16.msra.mxu0 %v2449_v46  ;;  %v2538_v45 = vld [vmem:[%s3260_s1 + $0x218] sm:$0xff]   ;;  %v2545_v46 = vld [vmem:[%s3260_s1 + $0x220] sm:$0xff]  }
  0x29   :  { %2274 = vmatpush3.bf16.msra.mxu1 %v2450_v47  ;;  %2211 = vmatprep.subr.bf16.mxu0 %v2457_v52  ;;  %v2529_v47 = vld [vmem:[%s3261_s0 + $0xa0] ss:$36 sps:$4 sm:$0xff]   ;;  %v2536_v52 = vld [vmem:[%s3261_s0 + $0xe8] ss:$36 sps:$4 sm:$0xff]  }
  0x2a   :  { %2275 = vmatprep.subr.bf16.mxu1 %v2458_v53  ;;  %v2559_v53 = vld [vmem:[%s3260_s1 + $0x230] sm:$0xff]  }
  0x2b   :  { %1086 = vmatmul.mubr.bf16.gmra.mrb[4].mxu0 %v2445_v42  ;;  %v2523_v42 = vld [vmem:[%s3261_s0 + $0x60] ss:$36 sps:$4 sm:$0xff]  }
  0x2c   :  { %1183 = vmatmul.mubr.bf16.gmra.mrb[4].mxu1 %v2446_v43  ;;  %1093 = vmatprep.mubr.bf16.mxu0 %v2451_v48  ;;  %v2525_v43 = vld [vmem:[%s3261_s0 + $0xa4] ss:$36 sps:$4 sm:$0xff]  }
  0x2d   :  { %1190 = vmatprep.mubr.bf16.mxu1 %v2453_v49  ;;  %2212 = vmatpush3.bf16.msra.mxu0 %v2459_v54  ;;  %v2530_v48 = vld [vmem:[%s3261_s0 + $0xa8] ss:$36 sps:$4 sm:$0xff]   ;;  %v2537_v54 = vld [vmem:[%s3261_s0 + $0xf0] ss:$36 sps:$4 sm:$0xff]  }
  0x2e   :  { %2276 = vmatpush3.bf16.msra.mxu1 %v2460_v55  ;;  %2213 = vmatprep.subr.bf16.mxu0 %v2467_v60  ;;  %v2532_v49 = vld [vmem:[%s3261_s0 + $0xec] ss:$36 sps:$4 sm:$0xff]   ;;  %v2539_v55 = vld [vmem:[%s3261_s0 + $0x134] ss:$36 sps:$4 sm:$0xff]   ;;  %v2546_v60 = vld [vmem:[%s3261_s0 + $0x17c] ss:$36 sps:$4 sm:$0xff]  }
  0x2f   :  { %2277 = vmatprep.subr.bf16.mxu1 %v2468_v61  ;;  %v2548_v61 = vld [vmem:[%s3261_s0 + $0x184] ss:$36 sps:$4 sm:$0xff]  }
  0x31   :  { %2214 = vmatpush3.bf16.msra.mxu0 %v2469_v62  ;;  %v2550_v62 = vld [vmem:[%s3261_s0 + $0x178] ss:$36 sps:$4 sm:$0xff]  }
  0x32   :  { %2278 = vmatpush3.bf16.msra.mxu1 %v2470_v63  ;;  %2215 = vmatprep.subr.bf16.mxu0 %v2477_v3  ;;  %v2551_v63 = vld [vmem:[%s3261_s0 + $0x180] ss:$36 sps:$4 sm:$0xff]   ;;  %v2558_v3 = vld [vmem:[%s3261_s0 + $0x1c8] ss:$36 sps:$4 sm:$0xff]  }
  0x33   :  { %1094 = vmatmul.mubr.bf16.gmra.mrb[8].mxu0 %v2455_v50  ;;  %2279 = vmatprep.subr.bf16.mxu1 %v2478_v5  ;;  %v2534_v50 = vld [vmem:[%s3261_s0 + $0xf4] ss:$36 sps:$4 sm:$0xff]  }
  0x34   :  { %1191 = vmatmul.mubr.bf16.gmra.mrb[8].mxu1 %v2456_v51  ;;  %1101 = vmatprep.mubr.bf16.mxu0 %v2461_v56  ;;  %v2552_v51 = vld [vmem:[%s3260_s1 + $0x228] sm:$0xff]   ;;  %v2541_v56 = vld [vmem:[%s3261_s0 + $0x13c] ss:$36 sps:$4 sm:$0xff]   ;;  %v2562_v5 = vld [vmem:[%s3261_s0 + $0x214] ss:$36 sps:$4 sm:$0xff]  }
  0x35   :  { %1198 = vmatprep.mubr.bf16.mxu1 %v2463_v57  ;;  %2216 = vmatpush3.bf16.msra.mxu0 %v2479_v6  ;;  %v2566_v57 = vld [vmem:[%s3260_s1 + $0x238] sm:$0xff]   ;;  %v2564_v6 = vld [vmem:[%s3261_s0 + $0x208] ss:$36 sps:$4 sm:$0xff]  }
  0x36   :  { %2280 = vmatpush3.bf16.msra.mxu1 %v2480_v7  ;;  %2217 = vmatprep.subr.bf16.mxu0 %v2487_v10  ;;  %v2565_v7 = vld [vmem:[%s3261_s0 + $0x210] ss:$36 sps:$4 sm:$0xff]   ;;  %v2569_v10 = vld [vmem:[%s3261_s0 + $0x68] ss:$36 sps:$4 sm:$0xff]  }
  0x37   :  { %2281 = vmatprep.subr.bf16.mxu1 %v2488_v11  ;;  %v2570_v11 = vld [vmem:[%s3261_s0 + $0x188] ss:$36 sps:$4 sm:$0xff]  }
  0x39   :  { %2218 = vmatpush3.bf16.msra.mxu0 %v2489_v13  ;;  %v2572_v13 = vld [vmem:[%s3261_s0 + $0x1d0] ss:$36 sps:$4 sm:$0xff]  }
  0x3a   :  { %2282 = vmatpush3.bf16.msra.mxu1 %v2490_v14  ;;  %2219 = vmatprep.subr.bf16.mxu0 %v2497_v18  ;;  %v2573_v14 = vld [vmem:[%s3261_s0 + $0xf8] ss:$36 sps:$4 sm:$0xff]  }
  0x3b   :  { %1102 = vmatmul.mubr.bf16.gmra.mrb[12].mxu0 %v2465_v58  ;;  %2283 = vmatprep.subr.bf16.mxu1 %v2498_v19  ;;  %v2543_v58 = vld [vmem:[%s3261_s0 + $0x130] ss:$36 sps:$4 sm:$0xff]  }
  0x3c   :  { %1199 = vmatmul.mubr.bf16.gmra.mrb[12].mxu1 %v2466_v59  ;;  %1109 = vmatprep.mubr.bf16.mxu0 %v2471_v0  ;;  %v2544_v59 = vld [vmem:[%s3261_s0 + $0x138] ss:$36 sps:$4 sm:$0xff]   ;;  %v2553_v0 = vld [vmem:[%s3261_s0 + $0x1c4] ss:$36 sps:$4 sm:$0xff]  }
  0x3d   :  { %1206 = vmatprep.mubr.bf16.mxu1 %v2473_v1  ;;  %2220 = vmatpush3.bf16.msra.mxu0 %v2499_v20  ;;  %v2555_v1 = vld [vmem:[%s3261_s0 + $0x1cc] ss:$36 sps:$4 sm:$0xff]  }
  0x3e   :  { %2284 = vmatpush3.bf16.msra.mxu1 %v2500_v21  ;;  %2221 = vmatprep.subr.bf16.mxu0 %v2507_v26 }
  0x3f   :  { %2285 = vmatprep.subr.bf16.mxu1 %v2508_v27 }
  0x41   :  { %2222 = vmatpush3.bf16.msra.mxu0 %v2509_v28 }
  0x42   :  { %2286 = vmatpush3.bf16.msra.mxu1 %v2510_v29  ;;  %2351 = vmatprep.subr.bf16.mxu0 %v2517_v32 }
  0x43   :  { %1110 = vmatmul.mubr.bf16.gmra.mrb[16].mxu0 %v2475_v2  ;;  %2383 = vmatprep.subr.bf16.mxu1 %v2517_v32  ;;  %v2557_v2 = vld [vmem:[%s3261_s0 + $0x1c0] ss:$36 sps:$4 sm:$0xff]  }
  0x44   :  { %1207 = vmatmul.mubr.bf16.gmra.mrb[16].mxu1 %v2476_v4  ;;  %1117 = vmatprep.mubr.bf16.mxu0 %v2481_v8  ;;  %v2560_v4 = vld [vmem:[%s3261_s0 + $0x20c] ss:$36 sps:$4 sm:$0xff]   ;;  %v2567_v8 = vld [vmem:[%s3261_s0 + $0x20] ss:$36 sps:$4 sm:$0xff]  }
  0x45   :  { %1214 = vmatprep.mubr.bf16.mxu1 %v2483_v9  ;;  %v2568_v9 = vld [vmem:[%s3261_s0 + $0x140] ss:$36 sps:$4 sm:$0xff]  }
  0x4b   :  { %1118 = vmatmul.mubr.bf16.gmra.mrb[20].mxu0 %v2485_v12  ;;  %v2571_v12 = vld [vmem:[%s3261_s0 + $0xb0] ss:$36 sps:$4 sm:$0xff]  }
  0x4c   :  { %1215 = vmatmul.mubr.bf16.gmra.mrb[20].mxu1 %v2486_v15  ;;  %1125 = vmatprep.mubr.bf16.mxu0 %v2491_v16  ;;  %v2574_v15 = vld [vmem:[%s3261_s0 + $0x218] ss:$36 sps:$4 sm:$0xff]  }
  0x4d   :  { %1222 = vmatprep.mubr.bf16.mxu1 %v2493_v17 }
  0x53   :  { %1126 = vmatmul.mubr.bf16.gmra.mrb[24].mxu0 %v2495_v22 }
  0x54   :  { %1223 = vmatmul.mubr.bf16.gmra.mrb[24].mxu1 %v2496_v23  ;;  %1133 = vmatprep.mubr.bf16.mxu0 %v2501_v24 }
  0x55   :  { %1230 = vmatprep.mubr.bf16.mxu1 %v2503_v25 }
  0x5b   :  { %1134 = vmatmul.mubr.bf16.gmra.mrb[28].mxu0 %v2505_v30 }
  0x5c   :  { %1231 = vmatmul.mubr.bf16.gmra.mrb[28].mxu1 %v2506_v31  ;;  %1271 = vmatprep.mubr.bf16.mxu0 %v2513_v33 }
  0x5d   :  { %1368 = vmatprep.mubr.bf16.mxu1 %v2516_v34 }
  0x63   :  { %1272 = vmatmul.mubr.bf16.vlgmr.msra.gmra.mrb[32].mxu0 %v2511_v35 }
  0x64   :  { %1369 = vmatmul.mubr.bf16.vlgmr.msra.gmra.mrb[32].mxu1 %v2514_v36  ;;  %2352 = vmatpush3.bf16.msra.mxu0 %v2517_v32 }
  0x65   :  { %2391 = vmatpush3.bf16.msra.mxu1 %v2517_v32  ;;  %1279 = vmatprep.mubr.bf16.mxu0 %v2518_v37 }
  0x66   :  { %1376 = vmatprep.mubr.bf16.mxu1 %v2520_v38  ;;  %2353 = vmatprep.subr.bf16.mxu0 %v2524_v39 }
  0x67   :  { %2384 = vmatprep.subr.bf16.mxu1 %v2524_v39 }
  0x68   :  { %2354 = vmatpush3.bf16.msra.mxu0 %v2524_v39 }
  0x69   :  { %2392 = vmatpush3.bf16.msra.mxu1 %v2524_v39  ;;  %2355 = vmatprep.subr.bf16.mxu0 %v2531_v40 }
  0x6a   :  { %2385 = vmatprep.subr.bf16.mxu1 %v2531_v40 }
  0x6b   :  { %1280 = vmatmul.mubr.bf16.gmra.mrb[36].mxu0 %v2522_v41 }
  0x6c   :  { %1377 = vmatmul.mubr.bf16.gmra.mrb[36].mxu1 %v2523_v42  ;;  %1287 = vmatprep.mubr.bf16.mxu0 %v2525_v43 }
  0x6d   :  { %1384 = vmatprep.mubr.bf16.mxu1 %v2527_v44  ;;  %2356 = vmatpush3.bf16.msra.mxu0 %v2531_v40 }
  0x6e   :  { %2393 = vmatpush3.bf16.msra.mxu1 %v2531_v40  ;;  %2357 = vmatprep.subr.bf16.mxu0 %v2538_v45 }
  0x6f   :  { %2386 = vmatprep.subr.bf16.mxu1 %v2538_v45 }
  0x71   :  { %2358 = vmatpush3.bf16.msra.mxu0 %v2538_v45 }
  0x72   :  { %2394 = vmatpush3.bf16.msra.mxu1 %v2538_v45  ;;  %2359 = vmatprep.subr.bf16.mxu0 %v2545_v46 }
  0x73   :  { %1288 = vmatmul.mubr.bf16.gmra.mrb[40].mxu0 %v2529_v47  ;;  %2387 = vmatprep.subr.bf16.mxu1 %v2545_v46 }
  0x74   :  { %1385 = vmatmul.mubr.bf16.gmra.mrb[40].mxu1 %v2530_v48  ;;  %1295 = vmatprep.mubr.bf16.mxu0 %v2532_v49 }
  0x75   :  { %1392 = vmatprep.mubr.bf16.mxu1 %v2534_v50  ;;  %2360 = vmatpush3.bf16.msra.mxu0 %v2545_v46 }
  0x76   :  { %2395 = vmatpush3.bf16.msra.mxu1 %v2545_v46  ;;  %2361 = vmatprep.subr.bf16.mxu0 %v2552_v51 }
  0x77   :  { %2388 = vmatprep.subr.bf16.mxu1 %v2552_v51 }
  0x79   :  { %2362 = vmatpush3.bf16.msra.mxu0 %v2552_v51 }
  0x7a   :  { %2396 = vmatpush3.bf16.msra.mxu1 %v2552_v51  ;;  %2363 = vmatprep.subr.bf16.mxu0 %v2559_v53 }
  0x7b   :  { %1296 = vmatmul.mubr.bf16.gmra.mrb[44].mxu0 %v2536_v52  ;;  %2389 = vmatprep.subr.bf16.mxu1 %v2559_v53 }
  0x7c   :  { %1393 = vmatmul.mubr.bf16.gmra.mrb[44].mxu1 %v2537_v54  ;;  %1303 = vmatprep.mubr.bf16.mxu0 %v2539_v55 }
  0x7d   :  { %1400 = vmatprep.mubr.bf16.mxu1 %v2541_v56  ;;  %2364 = vmatpush3.bf16.msra.mxu0 %v2559_v53 }
  0x7e   :  { %2397 = vmatpush3.bf16.msra.mxu1 %v2559_v53  ;;  %2365 = vmatprep.subr.bf16.mxu0 %v2566_v57 }
  0x7f   :  { %2390 = vmatprep.subr.bf16.mxu1 %v2566_v57 }
  0x81   :  { %2366 = vmatpush3.bf16.msra.mxu0 %v2566_v57 }
  0x82   :  { %2398 = vmatpush3.bf16.msra.mxu1 %v2566_v57 }
  0x83   :  { %1304 = vmatmul.mubr.bf16.gmra.mrb[48].mxu0 %v2543_v58 }
  0x84   :  { %1401 = vmatmul.mubr.bf16.gmra.mrb[48].mxu1 %v2544_v59  ;;  %1311 = vmatprep.mubr.bf16.mxu0 %v2546_v60 }
  0x85   :  { %1408 = vmatprep.mubr.bf16.mxu1 %v2548_v61 }
  0x8b   :  { %1312 = vmatmul.mubr.bf16.gmra.mrb[52].mxu0 %v2550_v62 }
  0x8c   :  { %1409 = vmatmul.mubr.bf16.gmra.mrb[52].mxu1 %v2551_v63  ;;  %1319 = vmatprep.mubr.bf16.mxu0 %v2553_v0 }
  0x8d   :  { %1416 = vmatprep.mubr.bf16.mxu1 %v2555_v1 }
  0x93   :  { %1320 = vmatmul.mubr.bf16.gmra.mrb[56].mxu0 %v2557_v2 }
  0x94   :  { %1417 = vmatmul.mubr.bf16.gmra.mrb[56].mxu1 %v2558_v3  ;;  %1327 = vmatprep.mubr.bf16.mxu0 %v2560_v4 }
  0x95   :  { %1424 = vmatprep.mubr.bf16.mxu1 %v2562_v5 }
  0x9b   :  { %1328 = vmatmul.mubr.bf16.gmra.mrb[60].mxu0 %v2564_v6 }
  0x9c   :  { %1425 = vmatmul.mubr.bf16.gmra.mrb[60].mxu1 %v2565_v7  ;;  %2367 = vmatprep.mubr.bf16.mxu0 %v2567_v8 }
  0x9d   :  { %2375 = vmatprep.mubr.bf16.mxu1 %v2568_v9 }
  0xa3   :  { %2368 = vmatmul.mubr.bf16.vlgmr.msra.gmra.mrb[64].mxu0 %v2569_v10 }
  0xa4   :  { %2376 = vmatmul.mubr.bf16.vlgmr.msra.gmra.mrb[64].mxu1 %v2570_v11  ;;  %2371 = vmatprep.mubr.bf16.mxu0 %v2571_v12 }
  0xa5   :  { %2379 = vmatprep.mubr.bf16.mxu1 %v2572_v13 }
  0xab   :  { %2372 = vmatmul.mubr.bf16.gmra.mrb[68].mxu0 %v2573_v14 }
  0xac   :  { %2380 = vmatmul.mubr.bf16.gmra.mrb[68].mxu1 %v2574_v15 }
  0xf6   :  { %v2095_v16 = vpop.f32.mrb[0].mxu0 }
  0xf7   :  { %v2159_v17 = vpop.f32.mrb[0].mxu1  ;;  %v2096_v18 = vpop.f32.mrb[1].mxu0 }
  0xf8   :  { %v2097_v19 = vadd.f32 %v2096_v18, %v2095_v16  ;;  %v2160_v20 = vpop.f32.mrb[1].mxu1  ;;  %v2098_v21 = vpop.f32.mrb[2].mxu0 }
  0xf9   :  { %v2161_v22 = vadd.f32 %v2160_v20, %v2159_v17  ;;  %v2162_v23 = vpop.f32.mrb[2].mxu1  ;;  %v2099_v24 = vpop.f32.mrb[3].mxu0 }
  0xfa   :  { %v2100_v25 = vadd.f32 %v2099_v24, %v2098_v21  ;;  %v2163_v26 = vpop.f32.mrb[3].mxu1 }
  0xfb   :  { %v3037_v27 = vadd.f32 %v2161_v22, %v2097_v19  ;;  %v2164_v28 = vadd.f32 %v2163_v26, %v2162_v23 }
  0xfd   :  { %v3039_v29 = vadd.f32 %v2164_v28, %v2100_v25 }
  0xfe   :  { %v2101_v30 = vpop.f32.mrb[4].mxu0 }
  0xff   :  { %v2165_v31 = vpop.f32.mrb[4].mxu1  ;;  %v2102_v32 = vpop.f32.mrb[5].mxu0 }
 0x100   :  { %v2103_v33 = vadd.f32 %v2102_v32, %v2101_v30  ;;  %v2166_v34 = vpop.f32.mrb[5].mxu1  ;;  %v2104_v35 = vpop.f32.mrb[6].mxu0 }
 0x101   :  { %v2167_v36 = vadd.f32 %v2166_v34, %v2165_v31  ;;  %v2168_v37 = vpop.f32.mrb[6].mxu1  ;;  %v2105_v38 = vpop.f32.mrb[7].mxu0 }
 0x102   :  { %v2106_v39 = vadd.f32 %v2105_v38, %v2104_v35  ;;  %v2169_v40 = vpop.f32.mrb[7].mxu1 }
 0x103   :  { %v3041_v41 = vadd.f32 %v2167_v36, %v2103_v33  ;;  %v2170_v42 = vadd.f32 %v2169_v40, %v2168_v37 }
 0x105   :  { %v3043_v43 = vadd.f32 %v2170_v42, %v2106_v39 }
 0x106   :  { %v2107_v44 = vpop.f32.mrb[8].mxu0 }
 0x107   :  { %v2171_v45 = vpop.f32.mrb[8].mxu1  ;;  %v2108_v46 = vpop.f32.mrb[9].mxu0 }
 0x108   :  { %v2109_v47 = vadd.f32 %v2108_v46, %v2107_v44  ;;  %v2172_v48 = vpop.f32.mrb[9].mxu1  ;;  %v2110_v49 = vpop.f32.mrb[10].mxu0 }
 0x109   :  { %v2173_v50 = vadd.f32 %v2172_v48, %v2171_v45  ;;  %v2174_v51 = vpop.f32.mrb[10].mxu1  ;;  %v2111_v52 = vpop.f32.mrb[11].mxu0 }
 0x10a   :  { %v2112_v53 = vadd.f32 %v2111_v52, %v2110_v49  ;;  %v2175_v54 = vpop.f32.mrb[11].mxu1 }
 0x10b   :  { %v3045_v55 = vadd.f32 %v2173_v50, %v2109_v47  ;;  %v2176_v56 = vadd.f32 %v2175_v54, %v2174_v51 }
 0x10d   :  { %v3047_v57 = vadd.f32 %v2176_v56, %v2112_v53 }
 0x10e   :  { %v2113_v58 = vpop.f32.mrb[12].mxu0 }
 0x10f   :  { %v2177_v59 = vpop.f32.mrb[12].mxu1  ;;  %v2114_v60 = vpop.f32.mrb[13].mxu0 }
 0x110   :  { %v2115_v61 = vadd.f32 %v2114_v60, %v2113_v58  ;;  %v2178_v62 = vpop.f32.mrb[13].mxu1  ;;  %v2116_v63 = vpop.f32.mrb[14].mxu0 }
 0x111   :  { %v2179_v0 = vadd.f32 %v2178_v62, %v2177_v59  ;;  %v2180_v1 = vpop.f32.mrb[14].mxu1  ;;  %v2117_v2 = vpop.f32.mrb[15].mxu0 }
 0x112   :  { %v2118_v3 = vadd.f32 %v2117_v2, %v2116_v63  ;;  %v2181_v4 = vpop.f32.mrb[15].mxu1 }
 0x113   :  { %v3049_v5 = vadd.f32 %v2179_v0, %v2115_v61  ;;  %v2182_v6 = vadd.f32 %v2181_v4, %v2180_v1 }
 0x115   :  { %v3051_v7 = vadd.f32 %v2182_v6, %v2118_v3 }
 0x116   :  { %v2119_v8 = vpop.f32.mrb[16].mxu0 }
 0x117   :  { %v2183_v9 = vpop.f32.mrb[16].mxu1  ;;  %v2120_v10 = vpop.f32.mrb[17].mxu0 }
 0x118   :  { %v2121_v11 = vadd.f32 %v2120_v10, %v2119_v8  ;;  %v2184_v12 = vpop.f32.mrb[17].mxu1  ;;  %v2122_v13 = vpop.f32.mrb[18].mxu0 }
 0x119   :  { %v2185_v14 = vadd.f32 %v2184_v12, %v2183_v9  ;;  %v2186_v15 = vpop.f32.mrb[18].mxu1  ;;  %v2123_v16 = vpop.f32.mrb[19].mxu0 }
 0x11a   :  { %v2124_v17 = vadd.f32 %v2123_v16, %v2122_v13  ;;  %v2187_v18 = vpop.f32.mrb[19].mxu1 }
 0x11b   :  { %v3053_v19 = vadd.f32 %v2185_v14, %v2121_v11  ;;  %v2188_v20 = vadd.f32 %v2187_v18, %v2186_v15 }
 0x11d   :  { %v3055_v21 = vadd.f32 %v2188_v20, %v2124_v17 }
 0x11e   :  { %v2125_v22 = vpop.f32.mrb[20].mxu0 }
 0x11f   :  { %v2189_v23 = vpop.f32.mrb[20].mxu1  ;;  %v2126_v24 = vpop.f32.mrb[21].mxu0 }
 0x120   :  { %v2127_v25 = vadd.f32 %v2126_v24, %v2125_v22  ;;  %v2190_v26 = vpop.f32.mrb[21].mxu1  ;;  %v2128_v28 = vpop.f32.mrb[22].mxu0 }
 0x121   :  { %v2191_v30 = vadd.f32 %v2190_v26, %v2189_v23  ;;  %v2192_v31 = vpop.f32.mrb[22].mxu1  ;;  %v2129_v32 = vpop.f32.mrb[23].mxu0 }
 0x122   :  { %v2130_v33 = vadd.f32 %v2129_v32, %v2128_v28  ;;  %v2193_v34 = vpop.f32.mrb[23].mxu1 }
 0x123   :  { %v3057_v35 = vadd.f32 %v2191_v30, %v2127_v25  ;;  %v2194_v36 = vadd.f32 %v2193_v34, %v2192_v31 }
 0x125   :  { %v3059_v37 = vadd.f32 %v2194_v36, %v2130_v33 }
 0x126   :  { %v2131_v38 = vpop.f32.mrb[24].mxu0 }
 0x127   :  { %v2195_v39 = vpop.f32.mrb[24].mxu1  ;;  %v2132_v40 = vpop.f32.mrb[25].mxu0 }
 0x128   :  { %v2133_v42 = vadd.f32 %v2132_v40, %v2131_v38  ;;  %v2196_v44 = vpop.f32.mrb[25].mxu1  ;;  %v2134_v45 = vpop.f32.mrb[26].mxu0 }
 0x129   :  { %v2197_v46 = vadd.f32 %v2196_v44, %v2195_v39  ;;  %v2198_v47 = vpop.f32.mrb[26].mxu1  ;;  %v2135_v48 = vpop.f32.mrb[27].mxu0 }
 0x12a   :  { %v2136_v49 = vadd.f32 %v2135_v48, %v2134_v45  ;;  %v2199_v50 = vpop.f32.mrb[27].mxu1 }
 0x12b   :  { %v3061_v51 = vadd.f32 %v2197_v46, %v2133_v42  ;;  %v2200_v52 = vadd.f32 %v2199_v50, %v2198_v47 }
 0x12d   :  { %v3063_v53 = vadd.f32 %v2200_v52, %v2136_v49 }
 0x12e   :  { %v2137_v54 = vpop.f32.mrb[28].mxu0 }
 0x12f   :  { %v2201_v56 = vpop.f32.mrb[28].mxu1  ;;  %v2138_v58 = vpop.f32.mrb[29].mxu0 }
 0x130   :  { %v2139_v59 = vadd.f32 %v2138_v58, %v2137_v54  ;;  %v2202_v60 = vpop.f32.mrb[29].mxu1  ;;  %v2140_v61 = vpop.f32.mrb[30].mxu0 }
 0x131   :  { %v2203_v62 = vadd.f32 %v2202_v60, %v2201_v56  ;;  %v2204_v63 = vpop.f32.mrb[30].mxu1  ;;  %v2141_v0 = vpop.f32.mrb[31].mxu0 }
 0x132   :  { %v2142_v1 = vadd.f32 %v2141_v0, %v2140_v61  ;;  %v2205_v2 = vpop.f32.mrb[31].mxu1 }
 0x133   :  { %v3065_v3 = vadd.f32 %v2203_v62, %v2139_v59  ;;  %v2206_v4 = vadd.f32 %v2205_v2, %v2204_v63 }
 0x135   :  { %v3067_v6 = vadd.f32 %v2206_v4, %v2142_v1 }
 0x136   :  { %v2223_v8 = vpop.f32.mrb[32].mxu0 }
 0x137   :  { %v2287_v9 = vpop.f32.mrb[32].mxu1  ;;  %v2224_v10 = vpop.f32.mrb[33].mxu0 }
 0x138   :  { %v2225_v11 = vadd.f32 %v2224_v10, %v2223_v8  ;;  %v2288_v12 = vpop.f32.mrb[33].mxu1  ;;  %v2226_v13 = vpop.f32.mrb[34].mxu0 }
 0x139   :  { %v2289_v14 = vadd.f32 %v2288_v12, %v2287_v9  ;;  %v2290_v15 = vpop.f32.mrb[34].mxu1  ;;  %v2227_v16 = vpop.f32.mrb[35].mxu0 }
 0x13a   :  { %v1274_v17 = vadd.f32 %v2225_v11, %v3037_v27  ;;  %v2228_v18 = vadd.f32 %v2227_v16, %v2226_v13  ;;  %v2291_v20 = vpop.f32.mrb[35].mxu1 }
 0x13b   :  { %v2292_v22 = vadd.f32 %v2291_v20, %v2290_v15 }
 0x13c   :  { %v1277_v23 = vadd.f32 %v2228_v18, %v3039_v29  ;;  %v3071_v24 = vadd.f32 %v2289_v14, %v1274_v17 }
 0x13e   :  { %v2229_v25 = vpop.f32.mrb[36].mxu0  ;;  %v3073_v26 = vadd.f32 %v2292_v22, %v1277_v23 }
 0x13f   :  { %v2293_v28 = vpop.f32.mrb[36].mxu1  ;;  %v2230_v30 = vpop.f32.mrb[37].mxu0 }
 0x140   :  { %v2231_v31 = vadd.f32 %v2230_v30, %v2229_v25  ;;  %v2294_v32 = vpop.f32.mrb[37].mxu1  ;;  %v2232_v33 = vpop.f32.mrb[38].mxu0 }
 0x141   :  { %v2295_v34 = vadd.f32 %v2294_v32, %v2293_v28  ;;  %v2296_v36 = vpop.f32.mrb[38].mxu1  ;;  %v2233_v38 = vpop.f32.mrb[39].mxu0 }
 0x142   :  { %v1282_v27 = vadd.f32 %v2231_v31, %v3041_v41  ;;  %v2234_v39 = vadd.f32 %v2233_v38, %v2232_v33  ;;  %v2297_v40 = vpop.f32.mrb[39].mxu1 }
 0x143   :  { %v2298_v42 = vadd.f32 %v2297_v40, %v2296_v36 }
 0x144   :  { %v1285_v29 = vadd.f32 %v2234_v39, %v3043_v43  ;;  %v3077_v44 = vadd.f32 %v2295_v34, %v1282_v27 }
 0x146   :  { %v2235_v45 = vpop.f32.mrb[40].mxu0  ;;  %v3079_v46 = vadd.f32 %v2298_v42, %v1285_v29 }
 0x147   :  { %v2299_v47 = vpop.f32.mrb[40].mxu1  ;;  %v2236_v48 = vpop.f32.mrb[41].mxu0 }
 0x148   :  { %v2237_v49 = vadd.f32 %v2236_v48, %v2235_v45  ;;  %v2300_v50 = vpop.f32.mrb[41].mxu1  ;;  %v2238_v52 = vpop.f32.mrb[42].mxu0 }
 0x149   :  { %v2301_v54 = vadd.f32 %v2300_v50, %v2299_v47  ;;  %v2302_v56 = vpop.f32.mrb[42].mxu1  ;;  %v2239_v58 = vpop.f32.mrb[43].mxu0 }
 0x14a   :  { %v1290_v41 = vadd.f32 %v2237_v49, %v3045_v55  ;;  %v2240_v59 = vadd.f32 %v2239_v58, %v2238_v52  ;;  %v2303_v60 = vpop.f32.mrb[43].mxu1 }
 0x14b   :  { %v2304_v61 = vadd.f32 %v2303_v60, %v2302_v56 }
 0x14c   :  { %v1293_v43 = vadd.f32 %v2240_v59, %v3047_v57  ;;  %v3083_v62 = vadd.f32 %v2301_v54, %v1290_v41 }
 0x14e   :  { %v2241_v63 = vpop.f32.mrb[44].mxu0  ;;  %v3085_v0 = vadd.f32 %v2304_v61, %v1293_v43 }
 0x14f   :  { %v2305_v1 = vpop.f32.mrb[44].mxu1  ;;  %v2242_v2 = vpop.f32.mrb[45].mxu0 }
 0x150   :  { %v2243_v4 = vadd.f32 %v2242_v2, %v2241_v63  ;;  %v2306_v8 = vpop.f32.mrb[45].mxu1  ;;  %v2244_v9 = vpop.f32.mrb[46].mxu0 }
 0x151   :  { %v2307_v10 = vadd.f32 %v2306_v8, %v2305_v1  ;;  %v2308_v11 = vpop.f32.mrb[46].mxu1  ;;  %v2245_v12 = vpop.f32.mrb[47].mxu0 }
 0x152   :  { %v1298_v55 = vadd.f32 %v2243_v4, %v3049_v5  ;;  %v2246_v13 = vadd.f32 %v2245_v12, %v2244_v9  ;;  %v2309_v14 = vpop.f32.mrb[47].mxu1 }
 0x153   :  { %v2310_v15 = vadd.f32 %v2309_v14, %v2308_v11 }
 0x154   :  { %v1301_v57 = vadd.f32 %v2246_v13, %v3051_v7  ;;  %v3089_v16 = vadd.f32 %v2307_v10, %v1298_v55 }
 0x156   :  { %v2247_v17 = vpop.f32.mrb[48].mxu0  ;;  %v3091_v18 = vadd.f32 %v2310_v15, %v1301_v57 }
 0x157   :  { %v2311_v20 = vpop.f32.mrb[48].mxu1  ;;  %v2248_v22 = vpop.f32.mrb[49].mxu0 }
 0x158   :  { %v2249_v23 = vadd.f32 %v2248_v22, %v2247_v17  ;;  %v2312_v25 = vpop.f32.mrb[49].mxu1  ;;  %v2250_v28 = vpop.f32.mrb[50].mxu0 }
 0x159   :  { %v2313_v30 = vadd.f32 %v2312_v25, %v2311_v20  ;;  %v2314_v31 = vpop.f32.mrb[50].mxu1  ;;  %v2251_v32 = vpop.f32.mrb[51].mxu0 }
 0x15a   :  { %v1306_v5 = vadd.f32 %v2249_v23, %v3053_v19  ;;  %v2252_v33 = vadd.f32 %v2251_v32, %v2250_v28  ;;  %v2315_v34 = vpop.f32.mrb[51].mxu1  ;;  %v3123_v32 = vld [vmem:[%s3262_s4] sm:$0xff]  }
 0x15b   :  { %v2316_v36 = vadd.f32 %v2315_v34, %v2314_v31  ;;  %v3118_v31 = vld [vmem:[%s3262_s4 + $0x28] sm:$0xff]   ;;  %v3134_v34 = vld [vmem:[%s3262_s4 + $0x18] sm:$0xff]  }
 0x15c   :  { %v1309_v7 = vadd.f32 %v2252_v33, %v3055_v21  ;;  %v3095_v38 = vadd.f32 %v2313_v30, %v1306_v5 }
 0x15e   :  { %v2253_v27 = vpop.f32.mrb[52].mxu0  ;;  %v3097_v39 = vadd.f32 %v2316_v36, %v1309_v7 }
 0x15f   :  { %v2317_v40 = vpop.f32.mrb[52].mxu1  ;;  %v2254_v42 = vpop.f32.mrb[53].mxu0 }
 0x160   :  { %v2255_v29 = vadd.f32 %v2254_v42, %v2253_v27  ;;  %v2318_v45 = vpop.f32.mrb[53].mxu1  ;;  %v2256_v47 = vpop.f32.mrb[54].mxu0  ;;  %v2015_v27 = vunpack.c.l.bf16 %v3118_v31  ;;  %v3144_v42 = vld [vmem:[%s3262_s4 + $0x38] sm:$0xff]  }
 0x161   :  { %v2319_v48 = vadd.f32 %v2318_v45, %v2317_v40  ;;  %v2320_v49 = vpop.f32.mrb[54].mxu1  ;;  %v2257_v50 = vpop.f32.mrb[55].mxu0  ;;  %v1995_v40 = vunpack.c.l.bf16 %v3123_v32  ;;  %v3154_v45 = vld [vmem:[%s3263_s2] ss:$0 sm:$0xff] }
 0x162   :  { %v1314_v19 = vadd.f32 %v2255_v29, %v3057_v35  ;;  %v2258_v52 = vadd.f32 %v2257_v50, %v2256_v47  ;;  %v2321_v54 = vpop.f32.mrb[55].mxu1  ;;  %v3162_v50 = vld [vmem:[%s3262_s4 + $0x30] sm:$0xff]  }
 0x163   :  { %v2322_v56 = vadd.f32 %v2321_v54, %v2320_v49  ;;  %v2016_v49 = vunpack.c.h.bf16 %v3118_v31 }
 0x164   :  { %v1317_v21 = vadd.f32 %v2258_v52, %v3059_v37  ;;  %v1411_v58 = vadd.f32 %v2319_v48, %v1314_v19 }
 0x166   :  { %v2259_v41 = vpop.f32.mrb[56].mxu0  ;;  %v3101_v59 = vadd.f32 %v2322_v56, %v1317_v21  ;;  %v1996_v21 = vunpack.c.h.bf16 %v3123_v32 }
 0x167   :  { %v2323_v60 = vpop.f32.mrb[56].mxu1  ;;  %v2260_v61 = vpop.f32.mrb[57].mxu0 }
 0x168   :  { %v2261_v43 = vadd.f32 %v2260_v61, %v2259_v41  ;;  %v2324_v63 = vpop.f32.mrb[57].mxu1  ;;  %v2262_v1 = vpop.f32.mrb[58].mxu0  ;;  %v3173_v61 = vld [vmem:[%s3264_s3] ss:$0 sm:$0xff] }
 0x169   :  { %v2325_v2 = vadd.f32 %v2324_v63, %v2323_v60  ;;  %v2326_v4 = vpop.f32.mrb[58].mxu1  ;;  %v2263_v8 = vpop.f32.mrb[59].mxu0  ;;  %v2007_v60 = vunpack.c.l.bf16 %v3134_v34 }
 0x16a   :  { %v1322_v9 = vadd.f32 %v2261_v43, %v3061_v51  ;;  %v2264_v35 = vadd.f32 %v2263_v8, %v2262_v1  ;;  %v2327_v10 = vpop.f32.mrb[59].mxu1 }
 0x16b   :  { %v2328_v11 = vadd.f32 %v2327_v10, %v2326_v4 }
 0x16c   :  { %v1325_v12 = vadd.f32 %v2264_v35, %v3063_v53  ;;  %v3105_v37 = vadd.f32 %v2325_v2, %v1322_v9  ;;  %v3113_v53 = vld [vmem:[%s3262_s4 + $0x8] sm:$0xff]  }
 0x16d   :  { %v1999_v7 = vunpack.c.l.bf16 %v3113_v53  ;;  %v2000_v48 = vunpack.c.h.bf16 %v3113_v53 }
 0x16e   :  { %v2265_v55 = vpop.f32.mrb[60].mxu0  ;;  %v3107_v13 = vadd.f32 %v2328_v11, %v1325_v12  ;;  %v2019_v12 = vunpack.c.l.bf16 %v3162_v50 }
 0x16f   :  { %v2329_v14 = vpop.f32.mrb[60].mxu1  ;;  %v2266_v15 = vpop.f32.mrb[61].mxu0 }
 0x170   :  { %v2267_v57 = vadd.f32 %v2266_v15, %v2265_v55  ;;  %v2330_v17 = vpop.f32.mrb[61].mxu1  ;;  %v2268_v20 = vpop.f32.mrb[62].mxu0 }
 0x171   :  { %v2331_v22 = vadd.f32 %v2330_v17, %v2329_v14  ;;  %v2332_v23 = vpop.f32.mrb[62].mxu1  ;;  %v2269_v25 = vpop.f32.mrb[63].mxu0 }
 0x172   :  { %v1330_v51 = vadd.f32 %v2267_v57, %v3065_v3  ;;  %v2270_v28 = vadd.f32 %v2269_v25, %v2268_v20  ;;  %v2333_v30 = vpop.f32.mrb[63].mxu1  ;;  %v3128_v3 = vld [vmem:[%s3262_s4 + $0x20] sm:$0xff]  }
 0x173   :  { %v2334_v5 = vadd.f32 %v2333_v30, %v2332_v23  ;;  %v2011_v47 = vunpack.c.l.bf16 %v3128_v3  ;;  %v2012_v41 = vunpack.c.h.bf16 %v3128_v3 }
 0x174   :  { %v1333_v33 = vadd.f32 %v2270_v28, %v3067_v6  ;;  %v3136_v36 = vadd.f32 %v2331_v22, %v1330_v51  ;;  %v3149_v6 = vld [vmem:[%s3262_s4 + $0x10] sm:$0xff]  }
 0x175   :  { %v2003_v4 = vunpack.c.l.bf16 %v3149_v6 }
 0x176   :  { %v2369_v29 = vpop.f32.mrb[64].mxu0  ;;  %v3164_v19 = vadd.f32 %v2334_v5, %v1333_v33 }
 0x177   :  { %v1476_v52 = vadd.f32 %v2369_v29, %v3077_v44  ;;  %v2377_v54 = vpop.f32.mrb[64].mxu1  ;;  %v1467_v56 = vpop.f32.mrb[65].mxu0  ;;  %v2023_v44 = vunpack.c.l.bf16 %v3144_v42 }
 0x178   :  { %v1508_v43 = vadd.f32 %v2377_v54, %v1411_v58  ;;  %v1468_v63 = vadd.f32 %v1467_v56, %v3071_v24  ;;  %v1499_v1 = vpop.f32.mrb[65].mxu1  ;;  %v2370_v2 = vpop.f32.mrb[66].mxu0 }
 0x179   :  { %v1630_v8 = vmul.f32 %v3154_v45, %v1476_v52  ;;  %v1500_v9 = vadd.f32 %v1499_v1, %v3095_v38  ;;  %v1479_v35 = vadd.f32 %v2370_v2, %v3079_v46  ;;  %v2378_v10 = vpop.f32.mrb[66].mxu1  ;;  %v1470_v11 = vpop.f32.mrb[67].mxu0 }
 0x17a   :  { %v1638_v58 = vmul.f32 %v3154_v45, %v1508_v43  ;;  %v1628_v24 = vmul.f32 %v3154_v45, %v1468_v63  ;;  %v1511_v55 = vadd.f32 %v2378_v10, %v3101_v59  ;;  %v1471_v14 = vadd.f32 %v1470_v11, %v3073_v26  ;;  %v1502_v15 = vpop.f32.mrb[67].mxu1 }
 0x17b   :  { %v1653_v57 = vadd.f32 %v3173_v61, %v1630_v8  ;;  %v1636_v17 = vmul.f32 %v3154_v45, %v1500_v9  ;;  %v1631_v38 = vmul.f32 %v3154_v45, %v1479_v35  ;;  %v1503_v46 = vadd.f32 %v1502_v15, %v3097_v39 }
 0x17c   :  { %v1661_v20 = vadd.f32 %v3173_v61, %v1638_v58  ;;  %v1651_v22 = vadd.f32 %v3173_v61, %v1628_v24  ;;  %v1639_v23 = vmul.f32 %v3154_v45, %v1511_v55  ;;  %v1629_v25 = vmul.f32 %v3154_v45, %v1471_v14 }
 0x17d   :  { %v1701_v59 = vadd.f32 %v1999_v7, %v1653_v57  ;;  %v1659_v26 = vadd.f32 %v3173_v61, %v1636_v17  ;;  %v1654_v51 = vadd.f32 %v3173_v61, %v1631_v38  ;;  %v1637_v28 = vmul.f32 %v3154_v45, %v1503_v46 }
 0x17e   :  { %v1709_v30 = vadd.f32 %v2015_v27, %v1661_v20  ;;  %v1699_v53 = vadd.f32 %v1995_v40, %v1651_v22  ;;  %v1662_v31 = vadd.f32 %v3173_v61, %v1639_v23  ;;  %v1652_v39 = vadd.f32 %v3173_v61, %v1629_v25  ;;  %v2373_v32 = vpop.f32.mrb[68].mxu0 }
 0x17f   :  { %v1717_v5 = vmax.f32 %v1701_v59, 0.0  ;;  %v1707_v3 = vadd.f32 %v2011_v47, %v1659_v26  ;;  %v1702_v33 = vadd.f32 %v2000_v48, %v1654_v51  ;;  %v1660_v29 = vadd.f32 %v3173_v61, %v1637_v28  ;;  %v2381_v52 = vpop.f32.mrb[68].mxu1  ;;  %v1483_v7 = vpop.f32.mrb[69].mxu0 }
 0x180   :  { %v1725_v54 = vmax.f32 %v1709_v30, 0.0  ;;  %v1715_v56 = vmax.f32 %v1699_v53, 0.0  ;;  %v1710_v43 = vadd.f32 %v2016_v49, %v1662_v31  ;;  %v1700_v63 = vadd.f32 %v1996_v21, %v1652_v39  ;;  %v1515_v1 = vpop.f32.mrb[69].mxu1  ;;  %v2374_v2 = vpop.f32.mrb[70].mxu0 }
 0x181   :  { %v1723_v27 = vmax.f32 %v1707_v3, 0.0  ;;  %v1718_v40 = vmax.f32 %v1702_v33, 0.0  ;;  %v1708_v8 = vadd.f32 %v2012_v41, %v1660_v29  ;;  %v1492_v9 = vadd.f32 %v2373_v32, %v3089_v16  ;;  %v2382_v35 = vpop.f32.mrb[70].mxu1  ;;  %v1486_v10 = vpop.f32.mrb[71].mxu0 }
 0x182   :  { %v1726_v11 = vmax.f32 %v1710_v43, 0.0  ;;  %v1716_v47 = vmax.f32 %v1700_v63, 0.0  ;;  %v1524_v48 = vadd.f32 %v2381_v52, %v3136_v36  ;;  %v1484_v58 = vadd.f32 %v1483_v7, %v3083_v62  ;;  %v1518_v24 = vpop.f32.mrb[71].mxu1 }
 0x183   :  { %v2033_v55 = vpack.c.bf16 %v1718_v40, %v1717_v5  ;;  %v1724_v14 = vmax.f32 %v1708_v8, 0.0  ;;  %v1634_v49 = vmul.f32 %v3154_v45, %v1492_v9  ;;  %v1516_v21 = vadd.f32 %v1515_v1, %v3105_v37 }
 0x184   :  { %v2053_v15 = vpack.c.bf16 %v1726_v11, %v1725_v54  ;;  %v2028_v57 = vpack.c.bf16 %v1716_v47, %v1715_v56  ;;  %v1642_v41 = vmul.f32 %v3154_v45, %v1524_v48  ;;  %v1632_v16 = vmul.f32 %v3154_v45, %v1484_v58 }
 0x185   :  { %2072 = vst [vmem:[%s3265_s5 + $0x8] sm:$0xff] %v2033_v55   ;;  %v2048_v36 = vpack.c.bf16 %v1724_v14, %v1723_v27  ;;  %v1657_v62 = vadd.f32 %v3173_v61, %v1634_v49  ;;  %v1640_v17 = vmul.f32 %v3154_v45, %v1516_v21  ;;  %v1495_v38 = vadd.f32 %v2374_v2, %v3091_v18 }
 0x186   :  { %2076 = vst [vmem:[%s3265_s5 + $0x28] sm:$0xff] %v2053_v15   ;;  %2029 = vst [vmem:[%s3265_s5] sm:$0xff] %v2028_v57   ;;  %v1665_v37 = vadd.f32 %v3173_v61, %v1642_v41  ;;  %v1655_v46 = vadd.f32 %v3173_v61, %v1632_v16  ;;  %v1527_v20 = vadd.f32 %v2382_v35, %v3164_v19  ;;  %v2008_v25 = vunpack.c.h.bf16 %v3134_v34 }
 0x187   :  { %v1487_v22 = vadd.f32 %v1486_v10, %v3085_v0  ;;  %2075 = vst [vmem:[%s3265_s5 + $0x20] sm:$0xff] %v2048_v36   ;;  %v1663_v18 = vadd.f32 %v3173_v61, %v1640_v17  ;;  %v1635_v23 = vmul.f32 %v3154_v45, %v1495_v38  ;;  %v1519_v59 = vadd.f32 %v1518_v24, %v3107_v13 }
 0x188   :  { %v1643_v26 = vmul.f32 %v3154_v45, %v1527_v20  ;;  %v2024_v51 = vunpack.c.h.bf16 %v3144_v42  ;;  %v2004_v0 = vunpack.c.h.bf16 %v3149_v6  ;;  %v1705_v28 = vadd.f32 %v2007_v60, %v1657_v62 }
 0x189   :  { %v1633_v19 = vmul.f32 %v3154_v45, %v1487_v22  ;;  %v1658_v30 = vadd.f32 %v3173_v61, %v1635_v23  ;;  %v1641_v53 = vmul.f32 %v3154_v45, %v1519_v59  ;;  %v2020_v31 = vunpack.c.h.bf16 %v3162_v50 }
 0x18a   :  { %v1713_v13 = vadd.f32 %v2023_v44, %v1665_v37  ;;  %v1703_v39 = vadd.f32 %v2003_v4, %v1655_v46  ;;  %v1666_v32 = vadd.f32 %v3173_v61, %v1643_v26  ;;  %v1711_v34 = vadd.f32 %v2019_v12, %v1663_v18 }
 0x18b   :  { %v1656_v5 = vadd.f32 %v3173_v61, %v1633_v19  ;;  %v1706_v60 = vadd.f32 %v2008_v25, %v1658_v30  ;;  %v1664_v3 = vadd.f32 %v3173_v61, %v1641_v53  ;;  %v1721_v29 = vmax.f32 %v1705_v28, 0.0 }
 0x18c   :  { %v1714_v33 = vadd.f32 %v2024_v51, %v1666_v32  ;;  %v1729_v42 = vmax.f32 %v1713_v13, 0.0  ;;  %v1719_v44 = vmax.f32 %v1703_v39, 0.0  ;;  %v1727_v4 = vmax.f32 %v1711_v34, 0.0 }
 0x18d   :  { %v1704_v45 = vadd.f32 %v2004_v0, %v1656_v5  ;;  %v1722_v52 = vmax.f32 %v1706_v60, 0.0  ;;  %v1712_v7 = vadd.f32 %v2020_v31, %v1664_v3 }
 0x18e   :  { %v1730_v54 = vmax.f32 %v1714_v33, 0.0 }
 0x18f   :  { %v1720_v6 = vmax.f32 %v1704_v45, 0.0  ;;  %v2043_v56 = vpack.c.bf16 %v1722_v52, %v1721_v29  ;;  %v1728_v43 = vmax.f32 %v1712_v7, 0.0 }
 0x190   :  { %v2063_v63 = vpack.c.bf16 %v1730_v54, %v1729_v42 }
 0x191   :  { %v2038_v1 = vpack.c.bf16 %v1720_v6, %v1719_v44  ;;  %2074 = vst [vmem:[%s3265_s5 + $0x18] sm:$0xff] %v2043_v56   ;;  %v2058_v50 = vpack.c.bf16 %v1728_v43, %v1727_v4 }
 0x192   :  { %2078 = vst [vmem:[%s3265_s5 + $0x38] sm:$0xff] %v2063_v63  }
 0x193   :  { %2073 = vst [vmem:[%s3265_s5 + $0x10] sm:$0xff] %v2038_v1   ;;  %2077 = vst [vmem:[%s3265_s5 + $0x30] sm:$0xff] %v2058_v50  }

// kernel: resnet_forward.13
= control target key start
LH: loop header
LB: loop body
LE: loop exit
PB: predicated region body
PF: predicated region fallthrough
CT: control target
= control target key end

     0   :  { %s2381_s1 = inlined_call_operand.vmem [shape: bf16[1152,256], index: 1, kind: input, shape index: {}]   ;;  %s2382_s0 = inlined_call_operand.vmem [shape: bf16[32,1152], index: 0, kind: input, shape index: {}]   ;;  %s2383_s2 = inlined_call_operand.vmem [shape: f32[1,256], index: 2, kind: input, shape index: {}]   ;;  %s2384_s3 = inlined_call_operand.vmem [shape: f32[1,256], index: 3, kind: input, shape index: {}]   ;;  %s2385_s4 = inlined_call_operand.vmem [shape: bf16[32,256], index: 4, kind: output, shape index: {}]  }
   0x1   :  { %v1609_v0 = vld [vmem:[%s2381_s1 + $0x4] ss:$8 sps:$4 sm:$0xff]   ;;  %v1613_v2 = vld [vmem:[%s2381_s1] ss:$8 sps:$4 sm:$0xff]   ;;  %v1615_v4 = vld [vmem:[%s2381_s1 + $0x14] ss:$8 sps:$4 sm:$0xff]  }
   0x2   :  { %v1611_v1 = vld [vmem:[%s2381_s1 + $0x204] ss:$8 sps:$4 sm:$0xff]   ;;  %994 = vmatprep.subr.bf16.mxu1 %v1609_v0  ;;  %v1614_v3 = vld [vmem:[%s2381_s1 + $0x200] ss:$8 sps:$4 sm:$0xff]   ;;  %v1617_v5 = vld [vmem:[%s2381_s1 + $0x214] ss:$8 sps:$4 sm:$0xff]  }
   0x3   :  { %1100 = vmatprep.subr.bf16.mxu0 %v1611_v1  ;;  %995 = vmatpush1.bf16.msra.mxu1 %v1613_v2  ;;  %v1619_v6 = vld [vmem:[%s2381_s1 + $0x10] ss:$8 sps:$4 sm:$0xff]   ;;  %v1621_v8 = vld [vmem:[%s2381_s1 + $0x24] ss:$8 sps:$4 sm:$0xff]   ;;  %v1625_v10 = vld [vmem:[%s2381_s1 + $0x20] ss:$8 sps:$4 sm:$0xff]  }
   0x4   :  { %1101 = vmatpush1.bf16.msra.mxu0 %v1614_v3  ;;  %996 = vmatprep.subr.bf16.mxu1 %v1615_v4  ;;  %v1620_v7 = vld [vmem:[%s2381_s1 + $0x210] ss:$8 sps:$4 sm:$0xff]   ;;  %v1623_v9 = vld [vmem:[%s2381_s1 + $0x224] ss:$8 sps:$4 sm:$0xff]   ;;  %v1626_v11 = vld [vmem:[%s2381_s1 + $0x220] ss:$8 sps:$4 sm:$0xff]  }
   0x5   :  { %1102 = vmatprep.subr.bf16.mxu0 %v1617_v5  ;;  %v1627_v12 = vld [vmem:[%s2381_s1 + $0x34] ss:$8 sps:$4 sm:$0xff]   ;;  %v1631_v14 = vld [vmem:[%s2381_s1 + $0x30] ss:$8 sps:$4 sm:$0xff]   ;;  %v1633_v16 = vld [vmem:[%s2381_s1 + $0x44] ss:$8 sps:$4 sm:$0xff]  }
   0x6   :  { %v1629_v13 = vld [vmem:[%s2381_s1 + $0x234] ss:$8 sps:$4 sm:$0xff]   ;;  %v1632_v15 = vld [vmem:[%s2381_s1 + $0x230] ss:$8 sps:$4 sm:$0xff]   ;;  %v1635_v17 = vld [vmem:[%s2381_s1 + $0x244] ss:$8 sps:$4 sm:$0xff]  }
   0x7   :  { %997 = vmatpush1.bf16.msra.mxu1 %v1619_v6  ;;  %v1637_v18 = vld [vmem:[%s2381_s1 + $0x40] ss:$8 sps:$4 sm:$0xff]   ;;  %v1639_v20 = vld [vmem:[%s2381_s1 + $0x54] ss:$8 sps:$4 sm:$0xff]   ;;  %v1643_v22 = vld [vmem:[%s2381_s1 + $0x50] ss:$8 sps:$4 sm:$0xff]  }
   0x8   :  { %1103 = vmatpush1.bf16.msra.mxu0 %v1620_v7  ;;  %998 = vmatprep.subr.bf16.mxu1 %v1621_v8  ;;  %v1638_v19 = vld [vmem:[%s2381_s1 + $0x240] ss:$8 sps:$4 sm:$0xff]   ;;  %v1641_v21 = vld [vmem:[%s2381_s1 + $0x254] ss:$8 sps:$4 sm:$0xff]   ;;  %v1644_v23 = vld [vmem:[%s2381_s1 + $0x250] ss:$8 sps:$4 sm:$0xff]  }
   0x9   :  { %1104 = vmatprep.subr.bf16.mxu0 %v1623_v9  ;;  %v1645_v24 = vld [vmem:[%s2381_s1 + $0x64] ss:$8 sps:$4 sm:$0xff]   ;;  %v1649_v26 = vld [vmem:[%s2381_s1 + $0x60] ss:$8 sps:$4 sm:$0xff]   ;;  %v1651_v28 = vld [vmem:[%s2381_s1 + $0x74] ss:$8 sps:$4 sm:$0xff]  }
   0xa   :  { %v1647_v25 = vld [vmem:[%s2381_s1 + $0x264] ss:$8 sps:$4 sm:$0xff]   ;;  %v1650_v27 = vld [vmem:[%s2381_s1 + $0x260] ss:$8 sps:$4 sm:$0xff]   ;;  %v1653_v29 = vld [vmem:[%s2381_s1 + $0x274] ss:$8 sps:$4 sm:$0xff]  }
   0xb   :  { %999 = vmatpush1.bf16.msra.mxu1 %v1625_v10  ;;  %v1655_v30 = vld [vmem:[%s2381_s1 + $0x70] ss:$8 sps:$4 sm:$0xff]   ;;  %v1657_v32 = vld [vmem:[%s2381_s1 + $0x84] ss:$8 sps:$4 sm:$0xff]   ;;  %v1661_v34 = vld [vmem:[%s2381_s1 + $0x80] ss:$8 sps:$4 sm:$0xff]  }
   0xc   :  { %1105 = vmatpush1.bf16.msra.mxu0 %v1626_v11  ;;  %1000 = vmatprep.subr.bf16.mxu1 %v1627_v12  ;;  %v1656_v31 = vld [vmem:[%s2381_s1 + $0x270] ss:$8 sps:$4 sm:$0xff]   ;;  %v1659_v33 = vld [vmem:[%s2381_s1 + $0x284] ss:$8 sps:$4 sm:$0xff]   ;;  %v1662_v35 = vld [vmem:[%s2381_s1 + $0x280] ss:$8 sps:$4 sm:$0xff]  }
   0xd   :  { %1106 = vmatprep.subr.bf16.mxu0 %v1629_v13  ;;  %v1663_v36 = vld [vmem:[%s2381_s1 + $0x94] ss:$8 sps:$4 sm:$0xff]   ;;  %v1667_v38 = vld [vmem:[%s2381_s1 + $0x90] ss:$8 sps:$4 sm:$0xff]   ;;  %v1669_v40 = vld [vmem:[%s2381_s1 + $0xa4] ss:$8 sps:$4 sm:$0xff]  }
   0xe   :  { %v1665_v37 = vld [vmem:[%s2381_s1 + $0x294] ss:$8 sps:$4 sm:$0xff]   ;;  %v1668_v39 = vld [vmem:[%s2381_s1 + $0x290] ss:$8 sps:$4 sm:$0xff]   ;;  %v1671_v41 = vld [vmem:[%s2381_s1 + $0x2a4] ss:$8 sps:$4 sm:$0xff]  }
   0xf   :  { %1001 = vmatpush1.bf16.msra.mxu1 %v1631_v14  ;;  %v1673_v42 = vld [vmem:[%s2381_s1 + $0xa0] ss:$8 sps:$4 sm:$0xff]   ;;  %v1675_v44 = vld [vmem:[%s2381_s1 + $0xb4] ss:$8 sps:$4 sm:$0xff]   ;;  %v1679_v46 = vld [vmem:[%s2381_s1 + $0xb0] ss:$8 sps:$4 sm:$0xff]  }
  0x10   :  { %1107 = vmatpush1.bf16.msra.mxu0 %v1632_v15  ;;  %1002 = vmatprep.subr.bf16.mxu1 %v1633_v16  ;;  %v1674_v43 = vld [vmem:[%s2381_s1 + $0x2a0] ss:$8 sps:$4 sm:$0xff]   ;;  %v1677_v45 = vld [vmem:[%s2381_s1 + $0x2b4] ss:$8 sps:$4 sm:$0xff]   ;;  %v1680_v47 = vld [vmem:[%s2381_s1 + $0x2b0] ss:$8 sps:$4 sm:$0xff]  }
  0x11   :  { %1108 = vmatprep.subr.bf16.mxu0 %v1635_v17  ;;  %v1707_v48 = vld [vmem:[%s2382_s0 + $0x4] ss:$36 sps:$4 sm:$0xff]   ;;  %v1713_v51 = vld [vmem:[%s2382_s0 + $0x14] ss:$36 sps:$4 sm:$0xff]  }
  0x12   :  { %v1681_v49 = vld [vmem:[%s2381_s1 + $0xc4] ss:$8 sps:$4 sm:$0xff]   ;;  %1026 = vmatprep.mubr.bf16.mxu1 %v1707_v48  ;;  %v1685_v52 = vld [vmem:[%s2381_s1 + $0xc0] ss:$8 sps:$4 sm:$0xff]   ;;  %v1687_v54 = vld [vmem:[%s2381_s1 + $0xd4] ss:$8 sps:$4 sm:$0xff]   ;;  %1132 = vmatprep.mubr.bf16.mxu0 %v1713_v51 }
  0x13   :  { %1003 = vmatpush1.bf16.msra.mxu1 %v1637_v18  ;;  %v1683_v50 = vld [vmem:[%s2381_s1 + $0x2c4] ss:$8 sps:$4 sm:$0xff]   ;;  %v1686_v53 = vld [vmem:[%s2381_s1 + $0x2c0] ss:$8 sps:$4 sm:$0xff]   ;;  %v1689_v55 = vld [vmem:[%s2381_s1 + $0x2d4] ss:$8 sps:$4 sm:$0xff]  }
  0x14   :  { %1109 = vmatpush1.bf16.msra.mxu0 %v1638_v19  ;;  %1004 = vmatprep.subr.bf16.mxu1 %v1639_v20  ;;  %v1691_v56 = vld [vmem:[%s2381_s1 + $0xd0] ss:$8 sps:$4 sm:$0xff]   ;;  %v1693_v58 = vld [vmem:[%s2381_s1 + $0xe4] ss:$8 sps:$4 sm:$0xff]   ;;  %v1697_v60 = vld [vmem:[%s2381_s1 + $0xe0] ss:$8 sps:$4 sm:$0xff]  }
  0x15   :  { %1110 = vmatprep.subr.bf16.mxu0 %v1641_v21  ;;  %v1692_v57 = vld [vmem:[%s2381_s1 + $0x2d0] ss:$8 sps:$4 sm:$0xff]   ;;  %v1695_v59 = vld [vmem:[%s2381_s1 + $0x2e4] ss:$8 sps:$4 sm:$0xff]   ;;  %v1698_v61 = vld [vmem:[%s2381_s1 + $0x2e0] ss:$8 sps:$4 sm:$0xff]  }
  0x16   :  { %v1699_v62 = vld [vmem:[%s2381_s1 + $0xf4] ss:$8 sps:$4 sm:$0xff]   ;;  %v1703_v0 = vld [vmem:[%s2381_s1 + $0xf0] ss:$8 sps:$4 sm:$0xff]   ;;  %v1710_v2 = vld [vmem:[%s2381_s1 + $0x104] ss:$8 sps:$4 sm:$0xff]  }
  0x17   :  { %1005 = vmatpush1.bf16.msra.mxu1 %v1643_v22  ;;  %v1701_v63 = vld [vmem:[%s2381_s1 + $0x2f4] ss:$8 sps:$4 sm:$0xff]   ;;  %v1704_v1 = vld [vmem:[%s2381_s1 + $0x2f0] ss:$8 sps:$4 sm:$0xff]   ;;  %v1716_v3 = vld [vmem:[%s2381_s1 + $0x304] ss:$8 sps:$4 sm:$0xff]  }
  0x18   :  { %1111 = vmatpush1.bf16.msra.mxu0 %v1644_v23  ;;  %1006 = vmatprep.subr.bf16.mxu1 %v1645_v24  ;;  %v1705_v4 = vld [vmem:[%s2382_s0] ss:$36 sps:$4 sm:$0xff]   ;;  %v1711_v6 = vld [vmem:[%s2382_s0 + $0x10] ss:$36 sps:$4 sm:$0xff]  }
  0x19   :  { %1112 = vmatprep.subr.bf16.mxu0 %v1647_v25  ;;  %v1708_v5 = vld [vmem:[%s2381_s1 + $0x100] ss:$8 sps:$4 sm:$0xff]   ;;  %v1719_v8 = vld [vmem:[%s2381_s1 + $0x114] ss:$8 sps:$4 sm:$0xff]   ;;  %v1717_v10 = vld [vmem:[%s2381_s1 + $0x110] ss:$8 sps:$4 sm:$0xff]  }
  0x1a   :  { %v1714_v7 = vld [vmem:[%s2381_s1 + $0x300] ss:$8 sps:$4 sm:$0xff]   ;;  %v1722_v9 = vld [vmem:[%s2381_s1 + $0x314] ss:$8 sps:$4 sm:$0xff]   ;;  %v1720_v11 = vld [vmem:[%s2381_s1 + $0x310] ss:$8 sps:$4 sm:$0xff]  }
  0x1b   :  { %1007 = vmatpush1.bf16.msra.mxu1 %v1649_v26  ;;  %v1725_v12 = vld [vmem:[%s2381_s1 + $0x124] ss:$8 sps:$4 sm:$0xff]   ;;  %v1723_v14 = vld [vmem:[%s2381_s1 + $0x120] ss:$8 sps:$4 sm:$0xff]   ;;  %v1731_v16 = vld [vmem:[%s2381_s1 + $0x134] ss:$8 sps:$4 sm:$0xff]  }
  0x1c   :  { %1113 = vmatpush1.bf16.msra.mxu0 %v1650_v27  ;;  %1008 = vmatprep.subr.bf16.mxu1 %v1651_v28  ;;  %v1728_v13 = vld [vmem:[%s2381_s1 + $0x324] ss:$8 sps:$4 sm:$0xff]   ;;  %v1726_v15 = vld [vmem:[%s2381_s1 + $0x320] ss:$8 sps:$4 sm:$0xff]   ;;  %v1734_v17 = vld [vmem:[%s2381_s1 + $0x334] ss:$8 sps:$4 sm:$0xff]  }
  0x1d   :  { %1114 = vmatprep.subr.bf16.mxu0 %v1653_v29  ;;  %v1729_v18 = vld [vmem:[%s2381_s1 + $0x130] ss:$8 sps:$4 sm:$0xff]   ;;  %v1737_v20 = vld [vmem:[%s2381_s1 + $0x144] ss:$8 sps:$4 sm:$0xff]   ;;  %v1735_v22 = vld [vmem:[%s2381_s1 + $0x140] ss:$8 sps:$4 sm:$0xff]  }
  0x1e   :  { %v1732_v19 = vld [vmem:[%s2381_s1 + $0x330] ss:$8 sps:$4 sm:$0xff]   ;;  %v1740_v21 = vld [vmem:[%s2381_s1 + $0x344] ss:$8 sps:$4 sm:$0xff]   ;;  %v1738_v23 = vld [vmem:[%s2381_s1 + $0x340] ss:$8 sps:$4 sm:$0xff]  }
  0x1f   :  { %1009 = vmatpush1.bf16.msra.mxu1 %v1655_v30  ;;  %v1743_v24 = vld [vmem:[%s2381_s1 + $0x154] ss:$8 sps:$4 sm:$0xff]   ;;  %v1741_v26 = vld [vmem:[%s2381_s1 + $0x150] ss:$8 sps:$4 sm:$0xff]   ;;  %v1749_v28 = vld [vmem:[%s2381_s1 + $0x164] ss:$8 sps:$4 sm:$0xff]  }
  0x20   :  { %1115 = vmatpush1.bf16.msra.mxu0 %v1656_v31  ;;  %1010 = vmatprep.subr.bf16.mxu1 %v1657_v32  ;;  %v1746_v25 = vld [vmem:[%s2381_s1 + $0x354] ss:$8 sps:$4 sm:$0xff]   ;;  %v1744_v27 = vld [vmem:[%s2381_s1 + $0x350] ss:$8 sps:$4 sm:$0xff]   ;;  %v1799_v31 = vld [vmem:[%s2382_s0 + $0x48] ss:$36 sps:$4 sm:$0xff]  }
  0x21   :  { %1116 = vmatprep.subr.bf16.mxu0 %v1659_v33  ;;  %v1795_v29 = vld [vmem:[%s2382_s0 + $0x4c] ss:$36 sps:$4 sm:$0xff]   ;;  %v1797_v30 = vld [vmem:[%s2382_s0 + $0x5c] ss:$36 sps:$4 sm:$0xff]  }
  0x22   :  { %v1752_v32 = vld [vmem:[%s2381_s1 + $0x364] ss:$8 sps:$4 sm:$0xff]   ;;  %v1803_v33 = vld [vmem:[%s2382_s0 + $0x58] ss:$36 sps:$4 sm:$0xff]  }
  0x23   :  { %1011 = vmatpush1.bf16.msra.mxu1 %v1661_v34  ;;  %v1747_v34 = vld [vmem:[%s2381_s1 + $0x160] ss:$8 sps:$4 sm:$0xff]   ;;  %v1765_v48 = vld [vmem:[%s2381_s1 + $0x190] ss:$8 sps:$4 sm:$0xff]   ;;  %v1776_v51 = vld [vmem:[%s2381_s1 + $0x3a4] ss:$8 sps:$4 sm:$0xff]  }
  0x24   :  { %1117 = vmatpush1.bf16.msra.mxu0 %v1662_v35  ;;  %1012 = vmatprep.subr.bf16.mxu1 %v1663_v36  ;;  %v1750_v35 = vld [vmem:[%s2381_s1 + $0x360] ss:$8 sps:$4 sm:$0xff]   ;;  %v1755_v36 = vld [vmem:[%s2381_s1 + $0x174] ss:$8 sps:$4 sm:$0xff]  }
  0x25   :  { %1118 = vmatprep.subr.bf16.mxu0 %v1665_v37  ;;  %v1758_v37 = vld [vmem:[%s2381_s1 + $0x374] ss:$8 sps:$4 sm:$0xff]  }
  0x27   :  { %1013 = vmatpush1.bf16.msra.mxu1 %v1667_v38  ;;  %v1753_v38 = vld [vmem:[%s2381_s1 + $0x170] ss:$8 sps:$4 sm:$0xff]  }
  0x28   :  { %1119 = vmatpush1.bf16.msra.mxu0 %v1668_v39  ;;  %1014 = vmatprep.subr.bf16.mxu1 %v1669_v40  ;;  %v1756_v39 = vld [vmem:[%s2381_s1 + $0x370] ss:$8 sps:$4 sm:$0xff]   ;;  %v1761_v40 = vld [vmem:[%s2381_s1 + $0x184] ss:$8 sps:$4 sm:$0xff]  }
  0x29   :  { %1120 = vmatprep.subr.bf16.mxu0 %v1671_v41  ;;  %v1815_v41 = vld [vmem:[%s2382_s0 + $0xc] ss:$36 sps:$4 sm:$0xff]  }
  0x2b   :  { %1015 = vmatpush1.bf16.msra.mxu1 %v1673_v42  ;;  %v1764_v42 = vld [vmem:[%s2381_s1 + $0x384] ss:$8 sps:$4 sm:$0xff]  }
  0x2c   :  { %1121 = vmatpush1.bf16.msra.mxu0 %v1674_v43  ;;  %1016 = vmatprep.subr.bf16.mxu1 %v1675_v44  ;;  %v1818_v43 = vld [vmem:[%s2382_s0 + $0x1c] ss:$36 sps:$4 sm:$0xff]  }
  0x2d   :  { %1122 = vmatprep.subr.bf16.mxu0 %v1677_v45  ;;  %v1759_v44 = vld [vmem:[%s2381_s1 + $0x180] ss:$8 sps:$4 sm:$0xff]  }
  0x2e   :  { %v1762_v45 = vld [vmem:[%s2381_s1 + $0x380] ss:$8 sps:$4 sm:$0xff]  }
  0x2f   :  { %1017 = vmatpush1.bf16.msra.mxu1 %v1679_v46  ;;  %v1767_v46 = vld [vmem:[%s2381_s1 + $0x194] ss:$8 sps:$4 sm:$0xff]  }
  0x30   :  { %1123 = vmatpush1.bf16.msra.mxu0 %v1680_v47  ;;  %1018 = vmatprep.subr.bf16.mxu1 %v1681_v49  ;;  %v1770_v47 = vld [vmem:[%s2381_s1 + $0x394] ss:$8 sps:$4 sm:$0xff]   ;;  %v1768_v49 = vld [vmem:[%s2381_s1 + $0x390] ss:$8 sps:$4 sm:$0xff]  }
  0x31   :  { %1124 = vmatprep.subr.bf16.mxu0 %v1683_v50  ;;  %v1773_v50 = vld [vmem:[%s2381_s1 + $0x1a4] ss:$8 sps:$4 sm:$0xff]  }
  0x33   :  { %1019 = vmatpush1.bf16.msra.mxu1 %v1685_v52  ;;  %v1771_v52 = vld [vmem:[%s2381_s1 + $0x1a0] ss:$8 sps:$4 sm:$0xff]  }
  0x34   :  { %1125 = vmatpush1.bf16.msra.mxu0 %v1686_v53  ;;  %1020 = vmatprep.subr.bf16.mxu1 %v1687_v54  ;;  %v1774_v53 = vld [vmem:[%s2381_s1 + $0x3a0] ss:$8 sps:$4 sm:$0xff]   ;;  %v1779_v54 = vld [vmem:[%s2381_s1 + $0x1b4] ss:$8 sps:$4 sm:$0xff]  }
  0x35   :  { %1126 = vmatprep.subr.bf16.mxu0 %v1689_v55  ;;  %v1782_v55 = vld [vmem:[%s2381_s1 + $0x3b4] ss:$8 sps:$4 sm:$0xff]  }
  0x37   :  { %1021 = vmatpush1.bf16.msra.mxu1 %v1691_v56  ;;  %v1777_v56 = vld [vmem:[%s2381_s1 + $0x1b0] ss:$8 sps:$4 sm:$0xff]  }
  0x38   :  { %1127 = vmatpush1.bf16.msra.mxu0 %v1692_v57  ;;  %1022 = vmatprep.subr.bf16.mxu1 %v1693_v58  ;;  %v1780_v57 = vld [vmem:[%s2381_s1 + $0x3b0] ss:$8 sps:$4 sm:$0xff]   ;;  %v1785_v58 = vld [vmem:[%s2381_s1 + $0x1c4] ss:$8 sps:$4 sm:$0xff]  }
  0x39   :  { %1128 = vmatprep.subr.bf16.mxu0 %v1695_v59  ;;  %v1788_v59 = vld [vmem:[%s2381_s1 + $0x3c4] ss:$8 sps:$4 sm:$0xff]  }
  0x3b   :  { %1023 = vmatpush1.bf16.msra.mxu1 %v1697_v60  ;;  %v1783_v60 = vld [vmem:[%s2381_s1 + $0x1c0] ss:$8 sps:$4 sm:$0xff]  }
  0x3c   :  { %1129 = vmatpush1.bf16.msra.mxu0 %v1698_v61  ;;  %1024 = vmatprep.subr.bf16.mxu1 %v1699_v62  ;;  %v1786_v61 = vld [vmem:[%s2381_s1 + $0x3c0] ss:$8 sps:$4 sm:$0xff]   ;;  %v1791_v62 = vld [vmem:[%s2381_s1 + $0x1d4] ss:$8 sps:$4 sm:$0xff]  }
  0x3d   :  { %1130 = vmatprep.subr.bf16.mxu0 %v1701_v63  ;;  %v1794_v63 = vld [vmem:[%s2381_s1 + $0x3d4] ss:$8 sps:$4 sm:$0xff]  }
  0x3f   :  { %1025 = vmatpush1.bf16.msra.mxu1 %v1703_v0  ;;  %v1789_v0 = vld [vmem:[%s2381_s1 + $0x1d0] ss:$8 sps:$4 sm:$0xff]  }
  0x40   :  { %1131 = vmatpush1.bf16.msra.mxu0 %v1704_v1  ;;  %1047 = vmatprep.subr.bf16.mxu1 %v1710_v2  ;;  %v1792_v1 = vld [vmem:[%s2381_s1 + $0x3d0] ss:$8 sps:$4 sm:$0xff]   ;;  %v1802_v2 = vld [vmem:[%s2381_s1 + $0x1e4] ss:$8 sps:$4 sm:$0xff]  }
  0x41   :  { %1153 = vmatprep.subr.bf16.mxu0 %v1716_v3  ;;  %v1806_v3 = vld [vmem:[%s2381_s1 + $0x3e4] ss:$8 sps:$4 sm:$0xff]  }
  0x42   :  { %1027 = vmatmul.mubr.bf16.vlgmr.msra.gmra.mrb[0].mxu1 %v1705_v4  ;;  %v1800_v4 = vld [vmem:[%s2381_s1 + $0x1e0] ss:$8 sps:$4 sm:$0xff]  }
  0x43   :  { %1133 = vmatmul.mubr.bf16.vlgmr.msra.gmra.mrb[0].mxu0 %v1711_v6  ;;  %1048 = vmatpush1.bf16.msra.mxu1 %v1708_v5  ;;  %v1804_v5 = vld [vmem:[%s2381_s1 + $0x3e0] ss:$8 sps:$4 sm:$0xff]   ;;  %v1809_v6 = vld [vmem:[%s2381_s1 + $0x1f4] ss:$8 sps:$4 sm:$0xff]  }
  0x44   :  { %1154 = vmatpush1.bf16.msra.mxu0 %v1714_v7  ;;  %1049 = vmatprep.subr.bf16.mxu1 %v1719_v8  ;;  %v1812_v7 = vld [vmem:[%s2381_s1 + $0x3f4] ss:$8 sps:$4 sm:$0xff]   ;;  %v1807_v8 = vld [vmem:[%s2381_s1 + $0x1f0] ss:$8 sps:$4 sm:$0xff]  }
  0x45   :  { %1155 = vmatprep.subr.bf16.mxu0 %v1722_v9  ;;  %1036 = vmatprep.mubr.bf16.mxu1 %v1795_v29  ;;  %v1810_v9 = vld [vmem:[%s2381_s1 + $0x3f0] ss:$8 sps:$4 sm:$0xff]   ;;  %v1845_v29 = vld [vmem:[%s2381_s1 + $0x464] ss:$8 sps:$4 sm:$0xff]  }
  0x46   :  { %1142 = vmatprep.mubr.bf16.mxu0 %v1797_v30  ;;  %v1843_v30 = vld [vmem:[%s2381_s1 + $0x460] ss:$8 sps:$4 sm:$0xff]  }
  0x47   :  { %1050 = vmatpush1.bf16.msra.mxu1 %v1717_v10  ;;  %v1821_v10 = vld [vmem:[%s2381_s1 + $0x404] ss:$8 sps:$4 sm:$0xff]  }
  0x48   :  { %1156 = vmatpush1.bf16.msra.mxu0 %v1720_v11  ;;  %1051 = vmatprep.subr.bf16.mxu1 %v1725_v12  ;;  %v1813_v11 = vld [vmem:[%s2382_s0 + $0x8] ss:$36 sps:$4 sm:$0xff]   ;;  %v1816_v12 = vld [vmem:[%s2382_s0 + $0x18] ss:$36 sps:$4 sm:$0xff]  }
  0x49   :  { %1157 = vmatprep.subr.bf16.mxu0 %v1728_v13  ;;  %v1819_v13 = vld [vmem:[%s2381_s1 + $0x400] ss:$8 sps:$4 sm:$0xff]  }
  0x4a   :  { %1037 = vmatmul.mubr.bf16.gmra.mrb[4].mxu1 %v1799_v31  ;;  %v1848_v31 = vld [vmem:[%s2381_s1 + $0x474] ss:$8 sps:$4 sm:$0xff]  }
  0x4b   :  { %1052 = vmatpush1.bf16.msra.mxu1 %v1723_v14  ;;  %1143 = vmatmul.mubr.bf16.gmra.mrb[4].mxu0 %v1803_v33  ;;  %v1824_v14 = vld [vmem:[%s2381_s1 + $0x414] ss:$8 sps:$4 sm:$0xff]   ;;  %v1849_v33 = vld [vmem:[%s2382_s0 + $0x20] ss:$36 sps:$4 sm:$0xff]  }
  0x4c   :  { %1158 = vmatpush1.bf16.msra.mxu0 %v1726_v15  ;;  %1053 = vmatprep.subr.bf16.mxu1 %v1731_v16  ;;  %v1825_v15 = vld [vmem:[%s2382_s0 + $0x54] ss:$36 sps:$4 sm:$0xff]   ;;  %v1827_v16 = vld [vmem:[%s2382_s0 + $0x64] ss:$36 sps:$4 sm:$0xff]  }
  0x4d   :  { %1159 = vmatprep.subr.bf16.mxu0 %v1734_v17  ;;  %1079 = vmatprep.mubr.bf16.mxu1 %v1815_v41  ;;  %v1822_v17 = vld [vmem:[%s2381_s1 + $0x410] ss:$8 sps:$4 sm:$0xff]  }
  0x4e   :  { %1185 = vmatprep.mubr.bf16.mxu0 %v1818_v43 }
  0x4f   :  { %1054 = vmatpush1.bf16.msra.mxu1 %v1729_v18  ;;  %v1833_v18 = vld [vmem:[%s2381_s1 + $0x424] ss:$8 sps:$4 sm:$0xff]  }
  0x50   :  { %1160 = vmatpush1.bf16.msra.mxu0 %v1732_v19  ;;  %1055 = vmatprep.subr.bf16.mxu1 %v1737_v20  ;;  %v1829_v19 = vld [vmem:[%s2382_s0 + $0x50] ss:$36 sps:$4 sm:$0xff]   ;;  %v1830_v20 = vld [vmem:[%s2382_s0 + $0x60] ss:$36 sps:$4 sm:$0xff]  }
  0x51   :  { %1161 = vmatprep.subr.bf16.mxu0 %v1740_v21  ;;  %v1831_v21 = vld [vmem:[%s2381_s1 + $0x420] ss:$8 sps:$4 sm:$0xff]  }
  0x53   :  { %1056 = vmatpush1.bf16.msra.mxu1 %v1735_v22  ;;  %v1836_v22 = vld [vmem:[%s2381_s1 + $0x434] ss:$8 sps:$4 sm:$0xff]  }
  0x54   :  { %1162 = vmatpush1.bf16.msra.mxu0 %v1738_v23  ;;  %1057 = vmatprep.subr.bf16.mxu1 %v1743_v24  ;;  %v1834_v23 = vld [vmem:[%s2381_s1 + $0x430] ss:$8 sps:$4 sm:$0xff]   ;;  %v1839_v24 = vld [vmem:[%s2381_s1 + $0x444] ss:$8 sps:$4 sm:$0xff]  }
  0x55   :  { %1163 = vmatprep.subr.bf16.mxu0 %v1746_v25  ;;  %v1851_v25 = vmov 0  }
  0x57   :  { %1058 = vmatpush1.bf16.msra.mxu1 %v1741_v26  ;;  %v1837_v26 = vld [vmem:[%s2381_s1 + $0x440] ss:$8 sps:$4 sm:$0xff]  }
  0x58   :  { %1164 = vmatpush1.bf16.msra.mxu0 %v1744_v27  ;;  %1059 = vmatprep.subr.bf16.mxu1 %v1749_v28  ;;  %v1842_v27 = vld [vmem:[%s2381_s1 + $0x454] ss:$8 sps:$4 sm:$0xff]   ;;  %v1840_v28 = vld [vmem:[%s2381_s1 + $0x450] ss:$8 sps:$4 sm:$0xff]  }
  0x59   :  { %1165 = vmatprep.subr.bf16.mxu0 %v1752_v32  ;;  %v1846_v32 = vld [vmem:[%s2381_s1 + $0x470] ss:$8 sps:$4 sm:$0xff]  }
  0x5b   :  { %1060 = vmatpush1.bf16.msra.mxu1 %v1747_v34  ;;  %v1850_v34 = vld [vmem:[%s2382_s0 + $0x68] ss:$36 sps:$4 sm:$0xff]  }
  0x5c   :  { %1166 = vmatpush1.bf16.msra.mxu0 %v1750_v35  ;;  %1061 = vmatprep.subr.bf16.mxu1 %v1755_v36 }
  0x5d   :  { %1167 = vmatprep.subr.bf16.mxu0 %v1758_v37 }
  0x5f   :  { %1062 = vmatpush1.bf16.msra.mxu1 %v1753_v38 }
  0x60   :  { %1168 = vmatpush1.bf16.msra.mxu0 %v1756_v39  ;;  %1063 = vmatprep.subr.bf16.mxu1 %v1761_v40 }
  0x61   :  { %1169 = vmatprep.subr.bf16.mxu0 %v1764_v42 }
  0x63   :  { %1064 = vmatpush1.bf16.msra.mxu1 %v1759_v44 }
  0x64   :  { %1170 = vmatpush1.bf16.msra.mxu0 %v1762_v45  ;;  %1065 = vmatprep.subr.bf16.mxu1 %v1767_v46 }
  0x65   :  { %1171 = vmatprep.subr.bf16.mxu0 %v1770_v47 }
  0x67   :  { %1066 = vmatpush1.bf16.msra.mxu1 %v1765_v48 }
  0x68   :  { %1172 = vmatpush1.bf16.msra.mxu0 %v1768_v49  ;;  %1067 = vmatprep.subr.bf16.mxu1 %v1773_v50 }
  0x69   :  { %1173 = vmatprep.subr.bf16.mxu0 %v1776_v51  ;;  %v1312_v51 = vlaneseq }
  0x6b   :  { %1068 = vmatpush1.bf16.msra.mxu1 %v1771_v52  ;;  %v1313_v52 = vshrl.u32 %v1312_v51, 7 }
  0x6c   :  { %1174 = vmatpush1.bf16.msra.mxu0 %v1774_v53  ;;  %1069 = vmatprep.subr.bf16.mxu1 %v1779_v54  ;;  %v1310_v54 = vld [vmem:[%s2383_s2] sm:$0x3] }
  0x6d   :  { %1175 = vmatprep.subr.bf16.mxu0 %v1782_v55  ;;  %v1314_v53 = vsub.s32 0, %v1313_v52  ;;  %v1318_v55 = vsub.s32 1, %v1313_v52 }
  0x6f   :  { %1070 = vmatpush1.bf16.msra.mxu1 %v1777_v56  ;;  %v1330_v56 = vld [vmem:[%s2384_s3] sm:$0x3] }
  0x70   :  { %1176 = vmatpush1.bf16.msra.mxu0 %v1780_v57  ;;  %1071 = vmatprep.subr.bf16.mxu1 %v1785_v58  ;;  %v1315_v57 = vrot.slane %v1310_v54, %v1314_v53 }
  0x71   :  { %1177 = vmatprep.subr.bf16.mxu0 %v1788_v59 }
  0x73   :  { %1072 = vmatpush1.bf16.msra.mxu1 %v1783_v60  ;;  %v1319_v60 = vrot.slane %v1310_v54, %v1318_v55 }
  0x74   :  { %1178 = vmatpush1.bf16.msra.mxu0 %v1786_v61  ;;  %1073 = vmatprep.subr.bf16.mxu1 %v1791_v62  ;;  %v1335_v62 = vrot.slane %v1330_v56, %v1314_v53 }
  0x75   :  { %1179 = vmatprep.subr.bf16.mxu0 %v1794_v63 }
  0x77   :  { %1074 = vmatpush1.bf16.msra.mxu1 %v1789_v0 }
  0x78   :  { %1180 = vmatpush1.bf16.msra.mxu0 %v1792_v1  ;;  %1075 = vmatprep.subr.bf16.mxu1 %v1802_v2 }
  0x79   :  { %1181 = vmatprep.subr.bf16.mxu0 %v1806_v3  ;;  %v1339_v3 = vrot.slane %v1330_v56, %v1318_v55 }
  0x7b   :  { %1076 = vmatpush1.bf16.msra.mxu1 %v1800_v4 }
  0x7c   :  { %1182 = vmatpush1.bf16.msra.mxu0 %v1804_v5  ;;  %1077 = vmatprep.subr.bf16.mxu1 %v1809_v6 }
  0x7d   :  { %1183 = vmatprep.subr.bf16.mxu0 %v1812_v7 }
  0x7f   :  { %1078 = vmatpush1.bf16.msra.mxu1 %v1807_v8 }
  0x80   :  { %1184 = vmatpush1.bf16.msra.mxu0 %v1810_v9  ;;  %1560 = vmatprep.subr.bf16.mxu1 %v1821_v10 }
  0x81   :  { %1206 = vmatprep.subr.bf16.mxu0 %v1821_v10 }
  0x82   :  { %1080 = vmatmul.mubr.bf16.vlgmr.msra.gmra.mrb[0].mxu1 %v1813_v11 }
  0x83   :  { %1186 = vmatmul.mubr.bf16.vlgmr.msra.gmra.mrb[0].mxu0 %v1816_v12  ;;  %1568 = vmatpush1.bf16.msra.mxu1 %v1819_v13 }
  0x84   :  { %1207 = vmatpush1.bf16.msra.mxu0 %v1819_v13  ;;  %1561 = vmatprep.subr.bf16.mxu1 %v1824_v14 }
  0x85   :  { %1208 = vmatprep.subr.bf16.mxu0 %v1824_v14  ;;  %1089 = vmatprep.mubr.bf16.mxu1 %v1825_v15 }
  0x86   :  { %1195 = vmatprep.mubr.bf16.mxu0 %v1827_v16 }
  0x87   :  { %1569 = vmatpush1.bf16.msra.mxu1 %v1822_v17 }
  0x88   :  { %1209 = vmatpush1.bf16.msra.mxu0 %v1822_v17  ;;  %1562 = vmatprep.subr.bf16.mxu1 %v1833_v18 }
  0x89   :  { %1210 = vmatprep.subr.bf16.mxu0 %v1833_v18 }
  0x8a   :  { %1090 = vmatmul.mubr.bf16.gmra.mrb[4].mxu1 %v1829_v19 }
  0x8b   :  { %1196 = vmatmul.mubr.bf16.gmra.mrb[4].mxu0 %v1830_v20  ;;  %1570 = vmatpush1.bf16.msra.mxu1 %v1831_v21 }
  0x8c   :  { %1211 = vmatpush1.bf16.msra.mxu0 %v1831_v21  ;;  %1563 = vmatprep.subr.bf16.mxu1 %v1836_v22 }
  0x8d   :  { %1212 = vmatprep.subr.bf16.mxu0 %v1836_v22  ;;  %1238 = vmatprep.mubr.bf16.mxu0 %v1851_v25 }
  0x8e   :  { %1248 = vmatprep.mubr.bf16.mxu1 %v1851_v25 }
  0x8f   :  { %1571 = vmatpush1.bf16.msra.mxu1 %v1834_v23 }
  0x90   :  { %1213 = vmatpush1.bf16.msra.mxu0 %v1834_v23  ;;  %1564 = vmatprep.subr.bf16.mxu1 %v1839_v24 }
  0x91   :  { %1214 = vmatprep.subr.bf16.mxu0 %v1839_v24 }
  0x93   :  { %1572 = vmatpush1.bf16.msra.mxu1 %v1837_v26 }
  0x94   :  { %1215 = vmatpush1.bf16.msra.mxu0 %v1837_v26  ;;  %1565 = vmatprep.subr.bf16.mxu1 %v1842_v27 }
  0x95   :  { %1216 = vmatprep.subr.bf16.mxu0 %v1842_v27 }
  0x97   :  { %1573 = vmatpush1.bf16.msra.mxu1 %v1840_v28 }
  0x98   :  { %1217 = vmatpush1.bf16.msra.mxu0 %v1840_v28  ;;  %1566 = vmatprep.subr.bf16.mxu1 %v1845_v29 }
  0x99   :  { %1218 = vmatprep.subr.bf16.mxu0 %v1845_v29 }
  0x9b   :  { %1574 = vmatpush1.bf16.msra.mxu1 %v1843_v30 }
  0x9c   :  { %1219 = vmatpush1.bf16.msra.mxu0 %v1843_v30  ;;  %1567 = vmatprep.subr.bf16.mxu1 %v1848_v31 }
  0x9d   :  { %1220 = vmatprep.subr.bf16.mxu0 %v1848_v31 }
  0x9f   :  { %1575 = vmatpush1.bf16.msra.mxu1 %v1846_v32 }
  0xa0   :  { %1221 = vmatpush1.bf16.msra.mxu0 %v1846_v32 }
  0xa2   :  { %1249 = vmatmul.mubr.bf16.vlgmr.msra.gmra.mrb[8].mxu1 %v1850_v34 }
  0xa3   :  { %1239 = vmatmul.mubr.bf16.vlgmr.msra.gmra.mrb[0].mxu0 %v1849_v33 }
 0x155   :  { %v1081_v35 = vpop.f32.mrb[0].mxu1 }
 0x156   :  { %v1083_v36 = vpop.f32.mrb[1].mxu1 }
 0x157   :  { %v1085_v37 = vpop.f32.mrb[2].mxu1 }
 0x158   :  { %v1087_v38 = vpop.f32.mrb[3].mxu1 }
 0x15d   :  { %v1091_v39 = vpop.f32.mrb[4].mxu1 }
 0x15e   :  { %v1197_v40 = vpop.f32.mrb[4].mxu0  ;;  %v1093_v42 = vpop.f32.mrb[5].mxu1 }
 0x15f   :  { %v1580_v41 = vadd.f32 %v1197_v40, %v1091_v39  ;;  %v1199_v43 = vpop.f32.mrb[5].mxu0  ;;  %v1095_v45 = vpop.f32.mrb[6].mxu1 }
 0x160   :  { %v1582_v44 = vadd.f32 %v1199_v43, %v1093_v42  ;;  %v1201_v46 = vpop.f32.mrb[6].mxu0  ;;  %v1097_v48 = vpop.f32.mrb[7].mxu1 }
 0x161   :  { %v1584_v47 = vadd.f32 %v1201_v46, %v1095_v45  ;;  %v1203_v49 = vpop.f32.mrb[7].mxu0 }
 0x162   :  { %v1586_v50 = vadd.f32 %v1203_v49, %v1097_v48 }
 0x175   :  { %v1250_v59 = vpop.f32.mrb[8].mxu1 }
 0x176   :  { %v1240_v58 = vpop.f32.mrb[0].mxu0  ;;  %v1581_v63 = vadd.f32 %v1580_v41, %v1250_v59  ;;  %v1252_v1 = vpop.f32.mrb[9].mxu1 }
 0x177   :  { %v1576_v61 = vadd.f32 %v1240_v58, %v1081_v35  ;;  %v1242_v0 = vpop.f32.mrb[1].mxu0  ;;  %v1583_v4 = vadd.f32 %v1582_v44, %v1252_v1  ;;  %v1254_v6 = vpop.f32.mrb[10].mxu1 }
 0x178   :  { %v1577_v2 = vadd.f32 %v1242_v0, %v1083_v36  ;;  %v1244_v5 = vpop.f32.mrb[2].mxu0  ;;  %v1326_v8 = vmul.f32 %v1581_v63, %v1315_v57  ;;  %v1585_v10 = vadd.f32 %v1584_v47, %v1254_v6  ;;  %v1256_v12 = vpop.f32.mrb[11].mxu1 }
 0x179   :  { %v1322_v7 = vmul.f32 %v1576_v61, %v1315_v57  ;;  %v1578_v9 = vadd.f32 %v1244_v5, %v1085_v37  ;;  %v1246_v11 = vpop.f32.mrb[3].mxu0  ;;  %v1327_v14 = vmul.f32 %v1583_v4, %v1319_v60  ;;  %v1587_v16 = vadd.f32 %v1586_v50, %v1256_v12 }
 0x17a   :  { %v1323_v13 = vmul.f32 %v1577_v2, %v1319_v60  ;;  %v1579_v15 = vadd.f32 %v1246_v11, %v1087_v38  ;;  %v1346_v18 = vadd.f32 %v1335_v62, %v1326_v8  ;;  %v1328_v20 = vmul.f32 %v1585_v10, %v1315_v57 }
 0x17b   :  { %v1342_v17 = vadd.f32 %v1335_v62, %v1322_v7  ;;  %v1324_v19 = vmul.f32 %v1578_v9, %v1315_v57  ;;  %v1347_v22 = vadd.f32 %v1339_v3, %v1327_v14  ;;  %v1329_v24 = vmul.f32 %v1587_v16, %v1319_v60 }
 0x17c   :  { %v1343_v21 = vadd.f32 %v1339_v3, %v1323_v13  ;;  %v1325_v23 = vmul.f32 %v1579_v15, %v1319_v60  ;;  %v1354_v26 = vmax.f32 %v1346_v18, 0.0  ;;  %v1348_v28 = vadd.f32 %v1335_v62, %v1328_v20 }
 0x17d   :  { %v1350_v25 = vmax.f32 %v1342_v17, 0.0  ;;  %v1344_v27 = vadd.f32 %v1335_v62, %v1324_v19  ;;  %v1355_v30 = vmax.f32 %v1347_v22, 0.0  ;;  %v1349_v32 = vadd.f32 %v1339_v3, %v1329_v24 }
 0x17e   :  { %v1351_v29 = vmax.f32 %v1343_v21, 0.0  ;;  %v1345_v31 = vadd.f32 %v1339_v3, %v1325_v23  ;;  %v1356_v34 = vmax.f32 %v1348_v28, 0.0 }
 0x17f   :  { %v1352_v33 = vmax.f32 %v1344_v27, 0.0  ;;  %v1558_v36 = vpack.c.bf16 %v1355_v30, %v1354_v26  ;;  %v1357_v38 = vmax.f32 %v1349_v32, 0.0 }
 0x180   :  { %v1556_v35 = vpack.c.bf16 %v1351_v29, %v1350_v25  ;;  %v1353_v37 = vmax.f32 %v1345_v31, 0.0 }
 0x181   :  { %1384 = vst [vmem:[%s2385_s4 + $0x10] sm:$0xff] %v1558_v36  ;;  %v1559_v40 = vpack.c.bf16 %v1357_v38, %v1356_v34 }
 0x182   :  { %1382 = vst [vmem:[%s2385_s4] sm:$0xff] %v1556_v35  ;;  %v1557_v39 = vpack.c.bf16 %v1353_v37, %v1352_v33 }
 0x183   :  { %1385 = vst [vmem:[%s2385_s4 + $0x18] sm:$0xff] %v1559_v40 }
 0x184   :  { %1383 = vst [vmem:[%s2385_s4 + $0x8] sm:$0xff] %v1557_v39 }

// kernel: resnet_forward.15
= control target key start
LH: loop header
LB: loop body
LE: loop exit
PB: predicated region body
PF: predicated region fallthrough
CT: control target
= control target key end

     0   :  { %v35_v7 = vlaneseq  ;;  %s506_s0 = inlined_call_operand.vmem [shape: bf16[2,16,256], index: 0, kind: input, shape index: {}]   ;;  %s507_s1 = inlined_call_operand.vmem [shape: f32[1,1,256], index: 1, kind: input, shape index: {}]   ;;  %s508_s2 = inlined_call_operand.vmem [shape: f32[1,1,256], index: 2, kind: input, shape index: {}]   ;;  %s509_s3 = inlined_call_operand.vmem [shape: f32[256,10], index: 3, kind: input, shape index: {}]   ;;  %s510_s4 = inlined_call_operand.vmem [shape: f32[1,10], index: 4, kind: input, shape index: {}]   ;;  %s511_s5 = inlined_call_operand.hbm [shape: f32[2,10], index: 5, kind: output, shape index: {}]  }
   0x1   :  { %v129_v0 = vld [vmem:[%s509_s3 + $0x80] sm:$0xff]  ;;  %v130_v1 = vld [vmem:[%s509_s3 + $0x88] sm:$0xff]  ;;  %v131_v5 = vld [vmem:[%s509_s3 + $0x90] sm:$0xff] }
   0x2   :  { %v113_v2 = vld [vmem:[%s509_s3] sm:$0xff]  ;;  %v283_v3 = vpack.c.bf16 %v130_v1, %v129_v0  ;;  %v114_v4 = vld [vmem:[%s509_s3 + $0x8] sm:$0xff]  ;;  %v132_v6 = vld [vmem:[%s509_s3 + $0x98] sm:$0xff]  ;;  %v36_v18 = vshrl.u32 %v35_v7, 7 }
   0x3   :  { %v285_v8 = vpack.c.bf16 %v114_v4, %v113_v2  ;;  %v287_v9 = vpack.c.bf16 %v132_v6, %v131_v5  ;;  %v115_v10 = vld [vmem:[%s509_s3 + $0x10] sm:$0xff]  ;;  %v116_v11 = vld [vmem:[%s509_s3 + $0x18] sm:$0xff]  ;;  %v133_v12 = vld [vmem:[%s509_s3 + $0xa0] sm:$0xff] }
   0x4   :  { %284 = vmatprep.subr.bf16.mxu0 %v283_v3  ;;  %v134_v13 = vld [vmem:[%s509_s3 + $0xa8] sm:$0xff]  ;;  %v289_v14 = vpack.c.bf16 %v116_v11, %v115_v10  ;;  %v117_v16 = vld [vmem:[%s509_s3 + $0x20] sm:$0xff]  ;;  %v135_v19 = vld [vmem:[%s509_s3 + $0xb0] sm:$0xff]  ;;  %v41_v31 = vsub.s32 1, %v36_v18  ;;  %v37_v36 = vsub.s32 0, %v36_v18 }
   0x5   :  { %286 = vmatpush3.bf16.msra.mxu0 %v285_v8  ;;  %v291_v15 = vpack.c.bf16 %v134_v13, %v133_v12  ;;  %v118_v17 = vld [vmem:[%s509_s3 + $0x28] sm:$0xff]  ;;  %v136_v20 = vld [vmem:[%s509_s3 + $0xb8] sm:$0xff]  ;;  %v119_v21 = vld [vmem:[%s509_s3 + $0x30] sm:$0xff] }
   0x6   :  { %288 = vmatprep.subr.bf16.mxu0 %v287_v9  ;;  %v120_v22 = vld [vmem:[%s509_s3 + $0x38] sm:$0xff]  ;;  %v137_v23 = vld [vmem:[%s509_s3 + $0xc0] sm:$0xff]  ;;  %v293_v24 = vpack.c.bf16 %v118_v17, %v117_v16  ;;  %v138_v25 = vld [vmem:[%s509_s3 + $0xc8] sm:$0xff]  ;;  %v295_v28 = vpack.c.bf16 %v136_v20, %v135_v19 }
   0x7   :  { %v121_v26 = vld [vmem:[%s509_s3 + $0x40] sm:$0xff]  ;;  %v122_v27 = vld [vmem:[%s509_s3 + $0x48] sm:$0xff]  ;;  %v139_v29 = vld [vmem:[%s509_s3 + $0xd0] sm:$0xff]  ;;  %v297_v32 = vpack.c.bf16 %v120_v22, %v119_v21  ;;  %v299_v37 = vpack.c.bf16 %v138_v25, %v137_v23 }
   0x8   :  { %v140_v30 = vld [vmem:[%s509_s3 + $0xd8] sm:$0xff]  ;;  %v440_v33 = vld [vmem:[%s509_s3 + $0x50] sm:$0xff]  ;;  %v21_v35 = vld [vmem:[%s506_s0] sm:$0xff]  ;;  %v301_v38 = vpack.c.bf16 %v122_v27, %v121_v26 }
   0x9   :  { %290 = vmatpush3.bf16.msra.mxu0 %v289_v14  ;;  %v445_v34 = vld [vmem:[%s509_s3 + $0x58] sm:$0xff]  ;;  %v22_v39 = vld [vmem:[%s506_s0 + $0x8] sm:$0xff]  ;;  %v23_v40 = vld [vmem:[%s506_s0 + $0x10] sm:$0xff]  ;;  %v26_v42 = vunpack.c.h.bf16 %v21_v35  ;;  %v25_v43 = vunpack.c.l.bf16 %v21_v35 }
   0xa   :  { %292 = vmatprep.subr.bf16.mxu0 %v291_v15  ;;  %v24_v41 = vld [vmem:[%s506_s0 + $0x18] sm:$0xff]  ;;  %v28_v44 = vunpack.c.h.bf16 %v22_v39  ;;  %v30_v45 = vunpack.c.h.bf16 %v23_v40  ;;  %v33_v47 = vld [vmem:[%s507_s1] sm:$0x3]  ;;  %v27_v49 = vunpack.c.l.bf16 %v22_v39 }
   0xb   :  { %v32_v46 = vunpack.c.h.bf16 %v24_v41  ;;  %v53_v48 = vld [vmem:[%s508_s2] sm:$0x3] }
   0xd   :  { %294 = vmatpush3.bf16.msra.mxu0 %v293_v24 }
   0xe   :  { %10 = vsyncpa [#allocation3], 0  ;;  %296 = vmatprep.subr.bf16.mxu0 %v295_v28  ;;  %v42_v50 = vrot.slane %v33_v47, %v41_v31  ;;  %v62_v51 = vrot.slane %v53_v48, %v41_v31  ;;  %v29_v52 = vunpack.c.l.bf16 %v23_v40  ;;  %v31_v53 = vunpack.c.l.bf16 %v24_v41  ;;  %v141_v6 = vld [vmem:[%s509_s3 + $0xe0] sm:$0xff]  ;;  %v142_v7 = vld [vmem:[%s509_s3 + $0xe8] sm:$0xff]  ;;  %s340_s17 = smov [#allocation2]  }
   0xf   :  { %v303_v54 = vpack.c.bf16 %v140_v30, %v139_v29  ;;  %v305_v55 = vpack.c.bf16 %v445_v34, %v440_v33  ;;  %v38_v56 = vrot.slane %v33_v47, %v37_v36  ;;  %v58_v57 = vrot.slane %v53_v48, %v37_v36  ;;  %v125_v21 = vld [vmem:[%s509_s3 + $0x60] sm:$0xff]  ;;  %v126_v22 = vld [vmem:[%s509_s3 + $0x68] sm:$0xff]  ;;  %v143_v25 = vld [vmem:[%s509_s3 + $0xf0] sm:$0xff]  ;;  %s239_s18 = sshll.u32 %s340_s17, 4  ;;  %s240_s18 = int_to_ptr.vmem [resolvable:$true] %s239_s18 }
  0x10   :  { %v46_v58 = vmul.f32 %v42_v50, %v26_v42  ;;  %v48_v59 = vmul.f32 %v42_v50, %v28_v44  ;;  %v50_v60 = vmul.f32 %v42_v50, %v30_v45  ;;  %v52_v61 = vmul.f32 %v42_v50, %v32_v46  ;;  %v144_v26 = vld [vmem:[%s509_s3 + $0xf8] sm:$0xff]  ;;  %v127_v35 = vld [vmem:[%s509_s3 + $0x70] sm:$0xff]  ;;  %s316_s19 = scalar_lea.vmem %s240_s18, 32  ;;  %p321_p1 = scmp.lt.s32.totalorder %s240_s18, %s240_s18 }
  0x11   :  { %298 = vmatpush3.bf16.msra.mxu0 %v297_v32  ;;  %v45_v62 = vmul.f32 %v38_v56, %v25_v43  ;;  %v47_v63 = vmul.f32 %v38_v56, %v27_v49  ;;  %v49_v0 = vmul.f32 %v38_v56, %v29_v52  ;;  %v51_v1 = vmul.f32 %v38_v56, %v31_v53  ;;  %v128_v36 = vld [vmem:[%s509_s3 + $0x78] sm:$0xff]  ;;  %p317_p0 = scmp.ne.s32.totalorder %s240_s18, %s316_s19  ;;  %p322_p2 = scmp.lt.s32.totalorder %s316_s19, %s316_s19 }
  0x12   :  { %300 = vmatprep.subr.bf16.mxu0 %v299_v37  ;;  %v66_v2 = vadd.f32 %v62_v51, %v46_v58  ;;  %v68_v3 = vadd.f32 %v62_v51, %v48_v59  ;;  %v70_v4 = vadd.f32 %v62_v51, %v50_v60  ;;  %v72_v5 = vadd.f32 %v62_v51, %v52_v61 }
  0x13   :  { %v65_v8 = vadd.f32 %v58_v57, %v45_v62  ;;  %v67_v9 = vadd.f32 %v58_v57, %v47_v63  ;;  %v69_v10 = vadd.f32 %v58_v57, %v49_v0  ;;  %v71_v11 = vadd.f32 %v58_v57, %v51_v1  ;;  %v247_v1 = vld [vmem:[%s510_s4] ss:$0 sm:$0xff]  ;;  %p323_p3 = por %p322_p2, %p321_p1 }
  0x14   :  { %v74_v12 = vmax.f32 %v66_v2, 0.0  ;;  %v76_v13 = vmax.f32 %v68_v3, 0.0  ;;  %v78_v14 = vmax.f32 %v70_v4, 0.0  ;;  %v80_v15 = vmax.f32 %v72_v5, 0.0 }
  0x15   :  { %302 = vmatpush3.bf16.msra.mxu0 %v301_v38  ;;  %v73_v16 = vmax.f32 %v65_v8, 0.0  ;;  %v75_v17 = vmax.f32 %v67_v9, 0.0  ;;  %v77_v18 = vmax.f32 %v69_v10, 0.0  ;;  %v79_v19 = vmax.f32 %v71_v11, 0.0  ;;  %p324_p4 = pnand %p323_p3, %p317_p0 }
  0x16   :  { %304 = vmatprep.subr.bf16.mxu0 %v303_v54  ;;  %v307_v20 = vpack.c.bf16 %v142_v7, %v141_v6  ;;  %v88_v23 = vadd.f32 %v76_v13, %v74_v12  ;;  %v102_v24 = vadd.f32 %v80_v15, %v78_v14  ;;  %v309_v31 = vpack.c.bf16 %v126_v22, %v125_v21 }
  0x17   :  { %v81_v27 = vadd.f32 %v75_v17, %v73_v16  ;;  %v95_v28 = vadd.f32 %v79_v19, %v77_v18  ;;  %v311_v34 = vpack.c.bf16 %v144_v26, %v143_v25  ;;  %v313_v43 = vpack.c.bf16 %v128_v36, %v127_v35 }
  0x18   :  { %v89_v29 = vrot.slane %v88_v23, 4  ;;  %v103_v30 = vrot.slane %v102_v24, 4  ;;  %vm156_vm0 = vcmask 1041409   ;;  %vm231_vm1 = vcmask 74752  }
  0x19   :  { %306 = vmatpush3.bf16.msra.mxu0 %v305_v55  ;;  %v82_v32 = vrot.slane %v81_v27, 4  ;;  %v96_v33 = vrot.slane %v95_v28, 4 }
  0x1a   :  { %308 = vmatprep.subr.bf16.mxu0 %v307_v20  ;;  %v90_v37 = vadd.f32 %v89_v29, %v88_v23  ;;  %v104_v38 = vadd.f32 %v103_v30, %v102_v24 }
  0x1b   :  { %v83_v39 = vadd.f32 %v82_v32, %v81_v27  ;;  %v97_v40 = vadd.f32 %v96_v33, %v95_v28 }
  0x1c   :  { %v91_v41 = vrot.slane %v90_v37, 2  ;;  %v105_v42 = vrot.slane %v104_v38, 2 }
  0x1d   :  { %310 = vmatpush3.bf16.msra.mxu0 %v309_v31  ;;  %v84_v44 = vrot.slane %v83_v39, 2  ;;  %v98_v45 = vrot.slane %v97_v40, 2 }
  0x1e   :  { %312 = vmatprep.subr.bf16.mxu0 %v311_v34  ;;  %v92_v46 = vadd.f32 %v91_v41, %v90_v37  ;;  %v106_v47 = vadd.f32 %v105_v42, %v104_v38 }
  0x1f   :  { %v85_v48 = vadd.f32 %v84_v44, %v83_v39  ;;  %v99_v49 = vadd.f32 %v98_v45, %v97_v40 }
  0x20   :  { %v93_v50 = vrot.slane %v92_v46, 1  ;;  %v107_v51 = vrot.slane %v106_v47, 1 }
  0x21   :  { %314 = vmatpush3.bf16.msra.mxu0 %v313_v43  ;;  %v86_v52 = vrot.slane %v85_v48, 1  ;;  %v100_v53 = vrot.slane %v99_v49, 1 }
  0x22   :  { %v94_v54 = vadd.f32 %v93_v50, %v92_v46  ;;  %v108_v55 = vadd.f32 %v107_v51, %v106_v47 }
  0x23   :  { %v87_v56 = vadd.f32 %v86_v52, %v85_v48  ;;  %v101_v57 = vadd.f32 %v100_v53, %v99_v49 }
  0x24   :  { %v110_v58 = vmul.f32 0.0625, %v94_v54  ;;  %v112_v59 = vmul.f32 0.0625, %v108_v55 }
  0x25   :  { %v109_v60 = vmul.f32 0.0625, %v87_v56  ;;  %v111_v61 = vmul.f32 0.0625, %v101_v57 }
  0x26   :  { %v158_v62 = vsel %vm156_vm0, %v112_v59, %v110_v58 }
  0x27   :  { %225 = vmatprep.mubr.f32.mxu0 %v158_v62  ;;  %v157_v63 = vsel %vm156_vm0, %v111_v61, %v109_v60 }
  0x28   :  { %226 = vmatmul.mubr.f32.vlgmr.msra.gmra.mrb[0].mxu0 %v157_v63 }
  0xfb   :  { %v280_v0 = vpop.f32.mrb[0].mxu0 }
  0xfc   :  { %v281_v2 = vpop.f32.mrb[1].mxu0 }
  0xfd   :  { %v282_v3 = vadd.f32 %v281_v2, %v280_v0 }
  0xff   :  { %v228_v4 = vadd.f32 %v282_v3, %v247_v1 }
 0x101   :  { %232 = vst.msk [vmem:[#allocation2] sm:$0x3] %vm231_vm1, %v228_v4 }
 0x102   :  { %327 = shalt.err (!%p324_p4)
}
 0x103   :  { %s328_s22 = scalar_lea.hbm %s511_s5, 32 }
 0x104   :  { %p329_p5 = scmp.ne.s32.totalorder %s511_s5, %s328_s22  ;;  %p332_p6 = scmp.lt.u32.totalorder %s328_s22, %s511_s5 }
 0x106   :  { %p334_p7 = pnand %p332_p6, %p329_p5 }
 0x108   :  { %337 = shalt.err (!%p334_p7)
}
 0x109   :  { %242 = dma.vmem_to_hbm [thread:$0]  %s240_s18, 32, %s511_s5, [#allocation3]  }
 0x10a   :  { %338 = dma.done.wait [#allocation3], 32  }
 0x10b   :  { %339 = vsyncadd [#allocation3], 4294967264 }
 0x10c   :  { %246 = vsyncpa [#allocation3], 1 }

// kernel: resnet_forward.14
= control target key start
LH: loop header
LB: loop body
LE: loop exit
PB: predicated region body
PF: predicated region fallthrough
CT: control target
= control target key end

     0   :  { %s4538_s1 = inlined_call_operand.vmem [shape: bf16[2304,256], index: 1, kind: input, shape index: {}]   ;;  %s4539_s0 = inlined_call_operand.vmem [shape: bf16[32,2304], index: 0, kind: input, shape index: {}]   ;;  %s4540_s2 = inlined_call_operand.vmem [shape: f32[1,256], index: 2, kind: input, shape index: {}]   ;;  %s4541_s3 = inlined_call_operand.vmem [shape: f32[1,256], index: 3, kind: input, shape index: {}]   ;;  %s4542_s4 = inlined_call_operand.vmem [shape: bf16[32,256], index: 4, kind: input, shape index: {}]   ;;  %s4543_s5 = inlined_call_operand.vmem [shape: bf16[32,256], index: 5, kind: output, shape index: {}]  }
   0x1   :  { %v3020_v0 = vld [vmem:[%s4538_s1 + $0x4] ss:$8 sps:$4 sm:$0xff]   ;;  %v3024_v2 = vld [vmem:[%s4538_s1] ss:$8 sps:$4 sm:$0xff]   ;;  %v3026_v4 = vld [vmem:[%s4538_s1 + $0x14] ss:$8 sps:$4 sm:$0xff]  }
   0x2   :  { %v3022_v1 = vld [vmem:[%s4538_s1 + $0x404] ss:$8 sps:$4 sm:$0xff]   ;;  %1964 = vmatprep.subr.bf16.mxu1 %v3020_v0  ;;  %v3025_v3 = vld [vmem:[%s4538_s1 + $0x400] ss:$8 sps:$4 sm:$0xff]   ;;  %v3028_v5 = vld [vmem:[%s4538_s1 + $0x414] ss:$8 sps:$4 sm:$0xff]  }
   0x3   :  { %2176 = vmatprep.subr.bf16.mxu0 %v3022_v1  ;;  %1965 = vmatpush1.bf16.msra.mxu1 %v3024_v2  ;;  %v3030_v6 = vld [vmem:[%s4538_s1 + $0x10] ss:$8 sps:$4 sm:$0xff]   ;;  %v3032_v8 = vld [vmem:[%s4538_s1 + $0x24] ss:$8 sps:$4 sm:$0xff]   ;;  %v3036_v10 = vld [vmem:[%s4538_s1 + $0x20] ss:$8 sps:$4 sm:$0xff]  }
   0x4   :  { %2177 = vmatpush1.bf16.msra.mxu0 %v3025_v3  ;;  %1966 = vmatprep.subr.bf16.mxu1 %v3026_v4  ;;  %v3031_v7 = vld [vmem:[%s4538_s1 + $0x410] ss:$8 sps:$4 sm:$0xff]   ;;  %v3034_v9 = vld [vmem:[%s4538_s1 + $0x424] ss:$8 sps:$4 sm:$0xff]   ;;  %v3037_v11 = vld [vmem:[%s4538_s1 + $0x420] ss:$8 sps:$4 sm:$0xff]  }
   0x5   :  { %2178 = vmatprep.subr.bf16.mxu0 %v3028_v5  ;;  %v3038_v12 = vld [vmem:[%s4538_s1 + $0x34] ss:$8 sps:$4 sm:$0xff]   ;;  %v3042_v14 = vld [vmem:[%s4538_s1 + $0x30] ss:$8 sps:$4 sm:$0xff]   ;;  %v3044_v16 = vld [vmem:[%s4538_s1 + $0x44] ss:$8 sps:$4 sm:$0xff]  }
   0x6   :  { %v3040_v13 = vld [vmem:[%s4538_s1 + $0x434] ss:$8 sps:$4 sm:$0xff]   ;;  %v3043_v15 = vld [vmem:[%s4538_s1 + $0x430] ss:$8 sps:$4 sm:$0xff]   ;;  %v3046_v17 = vld [vmem:[%s4538_s1 + $0x444] ss:$8 sps:$4 sm:$0xff]  }
   0x7   :  { %1967 = vmatpush1.bf16.msra.mxu1 %v3030_v6  ;;  %v3048_v18 = vld [vmem:[%s4538_s1 + $0x40] ss:$8 sps:$4 sm:$0xff]   ;;  %v3050_v20 = vld [vmem:[%s4538_s1 + $0x54] ss:$8 sps:$4 sm:$0xff]   ;;  %v3054_v22 = vld [vmem:[%s4538_s1 + $0x50] ss:$8 sps:$4 sm:$0xff]  }
   0x8   :  { %2179 = vmatpush1.bf16.msra.mxu0 %v3031_v7  ;;  %1968 = vmatprep.subr.bf16.mxu1 %v3032_v8  ;;  %v3049_v19 = vld [vmem:[%s4538_s1 + $0x440] ss:$8 sps:$4 sm:$0xff]   ;;  %v3052_v21 = vld [vmem:[%s4538_s1 + $0x454] ss:$8 sps:$4 sm:$0xff]   ;;  %v3055_v23 = vld [vmem:[%s4538_s1 + $0x450] ss:$8 sps:$4 sm:$0xff]  }
   0x9   :  { %2180 = vmatprep.subr.bf16.mxu0 %v3034_v9  ;;  %v3056_v24 = vld [vmem:[%s4538_s1 + $0x64] ss:$8 sps:$4 sm:$0xff]   ;;  %v3060_v26 = vld [vmem:[%s4538_s1 + $0x60] ss:$8 sps:$4 sm:$0xff]   ;;  %v3062_v28 = vld [vmem:[%s4538_s1 + $0x74] ss:$8 sps:$4 sm:$0xff]  }
   0xa   :  { %v3058_v25 = vld [vmem:[%s4538_s1 + $0x464] ss:$8 sps:$4 sm:$0xff]   ;;  %v3061_v27 = vld [vmem:[%s4538_s1 + $0x460] ss:$8 sps:$4 sm:$0xff]   ;;  %v3064_v29 = vld [vmem:[%s4538_s1 + $0x474] ss:$8 sps:$4 sm:$0xff]  }
   0xb   :  { %1969 = vmatpush1.bf16.msra.mxu1 %v3036_v10  ;;  %v3066_v30 = vld [vmem:[%s4538_s1 + $0x70] ss:$8 sps:$4 sm:$0xff]   ;;  %v3068_v32 = vld [vmem:[%s4538_s1 + $0x84] ss:$8 sps:$4 sm:$0xff]   ;;  %v3072_v34 = vld [vmem:[%s4538_s1 + $0x80] ss:$8 sps:$4 sm:$0xff]  }
   0xc   :  { %2181 = vmatpush1.bf16.msra.mxu0 %v3037_v11  ;;  %1970 = vmatprep.subr.bf16.mxu1 %v3038_v12  ;;  %v3067_v31 = vld [vmem:[%s4538_s1 + $0x470] ss:$8 sps:$4 sm:$0xff]   ;;  %v3070_v33 = vld [vmem:[%s4538_s1 + $0x484] ss:$8 sps:$4 sm:$0xff]   ;;  %v3073_v35 = vld [vmem:[%s4538_s1 + $0x480] ss:$8 sps:$4 sm:$0xff]  }
   0xd   :  { %2182 = vmatprep.subr.bf16.mxu0 %v3040_v13  ;;  %v3074_v36 = vld [vmem:[%s4538_s1 + $0x94] ss:$8 sps:$4 sm:$0xff]   ;;  %v3078_v38 = vld [vmem:[%s4538_s1 + $0x90] ss:$8 sps:$4 sm:$0xff]   ;;  %v3080_v40 = vld [vmem:[%s4538_s1 + $0xa4] ss:$8 sps:$4 sm:$0xff]  }
   0xe   :  { %v3076_v37 = vld [vmem:[%s4538_s1 + $0x494] ss:$8 sps:$4 sm:$0xff]   ;;  %v3079_v39 = vld [vmem:[%s4538_s1 + $0x490] ss:$8 sps:$4 sm:$0xff]   ;;  %v3082_v41 = vld [vmem:[%s4538_s1 + $0x4a4] ss:$8 sps:$4 sm:$0xff]  }
   0xf   :  { %1971 = vmatpush1.bf16.msra.mxu1 %v3042_v14  ;;  %v3084_v42 = vld [vmem:[%s4538_s1 + $0xa0] ss:$8 sps:$4 sm:$0xff]   ;;  %v3086_v44 = vld [vmem:[%s4538_s1 + $0xb4] ss:$8 sps:$4 sm:$0xff]   ;;  %v3090_v46 = vld [vmem:[%s4538_s1 + $0xb0] ss:$8 sps:$4 sm:$0xff]  }
  0x10   :  { %2183 = vmatpush1.bf16.msra.mxu0 %v3043_v15  ;;  %1972 = vmatprep.subr.bf16.mxu1 %v3044_v16  ;;  %v3085_v43 = vld [vmem:[%s4538_s1 + $0x4a0] ss:$8 sps:$4 sm:$0xff]   ;;  %v3088_v45 = vld [vmem:[%s4538_s1 + $0x4b4] ss:$8 sps:$4 sm:$0xff]   ;;  %v3091_v47 = vld [vmem:[%s4538_s1 + $0x4b0] ss:$8 sps:$4 sm:$0xff]  }
  0x11   :  { %2184 = vmatprep.subr.bf16.mxu0 %v3046_v17  ;;  %v3118_v48 = vld [vmem:[%s4539_s0 + $0x4] ss:$72 sps:$4 sm:$0xff]   ;;  %v3096_v52 = vld [vmem:[%s4538_s1 + $0xc0] ss:$8 sps:$4 sm:$0xff]   ;;  %v3098_v54 = vld [vmem:[%s4538_s1 + $0xd4] ss:$8 sps:$4 sm:$0xff]  }
  0x12   :  { %v3092_v49 = vld [vmem:[%s4538_s1 + $0xc4] ss:$8 sps:$4 sm:$0xff]   ;;  %1996 = vmatprep.mubr.bf16.mxu1 %v3118_v48  ;;  %v3097_v53 = vld [vmem:[%s4538_s1 + $0x4c0] ss:$8 sps:$4 sm:$0xff]   ;;  %v3100_v55 = vld [vmem:[%s4538_s1 + $0x4d4] ss:$8 sps:$4 sm:$0xff]  }
  0x13   :  { %1973 = vmatpush1.bf16.msra.mxu1 %v3048_v18  ;;  %v3094_v50 = vld [vmem:[%s4538_s1 + $0x4c4] ss:$8 sps:$4 sm:$0xff]   ;;  %v3102_v56 = vld [vmem:[%s4538_s1 + $0xd0] ss:$8 sps:$4 sm:$0xff]   ;;  %v3108_v60 = vld [vmem:[%s4538_s1 + $0xe0] ss:$8 sps:$4 sm:$0xff]  }
  0x14   :  { %2185 = vmatpush1.bf16.msra.mxu0 %v3049_v19  ;;  %1974 = vmatprep.subr.bf16.mxu1 %v3050_v20  ;;  %v3124_v51 = vld [vmem:[%s4539_s0 + $0x24] ss:$72 sps:$4 sm:$0xff]   ;;  %v3103_v57 = vld [vmem:[%s4538_s1 + $0x4d0] ss:$8 sps:$4 sm:$0xff]   ;;  %v3109_v61 = vld [vmem:[%s4538_s1 + $0x4e0] ss:$8 sps:$4 sm:$0xff]  }
  0x15   :  { %2186 = vmatprep.subr.bf16.mxu0 %v3052_v21  ;;  %2208 = vmatprep.mubr.bf16.mxu0 %v3124_v51  ;;  %v3104_v58 = vld [vmem:[%s4538_s1 + $0xe4] ss:$8 sps:$4 sm:$0xff]   ;;  %v3110_v62 = vld [vmem:[%s4538_s1 + $0xf4] ss:$8 sps:$4 sm:$0xff]   ;;  %v3114_v0 = vld [vmem:[%s4538_s1 + $0xf0] ss:$8 sps:$4 sm:$0xff]  }
  0x16   :  { %v3106_v59 = vld [vmem:[%s4538_s1 + $0x4e4] ss:$8 sps:$4 sm:$0xff]   ;;  %v3112_v63 = vld [vmem:[%s4538_s1 + $0x4f4] ss:$8 sps:$4 sm:$0xff]   ;;  %v3115_v1 = vld [vmem:[%s4538_s1 + $0x4f0] ss:$8 sps:$4 sm:$0xff]  }
  0x17   :  { %1975 = vmatpush1.bf16.msra.mxu1 %v3054_v22  ;;  %v3121_v2 = vld [vmem:[%s4538_s1 + $0x104] ss:$8 sps:$4 sm:$0xff]   ;;  %v3116_v4 = vld [vmem:[%s4539_s0] ss:$72 sps:$4 sm:$0xff]   ;;  %v3130_v8 = vld [vmem:[%s4538_s1 + $0x114] ss:$8 sps:$4 sm:$0xff]  }
  0x18   :  { %2187 = vmatpush1.bf16.msra.mxu0 %v3055_v23  ;;  %1976 = vmatprep.subr.bf16.mxu1 %v3056_v24  ;;  %v3127_v3 = vld [vmem:[%s4538_s1 + $0x504] ss:$8 sps:$4 sm:$0xff]   ;;  %v3119_v5 = vld [vmem:[%s4538_s1 + $0x100] ss:$8 sps:$4 sm:$0xff]   ;;  %v3133_v9 = vld [vmem:[%s4538_s1 + $0x514] ss:$8 sps:$4 sm:$0xff]  }
  0x19   :  { %2188 = vmatprep.subr.bf16.mxu0 %v3058_v25  ;;  %v3122_v6 = vld [vmem:[%s4539_s0 + $0x20] ss:$72 sps:$4 sm:$0xff]   ;;  %v3128_v10 = vld [vmem:[%s4538_s1 + $0x110] ss:$8 sps:$4 sm:$0xff]   ;;  %v3136_v12 = vld [vmem:[%s4538_s1 + $0x124] ss:$8 sps:$4 sm:$0xff]  }
  0x1a   :  { %v3125_v7 = vld [vmem:[%s4538_s1 + $0x500] ss:$8 sps:$4 sm:$0xff]   ;;  %v3131_v11 = vld [vmem:[%s4538_s1 + $0x510] ss:$8 sps:$4 sm:$0xff]   ;;  %v3139_v13 = vld [vmem:[%s4538_s1 + $0x524] ss:$8 sps:$4 sm:$0xff]  }
  0x1b   :  { %1977 = vmatpush1.bf16.msra.mxu1 %v3060_v26  ;;  %v3134_v14 = vld [vmem:[%s4538_s1 + $0x120] ss:$8 sps:$4 sm:$0xff]   ;;  %v3142_v16 = vld [vmem:[%s4538_s1 + $0x134] ss:$8 sps:$4 sm:$0xff]   ;;  %v3140_v18 = vld [vmem:[%s4538_s1 + $0x130] ss:$8 sps:$4 sm:$0xff]  }
  0x1c   :  { %2189 = vmatpush1.bf16.msra.mxu0 %v3061_v27  ;;  %1978 = vmatprep.subr.bf16.mxu1 %v3062_v28  ;;  %v3137_v15 = vld [vmem:[%s4538_s1 + $0x520] ss:$8 sps:$4 sm:$0xff]   ;;  %v3145_v17 = vld [vmem:[%s4538_s1 + $0x534] ss:$8 sps:$4 sm:$0xff]   ;;  %v3143_v19 = vld [vmem:[%s4538_s1 + $0x530] ss:$8 sps:$4 sm:$0xff]  }
  0x1d   :  { %2190 = vmatprep.subr.bf16.mxu0 %v3064_v29  ;;  %v3148_v20 = vld [vmem:[%s4538_s1 + $0x144] ss:$8 sps:$4 sm:$0xff]   ;;  %v3146_v22 = vld [vmem:[%s4538_s1 + $0x140] ss:$8 sps:$4 sm:$0xff]   ;;  %v3154_v24 = vld [vmem:[%s4538_s1 + $0x154] ss:$8 sps:$4 sm:$0xff]  }
  0x1e   :  { %v3151_v21 = vld [vmem:[%s4538_s1 + $0x544] ss:$8 sps:$4 sm:$0xff]   ;;  %v3149_v23 = vld [vmem:[%s4538_s1 + $0x540] ss:$8 sps:$4 sm:$0xff]   ;;  %v3157_v25 = vld [vmem:[%s4538_s1 + $0x554] ss:$8 sps:$4 sm:$0xff]  }
  0x1f   :  { %1979 = vmatpush1.bf16.msra.mxu1 %v3066_v30  ;;  %v3152_v26 = vld [vmem:[%s4538_s1 + $0x150] ss:$8 sps:$4 sm:$0xff]   ;;  %v3206_v28 = vld [vmem:[%s4539_s0 + $0x94] ss:$72 sps:$4 sm:$0xff]   ;;  %v3160_v29 = vld [vmem:[%s4538_s1 + $0x164] ss:$8 sps:$4 sm:$0xff]  }
  0x20   :  { %2191 = vmatpush1.bf16.msra.mxu0 %v3067_v31  ;;  %1980 = vmatprep.subr.bf16.mxu1 %v3068_v32  ;;  %v3155_v27 = vld [vmem:[%s4538_s1 + $0x550] ss:$8 sps:$4 sm:$0xff]   ;;  %v3163_v30 = vld [vmem:[%s4538_s1 + $0x564] ss:$8 sps:$4 sm:$0xff]   ;;  %v3211_v31 = vld [vmem:[%s4539_s0 + $0xb4] ss:$72 sps:$4 sm:$0xff]  }
  0x21   :  { %2192 = vmatprep.subr.bf16.mxu0 %v3070_v33  ;;  %v3158_v32 = vld [vmem:[%s4538_s1 + $0x160] ss:$8 sps:$4 sm:$0xff]   ;;  %v3176_v48 = vld [vmem:[%s4538_s1 + $0x190] ss:$8 sps:$4 sm:$0xff]   ;;  %v3187_v51 = vld [vmem:[%s4538_s1 + $0x5a4] ss:$8 sps:$4 sm:$0xff]  }
  0x22   :  { %v3161_v33 = vld [vmem:[%s4538_s1 + $0x560] ss:$8 sps:$4 sm:$0xff]  }
  0x23   :  { %1981 = vmatpush1.bf16.msra.mxu1 %v3072_v34  ;;  %v3216_v34 = vld [vmem:[%s4539_s0 + $0x90] ss:$72 sps:$4 sm:$0xff]  }
  0x24   :  { %2193 = vmatpush1.bf16.msra.mxu0 %v3073_v35  ;;  %1982 = vmatprep.subr.bf16.mxu1 %v3074_v36  ;;  %v3217_v35 = vld [vmem:[%s4539_s0 + $0xb0] ss:$72 sps:$4 sm:$0xff]   ;;  %v3166_v36 = vld [vmem:[%s4538_s1 + $0x174] ss:$8 sps:$4 sm:$0xff]  }
  0x25   :  { %2194 = vmatprep.subr.bf16.mxu0 %v3076_v37  ;;  %v3169_v37 = vld [vmem:[%s4538_s1 + $0x574] ss:$8 sps:$4 sm:$0xff]  }
  0x27   :  { %1983 = vmatpush1.bf16.msra.mxu1 %v3078_v38  ;;  %v3164_v38 = vld [vmem:[%s4538_s1 + $0x170] ss:$8 sps:$4 sm:$0xff]  }
  0x28   :  { %2195 = vmatpush1.bf16.msra.mxu0 %v3079_v39  ;;  %1984 = vmatprep.subr.bf16.mxu1 %v3080_v40  ;;  %v3167_v39 = vld [vmem:[%s4538_s1 + $0x570] ss:$8 sps:$4 sm:$0xff]   ;;  %v3226_v40 = vld [vmem:[%s4539_s0 + $0xc] ss:$72 sps:$4 sm:$0xff]  }
  0x29   :  { %2196 = vmatprep.subr.bf16.mxu0 %v3082_v41  ;;  %v3172_v41 = vld [vmem:[%s4538_s1 + $0x184] ss:$8 sps:$4 sm:$0xff]  }
  0x2b   :  { %1985 = vmatpush1.bf16.msra.mxu1 %v3084_v42  ;;  %v3175_v42 = vld [vmem:[%s4538_s1 + $0x584] ss:$8 sps:$4 sm:$0xff]  }
  0x2c   :  { %2197 = vmatpush1.bf16.msra.mxu0 %v3085_v43  ;;  %1986 = vmatprep.subr.bf16.mxu1 %v3086_v44  ;;  %v3232_v43 = vld [vmem:[%s4539_s0 + $0x2c] ss:$72 sps:$4 sm:$0xff]   ;;  %v3170_v44 = vld [vmem:[%s4538_s1 + $0x180] ss:$8 sps:$4 sm:$0xff]  }
  0x2d   :  { %2198 = vmatprep.subr.bf16.mxu0 %v3088_v45  ;;  %v3173_v45 = vld [vmem:[%s4538_s1 + $0x580] ss:$8 sps:$4 sm:$0xff]  }
  0x2f   :  { %1987 = vmatpush1.bf16.msra.mxu1 %v3090_v46  ;;  %v3178_v46 = vld [vmem:[%s4538_s1 + $0x194] ss:$8 sps:$4 sm:$0xff]  }
  0x30   :  { %2199 = vmatpush1.bf16.msra.mxu0 %v3091_v47  ;;  %1988 = vmatprep.subr.bf16.mxu1 %v3092_v49  ;;  %v3181_v47 = vld [vmem:[%s4538_s1 + $0x594] ss:$8 sps:$4 sm:$0xff]   ;;  %v3179_v49 = vld [vmem:[%s4538_s1 + $0x590] ss:$8 sps:$4 sm:$0xff]  }
  0x31   :  { %2200 = vmatprep.subr.bf16.mxu0 %v3094_v50  ;;  %v3184_v50 = vld [vmem:[%s4538_s1 + $0x1a4] ss:$8 sps:$4 sm:$0xff]  }
  0x33   :  { %1989 = vmatpush1.bf16.msra.mxu1 %v3096_v52  ;;  %v3182_v52 = vld [vmem:[%s4538_s1 + $0x1a0] ss:$8 sps:$4 sm:$0xff]  }
  0x34   :  { %2201 = vmatpush1.bf16.msra.mxu0 %v3097_v53  ;;  %1990 = vmatprep.subr.bf16.mxu1 %v3098_v54  ;;  %v3185_v53 = vld [vmem:[%s4538_s1 + $0x5a0] ss:$8 sps:$4 sm:$0xff]   ;;  %v3190_v54 = vld [vmem:[%s4538_s1 + $0x1b4] ss:$8 sps:$4 sm:$0xff]  }
  0x35   :  { %2202 = vmatprep.subr.bf16.mxu0 %v3100_v55  ;;  %v3193_v55 = vld [vmem:[%s4538_s1 + $0x5b4] ss:$8 sps:$4 sm:$0xff]  }
  0x37   :  { %1991 = vmatpush1.bf16.msra.mxu1 %v3102_v56  ;;  %v3188_v56 = vld [vmem:[%s4538_s1 + $0x1b0] ss:$8 sps:$4 sm:$0xff]  }
  0x38   :  { %2203 = vmatpush1.bf16.msra.mxu0 %v3103_v57  ;;  %1992 = vmatprep.subr.bf16.mxu1 %v3104_v58  ;;  %v3191_v57 = vld [vmem:[%s4538_s1 + $0x5b0] ss:$8 sps:$4 sm:$0xff]   ;;  %v3196_v58 = vld [vmem:[%s4538_s1 + $0x1c4] ss:$8 sps:$4 sm:$0xff]  }
  0x39   :  { %2204 = vmatprep.subr.bf16.mxu0 %v3106_v59  ;;  %v3199_v59 = vld [vmem:[%s4538_s1 + $0x5c4] ss:$8 sps:$4 sm:$0xff]  }
  0x3b   :  { %1993 = vmatpush1.bf16.msra.mxu1 %v3108_v60  ;;  %v3194_v60 = vld [vmem:[%s4538_s1 + $0x1c0] ss:$8 sps:$4 sm:$0xff]  }
  0x3c   :  { %2205 = vmatpush1.bf16.msra.mxu0 %v3109_v61  ;;  %1994 = vmatprep.subr.bf16.mxu1 %v3110_v62  ;;  %v3197_v61 = vld [vmem:[%s4538_s1 + $0x5c0] ss:$8 sps:$4 sm:$0xff]   ;;  %v3202_v62 = vld [vmem:[%s4538_s1 + $0x1d4] ss:$8 sps:$4 sm:$0xff]  }
  0x3d   :  { %2206 = vmatprep.subr.bf16.mxu0 %v3112_v63  ;;  %v3205_v63 = vld [vmem:[%s4538_s1 + $0x5d4] ss:$8 sps:$4 sm:$0xff]  }
  0x3f   :  { %1995 = vmatpush1.bf16.msra.mxu1 %v3114_v0  ;;  %v3200_v0 = vld [vmem:[%s4538_s1 + $0x1d0] ss:$8 sps:$4 sm:$0xff]  }
  0x40   :  { %2207 = vmatpush1.bf16.msra.mxu0 %v3115_v1  ;;  %2017 = vmatprep.subr.bf16.mxu1 %v3121_v2  ;;  %v3203_v1 = vld [vmem:[%s4538_s1 + $0x5d0] ss:$8 sps:$4 sm:$0xff]   ;;  %v3210_v2 = vld [vmem:[%s4538_s1 + $0x1e4] ss:$8 sps:$4 sm:$0xff]  }
  0x41   :  { %2229 = vmatprep.subr.bf16.mxu0 %v3127_v3  ;;  %v3215_v3 = vld [vmem:[%s4538_s1 + $0x5e4] ss:$8 sps:$4 sm:$0xff]  }
  0x42   :  { %1997 = vmatmul.mubr.bf16.vlgmr.msra.gmra.mrb[0].mxu1 %v3116_v4  ;;  %v3208_v4 = vld [vmem:[%s4538_s1 + $0x1e0] ss:$8 sps:$4 sm:$0xff]  }
  0x43   :  { %2209 = vmatmul.mubr.bf16.vlgmr.msra.gmra.mrb[0].mxu0 %v3122_v6  ;;  %2018 = vmatpush1.bf16.msra.mxu1 %v3119_v5  ;;  %v3213_v5 = vld [vmem:[%s4538_s1 + $0x5e0] ss:$8 sps:$4 sm:$0xff]   ;;  %v3220_v6 = vld [vmem:[%s4538_s1 + $0x1f4] ss:$8 sps:$4 sm:$0xff]  }
  0x44   :  { %2230 = vmatpush1.bf16.msra.mxu0 %v3125_v7  ;;  %2019 = vmatprep.subr.bf16.mxu1 %v3130_v8  ;;  %v3223_v7 = vld [vmem:[%s4538_s1 + $0x5f4] ss:$8 sps:$4 sm:$0xff]   ;;  %v3218_v8 = vld [vmem:[%s4538_s1 + $0x1f0] ss:$8 sps:$4 sm:$0xff]  }
  0x45   :  { %2231 = vmatprep.subr.bf16.mxu0 %v3133_v9  ;;  %2006 = vmatprep.mubr.bf16.mxu1 %v3206_v28  ;;  %v3221_v9 = vld [vmem:[%s4538_s1 + $0x5f0] ss:$8 sps:$4 sm:$0xff]   ;;  %v3250_v28 = vld [vmem:[%s4538_s1 + $0x234] ss:$8 sps:$4 sm:$0xff]  }
  0x46   :  { %2218 = vmatprep.mubr.bf16.mxu0 %v3211_v31  ;;  %v3251_v31 = vld [vmem:[%s4538_s1 + $0x630] ss:$8 sps:$4 sm:$0xff]  }
  0x47   :  { %2020 = vmatpush1.bf16.msra.mxu1 %v3128_v10  ;;  %v3229_v10 = vld [vmem:[%s4538_s1 + $0x204] ss:$8 sps:$4 sm:$0xff]  }
  0x48   :  { %2232 = vmatpush1.bf16.msra.mxu0 %v3131_v11  ;;  %2021 = vmatprep.subr.bf16.mxu1 %v3136_v12  ;;  %v3235_v11 = vld [vmem:[%s4538_s1 + $0x604] ss:$8 sps:$4 sm:$0xff]   ;;  %v3224_v12 = vld [vmem:[%s4539_s0 + $0x8] ss:$72 sps:$4 sm:$0xff]  }
  0x49   :  { %2233 = vmatprep.subr.bf16.mxu0 %v3139_v13  ;;  %v3227_v13 = vld [vmem:[%s4538_s1 + $0x200] ss:$8 sps:$4 sm:$0xff]  }
  0x4a   :  { %2007 = vmatmul.mubr.bf16.gmra.mrb[4].mxu1 %v3216_v34  ;;  %v3259_v34 = vld [vmem:[%s4538_s1 + $0x644] ss:$8 sps:$4 sm:$0xff]  }
  0x4b   :  { %2022 = vmatpush1.bf16.msra.mxu1 %v3134_v14  ;;  %2219 = vmatmul.mubr.bf16.gmra.mrb[4].mxu0 %v3217_v35  ;;  %v3230_v14 = vld [vmem:[%s4539_s0 + $0x28] ss:$72 sps:$4 sm:$0xff]   ;;  %v3340_v35 = vld [vmem:[%s4539_s0 + $0x34] ss:$72 sps:$4 sm:$0xff]  }
  0x4c   :  { %2234 = vmatpush1.bf16.msra.mxu0 %v3137_v15  ;;  %2023 = vmatprep.subr.bf16.mxu1 %v3142_v16  ;;  %v3233_v15 = vld [vmem:[%s4538_s1 + $0x600] ss:$8 sps:$4 sm:$0xff]   ;;  %v3238_v16 = vld [vmem:[%s4538_s1 + $0x214] ss:$8 sps:$4 sm:$0xff]  }
  0x4d   :  { %2235 = vmatprep.subr.bf16.mxu0 %v3145_v17  ;;  %2049 = vmatprep.mubr.bf16.mxu1 %v3226_v40  ;;  %v3241_v17 = vld [vmem:[%s4538_s1 + $0x614] ss:$8 sps:$4 sm:$0xff]   ;;  %v3260_v40 = vld [vmem:[%s4538_s1 + $0x250] ss:$8 sps:$4 sm:$0xff]  }
  0x4e   :  { %2261 = vmatprep.mubr.bf16.mxu0 %v3232_v43  ;;  %v3271_v43 = vld [vmem:[%s4538_s1 + $0x664] ss:$8 sps:$4 sm:$0xff]  }
  0x4f   :  { %2024 = vmatpush1.bf16.msra.mxu1 %v3140_v18  ;;  %v3236_v18 = vld [vmem:[%s4538_s1 + $0x210] ss:$8 sps:$4 sm:$0xff]  }
  0x50   :  { %2236 = vmatpush1.bf16.msra.mxu0 %v3143_v19  ;;  %2025 = vmatprep.subr.bf16.mxu1 %v3148_v20  ;;  %v3239_v19 = vld [vmem:[%s4538_s1 + $0x610] ss:$8 sps:$4 sm:$0xff]   ;;  %v3314_v20 = vld [vmem:[%s4539_s0 + $0x9c] ss:$72 sps:$4 sm:$0xff]  }
  0x51   :  { %2237 = vmatprep.subr.bf16.mxu0 %v3151_v21  ;;  %v3244_v21 = vld [vmem:[%s4538_s1 + $0x224] ss:$8 sps:$4 sm:$0xff]  }
  0x53   :  { %2026 = vmatpush1.bf16.msra.mxu1 %v3146_v22  ;;  %v3247_v22 = vld [vmem:[%s4538_s1 + $0x624] ss:$8 sps:$4 sm:$0xff]  }
  0x54   :  { %2238 = vmatpush1.bf16.msra.mxu0 %v3149_v23  ;;  %2027 = vmatprep.subr.bf16.mxu1 %v3154_v24  ;;  %v3319_v23 = vld [vmem:[%s4539_s0 + $0xbc] ss:$72 sps:$4 sm:$0xff]   ;;  %v3242_v24 = vld [vmem:[%s4538_s1 + $0x220] ss:$8 sps:$4 sm:$0xff]  }
  0x55   :  { %2239 = vmatprep.subr.bf16.mxu0 %v3157_v25  ;;  %v3245_v25 = vld [vmem:[%s4538_s1 + $0x620] ss:$8 sps:$4 sm:$0xff]  }
  0x57   :  { %2028 = vmatpush1.bf16.msra.mxu1 %v3152_v26  ;;  %v3324_v26 = vld [vmem:[%s4539_s0 + $0x98] ss:$72 sps:$4 sm:$0xff]  }
  0x58   :  { %2240 = vmatpush1.bf16.msra.mxu0 %v3155_v27  ;;  %2029 = vmatprep.subr.bf16.mxu1 %v3160_v29  ;;  %v3325_v27 = vld [vmem:[%s4539_s0 + $0xb8] ss:$72 sps:$4 sm:$0xff]   ;;  %v3253_v29 = vld [vmem:[%s4538_s1 + $0x634] ss:$8 sps:$4 sm:$0xff]  }
  0x59   :  { %2241 = vmatprep.subr.bf16.mxu0 %v3163_v30  ;;  %v3248_v30 = vld [vmem:[%s4538_s1 + $0x230] ss:$8 sps:$4 sm:$0xff]  }
  0x5b   :  { %2030 = vmatpush1.bf16.msra.mxu1 %v3158_v32  ;;  %v3334_v32 = vld [vmem:[%s4539_s0 + $0x14] ss:$72 sps:$4 sm:$0xff]  }
  0x5c   :  { %2242 = vmatpush1.bf16.msra.mxu0 %v3161_v33  ;;  %2031 = vmatprep.subr.bf16.mxu1 %v3166_v36  ;;  %v3256_v33 = vld [vmem:[%s4538_s1 + $0x244] ss:$8 sps:$4 sm:$0xff]   ;;  %v3254_v36 = vld [vmem:[%s4538_s1 + $0x240] ss:$8 sps:$4 sm:$0xff]  }
  0x5d   :  { %2243 = vmatprep.subr.bf16.mxu0 %v3169_v37  ;;  %v3257_v37 = vld [vmem:[%s4538_s1 + $0x640] ss:$8 sps:$4 sm:$0xff]  }
  0x5f   :  { %2032 = vmatpush1.bf16.msra.mxu1 %v3164_v38  ;;  %v3262_v38 = vld [vmem:[%s4538_s1 + $0x254] ss:$8 sps:$4 sm:$0xff]  }
  0x60   :  { %2244 = vmatpush1.bf16.msra.mxu0 %v3167_v39  ;;  %2033 = vmatprep.subr.bf16.mxu1 %v3172_v41  ;;  %v3265_v39 = vld [vmem:[%s4538_s1 + $0x654] ss:$8 sps:$4 sm:$0xff]   ;;  %v3263_v41 = vld [vmem:[%s4538_s1 + $0x650] ss:$8 sps:$4 sm:$0xff]  }
  0x61   :  { %2245 = vmatprep.subr.bf16.mxu0 %v3175_v42  ;;  %v3268_v42 = vld [vmem:[%s4538_s1 + $0x264] ss:$8 sps:$4 sm:$0xff]  }
  0x63   :  { %2034 = vmatpush1.bf16.msra.mxu1 %v3170_v44  ;;  %v3266_v44 = vld [vmem:[%s4538_s1 + $0x260] ss:$8 sps:$4 sm:$0xff]  }
  0x64   :  { %2246 = vmatpush1.bf16.msra.mxu0 %v3173_v45  ;;  %2035 = vmatprep.subr.bf16.mxu1 %v3178_v46  ;;  %v3269_v45 = vld [vmem:[%s4538_s1 + $0x660] ss:$8 sps:$4 sm:$0xff]   ;;  %v3274_v46 = vld [vmem:[%s4538_s1 + $0x274] ss:$8 sps:$4 sm:$0xff]  }
  0x65   :  { %2247 = vmatprep.subr.bf16.mxu0 %v3181_v47  ;;  %v3277_v47 = vld [vmem:[%s4538_s1 + $0x674] ss:$8 sps:$4 sm:$0xff]  }
  0x67   :  { %2036 = vmatpush1.bf16.msra.mxu1 %v3176_v48  ;;  %v3272_v48 = vld [vmem:[%s4538_s1 + $0x270] ss:$8 sps:$4 sm:$0xff]  }
  0x68   :  { %2248 = vmatpush1.bf16.msra.mxu0 %v3179_v49  ;;  %2037 = vmatprep.subr.bf16.mxu1 %v3184_v50  ;;  %v3275_v49 = vld [vmem:[%s4538_s1 + $0x670] ss:$8 sps:$4 sm:$0xff]   ;;  %v3280_v50 = vld [vmem:[%s4538_s1 + $0x284] ss:$8 sps:$4 sm:$0xff]  }
  0x69   :  { %2249 = vmatprep.subr.bf16.mxu0 %v3187_v51  ;;  %v3283_v51 = vld [vmem:[%s4538_s1 + $0x684] ss:$8 sps:$4 sm:$0xff]  }
  0x6b   :  { %2038 = vmatpush1.bf16.msra.mxu1 %v3182_v52  ;;  %v3278_v52 = vld [vmem:[%s4538_s1 + $0x280] ss:$8 sps:$4 sm:$0xff]  }
  0x6c   :  { %2250 = vmatpush1.bf16.msra.mxu0 %v3185_v53  ;;  %2039 = vmatprep.subr.bf16.mxu1 %v3190_v54  ;;  %v3281_v53 = vld [vmem:[%s4538_s1 + $0x680] ss:$8 sps:$4 sm:$0xff]   ;;  %v3286_v54 = vld [vmem:[%s4538_s1 + $0x294] ss:$8 sps:$4 sm:$0xff]  }
  0x6d   :  { %2251 = vmatprep.subr.bf16.mxu0 %v3193_v55  ;;  %v3289_v55 = vld [vmem:[%s4538_s1 + $0x694] ss:$8 sps:$4 sm:$0xff]  }
  0x6f   :  { %2040 = vmatpush1.bf16.msra.mxu1 %v3188_v56  ;;  %v3284_v56 = vld [vmem:[%s4538_s1 + $0x290] ss:$8 sps:$4 sm:$0xff]  }
  0x70   :  { %2252 = vmatpush1.bf16.msra.mxu0 %v3191_v57  ;;  %2041 = vmatprep.subr.bf16.mxu1 %v3196_v58  ;;  %v3287_v57 = vld [vmem:[%s4538_s1 + $0x690] ss:$8 sps:$4 sm:$0xff]   ;;  %v3292_v58 = vld [vmem:[%s4538_s1 + $0x2a4] ss:$8 sps:$4 sm:$0xff]  }
  0x71   :  { %2253 = vmatprep.subr.bf16.mxu0 %v3199_v59  ;;  %v3295_v59 = vld [vmem:[%s4538_s1 + $0x6a4] ss:$8 sps:$4 sm:$0xff]  }
  0x73   :  { %2042 = vmatpush1.bf16.msra.mxu1 %v3194_v60  ;;  %v3290_v60 = vld [vmem:[%s4538_s1 + $0x2a0] ss:$8 sps:$4 sm:$0xff]  }
  0x74   :  { %2254 = vmatpush1.bf16.msra.mxu0 %v3197_v61  ;;  %2043 = vmatprep.subr.bf16.mxu1 %v3202_v62  ;;  %v3293_v61 = vld [vmem:[%s4538_s1 + $0x6a0] ss:$8 sps:$4 sm:$0xff]   ;;  %v3298_v62 = vld [vmem:[%s4538_s1 + $0x2b4] ss:$8 sps:$4 sm:$0xff]  }
  0x75   :  { %2255 = vmatprep.subr.bf16.mxu0 %v3205_v63  ;;  %v3301_v63 = vld [vmem:[%s4538_s1 + $0x6b4] ss:$8 sps:$4 sm:$0xff]  }
  0x77   :  { %2044 = vmatpush1.bf16.msra.mxu1 %v3200_v0  ;;  %v3296_v0 = vld [vmem:[%s4538_s1 + $0x2b0] ss:$8 sps:$4 sm:$0xff]  }
  0x78   :  { %2256 = vmatpush1.bf16.msra.mxu0 %v3203_v1  ;;  %2045 = vmatprep.subr.bf16.mxu1 %v3210_v2  ;;  %v3299_v1 = vld [vmem:[%s4538_s1 + $0x6b0] ss:$8 sps:$4 sm:$0xff]   ;;  %v3304_v2 = vld [vmem:[%s4538_s1 + $0x2c4] ss:$8 sps:$4 sm:$0xff]  }
  0x79   :  { %2257 = vmatprep.subr.bf16.mxu0 %v3215_v3  ;;  %v3307_v3 = vld [vmem:[%s4538_s1 + $0x6c4] ss:$8 sps:$4 sm:$0xff]  }
  0x7b   :  { %2046 = vmatpush1.bf16.msra.mxu1 %v3208_v4  ;;  %v3302_v4 = vld [vmem:[%s4538_s1 + $0x2c0] ss:$8 sps:$4 sm:$0xff]  }
  0x7c   :  { %2258 = vmatpush1.bf16.msra.mxu0 %v3213_v5  ;;  %2047 = vmatprep.subr.bf16.mxu1 %v3220_v6  ;;  %v3305_v5 = vld [vmem:[%s4538_s1 + $0x6c0] ss:$8 sps:$4 sm:$0xff]   ;;  %v3310_v6 = vld [vmem:[%s4538_s1 + $0x2d4] ss:$8 sps:$4 sm:$0xff]  }
  0x7d   :  { %2259 = vmatprep.subr.bf16.mxu0 %v3223_v7  ;;  %v3313_v7 = vld [vmem:[%s4538_s1 + $0x6d4] ss:$8 sps:$4 sm:$0xff]  }
  0x7f   :  { %2048 = vmatpush1.bf16.msra.mxu1 %v3218_v8  ;;  %v3308_v8 = vld [vmem:[%s4538_s1 + $0x2d0] ss:$8 sps:$4 sm:$0xff]  }
  0x80   :  { %2260 = vmatpush1.bf16.msra.mxu0 %v3221_v9  ;;  %2070 = vmatprep.subr.bf16.mxu1 %v3229_v10  ;;  %v3311_v9 = vld [vmem:[%s4538_s1 + $0x6d0] ss:$8 sps:$4 sm:$0xff]   ;;  %v3318_v10 = vld [vmem:[%s4538_s1 + $0x2e4] ss:$8 sps:$4 sm:$0xff]  }
  0x81   :  { %2282 = vmatprep.subr.bf16.mxu0 %v3235_v11  ;;  %v3323_v11 = vld [vmem:[%s4538_s1 + $0x6e4] ss:$8 sps:$4 sm:$0xff]  }
  0x82   :  { %2050 = vmatmul.mubr.bf16.vlgmr.msra.gmra.mrb[0].mxu1 %v3224_v12  ;;  %v3316_v12 = vld [vmem:[%s4538_s1 + $0x2e0] ss:$8 sps:$4 sm:$0xff]  }
  0x83   :  { %2262 = vmatmul.mubr.bf16.vlgmr.msra.gmra.mrb[0].mxu0 %v3230_v14  ;;  %2071 = vmatpush1.bf16.msra.mxu1 %v3227_v13  ;;  %v3321_v13 = vld [vmem:[%s4538_s1 + $0x6e0] ss:$8 sps:$4 sm:$0xff]   ;;  %v3328_v14 = vld [vmem:[%s4538_s1 + $0x2f4] ss:$8 sps:$4 sm:$0xff]  }
  0x84   :  { %2283 = vmatpush1.bf16.msra.mxu0 %v3233_v15  ;;  %2072 = vmatprep.subr.bf16.mxu1 %v3238_v16  ;;  %v3331_v15 = vld [vmem:[%s4538_s1 + $0x6f4] ss:$8 sps:$4 sm:$0xff]   ;;  %v3326_v16 = vld [vmem:[%s4538_s1 + $0x2f0] ss:$8 sps:$4 sm:$0xff]  }
  0x85   :  { %2284 = vmatprep.subr.bf16.mxu0 %v3241_v17  ;;  %2059 = vmatprep.mubr.bf16.mxu1 %v3314_v20  ;;  %v3329_v17 = vld [vmem:[%s4538_s1 + $0x6f0] ss:$8 sps:$4 sm:$0xff]  }
  0x86   :  { %2271 = vmatprep.mubr.bf16.mxu0 %v3319_v23  ;;  %v3332_v20 = vld [vmem:[%s4539_s0 + $0x10] ss:$72 sps:$4 sm:$0xff]   ;;  %v3341_v23 = vld [vmem:[%s4538_s1 + $0x700] ss:$8 sps:$4 sm:$0xff]  }
  0x87   :  { %2073 = vmatpush1.bf16.msra.mxu1 %v3236_v18  ;;  %v3337_v18 = vld [vmem:[%s4538_s1 + $0x304] ss:$8 sps:$4 sm:$0xff]  }
  0x88   :  { %2285 = vmatpush1.bf16.msra.mxu0 %v3239_v19  ;;  %2074 = vmatprep.subr.bf16.mxu1 %v3244_v21  ;;  %v3343_v19 = vld [vmem:[%s4538_s1 + $0x704] ss:$8 sps:$4 sm:$0xff]   ;;  %v3335_v21 = vld [vmem:[%s4538_s1 + $0x300] ss:$8 sps:$4 sm:$0xff]  }
  0x89   :  { %2286 = vmatprep.subr.bf16.mxu0 %v3247_v22  ;;  %v3338_v22 = vld [vmem:[%s4539_s0 + $0x30] ss:$72 sps:$4 sm:$0xff]  }
  0x8a   :  { %2060 = vmatmul.mubr.bf16.gmra.mrb[4].mxu1 %v3324_v26  ;;  %v3422_v26 = vld [vmem:[%s4539_s0 + $0xa4] ss:$72 sps:$4 sm:$0xff]  }
  0x8b   :  { %2272 = vmatmul.mubr.bf16.gmra.mrb[4].mxu0 %v3325_v27  ;;  %2075 = vmatpush1.bf16.msra.mxu1 %v3242_v24  ;;  %v3346_v24 = vld [vmem:[%s4538_s1 + $0x314] ss:$8 sps:$4 sm:$0xff]   ;;  %v3424_v27 = vld [vmem:[%s4539_s0 + $0xc4] ss:$72 sps:$4 sm:$0xff]  }
  0x8c   :  { %2287 = vmatpush1.bf16.msra.mxu0 %v3245_v25  ;;  %2076 = vmatprep.subr.bf16.mxu1 %v3250_v28  ;;  %v3349_v25 = vld [vmem:[%s4538_s1 + $0x714] ss:$8 sps:$4 sm:$0xff]   ;;  %v3344_v28 = vld [vmem:[%s4538_s1 + $0x310] ss:$8 sps:$4 sm:$0xff]  }
  0x8d   :  { %2288 = vmatprep.subr.bf16.mxu0 %v3253_v29  ;;  %2102 = vmatprep.mubr.bf16.mxu1 %v3334_v32  ;;  %v3347_v29 = vld [vmem:[%s4538_s1 + $0x710] ss:$8 sps:$4 sm:$0xff]   ;;  %v3350_v32 = vld [vmem:[%s4538_s1 + $0x320] ss:$8 sps:$4 sm:$0xff]  }
  0x8e   :  { %2314 = vmatprep.mubr.bf16.mxu0 %v3340_v35  ;;  %v3430_v35 = vld [vmem:[%s4539_s0 + $0xc0] ss:$72 sps:$4 sm:$0xff]  }
  0x8f   :  { %2077 = vmatpush1.bf16.msra.mxu1 %v3248_v30  ;;  %v3352_v30 = vld [vmem:[%s4538_s1 + $0x324] ss:$8 sps:$4 sm:$0xff]  }
  0x90   :  { %2289 = vmatpush1.bf16.msra.mxu0 %v3251_v31  ;;  %2078 = vmatprep.subr.bf16.mxu1 %v3256_v33  ;;  %v3355_v31 = vld [vmem:[%s4538_s1 + $0x724] ss:$8 sps:$4 sm:$0xff]   ;;  %v3353_v33 = vld [vmem:[%s4538_s1 + $0x720] ss:$8 sps:$4 sm:$0xff]  }
  0x91   :  { %2290 = vmatprep.subr.bf16.mxu0 %v3259_v34  ;;  %v3426_v34 = vld [vmem:[%s4539_s0 + $0xa0] ss:$72 sps:$4 sm:$0xff]  }
  0x93   :  { %2079 = vmatpush1.bf16.msra.mxu1 %v3254_v36  ;;  %v3358_v36 = vld [vmem:[%s4538_s1 + $0x334] ss:$8 sps:$4 sm:$0xff]  }
  0x94   :  { %2291 = vmatpush1.bf16.msra.mxu0 %v3257_v37  ;;  %2080 = vmatprep.subr.bf16.mxu1 %v3262_v38  ;;  %v3361_v37 = vld [vmem:[%s4538_s1 + $0x734] ss:$8 sps:$4 sm:$0xff]  }
  0x95   :  { %2292 = vmatprep.subr.bf16.mxu0 %v3265_v39  ;;  %v3442_v38 = vld [vmem:[%s4539_s0 + $0x1c] ss:$72 sps:$4 sm:$0xff]  }
  0x96   :  { %v3445_v39 = vld [vmem:[%s4539_s0 + $0x3c] ss:$72 sps:$4 sm:$0xff]  }
  0x97   :  { %2081 = vmatpush1.bf16.msra.mxu1 %v3260_v40  ;;  %v3356_v40 = vld [vmem:[%s4538_s1 + $0x330] ss:$8 sps:$4 sm:$0xff]  }
  0x98   :  { %2293 = vmatpush1.bf16.msra.mxu0 %v3263_v41  ;;  %2082 = vmatprep.subr.bf16.mxu1 %v3268_v42  ;;  %v3359_v41 = vld [vmem:[%s4538_s1 + $0x730] ss:$8 sps:$4 sm:$0xff]   ;;  %v3364_v42 = vld [vmem:[%s4538_s1 + $0x344] ss:$8 sps:$4 sm:$0xff]  }
  0x99   :  { %2294 = vmatprep.subr.bf16.mxu0 %v3271_v43  ;;  %v3367_v43 = vld [vmem:[%s4538_s1 + $0x744] ss:$8 sps:$4 sm:$0xff]  }
  0x9b   :  { %2083 = vmatpush1.bf16.msra.mxu1 %v3266_v44  ;;  %v3362_v44 = vld [vmem:[%s4538_s1 + $0x340] ss:$8 sps:$4 sm:$0xff]  }
  0x9c   :  { %2295 = vmatpush1.bf16.msra.mxu0 %v3269_v45  ;;  %2084 = vmatprep.subr.bf16.mxu1 %v3274_v46  ;;  %v3365_v45 = vld [vmem:[%s4538_s1 + $0x740] ss:$8 sps:$4 sm:$0xff]   ;;  %v3370_v46 = vld [vmem:[%s4538_s1 + $0x354] ss:$8 sps:$4 sm:$0xff]  }
  0x9d   :  { %2296 = vmatprep.subr.bf16.mxu0 %v3277_v47  ;;  %v3373_v47 = vld [vmem:[%s4538_s1 + $0x754] ss:$8 sps:$4 sm:$0xff]  }
  0x9f   :  { %2085 = vmatpush1.bf16.msra.mxu1 %v3272_v48  ;;  %v3368_v48 = vld [vmem:[%s4538_s1 + $0x350] ss:$8 sps:$4 sm:$0xff]  }
  0xa0   :  { %2297 = vmatpush1.bf16.msra.mxu0 %v3275_v49  ;;  %2086 = vmatprep.subr.bf16.mxu1 %v3280_v50  ;;  %v3371_v49 = vld [vmem:[%s4538_s1 + $0x750] ss:$8 sps:$4 sm:$0xff]   ;;  %v3376_v50 = vld [vmem:[%s4538_s1 + $0x364] ss:$8 sps:$4 sm:$0xff]  }
  0xa1   :  { %2298 = vmatprep.subr.bf16.mxu0 %v3283_v51  ;;  %v3379_v51 = vld [vmem:[%s4538_s1 + $0x764] ss:$8 sps:$4 sm:$0xff]  }
  0xa3   :  { %2087 = vmatpush1.bf16.msra.mxu1 %v3278_v52  ;;  %v3374_v52 = vld [vmem:[%s4538_s1 + $0x360] ss:$8 sps:$4 sm:$0xff]  }
  0xa4   :  { %2299 = vmatpush1.bf16.msra.mxu0 %v3281_v53  ;;  %2088 = vmatprep.subr.bf16.mxu1 %v3286_v54  ;;  %v3377_v53 = vld [vmem:[%s4538_s1 + $0x760] ss:$8 sps:$4 sm:$0xff]   ;;  %v3382_v54 = vld [vmem:[%s4538_s1 + $0x374] ss:$8 sps:$4 sm:$0xff]  }
  0xa5   :  { %2300 = vmatprep.subr.bf16.mxu0 %v3289_v55  ;;  %v3385_v55 = vld [vmem:[%s4538_s1 + $0x774] ss:$8 sps:$4 sm:$0xff]  }
  0xa7   :  { %2089 = vmatpush1.bf16.msra.mxu1 %v3284_v56  ;;  %v3380_v56 = vld [vmem:[%s4538_s1 + $0x370] ss:$8 sps:$4 sm:$0xff]  }
  0xa8   :  { %2301 = vmatpush1.bf16.msra.mxu0 %v3287_v57  ;;  %2090 = vmatprep.subr.bf16.mxu1 %v3292_v58  ;;  %v3383_v57 = vld [vmem:[%s4538_s1 + $0x770] ss:$8 sps:$4 sm:$0xff]   ;;  %v3388_v58 = vld [vmem:[%s4538_s1 + $0x384] ss:$8 sps:$4 sm:$0xff]  }
  0xa9   :  { %2302 = vmatprep.subr.bf16.mxu0 %v3295_v59  ;;  %v3391_v59 = vld [vmem:[%s4538_s1 + $0x784] ss:$8 sps:$4 sm:$0xff]  }
  0xab   :  { %2091 = vmatpush1.bf16.msra.mxu1 %v3290_v60  ;;  %v3386_v60 = vld [vmem:[%s4538_s1 + $0x380] ss:$8 sps:$4 sm:$0xff]  }
  0xac   :  { %2303 = vmatpush1.bf16.msra.mxu0 %v3293_v61  ;;  %2092 = vmatprep.subr.bf16.mxu1 %v3298_v62  ;;  %v3389_v61 = vld [vmem:[%s4538_s1 + $0x780] ss:$8 sps:$4 sm:$0xff]   ;;  %v3394_v62 = vld [vmem:[%s4538_s1 + $0x394] ss:$8 sps:$4 sm:$0xff]  }
  0xad   :  { %2304 = vmatprep.subr.bf16.mxu0 %v3301_v63  ;;  %v3397_v63 = vld [vmem:[%s4538_s1 + $0x794] ss:$8 sps:$4 sm:$0xff]  }
  0xaf   :  { %2093 = vmatpush1.bf16.msra.mxu1 %v3296_v0  ;;  %v3392_v0 = vld [vmem:[%s4538_s1 + $0x390] ss:$8 sps:$4 sm:$0xff]  }
  0xb0   :  { %2305 = vmatpush1.bf16.msra.mxu0 %v3299_v1  ;;  %2094 = vmatprep.subr.bf16.mxu1 %v3304_v2  ;;  %v3395_v1 = vld [vmem:[%s4538_s1 + $0x790] ss:$8 sps:$4 sm:$0xff]   ;;  %v3400_v2 = vld [vmem:[%s4538_s1 + $0x3a4] ss:$8 sps:$4 sm:$0xff]  }
  0xb1   :  { %2306 = vmatprep.subr.bf16.mxu0 %v3307_v3  ;;  %v3403_v3 = vld [vmem:[%s4538_s1 + $0x7a4] ss:$8 sps:$4 sm:$0xff]  }
  0xb3   :  { %2095 = vmatpush1.bf16.msra.mxu1 %v3302_v4  ;;  %v3398_v4 = vld [vmem:[%s4538_s1 + $0x3a0] ss:$8 sps:$4 sm:$0xff]  }
  0xb4   :  { %2307 = vmatpush1.bf16.msra.mxu0 %v3305_v5  ;;  %2096 = vmatprep.subr.bf16.mxu1 %v3310_v6  ;;  %v3401_v5 = vld [vmem:[%s4538_s1 + $0x7a0] ss:$8 sps:$4 sm:$0xff]   ;;  %v3406_v6 = vld [vmem:[%s4538_s1 + $0x3b4] ss:$8 sps:$4 sm:$0xff]  }
  0xb5   :  { %2308 = vmatprep.subr.bf16.mxu0 %v3313_v7  ;;  %v3409_v7 = vld [vmem:[%s4538_s1 + $0x7b4] ss:$8 sps:$4 sm:$0xff]  }
  0xb7   :  { %2097 = vmatpush1.bf16.msra.mxu1 %v3308_v8  ;;  %v3404_v8 = vld [vmem:[%s4538_s1 + $0x3b0] ss:$8 sps:$4 sm:$0xff]  }
  0xb8   :  { %2309 = vmatpush1.bf16.msra.mxu0 %v3311_v9  ;;  %2098 = vmatprep.subr.bf16.mxu1 %v3318_v10  ;;  %v3407_v9 = vld [vmem:[%s4538_s1 + $0x7b0] ss:$8 sps:$4 sm:$0xff]   ;;  %v3412_v10 = vld [vmem:[%s4538_s1 + $0x3c4] ss:$8 sps:$4 sm:$0xff]  }
  0xb9   :  { %2310 = vmatprep.subr.bf16.mxu0 %v3323_v11  ;;  %v3415_v11 = vld [vmem:[%s4538_s1 + $0x7c4] ss:$8 sps:$4 sm:$0xff]  }
  0xbb   :  { %2099 = vmatpush1.bf16.msra.mxu1 %v3316_v12  ;;  %v3410_v12 = vld [vmem:[%s4538_s1 + $0x3c0] ss:$8 sps:$4 sm:$0xff]  }
  0xbc   :  { %2311 = vmatpush1.bf16.msra.mxu0 %v3321_v13  ;;  %2100 = vmatprep.subr.bf16.mxu1 %v3328_v14  ;;  %v3413_v13 = vld [vmem:[%s4538_s1 + $0x7c0] ss:$8 sps:$4 sm:$0xff]   ;;  %v3418_v14 = vld [vmem:[%s4538_s1 + $0x3d4] ss:$8 sps:$4 sm:$0xff]  }
  0xbd   :  { %2312 = vmatprep.subr.bf16.mxu0 %v3331_v15  ;;  %v3421_v15 = vld [vmem:[%s4538_s1 + $0x7d4] ss:$8 sps:$4 sm:$0xff]  }
  0xbf   :  { %2101 = vmatpush1.bf16.msra.mxu1 %v3326_v16  ;;  %v3416_v16 = vld [vmem:[%s4538_s1 + $0x3d0] ss:$8 sps:$4 sm:$0xff]  }
  0xc0   :  { %2313 = vmatpush1.bf16.msra.mxu0 %v3329_v17  ;;  %2123 = vmatprep.subr.bf16.mxu1 %v3337_v18  ;;  %v3419_v17 = vld [vmem:[%s4538_s1 + $0x7d0] ss:$8 sps:$4 sm:$0xff]   ;;  %v3429_v18 = vld [vmem:[%s4538_s1 + $0x3e4] ss:$8 sps:$4 sm:$0xff]  }
  0xc1   :  { %2335 = vmatprep.subr.bf16.mxu0 %v3343_v19  ;;  %v3433_v19 = vld [vmem:[%s4538_s1 + $0x7e4] ss:$8 sps:$4 sm:$0xff]  }
  0xc2   :  { %2103 = vmatmul.mubr.bf16.vlgmr.msra.gmra.mrb[0].mxu1 %v3332_v20  ;;  %v3427_v20 = vld [vmem:[%s4538_s1 + $0x3e0] ss:$8 sps:$4 sm:$0xff]  }
  0xc3   :  { %2315 = vmatmul.mubr.bf16.vlgmr.msra.gmra.mrb[0].mxu0 %v3338_v22  ;;  %2124 = vmatpush1.bf16.msra.mxu1 %v3335_v21  ;;  %v3431_v21 = vld [vmem:[%s4538_s1 + $0x7e0] ss:$8 sps:$4 sm:$0xff]   ;;  %v3436_v22 = vld [vmem:[%s4538_s1 + $0x3f4] ss:$8 sps:$4 sm:$0xff]  }
  0xc4   :  { %2336 = vmatpush1.bf16.msra.mxu0 %v3341_v23  ;;  %2125 = vmatprep.subr.bf16.mxu1 %v3346_v24  ;;  %v3439_v23 = vld [vmem:[%s4538_s1 + $0x7f4] ss:$8 sps:$4 sm:$0xff]   ;;  %v3434_v24 = vld [vmem:[%s4538_s1 + $0x3f0] ss:$8 sps:$4 sm:$0xff]  }
  0xc5   :  { %2337 = vmatprep.subr.bf16.mxu0 %v3349_v25  ;;  %2112 = vmatprep.mubr.bf16.mxu1 %v3422_v26  ;;  %v3437_v25 = vld [vmem:[%s4538_s1 + $0x7f0] ss:$8 sps:$4 sm:$0xff]   ;;  %v3448_v26 = vld [vmem:[%s4538_s1 + $0x804] ss:$8 sps:$4 sm:$0xff]  }
  0xc6   :  { %2324 = vmatprep.mubr.bf16.mxu0 %v3424_v27  ;;  %v3440_v27 = vld [vmem:[%s4539_s0 + $0x18] ss:$72 sps:$4 sm:$0xff]  }
  0xc7   :  { %2126 = vmatpush1.bf16.msra.mxu1 %v3344_v28  ;;  %v3443_v28 = vld [vmem:[%s4539_s0 + $0x38] ss:$72 sps:$4 sm:$0xff]  }
  0xc8   :  { %2338 = vmatpush1.bf16.msra.mxu0 %v3347_v29  ;;  %2127 = vmatprep.subr.bf16.mxu1 %v3352_v30  ;;  %v3446_v29 = vld [vmem:[%s4538_s1 + $0x800] ss:$8 sps:$4 sm:$0xff]   ;;  %v3451_v30 = vld [vmem:[%s4538_s1 + $0x814] ss:$8 sps:$4 sm:$0xff]  }
  0xc9   :  { %2339 = vmatprep.subr.bf16.mxu0 %v3355_v31  ;;  %v3452_v31 = vld [vmem:[%s4539_s0 + $0xac] ss:$72 sps:$4 sm:$0xff]  }
  0xca   :  { %2113 = vmatmul.mubr.bf16.gmra.mrb[4].mxu1 %v3426_v34  ;;  %v3460_v34 = vld [vmem:[%s4538_s1 + $0x824] ss:$8 sps:$4 sm:$0xff]  }
  0xcb   :  { %2325 = vmatmul.mubr.bf16.gmra.mrb[4].mxu0 %v3430_v35  ;;  %2128 = vmatpush1.bf16.msra.mxu1 %v3350_v32  ;;  %v3454_v32 = vld [vmem:[%s4539_s0 + $0xcc] ss:$72 sps:$4 sm:$0xff]   ;;  %v3456_v35 = vld [vmem:[%s4539_s0 + $0xa8] ss:$72 sps:$4 sm:$0xff]  }
  0xcc   :  { %2340 = vmatpush1.bf16.msra.mxu0 %v3353_v33  ;;  %2129 = vmatprep.subr.bf16.mxu1 %v3358_v36  ;;  %v3449_v33 = vld [vmem:[%s4538_s1 + $0x810] ss:$8 sps:$4 sm:$0xff]  }
  0xcd   :  { %2341 = vmatprep.subr.bf16.mxu0 %v3361_v37  ;;  %2155 = vmatprep.mubr.bf16.mxu1 %v3442_v38  ;;  %v3457_v36 = vld [vmem:[%s4539_s0 + $0xc8] ss:$72 sps:$4 sm:$0xff]   ;;  %v3463_v38 = vld [vmem:[%s4538_s1 + $0x834] ss:$8 sps:$4 sm:$0xff]  }
  0xce   :  { %2367 = vmatprep.mubr.bf16.mxu0 %v3445_v39  ;;  %v3458_v37 = vld [vmem:[%s4538_s1 + $0x820] ss:$8 sps:$4 sm:$0xff]   ;;  %v3502_v39 = vld [vmem:[%s4539_s0 + $0x44] ss:$72 sps:$4 sm:$0xff]  }
  0xcf   :  { %2130 = vmatpush1.bf16.msra.mxu1 %v3356_v40  ;;  %v3505_v40 = vld [vmem:[%s4539_s0 + $0xd4] ss:$72 sps:$4 sm:$0xff]  }
  0xd0   :  { %2342 = vmatpush1.bf16.msra.mxu0 %v3359_v41  ;;  %2131 = vmatprep.subr.bf16.mxu1 %v3364_v42  ;;  %v3461_v41 = vld [vmem:[%s4538_s1 + $0x830] ss:$8 sps:$4 sm:$0xff]   ;;  %v3466_v42 = vld [vmem:[%s4538_s1 + $0x844] ss:$8 sps:$4 sm:$0xff]  }
  0xd1   :  { %2343 = vmatprep.subr.bf16.mxu0 %v3367_v43  ;;  %v3464_v43 = vld [vmem:[%s4538_s1 + $0x840] ss:$8 sps:$4 sm:$0xff]  }
  0xd3   :  { %2132 = vmatpush1.bf16.msra.mxu1 %v3362_v44  ;;  %v3469_v44 = vld [vmem:[%s4538_s1 + $0x854] ss:$8 sps:$4 sm:$0xff]  }
  0xd4   :  { %2344 = vmatpush1.bf16.msra.mxu0 %v3365_v45  ;;  %2133 = vmatprep.subr.bf16.mxu1 %v3370_v46  ;;  %v3467_v45 = vld [vmem:[%s4538_s1 + $0x850] ss:$8 sps:$4 sm:$0xff]   ;;  %v3472_v46 = vld [vmem:[%s4538_s1 + $0x864] ss:$8 sps:$4 sm:$0xff]  }
  0xd5   :  { %2345 = vmatprep.subr.bf16.mxu0 %v3373_v47  ;;  %v3470_v47 = vld [vmem:[%s4538_s1 + $0x860] ss:$8 sps:$4 sm:$0xff]  }
  0xd7   :  { %2134 = vmatpush1.bf16.msra.mxu1 %v3368_v48  ;;  %v3475_v48 = vld [vmem:[%s4538_s1 + $0x874] ss:$8 sps:$4 sm:$0xff]  }
  0xd8   :  { %2346 = vmatpush1.bf16.msra.mxu0 %v3371_v49  ;;  %2135 = vmatprep.subr.bf16.mxu1 %v3376_v50  ;;  %v3473_v49 = vld [vmem:[%s4538_s1 + $0x870] ss:$8 sps:$4 sm:$0xff]   ;;  %v3478_v50 = vld [vmem:[%s4538_s1 + $0x884] ss:$8 sps:$4 sm:$0xff]  }
  0xd9   :  { %2347 = vmatprep.subr.bf16.mxu0 %v3379_v51  ;;  %v3476_v51 = vld [vmem:[%s4538_s1 + $0x880] ss:$8 sps:$4 sm:$0xff]  }
  0xdb   :  { %2136 = vmatpush1.bf16.msra.mxu1 %v3374_v52  ;;  %v3481_v52 = vld [vmem:[%s4538_s1 + $0x894] ss:$8 sps:$4 sm:$0xff]  }
  0xdc   :  { %2348 = vmatpush1.bf16.msra.mxu0 %v3377_v53  ;;  %2137 = vmatprep.subr.bf16.mxu1 %v3382_v54  ;;  %v3479_v53 = vld [vmem:[%s4538_s1 + $0x890] ss:$8 sps:$4 sm:$0xff]   ;;  %v3484_v54 = vld [vmem:[%s4538_s1 + $0x8a4] ss:$8 sps:$4 sm:$0xff]  }
  0xdd   :  { %2349 = vmatprep.subr.bf16.mxu0 %v3385_v55  ;;  %v3482_v55 = vld [vmem:[%s4538_s1 + $0x8a0] ss:$8 sps:$4 sm:$0xff]  }
  0xdf   :  { %2138 = vmatpush1.bf16.msra.mxu1 %v3380_v56  ;;  %v3487_v56 = vld [vmem:[%s4538_s1 + $0x8b4] ss:$8 sps:$4 sm:$0xff]  }
  0xe0   :  { %2350 = vmatpush1.bf16.msra.mxu0 %v3383_v57  ;;  %2139 = vmatprep.subr.bf16.mxu1 %v3388_v58  ;;  %v3485_v57 = vld [vmem:[%s4538_s1 + $0x8b0] ss:$8 sps:$4 sm:$0xff]   ;;  %v3490_v58 = vld [vmem:[%s4538_s1 + $0x8c4] ss:$8 sps:$4 sm:$0xff]  }
  0xe1   :  { %2351 = vmatprep.subr.bf16.mxu0 %v3391_v59  ;;  %v3488_v59 = vld [vmem:[%s4538_s1 + $0x8c0] ss:$8 sps:$4 sm:$0xff]  }
  0xe3   :  { %2140 = vmatpush1.bf16.msra.mxu1 %v3386_v60  ;;  %v3493_v60 = vld [vmem:[%s4538_s1 + $0x8d4] ss:$8 sps:$4 sm:$0xff]  }
  0xe4   :  { %2352 = vmatpush1.bf16.msra.mxu0 %v3389_v61  ;;  %2141 = vmatprep.subr.bf16.mxu1 %v3394_v62  ;;  %v3491_v61 = vld [vmem:[%s4538_s1 + $0x8d0] ss:$8 sps:$4 sm:$0xff]   ;;  %v3496_v62 = vld [vmem:[%s4538_s1 + $0x8e4] ss:$8 sps:$4 sm:$0xff]  }
  0xe5   :  { %2353 = vmatprep.subr.bf16.mxu0 %v3397_v63  ;;  %v3494_v63 = vld [vmem:[%s4538_s1 + $0x8e0] ss:$8 sps:$4 sm:$0xff]  }
  0xe7   :  { %2142 = vmatpush1.bf16.msra.mxu1 %v3392_v0  ;;  %v3499_v0 = vld [vmem:[%s4538_s1 + $0x8f4] ss:$8 sps:$4 sm:$0xff]  }
  0xe8   :  { %2354 = vmatpush1.bf16.msra.mxu0 %v3395_v1  ;;  %2143 = vmatprep.subr.bf16.mxu1 %v3400_v2  ;;  %v3497_v1 = vld [vmem:[%s4538_s1 + $0x8f0] ss:$8 sps:$4 sm:$0xff]   ;;  %v3500_v2 = vld [vmem:[%s4539_s0 + $0x40] ss:$72 sps:$4 sm:$0xff]  }
  0xe9   :  { %2355 = vmatprep.subr.bf16.mxu0 %v3403_v3  ;;  %v3503_v3 = vld [vmem:[%s4539_s0 + $0xd0] ss:$72 sps:$4 sm:$0xff]  }
  0xeb   :  { %2144 = vmatpush1.bf16.msra.mxu1 %v3398_v4 }
  0xec   :  { %2356 = vmatpush1.bf16.msra.mxu0 %v3401_v5  ;;  %2145 = vmatprep.subr.bf16.mxu1 %v3406_v6 }
  0xed   :  { %2357 = vmatprep.subr.bf16.mxu0 %v3409_v7 }
  0xef   :  { %2146 = vmatpush1.bf16.msra.mxu1 %v3404_v8 }
  0xf0   :  { %2358 = vmatpush1.bf16.msra.mxu0 %v3407_v9  ;;  %2147 = vmatprep.subr.bf16.mxu1 %v3412_v10 }
  0xf1   :  { %2359 = vmatprep.subr.bf16.mxu0 %v3415_v11 }
  0xf3   :  { %2148 = vmatpush1.bf16.msra.mxu1 %v3410_v12 }
  0xf4   :  { %2360 = vmatpush1.bf16.msra.mxu0 %v3413_v13  ;;  %2149 = vmatprep.subr.bf16.mxu1 %v3418_v14 }
  0xf5   :  { %2361 = vmatprep.subr.bf16.mxu0 %v3421_v15 }
  0xf7   :  { %2150 = vmatpush1.bf16.msra.mxu1 %v3416_v16 }
  0xf8   :  { %2362 = vmatpush1.bf16.msra.mxu0 %v3419_v17  ;;  %2151 = vmatprep.subr.bf16.mxu1 %v3429_v18 }
  0xf9   :  { %2363 = vmatprep.subr.bf16.mxu0 %v3433_v19 }
  0xfb   :  { %2152 = vmatpush1.bf16.msra.mxu1 %v3427_v20  ;;  %v2494_v20 = vlaneseq }
  0xfc   :  { %2364 = vmatpush1.bf16.msra.mxu0 %v3431_v21  ;;  %2153 = vmatprep.subr.bf16.mxu1 %v3436_v22 }
  0xfd   :  { %2365 = vmatprep.subr.bf16.mxu0 %v3439_v23  ;;  %v2495_v21 = vshrl.u32 %v2494_v20, 7 }
  0xff   :  { %2154 = vmatpush1.bf16.msra.mxu1 %v3434_v24  ;;  %v2496_v22 = vsub.s32 0, %v2495_v21  ;;  %v2500_v23 = vsub.s32 1, %v2495_v21  ;;  %v2492_v24 = vld [vmem:[%s4540_s2] sm:$0x3] }
 0x100   :  { %2366 = vmatpush1.bf16.msra.mxu0 %v3437_v25  ;;  %2924 = vmatprep.subr.bf16.mxu1 %v3448_v26  ;;  %v2512_v25 = vld [vmem:[%s4541_s3] sm:$0x3] }
 0x101   :  { %2388 = vmatprep.subr.bf16.mxu0 %v3448_v26  ;;  %v2532_v26 = vld [vmem:[%s4542_s4] sm:$0xff] }
 0x102   :  { %2156 = vmatmul.mubr.bf16.vlgmr.msra.gmra.mrb[0].mxu1 %v3440_v27  ;;  %v2534_v27 = vld [vmem:[%s4542_s4 + $0x10] sm:$0xff] }
 0x103   :  { %2368 = vmatmul.mubr.bf16.vlgmr.msra.gmra.mrb[0].mxu0 %v3443_v28  ;;  %2940 = vmatpush1.bf16.msra.mxu1 %v3446_v29  ;;  %v2533_v28 = vld [vmem:[%s4542_s4 + $0x8] sm:$0xff] }
 0x104   :  { %2389 = vmatpush1.bf16.msra.mxu0 %v3446_v29  ;;  %2925 = vmatprep.subr.bf16.mxu1 %v3451_v30  ;;  %v2535_v29 = vld [vmem:[%s4542_s4 + $0x18] sm:$0xff] }
 0x105   :  { %2390 = vmatprep.subr.bf16.mxu0 %v3451_v30  ;;  %2165 = vmatprep.mubr.bf16.mxu1 %v3452_v31  ;;  %v2497_v30 = vrot.slane %v2492_v24, %v2496_v22  ;;  %v2517_v31 = vrot.slane %v2512_v25, %v2496_v22 }
 0x106   :  { %2377 = vmatprep.mubr.bf16.mxu0 %v3454_v32  ;;  %v2501_v32 = vrot.slane %v2492_v24, %v2500_v23 }
 0x107   :  { %2941 = vmatpush1.bf16.msra.mxu1 %v3449_v33 }
 0x108   :  { %2391 = vmatpush1.bf16.msra.mxu0 %v3449_v33  ;;  %2926 = vmatprep.subr.bf16.mxu1 %v3460_v34  ;;  %v2521_v33 = vrot.slane %v2512_v25, %v2500_v23 }
 0x109   :  { %2392 = vmatprep.subr.bf16.mxu0 %v3460_v34 }
 0x10a   :  { %2166 = vmatmul.mubr.bf16.gmra.mrb[4].mxu1 %v3456_v35  ;;  %v2536_v35 = vunpack.c.l.bf16 %v2532_v26 }
 0x10b   :  { %2378 = vmatmul.mubr.bf16.gmra.mrb[4].mxu0 %v3457_v36  ;;  %2942 = vmatpush1.bf16.msra.mxu1 %v3458_v37 }
 0x10c   :  { %2393 = vmatpush1.bf16.msra.mxu0 %v3458_v37  ;;  %2927 = vmatprep.subr.bf16.mxu1 %v3463_v38  ;;  %v2540_v37 = vunpack.c.l.bf16 %v2534_v27 }
 0x10d   :  { %2394 = vmatprep.subr.bf16.mxu0 %v3463_v38  ;;  %2420 = vmatprep.mubr.bf16.mxu0 %v3502_v39  ;;  %v2537_v38 = vunpack.c.h.bf16 %v2532_v26  ;;  %v2541_v39 = vunpack.c.h.bf16 %v2534_v27 }
 0x10e   :  { %2430 = vmatprep.mubr.bf16.mxu1 %v3505_v40 }
 0x10f   :  { %2943 = vmatpush1.bf16.msra.mxu1 %v3461_v41 }
 0x110   :  { %2395 = vmatpush1.bf16.msra.mxu0 %v3461_v41  ;;  %2928 = vmatprep.subr.bf16.mxu1 %v3466_v42 }
 0x111   :  { %2396 = vmatprep.subr.bf16.mxu0 %v3466_v42 }
 0x113   :  { %2944 = vmatpush1.bf16.msra.mxu1 %v3464_v43 }
 0x114   :  { %2397 = vmatpush1.bf16.msra.mxu0 %v3464_v43  ;;  %2929 = vmatprep.subr.bf16.mxu1 %v3469_v44 }
 0x115   :  { %2398 = vmatprep.subr.bf16.mxu0 %v3469_v44  ;;  %v2538_v44 = vunpack.c.l.bf16 %v2533_v28 }
 0x117   :  { %2945 = vmatpush1.bf16.msra.mxu1 %v3467_v45 }
 0x118   :  { %2399 = vmatpush1.bf16.msra.mxu0 %v3467_v45  ;;  %2930 = vmatprep.subr.bf16.mxu1 %v3472_v46  ;;  %v2542_v45 = vunpack.c.l.bf16 %v2535_v29 }
 0x119   :  { %2400 = vmatprep.subr.bf16.mxu0 %v3472_v46 }
 0x11b   :  { %2946 = vmatpush1.bf16.msra.mxu1 %v3470_v47 }
 0x11c   :  { %2401 = vmatpush1.bf16.msra.mxu0 %v3470_v47  ;;  %2931 = vmatprep.subr.bf16.mxu1 %v3475_v48 }
 0x11d   :  { %2402 = vmatprep.subr.bf16.mxu0 %v3475_v48 }
 0x11f   :  { %2947 = vmatpush1.bf16.msra.mxu1 %v3473_v49 }
 0x120   :  { %2403 = vmatpush1.bf16.msra.mxu0 %v3473_v49  ;;  %2932 = vmatprep.subr.bf16.mxu1 %v3478_v50 }
 0x121   :  { %2404 = vmatprep.subr.bf16.mxu0 %v3478_v50  ;;  %v2539_v50 = vunpack.c.h.bf16 %v2533_v28 }
 0x123   :  { %2948 = vmatpush1.bf16.msra.mxu1 %v3476_v51 }
 0x124   :  { %2405 = vmatpush1.bf16.msra.mxu0 %v3476_v51  ;;  %2933 = vmatprep.subr.bf16.mxu1 %v3481_v52  ;;  %v2543_v51 = vunpack.c.h.bf16 %v2535_v29 }
 0x125   :  { %2406 = vmatprep.subr.bf16.mxu0 %v3481_v52 }
 0x127   :  { %2949 = vmatpush1.bf16.msra.mxu1 %v3479_v53 }
 0x128   :  { %2407 = vmatpush1.bf16.msra.mxu0 %v3479_v53  ;;  %2934 = vmatprep.subr.bf16.mxu1 %v3484_v54 }
 0x129   :  { %2408 = vmatprep.subr.bf16.mxu0 %v3484_v54 }
 0x12b   :  { %2950 = vmatpush1.bf16.msra.mxu1 %v3482_v55 }
 0x12c   :  { %2409 = vmatpush1.bf16.msra.mxu0 %v3482_v55  ;;  %2935 = vmatprep.subr.bf16.mxu1 %v3487_v56 }
 0x12d   :  { %2410 = vmatprep.subr.bf16.mxu0 %v3487_v56 }
 0x12f   :  { %2951 = vmatpush1.bf16.msra.mxu1 %v3485_v57 }
 0x130   :  { %2411 = vmatpush1.bf16.msra.mxu0 %v3485_v57  ;;  %2936 = vmatprep.subr.bf16.mxu1 %v3490_v58 }
 0x131   :  { %2412 = vmatprep.subr.bf16.mxu0 %v3490_v58 }
 0x133   :  { %2952 = vmatpush1.bf16.msra.mxu1 %v3488_v59 }
 0x134   :  { %2413 = vmatpush1.bf16.msra.mxu0 %v3488_v59  ;;  %2937 = vmatprep.subr.bf16.mxu1 %v3493_v60 }
 0x135   :  { %2414 = vmatprep.subr.bf16.mxu0 %v3493_v60 }
 0x137   :  { %2953 = vmatpush1.bf16.msra.mxu1 %v3491_v61 }
 0x138   :  { %2415 = vmatpush1.bf16.msra.mxu0 %v3491_v61  ;;  %2938 = vmatprep.subr.bf16.mxu1 %v3496_v62 }
 0x139   :  { %2416 = vmatprep.subr.bf16.mxu0 %v3496_v62 }
 0x13b   :  { %2954 = vmatpush1.bf16.msra.mxu1 %v3494_v63 }
 0x13c   :  { %2417 = vmatpush1.bf16.msra.mxu0 %v3494_v63  ;;  %2939 = vmatprep.subr.bf16.mxu1 %v3499_v0 }
 0x13d   :  { %2418 = vmatprep.subr.bf16.mxu0 %v3499_v0 }
 0x13f   :  { %2955 = vmatpush1.bf16.msra.mxu1 %v3497_v1 }
 0x140   :  { %2419 = vmatpush1.bf16.msra.mxu0 %v3497_v1 }
 0x142   :  { %2431 = vmatmul.mubr.bf16.vlgmr.msra.gmra.mrb[8].mxu1 %v3503_v3 }
 0x143   :  { %2421 = vmatmul.mubr.bf16.vlgmr.msra.gmra.mrb[0].mxu0 %v3500_v2 }
 0x1d5   :  { %v2157_v4 = vpop.f32.mrb[0].mxu1 }
 0x1d6   :  { %v2159_v5 = vpop.f32.mrb[1].mxu1 }
 0x1d7   :  { %v2161_v6 = vpop.f32.mrb[2].mxu1 }
 0x1d8   :  { %v2163_v7 = vpop.f32.mrb[3].mxu1 }
 0x1dd   :  { %v2167_v8 = vpop.f32.mrb[4].mxu1 }
 0x1de   :  { %v2379_v9 = vpop.f32.mrb[4].mxu0  ;;  %v2169_v11 = vpop.f32.mrb[5].mxu1 }
 0x1df   :  { %v2960_v10 = vadd.f32 %v2379_v9, %v2167_v8  ;;  %v2381_v12 = vpop.f32.mrb[5].mxu0  ;;  %v2171_v14 = vpop.f32.mrb[6].mxu1 }
 0x1e0   :  { %v2962_v13 = vadd.f32 %v2381_v12, %v2169_v11  ;;  %v2383_v15 = vpop.f32.mrb[6].mxu0  ;;  %v2173_v17 = vpop.f32.mrb[7].mxu1 }
 0x1e1   :  { %v2964_v16 = vadd.f32 %v2383_v15, %v2171_v14  ;;  %v2385_v18 = vpop.f32.mrb[7].mxu0 }
 0x1e2   :  { %v2966_v19 = vadd.f32 %v2385_v18, %v2173_v17 }
 0x215   :  { %v2432_v36 = vpop.f32.mrb[8].mxu1 }
 0x216   :  { %v2422_v34 = vpop.f32.mrb[0].mxu0  ;;  %v2961_v41 = vadd.f32 %v2960_v10, %v2432_v36  ;;  %v2434_v43 = vpop.f32.mrb[9].mxu1 }
 0x217   :  { %v2956_v40 = vadd.f32 %v2422_v34, %v2157_v4  ;;  %v2424_v42 = vpop.f32.mrb[1].mxu0  ;;  %v2963_v47 = vadd.f32 %v2962_v13, %v2434_v43  ;;  %v2436_v49 = vpop.f32.mrb[10].mxu1 }
 0x218   :  { %v2957_v46 = vadd.f32 %v2424_v42, %v2159_v5  ;;  %v2426_v48 = vpop.f32.mrb[2].mxu0  ;;  %v2508_v53 = vmul.f32 %v2961_v41, %v2497_v30  ;;  %v2965_v55 = vadd.f32 %v2964_v16, %v2436_v49  ;;  %v2438_v57 = vpop.f32.mrb[11].mxu1 }
 0x219   :  { %v2504_v52 = vmul.f32 %v2956_v40, %v2497_v30  ;;  %v2958_v54 = vadd.f32 %v2426_v48, %v2161_v6  ;;  %v2428_v56 = vpop.f32.mrb[3].mxu0  ;;  %v2509_v59 = vmul.f32 %v2963_v47, %v2501_v32  ;;  %v2967_v61 = vadd.f32 %v2966_v19, %v2438_v57 }
 0x21a   :  { %v2505_v58 = vmul.f32 %v2957_v46, %v2501_v32  ;;  %v2959_v60 = vadd.f32 %v2428_v56, %v2163_v7  ;;  %v2528_v63 = vadd.f32 %v2517_v31, %v2508_v53  ;;  %v2510_v1 = vmul.f32 %v2965_v55, %v2497_v30 }
 0x21b   :  { %v2524_v62 = vadd.f32 %v2517_v31, %v2504_v52  ;;  %v2506_v0 = vmul.f32 %v2958_v54, %v2497_v30  ;;  %v2529_v3 = vadd.f32 %v2521_v33, %v2509_v59  ;;  %v2511_v5 = vmul.f32 %v2967_v61, %v2501_v32 }
 0x21c   :  { %v2525_v2 = vadd.f32 %v2521_v33, %v2505_v58  ;;  %v2507_v4 = vmul.f32 %v2959_v60, %v2501_v32  ;;  %v2548_v9 = vadd.f32 %v2540_v37, %v2528_v63  ;;  %v2530_v11 = vadd.f32 %v2517_v31, %v2510_v1 }
 0x21d   :  { %v2544_v8 = vadd.f32 %v2536_v35, %v2524_v62  ;;  %v2526_v10 = vadd.f32 %v2517_v31, %v2506_v0  ;;  %v2549_v12 = vadd.f32 %v2541_v39, %v2529_v3  ;;  %v2531_v14 = vadd.f32 %v2521_v33, %v2511_v5 }
 0x21e   :  { %v2545_v6 = vadd.f32 %v2537_v38, %v2525_v2  ;;  %v2527_v13 = vadd.f32 %v2521_v33, %v2507_v4  ;;  %v2556_v16 = vmax.f32 %v2548_v9, 0.0  ;;  %v2550_v17 = vadd.f32 %v2542_v45, %v2530_v11 }
 0x21f   :  { %v2552_v15 = vmax.f32 %v2544_v8, 0.0  ;;  %v2546_v7 = vadd.f32 %v2538_v44, %v2526_v10  ;;  %v2557_v19 = vmax.f32 %v2549_v12, 0.0  ;;  %v2551_v21 = vadd.f32 %v2543_v51, %v2531_v14 }
 0x220   :  { %v2553_v18 = vmax.f32 %v2545_v6, 0.0  ;;  %v2547_v20 = vadd.f32 %v2539_v50, %v2527_v13  ;;  %v2558_v23 = vmax.f32 %v2550_v17, 0.0 }
 0x221   :  { %v2554_v22 = vmax.f32 %v2546_v7, 0.0  ;;  %v2922_v25 = vpack.c.bf16 %v2557_v19, %v2556_v16  ;;  %v2559_v27 = vmax.f32 %v2551_v21, 0.0 }
 0x222   :  { %v2920_v24 = vpack.c.bf16 %v2553_v18, %v2552_v15  ;;  %v2555_v26 = vmax.f32 %v2547_v20, 0.0 }
 0x223   :  { %2586 = vst [vmem:[%s4543_s5 + $0x10] sm:$0xff] %v2922_v25  ;;  %v2923_v29 = vpack.c.bf16 %v2559_v27, %v2558_v23 }
 0x224   :  { %2584 = vst [vmem:[%s4543_s5] sm:$0xff] %v2920_v24  ;;  %v2921_v28 = vpack.c.bf16 %v2555_v26, %v2554_v22 }
 0x225   :  { %2587 = vst [vmem:[%s4543_s5 + $0x18] sm:$0xff] %v2923_v29 }
 0x226   :  { %2585 = vst [vmem:[%s4543_s5 + $0x8] sm:$0xff] %v2921_v28 }

</bundles_post_ra>
